<compile_context>
chip_gen: v7x
topology: tpu7x:2x2x1
jax: 0.10.0
libtpu: 0.0.40
codegen_flags: <defaults>
</compile_context>

<pallas_src>
import jax
import jax.numpy as jnp
from jax.experimental import pallas as pl
from jax.experimental.pallas import tpu as pltpu

IN_FEATURES = 86528       # = 128 * 676
HIDDEN = 100
OUT_FEATURES = 2
NUM_CORES = 2             # leading "parallel" grid axis; shards across the 2 TCs on v7x
TK = 21632                # = 128 * 169; K / (NUM_CORES * TK) = 2 k-steps per core


def _fc1_partial_kernel(x_ref, w1t_ref, o_ref, acc_ref):
    """Per-core partial of x @ w1 over this core's half of the K reduction."""
    k = pl.program_id(1)

    @pl.when(k == 0)
    def _():
        acc_ref[...] = jnp.zeros_like(acc_ref)

    # x chunk (B, TK) f32 -> bf16; w1t chunk (HIDDEN, TK) bf16, lane-dense along K.
    # Contract the last dim of both operands -> native bf16 MXU matmul with f32
    # accumulation; the streamed weight tile is used as-is (no transpose, no
    # padded lanes streamed from HBM).
    acc_ref[...] += jax.lax.dot_general(
        x_ref[...].astype(jnp.bfloat16),
        w1t_ref[...],
        dimension_numbers=(((1,), (1,)), ((), ())),
        preferred_element_type=jnp.float32,
    )

    @pl.when(k == pl.num_programs(1) - 1)
    def _():
        o_ref[...] = acc_ref[...]


def _epilogue_kernel(p_ref, b1_ref, w2_ref, b2_ref, o_ref):
    """Combine per-core partials, add fc1 bias, ReLU, fc4 (+ bias)."""
    acc = jnp.sum(p_ref[...], axis=0)                      # (B, HIDDEN) f32
    h = jnp.maximum(acc + b1_ref[...], 0.0)                # fc1 bias + ReLU
    out = jnp.dot(h, w2_ref[...], preferred_element_type=jnp.float32) + b2_ref[...]
    o_ref[...] = out.astype(o_ref.dtype)


def prepare_params(w1, b1, w2, b2):
    """One-time parameter preparation (do NOT run per forward call).

    w1 ((K, 100) f32) is stored transposed as (100, K) bf16: lane-dense along K so
    the dominant HBM stream carries only the 100 real hidden rows (no 100->128
    zero-padding is ever streamed) and halves bytes vs f32.
    """
    w1t = jnp.asarray(w1, jnp.float32).T.astype(jnp.bfloat16)      # (HIDDEN, K)
    b1p = jnp.asarray(b1, jnp.float32).reshape(1, HIDDEN)
    w2p = jnp.asarray(w2, jnp.float32)                             # (HIDDEN, OUT)
    b2p = jnp.asarray(b2, jnp.float32).reshape(1, OUT_FEATURES)
    return w1t, b1p, w2p, b2p


@jax.jit
def resnet2_forward(x, w1t, b1p, w2p, b2p):
    """x: (B, 86528) f32; params must come from prepare_params()."""
    B, K = x.shape
    assert K == IN_FEATURES and K % (NUM_CORES * TK) == 0
    ksteps = K // (NUM_CORES * TK)          # k-steps per core (= 2)

    cost = pl.CostEstimate(
        flops=2 * B * K * HIDDEN,
        transcendentals=0,
        bytes_accessed=(K * HIDDEN * 2                 # bf16 w1 stream (dominant)
                        + B * K * 4                    # f32 x stream
                        + NUM_CORES * B * HIDDEN * 4), # per-core partials out
    )

    # Per-core live VMEM (double-buffered): w1t ~ 2*(112*TK*2B) ~ 9.7 MiB,
    # x ~ 2*(8*TK*4B) ~ 1.4 MiB, plus tiny scratch/output.  Far under the 40 MiB
    # limit below and under v7x's 64 MiB physical VMEM; shrink TK if B grows.
    partials = pl.pallas_call(
        _fc1_partial_kernel,
        out_shape=jax.ShapeDtypeStruct((NUM_CORES, B, HIDDEN), jnp.float32),
        grid_spec=pltpu.PrefetchScalarGridSpec(
            num_scalar_prefetch=0,
            grid=(NUM_CORES, ksteps),
            in_specs=[
                pl.BlockSpec((B, TK), lambda c, k: (0, c * ksteps + k)),       # x
                pl.BlockSpec((HIDDEN, TK), lambda c, k: (0, c * ksteps + k)),  # w1t bf16
            ],
            out_specs=pl.BlockSpec((None, B, HIDDEN), lambda c, k: (c, 0, 0)),
            scratch_shapes=[pltpu.VMEM((B, HIDDEN), jnp.float32)],
        ),
        compiler_params=pltpu.CompilerParams(
            dimension_semantics=("parallel", "arbitrary"),  # cores x serial K-reduction
            vmem_limit_bytes=40 << 20,
        ),
        cost_estimate=cost,
    )(x, w1t)

    # Tiny combine + bias + ReLU + fc4 epilogue (runs once; costs nanoseconds).
    return pl.pallas_call(
        _epilogue_kernel,
        out_shape=jax.ShapeDtypeStruct((B, OUT_FEATURES), x.dtype),
        grid=(1,),
        in_specs=[
            pl.BlockSpec((NUM_CORES, B, HIDDEN), lambda i: (0, 0, 0)),
            pl.BlockSpec((1, HIDDEN), lambda i: (0, 0)),
            pl.BlockSpec((HIDDEN, OUT_FEATURES), lambda i: (0, 0)),
            pl.BlockSpec((1, OUT_FEATURES), lambda i: (0, 0)),
        ],
        out_specs=pl.BlockSpec((B, OUT_FEATURES), lambda i: (0, 0)),
    )(partials, b1p, w2p, b2p)


def init_params(key):
    """Deterministic init mimicking PyTorch nn.Linear default (uniform +-1/sqrt(fan_in))."""
    k1, k2, k3, k4 = jax.random.split(key, 4)
    bound1 = 1.0 / (IN_FEATURES ** 0.5)
    bound2 = 1.0 / (HIDDEN ** 0.5)
    w1 = jax.random.uniform(k1, (IN_FEATURES, HIDDEN), jnp.float32, -bound1, bound1)
    b1 = jax.random.uniform(k2, (HIDDEN,), jnp.float32, -bound1, bound1)
    w2 = jax.random.uniform(k3, (HIDDEN, OUT_FEATURES), jnp.float32, -bound2, bound2)
    b2 = jax.random.uniform(k4, (OUT_FEATURES,), jnp.float32, -bound2, bound2)
    return w1, b1, w2, b2


if __name__ == "__main__":
    key = jax.random.PRNGKey(0)
    k_x, k_p = jax.random.split(key)

    B = 2
    x = jax.random.normal(k_x, (B, IN_FEATURES), dtype=jnp.float32)
    w1, b1, w2, b2 = init_params(k_p)

    # One-time param prep (bf16 cast + transpose), then the fused kernels.
    w1t, b1p, w2p, b2p = prepare_params(w1, b1, w2, b2)
    out = resnet2_forward(x, w1t, b1p, w2p, b2p)
    out = jax.block_until_ready(out)
    assert out.shape == (B, OUT_FEATURES)

    # Reference 1: same bf16 rounding of x / w1 as the kernel, f32 math elsewhere
    # (HIGHEST precision so the reference matmuls don't add their own bf16 error).
    hp = jax.lax.Precision.HIGHEST
    x_b = x.astype(jnp.bfloat16).astype(jnp.float32)
    w1_b = w1.astype(jnp.bfloat16).astype(jnp.float32)
    h_ref = jnp.maximum(jnp.dot(x_b, w1_b, precision=hp) + b1, 0.0)
    ref_matched = jnp.dot(h_ref, w2, precision=hp) + b2
    assert jnp.allclose(out, ref_matched, rtol=2e-3, atol=2e-3), \
        "mismatch vs bf16-matched reference"

    # Reference 2: full-f32 PyTorch-equivalent math -> loose tolerance
    # (bf16 rounding of w1 / x chunks is an intentional deviation).
    h32 = jnp.maximum(jnp.dot(x, w1, precision=hp) + b1, 0.0)
    ref_f32 = jnp.dot(h32, w2, precision=hp) + b2
    assert jnp.allclose(out, ref_f32, rtol=1e-1, atol=1e-1), "mismatch vs f32 reference"

    print("KERNEL_OK")
</pallas_src>

<mosaic_0001>
module attributes {stable_mosaic.version = 11 : i64} {
  func.func @_epilogue_kernel(%arg0: i32, %arg1: memref<2x2x100xf32, #tpu.memory_space<vmem>>, %arg2: memref<1x100xf32, #tpu.memory_space<vmem>>, %arg3: memref<100x2xf32, #tpu.memory_space<vmem>>, %arg4: memref<1x2xf32, #tpu.memory_space<vmem>>, %arg5: memref<2x2xf32, #tpu.memory_space<vmem>>) attributes {dimension_semantics = [#tpu.dimension_semantics<arbitrary>], iteration_bounds = array<i64: 1>, scalar_prefetch = 0 : i64, scratch_operands = 0 : i64, tpu.core_type = #tpu.core_type<tc>, window_params = [{pipeline_mode = #tpu.pipeline_mode<synchronous>, transform_indices = @transform_0, window_bounds = array<i64: 2, 2, 100>}, {pipeline_mode = #tpu.pipeline_mode<synchronous>, transform_indices = @transform_1, window_bounds = array<i64: 1, 100>}, {pipeline_mode = #tpu.pipeline_mode<synchronous>, transform_indices = @transform_2, window_bounds = array<i64: 100, 2>}, {pipeline_mode = #tpu.pipeline_mode<synchronous>, transform_indices = @transform_3, window_bounds = array<i64: 1, 2>}, {pipeline_mode = #tpu.pipeline_mode<synchronous>, transform_indices = @transform_4, window_bounds = array<i64: 2, 2>}]} {
    %c0 = arith.constant 0 : index
    %c0_0 = arith.constant 0 : index
    %c0_1 = arith.constant 0 : index
    %0 = vector.load %arg1[%c0, %c0_0, %c0_1] : memref<2x2x100xf32, #tpu.memory_space<vmem>>, vector<2x2x100xf32>
    %cst = arith.constant dense<0.000000e+00> : vector<2x100xf32>
    %1 = vector.multi_reduction <add>, %0, %cst [0] : vector<2x2x100xf32> to vector<2x100xf32>
    %c0_2 = arith.constant 0 : index
    %c0_3 = arith.constant 0 : index
    %2 = vector.load %arg2[%c0_2, %c0_3] : memref<1x100xf32, #tpu.memory_space<vmem>>, vector<1x100xf32>
    %3 = vector.broadcast %2 : vector<1x100xf32> to vector<2x100xf32>
    %4 = arith.addf %1, %3 : vector<2x100xf32>
    %cst_4 = arith.constant 0.000000e+00 : f32
    %5 = vector.broadcast %cst_4 : f32 to vector<2x100xf32>
    %6 = arith.maximumf %4, %5 : vector<2x100xf32>
    %c0_5 = arith.constant 0 : index
    %c0_6 = arith.constant 0 : index
    %7 = vector.load %arg3[%c0_5, %c0_6] : memref<100x2xf32, #tpu.memory_space<vmem>>, vector<100x2xf32>
    %cst_7 = arith.constant dense<0.000000e+00> : vector<2x2xf32>
    %8 = tpu.matmul %6, %7, %cst_7 {dimension_numbers = #tpu.dot_dimension_numbers<[1], [0], [0], [1], [0, 0, 1, 1], [], []>} : vector<2x100xf32>, vector<100x2xf32>, vector<2x2xf32> -> vector<2x2xf32>
    %c0_8 = arith.constant 0 : index
    %c0_9 = arith.constant 0 : index
    %9 = vector.load %arg4[%c0_8, %c0_9] : memref<1x2xf32, #tpu.memory_space<vmem>>, vector<1x2xf32>
    %10 = vector.broadcast %9 : vector<1x2xf32> to vector<2x2xf32>
    %11 = arith.addf %8, %10 : vector<2x2xf32>
    %c0_10 = arith.constant 0 : index
    %c0_11 = arith.constant 0 : index
    %12 = vector.load %arg5[%c0_10, %c0_11] : memref<2x2xf32, #tpu.memory_space<vmem>>, vector<2x2xf32>
    tpu.vector_store %arg5[%c0_10, %c0_11], %11 {strides = array<i32>} : memref<2x2xf32, #tpu.memory_space<vmem>>, vector<2x2xf32>,
    return
  }
  func.func @transform_0(%arg0: i32) -> (i32, i32, i32) {
    %c0_i32 = arith.constant 0 : i32
    %c0_i32_0 = arith.constant 0 : i32
    %c0_i32_1 = arith.constant 0 : i32
    %c0_i32_2 = arith.constant 0 : i32
    return %c0_i32, %c0_i32_0, %c0_i32_1 : i32, i32, i32
  }
  func.func @transform_1(%arg0: i32) -> (i32, i32) {
    %c0_i32 = arith.constant 0 : i32
    %c0_i32_0 = arith.constant 0 : i32
    %c0_i32_1 = arith.constant 0 : i32
    return %c0_i32, %c0_i32_0 : i32, i32
  }
  func.func @transform_2(%arg0: i32) -> (i32, i32) {
    %c0_i32 = arith.constant 0 : i32
    %c0_i32_0 = arith.constant 0 : i32
    %c0_i32_1 = arith.constant 0 : i32
    return %c0_i32, %c0_i32_0 : i32, i32
  }
  func.func @transform_3(%arg0: i32) -> (i32, i32) {
    %c0_i32 = arith.constant 0 : i32
    %c0_i32_0 = arith.constant 0 : i32
    %c0_i32_1 = arith.constant 0 : i32
    return %c0_i32, %c0_i32_0 : i32, i32
  }
  func.func @transform_4(%arg0: i32) -> (i32, i32) {
    %c0_i32 = arith.constant 0 : i32
    %c0_i32_0 = arith.constant 0 : i32
    %c0_i32_1 = arith.constant 0 : i32
    return %c0_i32, %c0_i32_0 : i32, i32
  }
}

module attributes {stable_mosaic.version = 11 : i64} {
  func.func @_fc1_partial_kernel(%arg0: i32, %arg1: i32, %arg2: memref<2x21632xf32, #tpu.memory_space<vmem>>, %arg3: memref<100x21632xbf16, #tpu.memory_space<vmem>>, %arg4: memref<1x2x100xf32, #tpu.memory_space<vmem>>, %arg5: memref<2x100xf32, #tpu.memory_space<vmem>>) attributes {dimension_semantics = [#tpu.dimension_semantics<parallel>, #tpu.dimension_semantics<arbitrary>], iteration_bounds = array<i64: 2, 2>, scalar_prefetch = 0 : i64, scratch_operands = 1 : i64, tpu.core_type = #tpu.core_type<tc>, window_params = [{transform_indices = @transform_0, window_bounds = array<i64: 2, 21632>}, {transform_indices = @transform_1, window_bounds = array<i64: 100, 21632>}, {transform_indices = @transform_2, window_bounds = array<i64: 1, 2, 100>}]} {
    %c0_i32 = arith.constant 0 : i32
    %0 = arith.cmpi eq, %arg1, %c0_i32 : i32
    %1 = arith.extui %0 : i1 to i32
    %c0_i32_0 = arith.constant 0 : i32
    %2 = arith.cmpi ne, %1, %c0_i32_0 : i32
    scf.if %2 {
      %cst_9 = arith.constant 0.000000e+00 : f32
      %13 = vector.broadcast %cst_9 : f32 to vector<2x100xf32>
      %c0_10 = arith.constant 0 : index
      %c0_11 = arith.constant 0 : index
      %14 = vector.load %arg5[%c0_10, %c0_11] : memref<2x100xf32, #tpu.memory_space<vmem>>, vector<2x100xf32>
      tpu.vector_store %arg5[%c0_10, %c0_11], %13 {strides = array<i32>} : memref<2x100xf32, #tpu.memory_space<vmem>>, vector<2x100xf32>,
    } else {
    }
    %c0 = arith.constant 0 : index
    %c0_1 = arith.constant 0 : index
    %3 = vector.load %arg5[%c0, %c0_1] : memref<2x100xf32, #tpu.memory_space<vmem>>, vector<2x100xf32>
    %c0_2 = arith.constant 0 : index
    %c0_3 = arith.constant 0 : index
    %4 = vector.load %arg2[%c0_2, %c0_3] : memref<2x21632xf32, #tpu.memory_space<vmem>>, vector<2x21632xf32>
    %5 = arith.truncf %4 : vector<2x21632xf32> to vector<2x21632xbf16>
    %c0_4 = arith.constant 0 : index
    %c0_5 = arith.constant 0 : index
    %6 = vector.load %arg3[%c0_4, %c0_5] : memref<100x21632xbf16, #tpu.memory_space<vmem>>, vector<100x21632xbf16>
    %cst = arith.constant dense<0.000000e+00> : vector<2x100xf32>
    %7 = tpu.matmul %5, %6, %cst {dimension_numbers = #tpu.dot_dimension_numbers<[1], [1], [0], [0], [0, 0, 1, 0], [], []>} : vector<2x21632xbf16>, vector<100x21632xbf16>, vector<2x100xf32> -> vector<2x100xf32>
    %8 = arith.addf %3, %7 : vector<2x100xf32>
    %c0_6 = arith.constant 0 : index
    %c0_7 = arith.constant 0 : index
    %9 = vector.load %arg5[%c0_6, %c0_7] : memref<2x100xf32, #tpu.memory_space<vmem>>, vector<2x100xf32>
    tpu.vector_store %arg5[%c0_6, %c0_7], %8 {strides = array<i32>} : memref<2x100xf32, #tpu.memory_space<vmem>>, vector<2x100xf32>,
    %c1_i32 = arith.constant 1 : i32
    %10 = arith.cmpi eq, %arg1, %c1_i32 : i32
    %11 = arith.extui %10 : i1 to i32
    %c0_i32_8 = arith.constant 0 : i32
    %12 = arith.cmpi ne, %11, %c0_i32_8 : i32
    scf.if %12 {
      %c0_9 = arith.constant 0 : index
      %c0_10 = arith.constant 0 : index
      %13 = vector.load %arg5[%c0_9, %c0_10] : memref<2x100xf32, #tpu.memory_space<vmem>>, vector<2x100xf32>
      %c0_11 = arith.constant 0 : index
      %c0_12 = arith.constant 0 : index
      %c0_13 = arith.constant 0 : index
      %14 = vector.load %arg4[%c0_11, %c0_12, %c0_13] : memref<1x2x100xf32, #tpu.memory_space<vmem>>, vector<1x2x100xf32>
      %15 = vector.shape_cast %14 : vector<1x2x100xf32> to vector<2x100xf32>
      %16 = vector.shape_cast %13 : vector<2x100xf32> to vector<1x2x100xf32>
      tpu.vector_store %arg4[%c0_11, %c0_12, %c0_13], %16 {strides = array<i32>} : memref<1x2x100xf32, #tpu.memory_space<vmem>>, vector<1x2x100xf32>,
    } else {
    }
    return
  }
  func.func @transform_0(%arg0: i32, %arg1: i32) -> (i32, i32) {
    %c2_i32 = arith.constant 2 : i32
    %0 = arith.muli %arg0, %c2_i32 : i32
    %1 = arith.addi %0, %arg1 : i32
    %c0_i32 = arith.constant 0 : i32
    %c0_i32_0 = arith.constant 0 : i32
    return %c0_i32, %1 : i32, i32
  }
  func.func @transform_1(%arg0: i32, %arg1: i32) -> (i32, i32) {
    %c2_i32 = arith.constant 2 : i32
    %0 = arith.muli %arg0, %c2_i32 : i32
    %1 = arith.addi %0, %arg1 : i32
    %c0_i32 = arith.constant 0 : i32
    %c0_i32_0 = arith.constant 0 : i32
    return %c0_i32, %1 : i32, i32
  }
  func.func @transform_2(%arg0: i32, %arg1: i32) -> (i32, i32, i32) {
    %c0_i32 = arith.constant 0 : i32
    %c0_i32_0 = arith.constant 0 : i32
    %c0_i32_1 = arith.constant 0 : i32
    return %arg0, %c0_i32, %c0_i32_0 : i32, i32, i32
  }
}

</mosaic_0001>

<bundles_post_ra>
// kernel: resnet2_forward.3
= control target key start
LH: loop header
LB: loop body
LE: loop exit
PB: predicated region body
PF: predicated region fallthrough
CT: control target
= control target key end

     0   :  { %v240_v3 = vmov 0.0|0.0   ;;  %vm241_vm0 = vmmov 0   ;;  %v242_v6 = vmov 0.0   ;;  %s332_s0 = inlined_call_operand.vmem [shape: f32[2,2,100], index: 0, kind: input, shape index: {}]   ;;  %s333_s1 = inlined_call_operand.vmem [shape: f32[1,100], index: 1, kind: input, shape index: {}]   ;;  %s334_s2 = inlined_call_operand.vmem [shape: f32[100,2], index: 2, kind: input, shape index: {}]   ;;  %s335_s3 = inlined_call_operand.vmem [shape: f32[1,2], index: 3, kind: input, shape index: {}]   ;;  %s336_s4 = inlined_call_operand.hbm [shape: f32[2,2], index: 4, kind: output, shape index: {}]  }
   0x1   :  { %v33_v0 = vld [vmem:[%s334_s2] sm:$0xff]  ;;  %v34_v1 = vld [vmem:[%s334_s2 + $0x8] sm:$0xff]  ;;  %v35_v2 = vld [vmem:[%s334_s2 + $0x10] sm:$0xff]  ;;  %194 = vmatprep.subr.bf16.mxu0 %v240_v3  ;;  %191 = vmatprep.mubr.msk.f32.mxu0 %vm241_vm0, %v242_v6 }
   0x2   :  { %v195_v4 = vpack.c.bf16 %v34_v1, %v33_v0  ;;  %v36_v5 = vld [vmem:[%s334_s2 + $0x18] sm:$0xff]  ;;  %v37_v8 = vld [vmem:[%s334_s2 + $0x20] sm:$0xff]  ;;  %v38_v9 = vld [vmem:[%s334_s2 + $0x28] sm:$0xff] }
   0x3   :  { %v198_v7 = vpack.c.bf16 %v36_v5, %v35_v2 }
   0x4   :  { %196 = vmatpush3.bf16.msra.mxu0 %v195_v4 }
   0x5   :  { %197 = vmatprep.subr.bf16.mxu0 %v240_v3 }
   0x6   :  { %9 = vsyncpa [#allocation3], 0  ;;  %v201_v10 = vpack.c.bf16 %v38_v9, %v37_v8  ;;  %v39_v11 = vld [vmem:[%s334_s2 + $0x30] sm:$0xff]  ;;  %v40_v12 = vld [vmem:[%s334_s2 + $0x38] sm:$0xff]  ;;  %vm20_vm1 = vcmask 812032   ;;  %vm57_vm2 = vcmask 1043456  }
   0x7   :  { %v18_v13 = vld [vmem:[%s332_s0] sm:$0x3]  ;;  %v19_v14 = vld [vmem:[%s332_s0 + $0x2] sm:$0x3]  ;;  %v204_v15 = vpack.c.bf16 %v40_v12, %v39_v11  ;;  %v42_v17 = vld [vmem:[%s334_s2 + $0x48] sm:$0xff]  ;;  %vm53_vm3 = vcmask 818176  }
   0x8   :  { %199 = vmatpush3.bf16.msra.mxu0 %v198_v7  ;;  %v41_v16 = vld [vmem:[%s334_s2 + $0x40] sm:$0xff]  ;;  %v21_v18 = vsel %vm20_vm1, %v18_v13, 0.0  ;;  %v22_v19 = vsel %vm20_vm1, %v19_v14, 0.0  ;;  %v43_v21 = vld [vmem:[%s334_s2 + $0x50] sm:$0xff]  ;;  %v44_v22 = vld [vmem:[%s334_s2 + $0x58] sm:$0xff]  ;;  %vm131_vm4 = vcmask 9216  }
   0x9   :  { %200 = vmatprep.subr.bf16.mxu0 %v240_v3  ;;  %v207_v20 = vpack.c.bf16 %v42_v17, %v41_v16  ;;  %v23_v23 = vadd.f32 %v22_v19, %v21_v18  ;;  %v147_v24 = vld [vmem:[%s333_s1] ss:$0 sm:$0xff]  ;;  %v210_v25 = vpack.c.bf16 %v44_v22, %v43_v21  ;;  %s243_s1 = smov [#allocation2]  }
   0xa   :  { %v45_v27 = vld [vmem:[%s334_s2 + $0x60] sm:$0xf]  ;;  %s139_s22 = sshll.u32 %s243_s1, 4  ;;  %s140_s22 = int_to_ptr.vmem [resolvable:$true] %s139_s22 }
   0xb   :  { %v31_v26 = vadd.f32 %v147_v24, %v23_v23  ;;  %v148_v29 = vld [vmem:[%s335_s3] ss:$0 sm:$0xff]  ;;  %s216_s23 = scalar_lea.vmem %s140_s22, 32  ;;  %p221_p1 = scmp.lt.s32.totalorder %s140_s22, %s140_s22 }
   0xc   :  { %202 = vmatpush3.bf16.msra.mxu0 %v201_v10  ;;  %p217_p0 = scmp.ne.s32.totalorder %s140_s22, %s216_s23  ;;  %p222_p2 = scmp.lt.s32.totalorder %s216_s23, %s216_s23 }
   0xd   :  { %203 = vmatprep.subr.bf16.mxu0 %v240_v3  ;;  %v32_v28 = vmax.f32 %v31_v26, 0.0 }
   0xe   :  { %p223_p3 = por %p222_p2, %p221_p1 }
  0x10   :  { %205 = vmatpush3.bf16.msra.mxu0 %v204_v15  ;;  %p224_p4 = pnand %p223_p3, %p217_p0 }
  0x11   :  { %206 = vmatprep.subr.bf16.mxu0 %v240_v3 }
  0x14   :  { %208 = vmatpush3.bf16.msra.mxu0 %v207_v20 }
  0x15   :  { %209 = vmatprep.subr.bf16.mxu0 %v240_v3 }
  0x18   :  { %211 = vmatpush3.bf16.msra.mxu0 %v210_v25 }
  0x19   :  { %189 = vmatprep.subr.mxu0 %v242_v6 }
  0x1c   :  { %190 = vmatpush3.msk.msra.mxu0 %vm57_vm2, %v45_v27 }
  0x1d   :  { %192 = vmatmul.mubr.msk.f32.vlgmr.msra.gmra.mrb[0].mxu0 %vm53_vm3, %v32_v28 }
  0xf0   :  { %v127_v30 = vpop.f32.mrb[0].mxu0 }
  0xf1   :  { %v128_v31 = vadd.f32 %v148_v29, %v127_v30  ;;  %v193_v32 = vpop.f32.mrb[1].mxu0 }
  0xf3   :  { %132 = vst.msk [vmem:[#allocation2] sm:$0x3] %vm131_vm4, %v128_v31 }
  0xf4   :  { %227 = shalt.err (!%p224_p4)
}
  0xf5   :  { %s228_s25 = scalar_lea.hbm %s336_s4, 32 }
  0xf6   :  { %p229_p5 = scmp.ne.s32.totalorder %s336_s4, %s228_s25  ;;  %p232_p6 = scmp.lt.u32.totalorder %s228_s25, %s336_s4 }
  0xf8   :  { %p234_p7 = pnand %p232_p6, %p229_p5 }
  0xfa   :  { %237 = shalt.err (!%p234_p7)
}
  0xfb   :  { %142 = dma.vmem_to_hbm [thread:$0]  %s140_s22, 32, %s336_s4, [#allocation3]  }
  0xfc   :  { %238 = dma.done.wait [#allocation3], 32  }
  0xfd   :  { %239 = vsyncadd [#allocation3], 4294967264 }
  0xfe   :  { %146 = vsyncpa [#allocation3], 1 }

// kernel: resnet2_forward.2
= control target key start
LH: loop header
LB: loop body
LE: loop exit
PB: predicated region body
PF: predicated region fallthrough
CT: control target
= control target key end

     0   :  { %7 = vsyncpa [#allocation4], 0  ;;  %s16899_s0 = inlined_call_operand.hbm [shape: f32[2,86528], index: 0, kind: input, shape index: {}]   ;;  %s16900_s1 = inlined_call_operand.hbm [shape: bf16[100,86528], index: 1, kind: input, shape index: {}]   ;;  %s16901_s2 = inlined_call_operand.vmem [shape: f32[2,2,100], index: 2, kind: output, shape index: {}]  }
   0x1   :  { %9 = vsyncpa [#allocation4 + $0x1], 0 }
   0x2   :  { %10 = vsyncpa [#allocation6], 0 }
   0x3   :  { %12 = vsyncpa [#allocation6 + $0x1], 0  ;;  %s14870_s9 = smov 0   ;;  %s14872_s10 = smov 0  }
   0x4   :  { %s14874_s11 = smov 0   ;;  %s14876_s12 = smov 0  }
   0x5   :  { %s14878_s13 = smov 0   ;;  %s14880_s14 = smov 0  }
   0x6   :  { %s14882_s15 = smov 0   ;;  %s14884_s16 = smov 0  }
   0x7 LB: > { %s11668_s17 = sadd.s32 4294967295, %s14844_s16   ;;  %s27_s18 = sadd.s32 1, %s14836_s14  ;;  %s14844_s16 = sphi %s14884_s16, %s18_s16   ;;  %s14840_s15 = sphi %s14882_s15, %s16913_s15   ;;  %s14836_s14 = sphi %s14880_s14, %s16912_s14   ;;  %s14832_s13 = sphi %s14878_s13, %s16911_s13   ;;  %s14828_s12 = sphi %s14876_s12, %s16910_s12   ;;  %s14824_s11 = sphi %s14874_s11, %s16909_s11   ;;  %s14820_s10 = sphi %s14872_s10, %s16908_s10   ;;  %s14816_s9 = sphi %s14870_s9, %s16907_s9  }
   0x8   : > { %p28_p0 = scmp.ge.s32.totalorder %s27_s18, 2  ;;  %s30_s19 = sadd.s32 1, %s14840_s15 }
   0x9   : > { %s11670_s20 = sshll.u32 %s14840_s15, 1  ;;  %s41_s21 = sadd.s32 1, %s14824_s11 }
   0xa   : > { %s16915_s18 = smov (%p28_p0, %s27_s18), 0  ;;  %s16917_s19 = smov (!%p28_p0, %s30_s19), %s14840_s15 }
   0xb   : > { %s14917_s22 = sadd.s32 %s14836_s14, %s11670_s20  ;;  %p48_p1 = scmp.ne.s32.totalorder %s14824_s11, %s14820_s10 }
   0xc   : > { %p32_p2 = scmp.ge.s32.totalorder %s16917_s19, 2  ;;  %p49_p3 = scmp.eq.s32.totalorder %s14844_s16, 0 }
   0xd   : > { %p54_p4 = scmp.ne.s32.totalorder %s14820_s10, %s14816_s9  ;;  %p55_p5 = scmp.eq.s32.totalorder %s11668_s17, 0 }
   0xe   : > { %s16919_s19 = smov (%p32_p2, %s16917_s19), 0  ;;  %p50_p6 = por %p49_p3, %p48_p1 }
   0xf   : > { %p14925_p7 = por %p55_p5, %p54_p4  ;;  %s11671_s24 = sshll.u32 %s16919_s19, 1 }
  0x10   : > { %s37_s25 = sadd.s32 %s11671_s24, %s16915_s18  ;;  %p12913_p8 = scmp.lt.s32.totalorder %s14844_s16, 4 }
  0x11   : > { %s16903_s23 = scalar_select %p14925_p7, 1, 0 }
  0x12   : > { %s38_s26 = ssub.s32 %s14917_s22, %s37_s25  ;;  %s14934_s27 = sand.u32 1, %s14824_s11  }
  0x13   : > { %p39_p9 = scmp.eq.s32.totalorder %s38_s26, 0  ;;  %s12898_s28 = smul.u32 338, %s14934_s27 }
  0x14   : > { %p14937_p10 = pnand %p12913_p8, %p50_p6  ;;  %s12870_s3 = smul.u32 5408, %s14917_s22 }
  0x15   : > { %s14942_s30 = scalar_select %p39_p9, %s14824_s11, %s41_s21  }
  0x16   : > { %s138_s4 = scalar_lea.vmem [#allocation3], %s12898_s28  ;;  %s14948_s8 = scalar_lea.hbm %s16899_s0, %s12870_s3 }
  0x17   : > { %s148_s5 = sshll.u32 %s138_s4, 4  ;;  %s135_s9 = scalar_lea.sflag [#allocation4], %s14934_s27  ;;  %s14950_s5 = int_to_ptr.vmem [resolvable:$true] %s148_s5 }
  0x18   : > { %s14714_s17 = scalar_lea.hbm %s14948_s8, 5408  ;;  %p14716_p12 = pneg %p14937_p10 }
  0x19   : > { %p14715_p11 = scmp.ne.s32.totalorder %s14948_s8, %s14714_s17  ;;  %s14719_s24 = scalar_lea.hbm %s16899_s0, 21632 }
  0x1a   : > { %p14720_p1 = scmp.lt.u32.totalorder %s14948_s8, %s16899_s0  ;;  %p14721_p2 = scmp.lt.u32.totalorder %s14719_s24, %s14714_s17 }
  0x1b   : > { %p14717_p13 = pnand %p14716_p12, %p14715_p11  ;;  %p14723_p4 = scmp.lt.u32.totalorder %s14714_s17, %s14948_s8 }
  0x1c   : > { %p14722_p3 = por %p14721_p2, %p14720_p1 }
  0x1d   : > { %p14718_p0 = pneg %p14717_p13 }
  0x1e   : > { %p14724_p5 = por %p14723_p4, %p14722_p3 }
  0x20   : > { %p14725_p6 = pnand %p14724_p5, %p14718_p0 }
  0x22   : > { %14728 = shalt.err (!%p14725_p6)
}
  0x23   : > { %s14729_s28 = scalar_lea.vmem %s14950_s5, 5408  ;;  %s14846_s3 = smov [#allocation3]  }
  0x24   : > { %p14730_p8 = scmp.ne.s32.totalorder %s14950_s5, %s14729_s28  ;;  %s14734_s4 = sshll.u32 %s14846_s3, 4  ;;  %s14735_s4 = int_to_ptr.vmem [resolvable:$false] %s14734_s4 }
  0x25   : > { %s14736_s6 = scalar_lea.vmem %s14735_s4, 10816  ;;  %p14737_p13 = scmp.lt.s32.totalorder %s14950_s5, %s14735_s4 }
  0x26   : > { %p14732_p9 = pnand %p14730_p8, %p14716_p12  ;;  %p14738_p1 = scmp.lt.s32.totalorder %s14736_s6, %s14729_s28 }
  0x28   : > { %p14733_p11 = pneg %p14732_p9  ;;  %p14739_p2 = por %p14738_p1, %p14737_p13 }
  0x2a   : > { %p14740_p3 = pnand %p14739_p2, %p14733_p11 }
  0x2c   : > { %14743 = shalt.err (!%p14740_p3)
}
  0x2d   : > { %12909 = dma.hbm_to_vmem [thread:$0]  (!%p14937_p10), %s14948_s8, 5408, %s14950_s5, %s135_s9  }
  0x2e   : > { %s12899_s7 = smul.u32 8788, %s14934_s27  ;;  %p11680_p0 = scmp.ge.s32.totalorder %s14844_s16, 1 }
  0x2f   : > { %s12871_s17 = smul.u32 10816, %s14917_s22  ;;  %p176_p4 = scmp.lt.s32.totalorder %s14844_s16, 5 }
  0x30   : > { %s159_s25 = scalar_lea.vmem [#allocation5], %s12899_s7  ;;  %s156_s22 = scalar_lea.sflag [#allocation6], %s14934_s27 }
  0x31   : > { %s14985_s24 = scalar_lea.hbm %s16900_s1, %s12871_s17  ;;  %s168_s26 = sshll.u32 %s159_s25, 4  ;;  %s14991_s26 = int_to_ptr.vmem [resolvable:$true] %s168_s26 }
  0x32   : > { %p14987_p5 = pnand %p11680_p0, %p176_p4  ;;  %s14744_s5 = scalar_lea.hbm %s14985_s24, 140608 }
  0x33   : > { %p14745_p6 = scmp.ne.s32.totalorder %s14985_s24, %s14744_s5  ;;  %s14749_s3 = scalar_lea.hbm %s16900_s1, 562432 }
  0x34   : > { %p14750_p11 = scmp.lt.u32.totalorder %s14985_s24, %s16900_s1  ;;  %p14751_p13 = scmp.lt.u32.totalorder %s14749_s3, %s14744_s5 }
  0x35   : > { %p14747_p8 = pnand %p14745_p6, %p14716_p12  ;;  %p14753_p2 = scmp.lt.u32.totalorder %s14744_s5, %s14985_s24 }
  0x36   : > { %p14752_p1 = por %p14751_p13, %p14750_p11 }
  0x37   : > { %p14748_p9 = pneg %p14747_p8 }
  0x38   : > { %p14754_p3 = por %p14753_p2, %p14752_p1 }
  0x3a   : > { %p14755_p0 = pnand %p14754_p3, %p14748_p9 }
  0x3c   : > { %14758 = shalt.err (!%p14755_p0)
}
  0x3d   : > { %s14759_s7 = scalar_lea.vmem %s14991_s26, 140608  ;;  %s14847_s17 = smov [#allocation5]  }
  0x3e   : > { %p14760_p4 = scmp.ne.s32.totalorder %s14991_s26, %s14759_s7  ;;  %s14764_s20 = sshll.u32 %s14847_s17, 4  ;;  %s14765_s20 = int_to_ptr.vmem [resolvable:$false] %s14764_s20 }
  0x3f   : > { %s14766_s21 = scalar_lea.vmem %s14765_s20, 281216  ;;  %p14767_p7 = scmp.lt.s32.totalorder %s14991_s26, %s14765_s20 }
  0x40   : > { %p14762_p6 = pnand %p14760_p4, %p14716_p12  ;;  %p14768_p11 = scmp.lt.s32.totalorder %s14766_s21, %s14759_s7 }
  0x42   : > { %p14763_p8 = pneg %p14762_p6  ;;  %p14769_p13 = por %p14768_p11, %p14767_p7 }
  0x44   : > { %p14770_p1 = pnand %p14769_p13, %p14763_p8 }
  0x46   : > { %14773 = shalt.err (!%p14770_p1)
}
  0x47   : > { %s14848_s25 = smov 43264   ;;  %s14849_s5 = smov 10816  }
  0x48   : > { %s14850_s8 = smov 676   ;;  %180 = sbr.rel (%p14987_p5) target bundleno = 2727 (0xaa7), region = 28 }
  0x49   : > { %12912 = dma.hbm_to_vmem [thread:$0]  (!%p14937_p10), %s14985_s24, 140608, %s14991_s26, %s156_s22, %s14848_s25, %s14849_s5, %s14850_s8  }
  0x4a   : > { %s182_s9 = sand.u32 (!%p14987_p5), 1, %s14820_s10   ;;  %p16906_p7 = scmp.ne.s32.totalorder (!%p14987_p5), %s16903_s23, 0 }
  0x4b   : > { %s12900_s3 = smul.u32 (!%p14987_p5), 338, %s182_s9  ;;  %s183_s4 = scalar_lea.sflag (!%p14987_p5), [#allocation4], %s182_s9 }
  0x4d   : > { %s15022_s6 = scalar_lea.vmem (!%p14987_p5), [#allocation3], %s12900_s3 }
  0x4f   : > { %14807 = dma.done.wait (%p16906_p7), %s183_s4, 5408  }
  0x50   : > { %14809 = vsyncadd (%p16906_p7), %s183_s4, 4294961888  ;;  %s12901_s7 = smul.u32 8788, %s182_s9  ;;  %s192_s29 = scalar_lea.sflag [#allocation6], %s182_s9 }
  0x52   : > { %s15028_s27 = scalar_lea.vmem [#allocation5], %s12901_s7 }
  0x53   : > { %14811 = dma.done.wait (%p16906_p7), %s192_s29, 140608  }
  0x54   : > { %14813 = vsyncadd (%p16906_p7), %s192_s29, 4294826688  ;;  %p226_p10 = scmp.lt.s32.totalorder %s14832_s13, 1  ;;  %p11682_p12 = scmp.ne.s32.totalorder %s14828_s12, 0 }
  0x55   : > { %vm235_vm0 = vcmask (!%p11682_p12), 812032   ;;  %v14851_v0 = vmov (!%p11682_p12), 0.0  }
  0x56   : > { %s16921_s13 = smov (!%p226_p10, %s14832_s13), 1  ;;  %234 = sbr.rel (%p11682_p12) target bundleno = 93 (0x5d), region = 40 }
  0x57   : > { %s11681_s24 = sshll.u32 %s16921_s13, 1  ;;  %236 = vst.msk [vmem:[#allocation2] sm:$0x3] (!%p11682_p12), %vm235_vm0, %v14851_v0 }
  0x58   : > { %s15039_s22 = scalar_lea.vmem %s16901_s2, %s11681_s24 }
  0x5d PF: > { %v12985_v1 = vld [vmem:[%s15028_s27 + $0x4] ss:$676 sps:$4 sm:$0xff]   ;;  %v12988_v3 = vld [vmem:[%s15028_s27 + $0xc] ss:$676 sps:$4 sm:$0xff]   ;;  %v12994_v6 = vld [vmem:[%s15028_s27 + $0x554] ss:$676 sps:$4 sm:$0xff]   ;;  %v328_v9 = vlaneseq }
  0x5e   : > { %v12987_v2 = vld [vmem:[%s15028_s27] ss:$676 sps:$4 sm:$0xff]   ;;  %8156 = vmatprep.subr.bf16.mxu0 %v12985_v1  ;;  %v12990_v4 = vld [vmem:[%s15028_s27 + $0x8] ss:$676 sps:$4 sm:$0xff]   ;;  %8196 = vmatprep.subr.bf16.mxu1 %v12988_v3  ;;  %v14852_v7 = vmov 1983009808  }
  0x5f   : > { %8157 = vmatpush1.bf16.xpose.msra.mxu0 %v12987_v2  ;;  %v12991_v5 = vld [vmem:[%s15028_s27 + $0x54c] ss:$676 sps:$4 sm:$0xff]   ;;  %8197 = vmatpush1.bf16.xpose.msra.mxu1 %v12990_v4  ;;  %v326_v8 = vunpack.c.l.s4 %v14852_v7  ;;  %v12997_v11 = vld [vmem:[%s15028_s27 + $0xa94] ss:$676 sps:$4 sm:$0xff]   ;;  %v13000_v13 = vld [vmem:[%s15028_s27 + $0xa9c] ss:$676 sps:$4 sm:$0xff]  }
  0x60   : > { %8158 = vmatprep.subr.bf16.mxu0 %v12991_v5  ;;  %8198 = vmatprep.subr.bf16.mxu1 %v12994_v6  ;;  %v12993_v10 = vld [vmem:[%s15028_s27 + $0x548] ss:$676 sps:$4 sm:$0xff]   ;;  %v12996_v12 = vld [vmem:[%s15028_s27 + $0x550] ss:$676 sps:$4 sm:$0xff]   ;;  %v329_v15 = vshrl.u32 %v328_v9, 7  ;;  %v238_v19 = vld [vmem:[%s15022_s6] sm:$0xff] }
  0x61   : > { %v327_v14 = vunpack.c.0.s8 %v326_v8  ;;  %v12999_v17 = vld [vmem:[%s15028_s27 + $0xa90] ss:$676 sps:$4 sm:$0xff]   ;;  %v13003_v18 = vld [vmem:[%s15028_s27 + $0xfdc] ss:$676 sps:$4 sm:$0xff]   ;;  %v13006_v21 = vld [vmem:[%s15028_s27 + $0xfe4] ss:$676 sps:$4 sm:$0xff]   ;;  %v324_v23 = vcombine.high %v238_v19, %v238_v19 }
  0x62   : > { %v13002_v20 = vld [vmem:[%s15028_s27 + $0xa98] ss:$676 sps:$4 sm:$0xff]   ;;  %v13009_v29 = vld [vmem:[%s15028_s27 + $0x1524] ss:$676 sps:$4 sm:$0xff]   ;;  %v13012_v32 = vld [vmem:[%s15028_s27 + $0x152c] ss:$676 sps:$4 sm:$0xff]  }
  0x63   : > { %v15052_v16 = vsub.s32 %v327_v14, %v329_v15  ;;  %v13005_v28 = vld [vmem:[%s15028_s27 + $0xfd8] ss:$676 sps:$4 sm:$0xff]   ;;  %v13008_v31 = vld [vmem:[%s15028_s27 + $0xfe0] ss:$676 sps:$4 sm:$0xff]   ;;  %v13015_v34 = vld [vmem:[%s15028_s27 + $0x1a6c] ss:$676 sps:$4 sm:$0xff]  }
  0x64   : > { %v13011_v33 = vld [vmem:[%s15028_s27 + $0x1520] ss:$676 sps:$4 sm:$0xff]   ;;  %v13014_v35 = vld [vmem:[%s15028_s27 + $0x1528] ss:$676 sps:$4 sm:$0xff]   ;;  %v13018_v36 = vld [vmem:[%s15028_s27 + $0x1a74] ss:$676 sps:$4 sm:$0xff]  }
  0x65   : > { %v331_v22 = vrot.slane %v238_v19, %v15052_v16  ;;  %v338_v25 = vrot.slane %v324_v23, %v15052_v16  ;;  %v2403_v37 = vld [vmem:[%s15028_s27 + $0x1fb0] sm:$0x33]  ;;  %v13017_v38 = vld [vmem:[%s15028_s27 + $0x1a68] ss:$676 sps:$4 sm:$0xff]   ;;  %v2404_v39 = vld [vmem:[%s15028_s27 + $0x1fb8] sm:$0x33] }
  0x66   : > { %v12699_v40 = vcombine.high %v2403_v37, %v2403_v37  ;;  %v13020_v41 = vld [vmem:[%s15028_s27 + $0x1a70] ss:$676 sps:$4 sm:$0xff]   ;;  %v12701_v42 = vcombine.high %v2404_v39, %v2404_v39  ;;  %v239_v43 = vld [vmem:[%s15022_s6 + $0x8] sm:$0xff]  ;;  %v12698_v45 = vcombine.low %v2403_v37, %v2403_v37  ;;  %v12700_v48 = vcombine.low %v2404_v39, %v2404_v39  ;;  %v13029_v58 = vld [vmem:[%s15028_s27 + $0x18] ss:$676 sps:$4 sm:$0xff]   ;;  %p12867_p5 = scmp.ne.s32.totalorder %s14828_s12, 1 }
  0x67   : > { %8159 = vmatpush1.bf16.xpose.msra.mxu0 %v12993_v10  ;;  %8199 = vmatpush1.bf16.xpose.msra.mxu1 %v12996_v12  ;;  %v339_v24 = vcombine.high %v331_v22, %v331_v22  ;;  %v340_v27 = vcombine.high %v338_v25, %v338_v25  ;;  %v341_v44 = vcombine.high %v239_v43, %v239_v43  ;;  %v13028_v47 = vld [vmem:[%s15028_s27 + $0x14] ss:$676 sps:$4 sm:$0xff]   ;;  %v13031_v50 = vld [vmem:[%s15028_s27 + $0x1c] ss:$676 sps:$4 sm:$0xff]   ;;  %v13037_v59 = vld [vmem:[%s15028_s27 + $0x564] ss:$676 sps:$4 sm:$0xff]  }
  0x68   : > { %8160 = vmatprep.subr.bf16.mxu0 %v12997_v11  ;;  %8200 = vmatprep.subr.bf16.mxu1 %v13000_v13  ;;  %v15075_v46 = vrot.slane %v239_v43, %v15052_v16  ;;  %v1214_v53 = vpack.c.bf16 %v331_v22, %v331_v22  ;;  %v13026_v54 = vld [vmem:[%s15028_s27 + $0x10] ss:$676 sps:$4 sm:$0xff]   ;;  %v1216_v56 = vpack.c.bf16 %v338_v25, %v338_v25  ;;  %v13034_v57 = vld [vmem:[%s15028_s27 + $0x55c] ss:$676 sps:$4 sm:$0xff]   ;;  %v13040_v62 = vld [vmem:[%s15028_s27 + $0xaa4] ss:$676 sps:$4 sm:$0xff]  }
  0x69   : > { %v1215_v26 = vpack.c.bf16 %v339_v24, %v339_v24  ;;  %v1217_v30 = vpack.c.bf16 %v340_v27, %v340_v27  ;;  %v15079_v49 = vrot.slane %v341_v44, %v15052_v16  ;;  %v13032_v61 = vld [vmem:[%s15028_s27 + $0x558] ss:$676 sps:$4 sm:$0xff]   ;;  %v13035_v63 = vld [vmem:[%s15028_s27 + $0x560] ss:$676 sps:$4 sm:$0xff]   ;;  %v13043_v0 = vld [vmem:[%s15028_s27 + $0xaac] ss:$676 sps:$4 sm:$0xff]  }
  0x6a   : > { %v356_v51 = vcombine.high %v15075_v46, %v15075_v46  ;;  %v13038_v1 = vld [vmem:[%s15028_s27 + $0xaa0] ss:$676 sps:$4 sm:$0xff]   ;;  %v13046_v2 = vld [vmem:[%s15028_s27 + $0xfec] ss:$676 sps:$4 sm:$0xff]   ;;  %v13049_v4 = vld [vmem:[%s15028_s27 + $0xff4] ss:$676 sps:$4 sm:$0xff]  }
  0x6b   : > { %8188 = vmatprep.mubr.bf16.mxu0 %v1215_v26  ;;  %8228 = vmatprep.mubr.bf16.mxu1 %v1217_v30  ;;  %v357_v52 = vcombine.high %v15079_v49, %v15079_v49  ;;  %v13041_v3 = vld [vmem:[%s15028_s27 + $0xaa8] ss:$676 sps:$4 sm:$0xff]   ;;  %v13052_v6 = vld [vmem:[%s15028_s27 + $0x1534] ss:$676 sps:$4 sm:$0xff]   ;;  %v13055_v8 = vld [vmem:[%s15028_s27 + $0x153c] ss:$676 sps:$4 sm:$0xff]  }
  0x6c   : > { %v1219_v55 = vpack.c.bf16 %v356_v51, %v356_v51  ;;  %v13044_v5 = vld [vmem:[%s15028_s27 + $0xfe8] ss:$676 sps:$4 sm:$0xff]   ;;  %v13047_v7 = vld [vmem:[%s15028_s27 + $0xff0] ss:$676 sps:$4 sm:$0xff]   ;;  %v13058_v10 = vld [vmem:[%s15028_s27 + $0x1a7c] ss:$676 sps:$4 sm:$0xff]  }
  0x6d   : > { %v1221_v60 = vpack.c.bf16 %v357_v52, %v357_v52  ;;  %v13050_v9 = vld [vmem:[%s15028_s27 + $0x1530] ss:$676 sps:$4 sm:$0xff]   ;;  %v13053_v11 = vld [vmem:[%s15028_s27 + $0x1538] ss:$676 sps:$4 sm:$0xff]   ;;  %v13061_v12 = vld [vmem:[%s15028_s27 + $0x1a84] ss:$676 sps:$4 sm:$0xff]  }
  0x6e   : > { %v2405_v13 = vld [vmem:[%s15028_s27 + $0x1fc0] sm:$0x33]  ;;  %v13056_v14 = vld [vmem:[%s15028_s27 + $0x1a78] ss:$676 sps:$4 sm:$0xff]   ;;  %v2406_v15 = vld [vmem:[%s15028_s27 + $0x1fc8] sm:$0x33] }
  0x6f   : > { %8161 = vmatpush1.bf16.xpose.msra.mxu0 %v12999_v17  ;;  %8201 = vmatpush1.bf16.xpose.msra.mxu1 %v13002_v20  ;;  %v12703_v17 = vcombine.high %v2405_v13, %v2405_v13  ;;  %v12705_v19 = vcombine.high %v2406_v15, %v2406_v15  ;;  %v240_v20 = vld [vmem:[%s15022_s6 + $0x10] sm:$0xff]  ;;  %v12702_v23 = vcombine.low %v2405_v13, %v2405_v13  ;;  %v13081_v39 = vld [vmem:[%s15028_s27 + $0xab4] ss:$676 sps:$4 sm:$0xff]   ;;  %v13087_v43 = vld [vmem:[%s15028_s27 + $0xffc] ss:$676 sps:$4 sm:$0xff]   ;;  %vm14854_vm1 = vmmov 0  }
  0x70   : > { %8162 = vmatprep.subr.bf16.mxu0 %v13003_v18  ;;  %8202 = vmatprep.subr.bf16.mxu1 %v13006_v21  ;;  %v13059_v18 = vld [vmem:[%s15028_s27 + $0x1a80] ss:$676 sps:$4 sm:$0xff]   ;;  %v358_v21 = vcombine.high %v240_v20, %v240_v20  ;;  %v15113_v24 = vrot.slane %v240_v20, %v15052_v16  ;;  %v13072_v25 = vld [vmem:[%s15028_s27 + $0x2c] ss:$676 sps:$4 sm:$0xff]   ;;  %v12704_v26 = vcombine.low %v2406_v15, %v2406_v15  ;;  %v13082_v44 = vld [vmem:[%s15028_s27 + $0xab8] ss:$676 sps:$4 sm:$0xff]  }
  0x71   : > { %v13068_v22 = vld [vmem:[%s15028_s27 + $0x24] ss:$676 sps:$4 sm:$0xff]   ;;  %v13099_v52 = vld [vmem:[%s15028_s27 + $0x1a8c] ss:$676 sps:$4 sm:$0xff]   ;;  %vm11557_vm2 = vcmask 812032  }
  0x72   : > { %v15117_v27 = vrot.slane %v358_v21, %v15052_v16  ;;  %v13094_v51 = vld [vmem:[%s15028_s27 + $0x1548] ss:$676 sps:$4 sm:$0xff]  }
  0x73   : > { %v13122_v15 = vld [vmem:[%s15028_s27 + $0xac4] ss:$676 sps:$4 sm:$0xff]   ;;  %v13128_v20 = vld [vmem:[%s15028_s27 + $0x100c] ss:$676 sps:$4 sm:$0xff]  }
  0x74   : > { %v374_v30 = vcombine.high %v15117_v27, %v15117_v27  ;;  %v13123_v21 = vld [vmem:[%s15028_s27 + $0xac8] ss:$676 sps:$4 sm:$0xff]  }
  0x76   : > { %v1225_v37 = vpack.c.bf16 %v374_v30, %v374_v30  ;;  %v13143_v30 = vld [vmem:[%s15028_s27 + $0x1aa4] ss:$676 sps:$4 sm:$0xff]  }
  0x77   : > { %8163 = vmatpush1.bf16.xpose.msra.mxu0 %v13005_v28  ;;  %8203 = vmatpush1.bf16.xpose.msra.mxu1 %v13008_v31  ;;  %v373_v28 = vcombine.high %v15113_v24, %v15113_v24  ;;  %v1218_v31 = vpack.c.bf16 %v15075_v46, %v15075_v46  ;;  %v13085_v46 = vld [vmem:[%s15028_s27 + $0xff8] ss:$676 sps:$4 sm:$0xff]  }
  0x78   : > { %8164 = vmatprep.subr.bf16.mxu0 %v13009_v29  ;;  %8204 = vmatprep.subr.bf16.mxu1 %v13012_v32  ;;  %v13066_v29 = vld [vmem:[%s15028_s27 + $0x20] ss:$676 sps:$4 sm:$0xff]   ;;  %v13075_v32 = vld [vmem:[%s15028_s27 + $0x56c] ss:$676 sps:$4 sm:$0xff]  }
  0x7f   : > { %8165 = vmatpush1.bf16.xpose.msra.mxu0 %v13011_v33  ;;  %8205 = vmatpush1.bf16.xpose.msra.mxu1 %v13014_v35  ;;  %v13070_v33 = vld [vmem:[%s15028_s27 + $0x28] ss:$676 sps:$4 sm:$0xff]   ;;  %v1220_v35 = vpack.c.bf16 %v15079_v49, %v15079_v49 }
  0x80   : > { %8166 = vmatprep.subr.bf16.mxu0 %v13015_v34  ;;  %8206 = vmatprep.subr.bf16.mxu1 %v13018_v36  ;;  %v1223_v34 = vpack.c.bf16 %v373_v28, %v373_v28  ;;  %v13078_v36 = vld [vmem:[%s15028_s27 + $0x574] ss:$676 sps:$4 sm:$0xff]   ;;  %v13096_v49 = vld [vmem:[%s15028_s27 + $0x154c] ss:$676 sps:$4 sm:$0xff]  }
  0x81   : > { %v13135_v28 = vld [vmem:[%s15028_s27 + $0x1558] ss:$676 sps:$4 sm:$0xff]  }
  0x87   : > { %8167 = vmatpush1.bf16.xpose.msra.mxu0 %v13017_v38  ;;  %8207 = vmatpush1.bf16.xpose.msra.mxu1 %v13020_v41  ;;  %v13073_v38 = vld [vmem:[%s15028_s27 + $0x568] ss:$676 sps:$4 sm:$0xff]   ;;  %v13084_v41 = vld [vmem:[%s15028_s27 + $0xabc] ss:$676 sps:$4 sm:$0xff]  }
  0x88   : > { %8168 = vmatprep.subr.bf16.mxu0 %v12699_v40  ;;  %8208 = vmatprep.subr.bf16.mxu1 %v12701_v42  ;;  %v13076_v40 = vld [vmem:[%s15028_s27 + $0x570] ss:$676 sps:$4 sm:$0xff]  }
  0x89   : > { %v13079_v42 = vld [vmem:[%s15028_s27 + $0xab0] ss:$676 sps:$4 sm:$0xff]  }
  0x8f   : > { %8169 = vmatpush1.bf16.xpose.msra.mxu0 %v12698_v45  ;;  %8209 = vmatpush1.bf16.xpose.msra.mxu1 %v12700_v48  ;;  %v13090_v45 = vld [vmem:[%s15028_s27 + $0x1004] ss:$676 sps:$4 sm:$0xff]  }
  0x90   : > { %8236 = vmatprep.subr.bf16.mxu0 %v13028_v47  ;;  %8276 = vmatprep.subr.bf16.mxu1 %v13031_v50  ;;  %v13093_v47 = vld [vmem:[%s15028_s27 + $0x1544] ss:$676 sps:$4 sm:$0xff]  }
  0x91   : > { %v13088_v48 = vld [vmem:[%s15028_s27 + $0x1000] ss:$676 sps:$4 sm:$0xff]  }
  0x92   : > { %v13091_v50 = vld [vmem:[%s15028_s27 + $0x1540] ss:$676 sps:$4 sm:$0xff]  }
  0x96   : > { %8189 = vmatmul.mubr.bf16.vlgmr.msra.gmra.mrb[0].mxu0 %v1214_v53  ;;  %8229 = vmatmul.mubr.bf16.vlgmr.msra.gmra.mrb[0].mxu1 %v1216_v56  ;;  %v13102_v53 = vld [vmem:[%s15028_s27 + $0x1a94] ss:$676 sps:$4 sm:$0xff]  }
  0x97   : > { %8237 = vmatpush1.bf16.xpose.msra.mxu0 %v13026_v54  ;;  %8268 = vmatprep.mubr.bf16.mxu0 %v1219_v55  ;;  %v2407_v54 = vld [vmem:[%s15028_s27 + $0x1fd0] sm:$0x33]  ;;  %v13097_v55 = vld [vmem:[%s15028_s27 + $0x1a88] ss:$676 sps:$4 sm:$0xff]   ;;  %v2408_v56 = vld [vmem:[%s15028_s27 + $0x1fd8] sm:$0x33] }
  0x98   : > { %8238 = vmatprep.subr.bf16.mxu0 %v13034_v57  ;;  %8277 = vmatpush1.bf16.xpose.msra.mxu1 %v13029_v58  ;;  %v12707_v57 = vcombine.high %v2407_v54, %v2407_v54  ;;  %v13100_v58 = vld [vmem:[%s15028_s27 + $0x1a90] ss:$676 sps:$4 sm:$0xff]  }
  0x99   : > { %8308 = vmatprep.mubr.bf16.mxu1 %v1221_v60  ;;  %8278 = vmatprep.subr.bf16.mxu1 %v13037_v59  ;;  %v12709_v59 = vcombine.high %v2408_v56, %v2408_v56  ;;  %v241_v60 = vld [vmem:[%s15022_s6 + $0x18] sm:$0xff] }
  0x9f   : > { %8239 = vmatpush1.bf16.xpose.msra.mxu0 %v13032_v61  ;;  %v375_v61 = vcombine.high %v241_v60, %v241_v60 }
  0xa0   : > { %8240 = vmatprep.subr.bf16.mxu0 %v13040_v62  ;;  %8279 = vmatpush1.bf16.xpose.msra.mxu1 %v13035_v63  ;;  %v13109_v62 = vld [vmem:[%s15028_s27 + $0x34] ss:$676 sps:$4 sm:$0xff]   ;;  %v12706_v63 = vcombine.low %v2407_v54, %v2407_v54 }
  0xa1   : > { %8280 = vmatprep.subr.bf16.mxu1 %v13043_v0  ;;  %v15154_v0 = vrot.slane %v241_v60, %v15052_v16  ;;  %v13169_v60 = vld [vmem:[%s15028_s27 + $0x101c] ss:$676 sps:$4 sm:$0xff]  }
  0xa7   : > { %8241 = vmatpush1.bf16.xpose.msra.mxu0 %v13038_v1  ;;  %v13113_v1 = vld [vmem:[%s15028_s27 + $0x3c] ss:$676 sps:$4 sm:$0xff]  }
  0xa8   : > { %8242 = vmatprep.subr.bf16.mxu0 %v13046_v2  ;;  %8281 = vmatpush1.bf16.xpose.msra.mxu1 %v13041_v3  ;;  %v12708_v2 = vcombine.low %v2408_v56, %v2408_v56  ;;  %v15158_v3 = vrot.slane %v375_v61, %v15052_v16  ;;  %v13163_v56 = vld [vmem:[%s15028_s27 + $0xad4] ss:$676 sps:$4 sm:$0xff]  }
  0xa9   : > { %8282 = vmatprep.subr.bf16.mxu1 %v13049_v4  ;;  %v390_v4 = vcombine.high %v15154_v0, %v15154_v0  ;;  %v13164_v61 = vld [vmem:[%s15028_s27 + $0xad8] ss:$676 sps:$4 sm:$0xff]  }
  0xaf   : > { %8243 = vmatpush1.bf16.xpose.msra.mxu0 %v13044_v5  ;;  %v13107_v5 = vld [vmem:[%s15028_s27 + $0x30] ss:$676 sps:$4 sm:$0xff]  }
  0xb0   : > { %8244 = vmatprep.subr.bf16.mxu0 %v13052_v6  ;;  %8283 = vmatpush1.bf16.xpose.msra.mxu1 %v13047_v7  ;;  %v391_v6 = vcombine.high %v15158_v3, %v15158_v3  ;;  %v1222_v7 = vpack.c.bf16 %v15113_v24, %v15113_v24  ;;  %v13134_v24 = vld [vmem:[%s15028_s27 + $0x1554] ss:$676 sps:$4 sm:$0xff]  }
  0xb1   : > { %8284 = vmatprep.subr.bf16.mxu1 %v13055_v8  ;;  %v13116_v8 = vld [vmem:[%s15028_s27 + $0x57c] ss:$676 sps:$4 sm:$0xff]  }
  0xb2   : > { %v1229_v13 = vpack.c.bf16 %v391_v6, %v391_v6  ;;  %v13184_v6 = vld [vmem:[%s15028_s27 + $0x1ab4] ss:$676 sps:$4 sm:$0xff]  }
  0xb7   : > { %8245 = vmatpush1.bf16.xpose.msra.mxu0 %v13050_v9  ;;  %v13111_v9 = vld [vmem:[%s15028_s27 + $0x38] ss:$676 sps:$4 sm:$0xff]  }
  0xb8   : > { %8246 = vmatprep.subr.bf16.mxu0 %v13058_v10  ;;  %8285 = vmatpush1.bf16.xpose.msra.mxu1 %v13053_v11  ;;  %v1227_v10 = vpack.c.bf16 %v390_v4, %v390_v4  ;;  %v1224_v11 = vpack.c.bf16 %v15117_v27, %v15117_v27  ;;  %v13132_v27 = vld [vmem:[%s15028_s27 + $0x1550] ss:$676 sps:$4 sm:$0xff]   ;;  %v13176_v4 = vld [vmem:[%s15028_s27 + $0x1568] ss:$676 sps:$4 sm:$0xff]  }
  0xb9   : > { %8286 = vmatprep.subr.bf16.mxu1 %v13061_v12  ;;  %v13119_v12 = vld [vmem:[%s15028_s27 + $0x584] ss:$676 sps:$4 sm:$0xff]  }
  0xbf   : > { %8247 = vmatpush1.bf16.xpose.msra.mxu0 %v13056_v14  ;;  %v13114_v14 = vld [vmem:[%s15028_s27 + $0x578] ss:$676 sps:$4 sm:$0xff]  }
  0xc0   : > { %8248 = vmatprep.subr.bf16.mxu0 %v12703_v17  ;;  %8287 = vmatpush1.bf16.xpose.msra.mxu1 %v13059_v18  ;;  %v13117_v17 = vld [vmem:[%s15028_s27 + $0x580] ss:$676 sps:$4 sm:$0xff]   ;;  %v13125_v18 = vld [vmem:[%s15028_s27 + $0xacc] ss:$676 sps:$4 sm:$0xff]  }
  0xc1   : > { %8288 = vmatprep.subr.bf16.mxu1 %v12705_v19  ;;  %v13120_v19 = vld [vmem:[%s15028_s27 + $0xac0] ss:$676 sps:$4 sm:$0xff]  }
  0xc7   : > { %8249 = vmatpush1.bf16.xpose.msra.mxu0 %v12702_v23  ;;  %v13126_v23 = vld [vmem:[%s15028_s27 + $0x1008] ss:$676 sps:$4 sm:$0xff]  }
  0xc8   : > { %8316 = vmatprep.subr.bf16.mxu0 %v13068_v22  ;;  %8289 = vmatpush1.bf16.xpose.msra.mxu1 %v12704_v26  ;;  %v13131_v22 = vld [vmem:[%s15028_s27 + $0x1014] ss:$676 sps:$4 sm:$0xff]   ;;  %v13137_v26 = vld [vmem:[%s15028_s27 + $0x155c] ss:$676 sps:$4 sm:$0xff]  }
  0xc9   : > { %8356 = vmatprep.subr.bf16.mxu1 %v13072_v25  ;;  %v13129_v25 = vld [vmem:[%s15028_s27 + $0x1010] ss:$676 sps:$4 sm:$0xff]  }
  0xce   : > { %8269 = vmatmul.mubr.bf16.vlgmr.msra.gmra.mrb[4].mxu0 %v1218_v31  ;;  %v2409_v31 = vld [vmem:[%s15028_s27 + $0x1fe0] sm:$0x33] }
  0xcf   : > { %8317 = vmatpush1.bf16.xpose.msra.mxu0 %v13066_v29  ;;  %8348 = vmatprep.mubr.bf16.mxu0 %v1223_v34  ;;  %v13140_v29 = vld [vmem:[%s15028_s27 + $0x1a9c] ss:$676 sps:$4 sm:$0xff]   ;;  %v12711_v34 = vcombine.high %v2409_v31, %v2409_v31 }
  0xd0   : > { %8309 = vmatmul.mubr.bf16.vlgmr.msra.gmra.mrb[4].mxu1 %v1220_v35  ;;  %8318 = vmatprep.subr.bf16.mxu0 %v13075_v32  ;;  %v13138_v32 = vld [vmem:[%s15028_s27 + $0x1a98] ss:$676 sps:$4 sm:$0xff]   ;;  %v13141_v35 = vld [vmem:[%s15028_s27 + $0x1aa0] ss:$676 sps:$4 sm:$0xff]  }
  0xd1   : > { %8357 = vmatpush1.bf16.xpose.msra.mxu1 %v13070_v33  ;;  %8388 = vmatprep.mubr.bf16.mxu1 %v1225_v37  ;;  %v2410_v33 = vld [vmem:[%s15028_s27 + $0x1fe8] sm:$0x33]  ;;  %v242_v37 = vld [vmem:[%s15022_s6 + $0x20] sm:$0xff] }
  0xd2   : > { %8358 = vmatprep.subr.bf16.mxu1 %v13078_v36  ;;  %v12713_v36 = vcombine.high %v2410_v33, %v2410_v33 }
  0xd7   : > { %8319 = vmatpush1.bf16.xpose.msra.mxu0 %v13073_v38  ;;  %v392_v38 = vcombine.high %v242_v37, %v242_v37 }
  0xd8   : > { %8320 = vmatprep.subr.bf16.mxu0 %v13081_v39  ;;  %v13150_v39 = vld [vmem:[%s15028_s27 + $0x44] ss:$676 sps:$4 sm:$0xff]  }
  0xd9   : > { %8359 = vmatpush1.bf16.xpose.msra.mxu1 %v13076_v40  ;;  %v12710_v40 = vcombine.low %v2409_v31, %v2409_v31 }
  0xda   : > { %8360 = vmatprep.subr.bf16.mxu1 %v13084_v41  ;;  %v15195_v41 = vrot.slane %v242_v37, %v15052_v16 }
  0xdf   : > { %8321 = vmatpush1.bf16.xpose.msra.mxu0 %v13079_v42  ;;  %v13154_v42 = vld [vmem:[%s15028_s27 + $0x4c] ss:$676 sps:$4 sm:$0xff]  }
  0xe0   : > { %8322 = vmatprep.subr.bf16.mxu0 %v13087_v43  ;;  %v12712_v43 = vcombine.low %v2410_v33, %v2410_v33 }
  0xe1   : > { %8361 = vmatpush1.bf16.xpose.msra.mxu1 %v13082_v44  ;;  %v15199_v44 = vrot.slane %v392_v38, %v15052_v16 }
  0xe2   : > { %8362 = vmatprep.subr.bf16.mxu1 %v13090_v45  ;;  %v407_v45 = vcombine.high %v15195_v41, %v15195_v41 }
  0xe3   : > { %v1232_v38 = vpack.c.bf16 %v15199_v44, %v15199_v44 }
  0xe7   : > { %8323 = vmatpush1.bf16.xpose.msra.mxu0 %v13085_v46  ;;  %v13148_v46 = vld [vmem:[%s15028_s27 + $0x40] ss:$676 sps:$4 sm:$0xff]  }
  0xe8   : > { %8324 = vmatprep.subr.bf16.mxu0 %v13093_v47  ;;  %v408_v47 = vcombine.high %v15199_v44, %v15199_v44  ;;  %v13207_v44 = vld [vmem:[%s15028_s27 + $0xaec] ss:$676 sps:$4 sm:$0xff]  }
  0xe9   : > { %8363 = vmatpush1.bf16.xpose.msra.mxu1 %v13088_v48  ;;  %v1226_v48 = vpack.c.bf16 %v15154_v0, %v15154_v0  ;;  %v13175_v0 = vld [vmem:[%s15028_s27 + $0x1564] ss:$676 sps:$4 sm:$0xff]  }
  0xea   : > { %8364 = vmatprep.subr.bf16.mxu1 %v13096_v49  ;;  %v13157_v49 = vld [vmem:[%s15028_s27 + $0x58c] ss:$676 sps:$4 sm:$0xff]   ;;  %v1233_v54 = vpack.c.bf16 %v408_v47, %v408_v47 }
  0xeb   : > { %v13205_v47 = vld [vmem:[%s15028_s27 + $0xae8] ss:$676 sps:$4 sm:$0xff]  }
  0xef   : > { %8325 = vmatpush1.bf16.xpose.msra.mxu0 %v13091_v50  ;;  %v13152_v50 = vld [vmem:[%s15028_s27 + $0x48] ss:$676 sps:$4 sm:$0xff]  }
  0xf0   : > { %8326 = vmatprep.subr.bf16.mxu0 %v13099_v52  ;;  %v1228_v52 = vpack.c.bf16 %v15158_v3, %v15158_v3  ;;  %v13173_v3 = vld [vmem:[%s15028_s27 + $0x1560] ss:$676 sps:$4 sm:$0xff]  }
  0xf1   : > { %8365 = vmatpush1.bf16.xpose.msra.mxu1 %v13094_v51  ;;  %v1231_v51 = vpack.c.bf16 %v407_v45, %v407_v45  ;;  %v13202_v45 = vld [vmem:[%s15028_s27 + $0xae0] ss:$676 sps:$4 sm:$0xff]  }
  0xf2   : > { %8366 = vmatprep.subr.bf16.mxu1 %v13102_v53  ;;  %v13160_v53 = vld [vmem:[%s15028_s27 + $0x594] ss:$676 sps:$4 sm:$0xff]  }
  0xf7   : > { %8327 = vmatpush1.bf16.xpose.msra.mxu0 %v13097_v55  ;;  %v13155_v55 = vld [vmem:[%s15028_s27 + $0x588] ss:$676 sps:$4 sm:$0xff]  }
  0xf8   : > { %8328 = vmatprep.subr.bf16.mxu0 %v12707_v57  ;;  %v13158_v57 = vld [vmem:[%s15028_s27 + $0x590] ss:$676 sps:$4 sm:$0xff]  }
  0xf9   : > { %8367 = vmatpush1.bf16.xpose.msra.mxu1 %v13100_v58  ;;  %v13166_v58 = vld [vmem:[%s15028_s27 + $0xadc] ss:$676 sps:$4 sm:$0xff]  }
  0xfa   : > { %8368 = vmatprep.subr.bf16.mxu1 %v12709_v59  ;;  %v13161_v59 = vld [vmem:[%s15028_s27 + $0xad0] ss:$676 sps:$4 sm:$0xff]  }
  0xff   : > { %8329 = vmatpush1.bf16.xpose.msra.mxu0 %v12706_v63  ;;  %v13167_v63 = vld [vmem:[%s15028_s27 + $0x1018] ss:$676 sps:$4 sm:$0xff]  }
 0x100   : > { %8396 = vmatprep.subr.bf16.mxu0 %v13109_v62  ;;  %v13172_v62 = vld [vmem:[%s15028_s27 + $0x1024] ss:$676 sps:$4 sm:$0xff]  }
 0x101   : > { %8369 = vmatpush1.bf16.xpose.msra.mxu1 %v12708_v2  ;;  %v13178_v2 = vld [vmem:[%s15028_s27 + $0x156c] ss:$676 sps:$4 sm:$0xff]  }
 0x102   : > { %8436 = vmatprep.subr.bf16.mxu1 %v13113_v1  ;;  %v13170_v1 = vld [vmem:[%s15028_s27 + $0x1020] ss:$676 sps:$4 sm:$0xff]  }
 0x106   : > { %8349 = vmatmul.mubr.bf16.vlgmr.msra.gmra.mrb[8].mxu0 %v1222_v7  ;;  %v2411_v7 = vld [vmem:[%s15028_s27 + $0x1ff0] sm:$0x33] }
 0x107   : > { %8397 = vmatpush1.bf16.xpose.msra.mxu0 %v13107_v5  ;;  %8428 = vmatprep.mubr.bf16.mxu0 %v1227_v10  ;;  %v13181_v5 = vld [vmem:[%s15028_s27 + $0x1aac] ss:$676 sps:$4 sm:$0xff]   ;;  %v12715_v10 = vcombine.high %v2411_v7, %v2411_v7 }
 0x108   : > { %8389 = vmatmul.mubr.bf16.vlgmr.msra.gmra.mrb[8].mxu1 %v1224_v11  ;;  %8398 = vmatprep.subr.bf16.mxu0 %v13116_v8  ;;  %v13179_v8 = vld [vmem:[%s15028_s27 + $0x1aa8] ss:$676 sps:$4 sm:$0xff]   ;;  %v13182_v11 = vld [vmem:[%s15028_s27 + $0x1ab0] ss:$676 sps:$4 sm:$0xff]  }
 0x109   : > { %8437 = vmatpush1.bf16.xpose.msra.mxu1 %v13111_v9  ;;  %8468 = vmatprep.mubr.bf16.mxu1 %v1229_v13  ;;  %v2412_v9 = vld [vmem:[%s15028_s27 + $0x1ff8] sm:$0x33]  ;;  %v243_v13 = vld [vmem:[%s15022_s6 + $0x28] sm:$0xff] }
 0x10a   : > { %8438 = vmatprep.subr.bf16.mxu1 %v13119_v12  ;;  %v12717_v12 = vcombine.high %v2412_v9, %v2412_v9 }
 0x10f   : > { %8399 = vmatpush1.bf16.xpose.msra.mxu0 %v13114_v14 }
 0x110   : > { %8400 = vmatprep.subr.bf16.mxu0 %v13122_v15  ;;  %v409_v15 = vcombine.high %v243_v13, %v243_v13 }
 0x111   : > { %8439 = vmatpush1.bf16.xpose.msra.mxu1 %v13117_v17 }
 0x112   : > { %8440 = vmatprep.subr.bf16.mxu1 %v13125_v18  ;;  %v13191_v18 = vld [vmem:[%s15028_s27 + $0x54] ss:$676 sps:$4 sm:$0xff]  }
 0x117   : > { %8401 = vmatpush1.bf16.xpose.msra.mxu0 %v13120_v19 }
 0x118   : > { %8402 = vmatprep.subr.bf16.mxu0 %v13128_v20 }
 0x119   : > { %8441 = vmatpush1.bf16.xpose.msra.mxu1 %v13123_v21  ;;  %v12714_v21 = vcombine.low %v2411_v7, %v2411_v7 }
 0x11a   : > { %8442 = vmatprep.subr.bf16.mxu1 %v13131_v22  ;;  %v15236_v22 = vrot.slane %v243_v13, %v15052_v16 }
 0x11c   : > { %v424_v31 = vcombine.high %v15236_v22, %v15236_v22 }
 0x11e   : > { %v1235_v37 = vpack.c.bf16 %v424_v31, %v424_v31  ;;  %v13240_v31 = vld [vmem:[%s15028_s27 + $0x5b0] ss:$676 sps:$4 sm:$0xff]  }
 0x11f   : > { %8403 = vmatpush1.bf16.xpose.msra.mxu0 %v13126_v23 }
 0x120   : > { %8404 = vmatprep.subr.bf16.mxu0 %v13134_v24 }
 0x121   : > { %8443 = vmatpush1.bf16.xpose.msra.mxu1 %v13129_v25  ;;  %v13195_v25 = vld [vmem:[%s15028_s27 + $0x5c] ss:$676 sps:$4 sm:$0xff]  }
 0x122   : > { %8444 = vmatprep.subr.bf16.mxu1 %v13137_v26 }
 0x127   : > { %8405 = vmatpush1.bf16.xpose.msra.mxu0 %v13132_v27  ;;  %v12716_v27 = vcombine.low %v2412_v9, %v2412_v9 }
 0x128   : > { %8406 = vmatprep.subr.bf16.mxu0 %v13140_v29  ;;  %v15242_v29 = vrot.slane %v409_v15, %v15052_v16 }
 0x129   : > { %8445 = vmatpush1.bf16.xpose.msra.mxu1 %v13135_v28 }
 0x12a   : > { %8446 = vmatprep.subr.bf16.mxu1 %v13143_v30  ;;  %v425_v33 = vcombine.high %v15242_v29, %v15242_v29 }
 0x12f   : > { %8407 = vmatpush1.bf16.xpose.msra.mxu0 %v13138_v32  ;;  %v13189_v32 = vld [vmem:[%s15028_s27 + $0x50] ss:$676 sps:$4 sm:$0xff]  }
 0x130   : > { %8408 = vmatprep.subr.bf16.mxu0 %v12711_v34  ;;  %v1230_v34 = vpack.c.bf16 %v15195_v41, %v15195_v41  ;;  %v13196_v41 = vld [vmem:[%s15028_s27 + $0x598] ss:$676 sps:$4 sm:$0xff]  }
 0x131   : > { %8447 = vmatpush1.bf16.xpose.msra.mxu1 %v13141_v35  ;;  %v13198_v35 = vld [vmem:[%s15028_s27 + $0x59c] ss:$676 sps:$4 sm:$0xff]  }
 0x132   : > { %8448 = vmatprep.subr.bf16.mxu1 %v12713_v36  ;;  %v13193_v36 = vld [vmem:[%s15028_s27 + $0x58] ss:$676 sps:$4 sm:$0xff]  }
 0x137   : > { %8409 = vmatpush1.bf16.xpose.msra.mxu0 %v12710_v40  ;;  %v1237_v40 = vpack.c.bf16 %v425_v33, %v425_v33  ;;  %v13251_v33 = vld [vmem:[%s15028_s27 + $0x103c] ss:$676 sps:$4 sm:$0xff]  }
 0x138   : > { %8476 = vmatprep.subr.bf16.mxu0 %v13150_v39  ;;  %v13201_v39 = vld [vmem:[%s15028_s27 + $0x5a4] ss:$676 sps:$4 sm:$0xff]  }
 0x139   : > { %8449 = vmatpush1.bf16.xpose.msra.mxu1 %v12712_v43  ;;  %v13199_v43 = vld [vmem:[%s15028_s27 + $0x5a0] ss:$676 sps:$4 sm:$0xff]  }
 0x13a   : > { %8516 = vmatprep.subr.bf16.mxu1 %v13154_v42  ;;  %v13204_v42 = vld [vmem:[%s15028_s27 + $0xae4] ss:$676 sps:$4 sm:$0xff]  }
 0x13e   : > { %8429 = vmatmul.mubr.bf16.vlgmr.msra.gmra.mrb[12].mxu0 %v1226_v48  ;;  %v13213_v48 = vld [vmem:[%s15028_s27 + $0x1034] ss:$676 sps:$4 sm:$0xff]  }
 0x13f   : > { %8477 = vmatpush1.bf16.xpose.msra.mxu0 %v13148_v46  ;;  %8508 = vmatprep.mubr.bf16.mxu0 %v1231_v51  ;;  %v13210_v46 = vld [vmem:[%s15028_s27 + $0x102c] ss:$676 sps:$4 sm:$0xff]  }
 0x140   : > { %8469 = vmatmul.mubr.bf16.vlgmr.msra.gmra.mrb[12].mxu1 %v1228_v52  ;;  %8478 = vmatprep.subr.bf16.mxu0 %v13157_v49  ;;  %v13208_v49 = vld [vmem:[%s15028_s27 + $0x1028] ss:$676 sps:$4 sm:$0xff]   ;;  %v13211_v51 = vld [vmem:[%s15028_s27 + $0x1030] ss:$676 sps:$4 sm:$0xff]   ;;  %v13219_v52 = vld [vmem:[%s15028_s27 + $0x157c] ss:$676 sps:$4 sm:$0xff]  }
 0x141   : > { %8517 = vmatpush1.bf16.xpose.msra.mxu1 %v13152_v50  ;;  %8548 = vmatprep.mubr.bf16.mxu1 %v1233_v54  ;;  %v13216_v50 = vld [vmem:[%s15028_s27 + $0x1574] ss:$676 sps:$4 sm:$0xff]  }
 0x142   : > { %8518 = vmatprep.subr.bf16.mxu1 %v13160_v53  ;;  %v13214_v53 = vld [vmem:[%s15028_s27 + $0x1570] ss:$676 sps:$4 sm:$0xff]   ;;  %v13217_v54 = vld [vmem:[%s15028_s27 + $0x1578] ss:$676 sps:$4 sm:$0xff]  }
 0x147   : > { %8479 = vmatpush1.bf16.xpose.msra.mxu0 %v13155_v55  ;;  %v13222_v55 = vld [vmem:[%s15028_s27 + $0x1abc] ss:$676 sps:$4 sm:$0xff]  }
 0x148   : > { %8480 = vmatprep.subr.bf16.mxu0 %v13163_v56  ;;  %v13225_v56 = vld [vmem:[%s15028_s27 + $0x1ac4] ss:$676 sps:$4 sm:$0xff]  }
 0x149   : > { %8519 = vmatpush1.bf16.xpose.msra.mxu1 %v13158_v57  ;;  %v2413_v57 = vld [vmem:[%s15028_s27 + $0x2000] sm:$0x33] }
 0x14a   : > { %8520 = vmatprep.subr.bf16.mxu1 %v13166_v58  ;;  %v13220_v58 = vld [vmem:[%s15028_s27 + $0x1ab8] ss:$676 sps:$4 sm:$0xff]   ;;  %v12718_v7 = vcombine.low %v2413_v57, %v2413_v57 }
 0x14f   : > { %8481 = vmatpush1.bf16.xpose.msra.mxu0 %v13161_v59  ;;  %v2414_v59 = vld [vmem:[%s15028_s27 + $0x2008] sm:$0x33] }
 0x150   : > { %8482 = vmatprep.subr.bf16.mxu0 %v13169_v60  ;;  %v12719_v60 = vcombine.high %v2413_v57, %v2413_v57  ;;  %v12720_v13 = vcombine.low %v2414_v59, %v2414_v59 }
 0x151   : > { %8521 = vmatpush1.bf16.xpose.msra.mxu1 %v13164_v61  ;;  %v13223_v61 = vld [vmem:[%s15028_s27 + $0x1ac0] ss:$676 sps:$4 sm:$0xff]  }
 0x152   : > { %8522 = vmatprep.subr.bf16.mxu1 %v13172_v62  ;;  %v12721_v62 = vcombine.high %v2414_v59, %v2414_v59 }
 0x157   : > { %8483 = vmatpush1.bf16.xpose.msra.mxu0 %v13167_v63  ;;  %v244_v63 = vld [vmem:[%s15022_s6 + $0x30] sm:$0xff] }
 0x158   : > { %8484 = vmatprep.subr.bf16.mxu0 %v13175_v0 }
 0x159   : > { %8523 = vmatpush1.bf16.xpose.msra.mxu1 %v13170_v1  ;;  %v426_v1 = vcombine.high %v244_v63, %v244_v63 }
 0x15a   : > { %8524 = vmatprep.subr.bf16.mxu1 %v13178_v2 }
 0x15b   : > { %v15286_v15 = vrot.slane %v426_v1, %v15052_v16 }
 0x15f   : > { %8485 = vmatpush1.bf16.xpose.msra.mxu0 %v13173_v3 }
 0x160   : > { %8486 = vmatprep.subr.bf16.mxu0 %v13181_v5 }
 0x161   : > { %8525 = vmatpush1.bf16.xpose.msra.mxu1 %v13176_v4  ;;  %v13232_v4 = vld [vmem:[%s15028_s27 + $0x64] ss:$676 sps:$4 sm:$0xff]  }
 0x162   : > { %8526 = vmatprep.subr.bf16.mxu1 %v13184_v6 }
 0x167   : > { %8487 = vmatpush1.bf16.xpose.msra.mxu0 %v13179_v8  ;;  %v15280_v8 = vrot.slane %v244_v63, %v15052_v16 }
 0x168   : > { %8488 = vmatprep.subr.bf16.mxu0 %v12715_v10 }
 0x169   : > { %v8190_v14 = vpop.f32.mrb[0].mxu0  ;;  %8527 = vmatpush1.bf16.xpose.msra.mxu1 %v13182_v11  ;;  %v8230_v19 = vpop.f32.mrb[0].mxu1  ;;  %v13236_v11 = vld [vmem:[%s15028_s27 + $0x6c] ss:$676 sps:$4 sm:$0xff]  }
 0x16a   : > { %v8192_v17 = vpop.f32.mrb[1].mxu0  ;;  %8528 = vmatprep.subr.bf16.mxu1 %v12717_v12  ;;  %v15238_v23 = vadd.f32 %v8230_v19, %v8190_v14  ;;  %v8232_v26 = vpop.f32.mrb[1].mxu1  ;;  %v13230_v19 = vld [vmem:[%s15028_s27 + $0x60] ss:$676 sps:$4 sm:$0xff]  }
 0x16b   : > { %v8193_v20 = vpop.f32.mrb[2].mxu0  ;;  %v8233_v28 = vpop.f32.mrb[2].mxu1  ;;  %v1236_v26 = vpack.c.bf16 %v15242_v29, %v15242_v29  ;;  %v13248_v29 = vld [vmem:[%s15028_s27 + $0xafc] ss:$676 sps:$4 sm:$0xff]  }
 0x16c   : > { %v8194_v24 = vpop.f32.mrb[3].mxu0  ;;  %v8234_v30 = vpop.f32.mrb[3].mxu1  ;;  %v442_v20 = vcombine.high %v15286_v15, %v15286_v15 }
 0x16d   : > { %v13234_v24 = vld [vmem:[%s15028_s27 + $0x68] ss:$676 sps:$4 sm:$0xff]   ;;  %v13245_v30 = vld [vmem:[%s15028_s27 + $0xaf4] ss:$676 sps:$4 sm:$0xff]  }
 0x16e   : > { %v1241_v28 = vpack.c.bf16 %v442_v20, %v442_v20  ;;  %v13292_v20 = vld [vmem:[%s15028_s27 + $0x104c] ss:$676 sps:$4 sm:$0xff]  }
 0x16f   : > { %8489 = vmatpush1.bf16.xpose.msra.mxu0 %v12714_v21  ;;  %v1234_v21 = vpack.c.bf16 %v15236_v22, %v15236_v22  ;;  %v13237_v22 = vld [vmem:[%s15028_s27 + $0x5a8] ss:$676 sps:$4 sm:$0xff]  }
 0x170   : > { %8556 = vmatprep.subr.bf16.mxu0 %v13191_v18  ;;  %v441_v18 = vcombine.high %v15280_v8, %v15280_v8 }
 0x171   : > { %8529 = vmatpush1.bf16.xpose.msra.mxu1 %v12716_v27  ;;  %v13242_v27 = vld [vmem:[%s15028_s27 + $0x5b4] ss:$676 sps:$4 sm:$0xff]  }
 0x172   : > { %8596 = vmatprep.subr.bf16.mxu1 %v13195_v25  ;;  %v1239_v25 = vpack.c.bf16 %v441_v18, %v441_v18  ;;  %v13281_v18 = vld [vmem:[%s15028_s27 + $0x5c0] ss:$676 sps:$4 sm:$0xff]  }
 0x176   : > { %8509 = vmatmul.mubr.bf16.vlgmr.msra.gmra.mrb[16].mxu0 %v1230_v34  ;;  %v13246_v34 = vld [vmem:[%s15028_s27 + $0xaf8] ss:$676 sps:$4 sm:$0xff]  }
 0x177   : > { %8557 = vmatpush1.bf16.xpose.msra.mxu0 %v13189_v32  ;;  %8588 = vmatprep.mubr.bf16.mxu0 %v1235_v37  ;;  %v13243_v32 = vld [vmem:[%s15028_s27 + $0xaf0] ss:$676 sps:$4 sm:$0xff]   ;;  %v13257_v37 = vld [vmem:[%s15028_s27 + $0x1584] ss:$676 sps:$4 sm:$0xff]  }
 0x178   : > { %8549 = vmatmul.mubr.bf16.vlgmr.msra.gmra.mrb[16].mxu1 %v1232_v38  ;;  %8558 = vmatprep.subr.bf16.mxu0 %v13198_v35  ;;  %v13254_v35 = vld [vmem:[%s15028_s27 + $0x1044] ss:$676 sps:$4 sm:$0xff]  }
 0x179   : > { %8597 = vmatpush1.bf16.xpose.msra.mxu1 %v13193_v36  ;;  %8628 = vmatprep.mubr.bf16.mxu1 %v1237_v40  ;;  %v13249_v36 = vld [vmem:[%s15028_s27 + $0x1038] ss:$676 sps:$4 sm:$0xff]   ;;  %v13252_v38 = vld [vmem:[%s15028_s27 + $0x1040] ss:$676 sps:$4 sm:$0xff]  }
 0x17a   : > { %8598 = vmatprep.subr.bf16.mxu1 %v13201_v39  ;;  %v13260_v39 = vld [vmem:[%s15028_s27 + $0x158c] ss:$676 sps:$4 sm:$0xff]   ;;  %v13255_v40 = vld [vmem:[%s15028_s27 + $0x1580] ss:$676 sps:$4 sm:$0xff]  }
 0x17f   : > { %8559 = vmatpush1.bf16.xpose.msra.mxu0 %v13196_v41  ;;  %v13258_v41 = vld [vmem:[%s15028_s27 + $0x1588] ss:$676 sps:$4 sm:$0xff]  }
 0x180   : > { %8560 = vmatprep.subr.bf16.mxu0 %v13204_v42  ;;  %v13263_v42 = vld [vmem:[%s15028_s27 + $0x1acc] ss:$676 sps:$4 sm:$0xff]  }
 0x181   : > { %8599 = vmatpush1.bf16.xpose.msra.mxu1 %v13199_v43  ;;  %v13266_v43 = vld [vmem:[%s15028_s27 + $0x1ad4] ss:$676 sps:$4 sm:$0xff]  }
 0x182   : > { %8600 = vmatprep.subr.bf16.mxu1 %v13207_v44  ;;  %v2415_v44 = vld [vmem:[%s15028_s27 + $0x2010] sm:$0x33] }
 0x187   : > { %8561 = vmatpush1.bf16.xpose.msra.mxu0 %v13202_v45  ;;  %v13261_v45 = vld [vmem:[%s15028_s27 + $0x1ac8] ss:$676 sps:$4 sm:$0xff]  }
 0x188   : > { %8562 = vmatprep.subr.bf16.mxu0 %v13210_v46  ;;  %v2416_v46 = vld [vmem:[%s15028_s27 + $0x2018] sm:$0x33] }
 0x189   : > { %8601 = vmatpush1.bf16.xpose.msra.mxu1 %v13205_v47  ;;  %v12723_v47 = vcombine.high %v2415_v44, %v2415_v44 }
 0x18a   : > { %8602 = vmatprep.subr.bf16.mxu1 %v13213_v48  ;;  %v13264_v48 = vld [vmem:[%s15028_s27 + $0x1ad0] ss:$676 sps:$4 sm:$0xff]  }
 0x18f   : > { %8563 = vmatpush1.bf16.xpose.msra.mxu0 %v13208_v49  ;;  %v12725_v49 = vcombine.high %v2416_v46, %v2416_v46 }
 0x190   : > { %8564 = vmatprep.subr.bf16.mxu0 %v13216_v50  ;;  %v245_v50 = vld [vmem:[%s15022_s6 + $0x38] sm:$0xff] }
 0x191   : > { %8603 = vmatpush1.bf16.xpose.msra.mxu1 %v13211_v51  ;;  %v15324_v59 = vrot.slane %v245_v50, %v15052_v16 }
 0x192   : > { %8604 = vmatprep.subr.bf16.mxu1 %v13219_v52  ;;  %v443_v52 = vcombine.high %v245_v50, %v245_v50 }
 0x197   : > { %8565 = vmatpush1.bf16.xpose.msra.mxu0 %v13214_v53 }
 0x198   : > { %8566 = vmatprep.subr.bf16.mxu0 %v13222_v55  ;;  %v13273_v55 = vld [vmem:[%s15028_s27 + $0x74] ss:$676 sps:$4 sm:$0xff]  }
 0x199   : > { %8605 = vmatpush1.bf16.xpose.msra.mxu1 %v13217_v54 }
 0x19a   : > { %8606 = vmatprep.subr.bf16.mxu1 %v13225_v56 }
 0x19f   : > { %8567 = vmatpush1.bf16.xpose.msra.mxu0 %v13220_v58  ;;  %v12722_v58 = vcombine.low %v2415_v44, %v2415_v44 }
 0x1a0   : > { %8568 = vmatprep.subr.bf16.mxu0 %v12719_v60 }
 0x1a1   : > { %v8270_v0 = vpop.f32.mrb[4].mxu0  ;;  %8607 = vmatpush1.bf16.xpose.msra.mxu1 %v13223_v61 }
 0x1a2   : > { %v8271_v2 = vadd.f32 %v8270_v0, %v15238_v23  ;;  %v8272_v3 = vpop.f32.mrb[5].mxu0  ;;  %8608 = vmatprep.subr.bf16.mxu1 %v12721_v62  ;;  %v13239_v23 = vld [vmem:[%s15028_s27 + $0x5ac] ss:$676 sps:$4 sm:$0xff]   ;;  %v13277_v62 = vld [vmem:[%s15028_s27 + $0x7c] ss:$676 sps:$4 sm:$0xff]   ;;  %v12724_v0 = vcombine.low %v2416_v46, %v2416_v46 }
 0x1a3   : > { %v8273_v5 = vpop.f32.mrb[6].mxu0  ;;  %v8310_v6 = vpop.f32.mrb[4].mxu1 }
 0x1a4   : > { %v15282_v9 = vadd.f32 %v8310_v6, %v8271_v2  ;;  %v8274_v10 = vpop.f32.mrb[7].mxu0  ;;  %v8312_v12 = vpop.f32.mrb[5].mxu1  ;;  %v15330_v2 = vrot.slane %v443_v52, %v15052_v16  ;;  %v13271_v5 = vld [vmem:[%s15028_s27 + $0x70] ss:$676 sps:$4 sm:$0xff]  }
 0x1a5   : > { %v8313_v14 = vpop.f32.mrb[6].mxu1  ;;  %v13275_v10 = vld [vmem:[%s15028_s27 + $0x78] ss:$676 sps:$4 sm:$0xff]   ;;  %v1240_v12 = vpack.c.bf16 %v15286_v15, %v15286_v15  ;;  %v13289_v15 = vld [vmem:[%s15028_s27 + $0xb0c] ss:$676 sps:$4 sm:$0xff]  }
 0x1a6   : > { %v8314_v17 = vpop.f32.mrb[7].mxu1  ;;  %v459_v6 = vcombine.high %v15330_v2, %v15330_v2 }
 0x1a7   : > { %8569 = vmatpush1.bf16.xpose.msra.mxu0 %v12718_v7  ;;  %v1238_v7 = vpack.c.bf16 %v15280_v8, %v15280_v8  ;;  %v13278_v8 = vld [vmem:[%s15028_s27 + $0x5b8] ss:$676 sps:$4 sm:$0xff]   ;;  %v13286_v17 = vld [vmem:[%s15028_s27 + $0xb04] ss:$676 sps:$4 sm:$0xff]  }
 0x1a8   : > { %8636 = vmatprep.subr.bf16.mxu0 %v13232_v4  ;;  %v458_v4 = vcombine.high %v15324_v59, %v15324_v59  ;;  %v1245_v14 = vpack.c.bf16 %v459_v6, %v459_v6  ;;  %v13333_v6 = vld [vmem:[%s15028_s27 + $0x105c] ss:$676 sps:$4 sm:$0xff]  }
 0x1a9   : > { %8609 = vmatpush1.bf16.xpose.msra.mxu1 %v12720_v13  ;;  %v13283_v13 = vld [vmem:[%s15028_s27 + $0x5c4] ss:$676 sps:$4 sm:$0xff]  }
 0x1aa   : > { %8676 = vmatprep.subr.bf16.mxu1 %v13236_v11  ;;  %v1243_v11 = vpack.c.bf16 %v458_v4, %v458_v4  ;;  %v13330_v4 = vld [vmem:[%s15028_s27 + $0xb1c] ss:$676 sps:$4 sm:$0xff]  }
 0x1ae   : > { %8589 = vmatmul.mubr.bf16.vlgmr.msra.gmra.mrb[20].mxu0 %v1234_v21  ;;  %v13287_v21 = vld [vmem:[%s15028_s27 + $0xb08] ss:$676 sps:$4 sm:$0xff]  }
 0x1af   : > { %8637 = vmatpush1.bf16.xpose.msra.mxu0 %v13230_v19  ;;  %8668 = vmatprep.mubr.bf16.mxu0 %v1239_v25  ;;  %v13284_v19 = vld [vmem:[%s15028_s27 + $0xb00] ss:$676 sps:$4 sm:$0xff]   ;;  %v13298_v25 = vld [vmem:[%s15028_s27 + $0x1594] ss:$676 sps:$4 sm:$0xff]  }
 0x1b0   : > { %8629 = vmatmul.mubr.bf16.vlgmr.msra.gmra.mrb[20].mxu1 %v1236_v26  ;;  %8638 = vmatprep.subr.bf16.mxu0 %v13239_v23  ;;  %v13295_v23 = vld [vmem:[%s15028_s27 + $0x1054] ss:$676 sps:$4 sm:$0xff]  }
 0x1b1   : > { %8677 = vmatpush1.bf16.xpose.msra.mxu1 %v13234_v24  ;;  %8708 = vmatprep.mubr.bf16.mxu1 %v1241_v28  ;;  %v13290_v24 = vld [vmem:[%s15028_s27 + $0x1048] ss:$676 sps:$4 sm:$0xff]   ;;  %v13293_v26 = vld [vmem:[%s15028_s27 + $0x1050] ss:$676 sps:$4 sm:$0xff]  }
 0x1b2   : > { %8678 = vmatprep.subr.bf16.mxu1 %v13242_v27  ;;  %v13301_v27 = vld [vmem:[%s15028_s27 + $0x159c] ss:$676 sps:$4 sm:$0xff]   ;;  %v13296_v28 = vld [vmem:[%s15028_s27 + $0x1590] ss:$676 sps:$4 sm:$0xff]  }
 0x1b7   : > { %8639 = vmatpush1.bf16.xpose.msra.mxu0 %v13237_v22  ;;  %v13299_v22 = vld [vmem:[%s15028_s27 + $0x1598] ss:$676 sps:$4 sm:$0xff]  }
 0x1b8   : > { %8640 = vmatprep.subr.bf16.mxu0 %v13245_v30  ;;  %v13304_v30 = vld [vmem:[%s15028_s27 + $0x1adc] ss:$676 sps:$4 sm:$0xff]  }
 0x1b9   : > { %8679 = vmatpush1.bf16.xpose.msra.mxu1 %v13240_v31  ;;  %v13307_v31 = vld [vmem:[%s15028_s27 + $0x1ae4] ss:$676 sps:$4 sm:$0xff]  }
 0x1ba   : > { %8680 = vmatprep.subr.bf16.mxu1 %v13248_v29  ;;  %v2417_v29 = vld [vmem:[%s15028_s27 + $0x2020] sm:$0x33] }
 0x1bb   : > { %v12726_v44 = vcombine.low %v2417_v29, %v2417_v29 }
 0x1bf   : > { %8641 = vmatpush1.bf16.xpose.msra.mxu0 %v13243_v32  ;;  %v13302_v32 = vld [vmem:[%s15028_s27 + $0x1ad8] ss:$676 sps:$4 sm:$0xff]  }
 0x1c0   : > { %8642 = vmatprep.subr.bf16.mxu0 %v13251_v33  ;;  %v2418_v33 = vld [vmem:[%s15028_s27 + $0x2028] sm:$0x33] }
 0x1c1   : > { %8681 = vmatpush1.bf16.xpose.msra.mxu1 %v13246_v34  ;;  %v12727_v34 = vcombine.high %v2417_v29, %v2417_v29  ;;  %v12728_v50 = vcombine.low %v2418_v33, %v2418_v33 }
 0x1c2   : > { %8682 = vmatprep.subr.bf16.mxu1 %v13254_v35  ;;  %v13305_v35 = vld [vmem:[%s15028_s27 + $0x1ae0] ss:$676 sps:$4 sm:$0xff]  }
 0x1c7   : > { %8643 = vmatpush1.bf16.xpose.msra.mxu0 %v13249_v36  ;;  %v12729_v36 = vcombine.high %v2418_v33, %v2418_v33 }
 0x1c8   : > { %8644 = vmatprep.subr.bf16.mxu0 %v13257_v37  ;;  %v246_v37 = vld [vmem:[%s15022_s6 + $0x40] sm:$0xff] }
 0x1c9   : > { %8683 = vmatpush1.bf16.xpose.msra.mxu1 %v13252_v38 }
 0x1ca   : > { %8684 = vmatprep.subr.bf16.mxu1 %v13260_v39  ;;  %v460_v39 = vcombine.high %v246_v37, %v246_v37 }
 0x1cc   : > { %v15373_v52 = vrot.slane %v460_v39, %v15052_v16 }
 0x1cf   : > { %8645 = vmatpush1.bf16.xpose.msra.mxu0 %v13255_v40 }
 0x1d0   : > { %8646 = vmatprep.subr.bf16.mxu0 %v13263_v42 }
 0x1d1   : > { %8685 = vmatpush1.bf16.xpose.msra.mxu1 %v13258_v41 }
 0x1d2   : > { %8686 = vmatprep.subr.bf16.mxu1 %v13266_v43 }
 0x1d7   : > { %8647 = vmatpush1.bf16.xpose.msra.mxu0 %v13261_v45  ;;  %v15367_v45 = vrot.slane %v246_v37, %v15052_v16 }
 0x1d8   : > { %8648 = vmatprep.subr.bf16.mxu0 %v12723_v47 }
 0x1d9   : > { %v8350_v51 = vpop.f32.mrb[8].mxu0  ;;  %8687 = vmatpush1.bf16.xpose.msra.mxu1 %v13264_v48  ;;  %v13314_v48 = vld [vmem:[%s15028_s27 + $0x84] ss:$676 sps:$4 sm:$0xff]  }
 0x1da   : > { %v8351_v53 = vadd.f32 %v8350_v51, %v15282_v9  ;;  %v8352_v54 = vpop.f32.mrb[9].mxu0  ;;  %8688 = vmatprep.subr.bf16.mxu1 %v12725_v49  ;;  %v13280_v9 = vld [vmem:[%s15028_s27 + $0x5bc] ss:$676 sps:$4 sm:$0xff]  }
 0x1db   : > { %v8353_v56 = vpop.f32.mrb[10].mxu0  ;;  %v8390_v57 = vpop.f32.mrb[8].mxu1 }
 0x1dc   : > { %v15326_v60 = vadd.f32 %v8390_v57, %v8351_v53  ;;  %v8354_v61 = vpop.f32.mrb[11].mxu0  ;;  %v8392_v63 = vpop.f32.mrb[9].mxu1  ;;  %v13318_v53 = vld [vmem:[%s15028_s27 + $0x8c] ss:$676 sps:$4 sm:$0xff]   ;;  %v476_v56 = vcombine.high %v15373_v52, %v15373_v52  ;;  %v1242_v57 = vpack.c.bf16 %v15324_v59, %v15324_v59 }
 0x1dd   : > { %v8393_v1 = vpop.f32.mrb[10].mxu1  ;;  %v1244_v61 = vpack.c.bf16 %v15330_v2, %v15330_v2  ;;  %v13316_v63 = vld [vmem:[%s15028_s27 + $0x88] ss:$676 sps:$4 sm:$0xff]   ;;  %v13327_v2 = vld [vmem:[%s15028_s27 + $0xb14] ss:$676 sps:$4 sm:$0xff]  }
 0x1de   : > { %v8394_v3 = vpop.f32.mrb[11].mxu1  ;;  %v13324_v1 = vld [vmem:[%s15028_s27 + $0x5d4] ss:$676 sps:$4 sm:$0xff]   ;;  %v13319_v59 = vld [vmem:[%s15028_s27 + $0x5c8] ss:$676 sps:$4 sm:$0xff]  }
 0x1df   : > { %8649 = vmatpush1.bf16.xpose.msra.mxu0 %v12722_v58  ;;  %v13312_v58 = vld [vmem:[%s15028_s27 + $0x80] ss:$676 sps:$4 sm:$0xff]   ;;  %v13322_v3 = vld [vmem:[%s15028_s27 + $0x5d0] ss:$676 sps:$4 sm:$0xff]  }
 0x1e0   : > { %8716 = vmatprep.subr.bf16.mxu0 %v13273_v55  ;;  %v475_v55 = vcombine.high %v15367_v45, %v15367_v45 }
 0x1e1   : > { %8689 = vmatpush1.bf16.xpose.msra.mxu1 %v12724_v0  ;;  %v1249_v0 = vpack.c.bf16 %v476_v56, %v476_v56  ;;  %v13366_v56 = vld [vmem:[%s15028_s27 + $0xb20] ss:$676 sps:$4 sm:$0xff]  }
 0x1e2   : > { %8756 = vmatprep.subr.bf16.mxu1 %v13277_v62  ;;  %v13321_v62 = vld [vmem:[%s15028_s27 + $0x5cc] ss:$676 sps:$4 sm:$0xff]  }
 0x1e6   : > { %8669 = vmatmul.mubr.bf16.vlgmr.msra.gmra.mrb[24].mxu0 %v1238_v7  ;;  %v13328_v7 = vld [vmem:[%s15028_s27 + $0xb18] ss:$676 sps:$4 sm:$0xff]  }
 0x1e7   : > { %8717 = vmatpush1.bf16.xpose.msra.mxu0 %v13271_v5  ;;  %8748 = vmatprep.mubr.bf16.mxu0 %v1243_v11  ;;  %v13325_v5 = vld [vmem:[%s15028_s27 + $0xb10] ss:$676 sps:$4 sm:$0xff]   ;;  %v13339_v11 = vld [vmem:[%s15028_s27 + $0x15a4] ss:$676 sps:$4 sm:$0xff]  }
 0x1e8   : > { %8709 = vmatmul.mubr.bf16.vlgmr.msra.gmra.mrb[24].mxu1 %v1240_v12  ;;  %8718 = vmatprep.subr.bf16.mxu0 %v13280_v9  ;;  %v13336_v9 = vld [vmem:[%s15028_s27 + $0x1064] ss:$676 sps:$4 sm:$0xff]  }
 0x1e9   : > { %8757 = vmatpush1.bf16.xpose.msra.mxu1 %v13275_v10  ;;  %8788 = vmatprep.mubr.bf16.mxu1 %v1245_v14  ;;  %v13331_v10 = vld [vmem:[%s15028_s27 + $0x1058] ss:$676 sps:$4 sm:$0xff]   ;;  %v13334_v12 = vld [vmem:[%s15028_s27 + $0x1060] ss:$676 sps:$4 sm:$0xff]  }
 0x1ea   : > { %8758 = vmatprep.subr.bf16.mxu1 %v13283_v13  ;;  %v13342_v13 = vld [vmem:[%s15028_s27 + $0x15ac] ss:$676 sps:$4 sm:$0xff]   ;;  %v13337_v14 = vld [vmem:[%s15028_s27 + $0x15a0] ss:$676 sps:$4 sm:$0xff]  }
 0x1ef   : > { %8719 = vmatpush1.bf16.xpose.msra.mxu0 %v13278_v8  ;;  %v13345_v8 = vld [vmem:[%s15028_s27 + $0x1aec] ss:$676 sps:$4 sm:$0xff]  }
 0x1f0   : > { %8720 = vmatprep.subr.bf16.mxu0 %v13286_v17  ;;  %v13340_v17 = vld [vmem:[%s15028_s27 + $0x15a8] ss:$676 sps:$4 sm:$0xff]  }
 0x1f1   : > { %8759 = vmatpush1.bf16.xpose.msra.mxu1 %v13281_v18  ;;  %v13348_v18 = vld [vmem:[%s15028_s27 + $0x1af4] ss:$676 sps:$4 sm:$0xff]  }
 0x1f2   : > { %8760 = vmatprep.subr.bf16.mxu1 %v13289_v15  ;;  %v2419_v15 = vld [vmem:[%s15028_s27 + $0x2030] sm:$0x33] }
 0x1f3   : > { %v12730_v29 = vcombine.low %v2419_v15, %v2419_v15 }
 0x1f7   : > { %8721 = vmatpush1.bf16.xpose.msra.mxu0 %v13284_v19  ;;  %v13343_v19 = vld [vmem:[%s15028_s27 + $0x1ae8] ss:$676 sps:$4 sm:$0xff]  }
 0x1f8   : > { %8722 = vmatprep.subr.bf16.mxu0 %v13292_v20  ;;  %v2420_v20 = vld [vmem:[%s15028_s27 + $0x2038] sm:$0x33] }
 0x1f9   : > { %8761 = vmatpush1.bf16.xpose.msra.mxu1 %v13287_v21  ;;  %v12731_v21 = vcombine.high %v2419_v15, %v2419_v15  ;;  %v12732_v37 = vcombine.low %v2420_v20, %v2420_v20 }
 0x1fa   : > { %8762 = vmatprep.subr.bf16.mxu1 %v13295_v23  ;;  %v13346_v23 = vld [vmem:[%s15028_s27 + $0x1af0] ss:$676 sps:$4 sm:$0xff]  }
 0x1ff   : > { %8723 = vmatpush1.bf16.xpose.msra.mxu0 %v13290_v24  ;;  %v12733_v24 = vcombine.high %v2420_v20, %v2420_v20 }
 0x200   : > { %8724 = vmatprep.subr.bf16.mxu0 %v13298_v25  ;;  %v247_v25 = vld [vmem:[%s15022_s6 + $0x48] sm:$0xff] }
 0x201   : > { %8763 = vmatpush1.bf16.xpose.msra.mxu1 %v13293_v26 }
 0x202   : > { %8764 = vmatprep.subr.bf16.mxu1 %v13301_v27  ;;  %v477_v27 = vcombine.high %v247_v25, %v247_v25 }
 0x204   : > { %v15417_v39 = vrot.slane %v477_v27, %v15052_v16 }
 0x207   : > { %8725 = vmatpush1.bf16.xpose.msra.mxu0 %v13296_v28 }
 0x208   : > { %8726 = vmatprep.subr.bf16.mxu0 %v13304_v30 }
 0x209   : > { %8765 = vmatpush1.bf16.xpose.msra.mxu1 %v13299_v22 }
 0x20a   : > { %8766 = vmatprep.subr.bf16.mxu1 %v13307_v31 }
 0x20f   : > { %8727 = vmatpush1.bf16.xpose.msra.mxu0 %v13302_v32  ;;  %v15411_v32 = vrot.slane %v247_v25, %v15052_v16 }
 0x210   : > { %8728 = vmatprep.subr.bf16.mxu0 %v12727_v34 }
 0x211   : > { %v8430_v38 = vpop.f32.mrb[12].mxu0  ;;  %8767 = vmatpush1.bf16.xpose.msra.mxu1 %v13305_v35  ;;  %v13355_v35 = vld [vmem:[%s15028_s27 + $0x94] ss:$676 sps:$4 sm:$0xff]  }
 0x212   : > { %v8431_v40 = vadd.f32 %v8430_v38, %v15326_v60  ;;  %v8432_v41 = vpop.f32.mrb[13].mxu0  ;;  %8768 = vmatprep.subr.bf16.mxu1 %v12729_v36  ;;  %v1247_v60 = vpack.c.bf16 %v475_v55, %v475_v55  ;;  %v13371_v55 = vld [vmem:[%s15028_s27 + $0xb2c] ss:$676 sps:$4 sm:$0xff]  }
 0x213   : > { %v8433_v42 = vpop.f32.mrb[14].mxu0  ;;  %v8470_v43 = vpop.f32.mrb[12].mxu1 }
 0x214   : > { %v15369_v46 = vadd.f32 %v8470_v43, %v8431_v40  ;;  %v8434_v47 = vpop.f32.mrb[15].mxu0  ;;  %v8472_v49 = vpop.f32.mrb[13].mxu1  ;;  %v13359_v40 = vld [vmem:[%s15028_s27 + $0x9c] ss:$676 sps:$4 sm:$0xff]   ;;  %v492_v42 = vcombine.high %v15411_v32, %v15411_v32  ;;  %v493_v43 = vcombine.high %v15417_v39, %v15417_v39 }
 0x215   : > { %v8473_v51 = vpop.f32.mrb[14].mxu1  ;;  %v13362_v49 = vld [vmem:[%s15028_s27 + $0x5dc] ss:$676 sps:$4 sm:$0xff]  }
 0x216   : > { %v8474_v54 = vpop.f32.mrb[15].mxu1  ;;  %v1251_v47 = vpack.c.bf16 %v492_v42, %v492_v42  ;;  %v1253_v51 = vpack.c.bf16 %v493_v43, %v493_v43  ;;  %v13412_v42 = vld [vmem:[%s15028_s27 + $0xb3c] ss:$676 sps:$4 sm:$0xff]   ;;  %v13407_v43 = vld [vmem:[%s15028_s27 + $0xb30] ss:$676 sps:$4 sm:$0xff]  }
 0x217   : > { %8729 = vmatpush1.bf16.xpose.msra.mxu0 %v12726_v44  ;;  %v1246_v44 = vpack.c.bf16 %v15367_v45, %v15367_v45  ;;  %v13360_v45 = vld [vmem:[%s15028_s27 + $0x5d8] ss:$676 sps:$4 sm:$0xff]   ;;  %v13363_v54 = vld [vmem:[%s15028_s27 + $0x5e0] ss:$676 sps:$4 sm:$0xff]  }
 0x218   : > { %8796 = vmatprep.subr.bf16.mxu0 %v13314_v48  ;;  %v1248_v48 = vpack.c.bf16 %v15373_v52, %v15373_v52  ;;  %v13368_v52 = vld [vmem:[%s15028_s27 + $0xb24] ss:$676 sps:$4 sm:$0xff]  }
 0x219   : > { %8769 = vmatpush1.bf16.xpose.msra.mxu1 %v12728_v50  ;;  %v13357_v50 = vld [vmem:[%s15028_s27 + $0x98] ss:$676 sps:$4 sm:$0xff]  }
 0x21a   : > { %8836 = vmatprep.subr.bf16.mxu1 %v13318_v53  ;;  %v13365_v53 = vld [vmem:[%s15028_s27 + $0x5e4] ss:$676 sps:$4 sm:$0xff]  }
 0x21e   : > { %8749 = vmatmul.mubr.bf16.vlgmr.msra.gmra.mrb[28].mxu0 %v1242_v57  ;;  %v13374_v57 = vld [vmem:[%s15028_s27 + $0x106c] ss:$676 sps:$4 sm:$0xff]  }
 0x21f   : > { %8797 = vmatpush1.bf16.xpose.msra.mxu0 %v13312_v58  ;;  %8828 = vmatprep.mubr.bf16.mxu0 %v1247_v60  ;;  %v13369_v58 = vld [vmem:[%s15028_s27 + $0xb28] ss:$676 sps:$4 sm:$0xff]   ;;  %v13377_v60 = vld [vmem:[%s15028_s27 + $0x1074] ss:$676 sps:$4 sm:$0xff]  }
 0x220   : > { %8789 = vmatmul.mubr.bf16.vlgmr.msra.gmra.mrb[28].mxu1 %v1244_v61  ;;  %8798 = vmatprep.subr.bf16.mxu0 %v13321_v62  ;;  %v13372_v61 = vld [vmem:[%s15028_s27 + $0x1068] ss:$676 sps:$4 sm:$0xff]   ;;  %v13380_v62 = vld [vmem:[%s15028_s27 + $0x15b4] ss:$676 sps:$4 sm:$0xff]  }
 0x221   : > { %8837 = vmatpush1.bf16.xpose.msra.mxu1 %v13316_v63  ;;  %8868 = vmatprep.mubr.bf16.mxu1 %v1249_v0  ;;  %v13375_v63 = vld [vmem:[%s15028_s27 + $0x1070] ss:$676 sps:$4 sm:$0xff]   ;;  %v13383_v0 = vld [vmem:[%s15028_s27 + $0x15bc] ss:$676 sps:$4 sm:$0xff]  }
 0x222   : > { %8838 = vmatprep.subr.bf16.mxu1 %v13324_v1  ;;  %v13378_v1 = vld [vmem:[%s15028_s27 + $0x15b0] ss:$676 sps:$4 sm:$0xff]  }
 0x227   : > { %8799 = vmatpush1.bf16.xpose.msra.mxu0 %v13319_v59  ;;  %v13386_v59 = vld [vmem:[%s15028_s27 + $0x1afc] ss:$676 sps:$4 sm:$0xff]  }
 0x228   : > { %8800 = vmatprep.subr.bf16.mxu0 %v13327_v2  ;;  %v13381_v2 = vld [vmem:[%s15028_s27 + $0x15b8] ss:$676 sps:$4 sm:$0xff]  }
 0x229   : > { %8839 = vmatpush1.bf16.xpose.msra.mxu1 %v13322_v3  ;;  %v13389_v3 = vld [vmem:[%s15028_s27 + $0x1b04] ss:$676 sps:$4 sm:$0xff]  }
 0x22a   : > { %8840 = vmatprep.subr.bf16.mxu1 %v13330_v4  ;;  %v2421_v4 = vld [vmem:[%s15028_s27 + $0x2040] sm:$0x33] }
 0x22b   : > { %v12734_v15 = vcombine.low %v2421_v4, %v2421_v4 }
 0x22f   : > { %8801 = vmatpush1.bf16.xpose.msra.mxu0 %v13325_v5  ;;  %v13384_v5 = vld [vmem:[%s15028_s27 + $0x1af8] ss:$676 sps:$4 sm:$0xff]  }
 0x230   : > { %8802 = vmatprep.subr.bf16.mxu0 %v13333_v6  ;;  %v2422_v6 = vld [vmem:[%s15028_s27 + $0x2048] sm:$0x33] }
 0x231   : > { %8841 = vmatpush1.bf16.xpose.msra.mxu1 %v13328_v7  ;;  %v12735_v7 = vcombine.high %v2421_v4, %v2421_v4  ;;  %v12736_v25 = vcombine.low %v2422_v6, %v2422_v6 }
 0x232   : > { %8842 = vmatprep.subr.bf16.mxu1 %v13336_v9  ;;  %v13387_v9 = vld [vmem:[%s15028_s27 + $0x1b00] ss:$676 sps:$4 sm:$0xff]  }
 0x237   : > { %8803 = vmatpush1.bf16.xpose.msra.mxu0 %v13331_v10  ;;  %v12737_v10 = vcombine.high %v2422_v6, %v2422_v6 }
 0x238   : > { %8804 = vmatprep.subr.bf16.mxu0 %v13339_v11  ;;  %v248_v11 = vld [vmem:[%s15022_s6 + $0x50] sm:$0xff] }
 0x239   : > { %8843 = vmatpush1.bf16.xpose.msra.mxu1 %v13334_v12 }
 0x23a   : > { %8844 = vmatprep.subr.bf16.mxu1 %v13342_v13  ;;  %v494_v13 = vcombine.high %v248_v11, %v248_v11 }
 0x23c   : > { %v15461_v27 = vrot.slane %v494_v13, %v15052_v16 }
 0x23f   : > { %8805 = vmatpush1.bf16.xpose.msra.mxu0 %v13337_v14 }
 0x240   : > { %8806 = vmatprep.subr.bf16.mxu0 %v13345_v8 }
 0x241   : > { %8845 = vmatpush1.bf16.xpose.msra.mxu1 %v13340_v17 }
 0x242   : > { %8846 = vmatprep.subr.bf16.mxu1 %v13348_v18 }
 0x247   : > { %8807 = vmatpush1.bf16.xpose.msra.mxu0 %v13343_v19  ;;  %v15455_v19 = vrot.slane %v248_v11, %v15052_v16 }
 0x248   : > { %8808 = vmatprep.subr.bf16.mxu0 %v12731_v21 }
 0x249   : > { %v8510_v26 = vpop.f32.mrb[16].mxu0  ;;  %8847 = vmatpush1.bf16.xpose.msra.mxu1 %v13346_v23  ;;  %v13396_v23 = vld [vmem:[%s15028_s27 + $0xa4] ss:$676 sps:$4 sm:$0xff]  }
 0x24a   : > { %v8511_v28 = vadd.f32 %v8510_v26, %v15369_v46  ;;  %v8512_v22 = vpop.f32.mrb[17].mxu0  ;;  %8848 = vmatprep.subr.bf16.mxu1 %v12733_v24  ;;  %v13353_v46 = vld [vmem:[%s15028_s27 + $0x90] ss:$676 sps:$4 sm:$0xff]  }
 0x24b   : > { %v8513_v30 = vpop.f32.mrb[18].mxu0  ;;  %v8550_v31 = vpop.f32.mrb[16].mxu1 }
 0x24c   : > { %v15413_v33 = vadd.f32 %v8550_v31, %v8511_v28  ;;  %v8514_v34 = vpop.f32.mrb[19].mxu0  ;;  %v8552_v36 = vpop.f32.mrb[17].mxu1  ;;  %v13400_v28 = vld [vmem:[%s15028_s27 + $0xac] ss:$676 sps:$4 sm:$0xff]   ;;  %v509_v30 = vcombine.high %v15455_v19, %v15455_v19  ;;  %v510_v31 = vcombine.high %v15461_v27, %v15461_v27 }
 0x24d   : > { %v8553_v38 = vpop.f32.mrb[18].mxu1  ;;  %v13403_v36 = vld [vmem:[%s15028_s27 + $0x5ec] ss:$676 sps:$4 sm:$0xff]  }
 0x24e   : > { %v8554_v41 = vpop.f32.mrb[19].mxu1  ;;  %v1255_v34 = vpack.c.bf16 %v509_v30, %v509_v30  ;;  %v1257_v38 = vpack.c.bf16 %v510_v31, %v510_v31  ;;  %v13453_v30 = vld [vmem:[%s15028_s27 + $0xb4c] ss:$676 sps:$4 sm:$0xff]   ;;  %v13448_v31 = vld [vmem:[%s15028_s27 + $0xb40] ss:$676 sps:$4 sm:$0xff]  }
 0x24f   : > { %8809 = vmatpush1.bf16.xpose.msra.mxu0 %v12730_v29  ;;  %v1250_v29 = vpack.c.bf16 %v15411_v32, %v15411_v32  ;;  %v13401_v32 = vld [vmem:[%s15028_s27 + $0x5e8] ss:$676 sps:$4 sm:$0xff]   ;;  %v13404_v41 = vld [vmem:[%s15028_s27 + $0x5f0] ss:$676 sps:$4 sm:$0xff]  }
 0x250   : > { %8876 = vmatprep.subr.bf16.mxu0 %v13355_v35  ;;  %v1252_v35 = vpack.c.bf16 %v15417_v39, %v15417_v39  ;;  %v13409_v39 = vld [vmem:[%s15028_s27 + $0xb34] ss:$676 sps:$4 sm:$0xff]  }
 0x251   : > { %8849 = vmatpush1.bf16.xpose.msra.mxu1 %v12732_v37  ;;  %v13398_v37 = vld [vmem:[%s15028_s27 + $0xa8] ss:$676 sps:$4 sm:$0xff]  }
 0x252   : > { %8916 = vmatprep.subr.bf16.mxu1 %v13359_v40  ;;  %v13406_v40 = vld [vmem:[%s15028_s27 + $0x5f4] ss:$676 sps:$4 sm:$0xff]  }
 0x256   : > { %8829 = vmatmul.mubr.bf16.vlgmr.msra.gmra.mrb[32].mxu0 %v1246_v44  ;;  %v13415_v44 = vld [vmem:[%s15028_s27 + $0x107c] ss:$676 sps:$4 sm:$0xff]  }
 0x257   : > { %8877 = vmatpush1.bf16.xpose.msra.mxu0 %v13353_v46  ;;  %8908 = vmatprep.mubr.bf16.mxu0 %v1251_v47  ;;  %v13410_v46 = vld [vmem:[%s15028_s27 + $0xb38] ss:$676 sps:$4 sm:$0xff]   ;;  %v13418_v47 = vld [vmem:[%s15028_s27 + $0x1084] ss:$676 sps:$4 sm:$0xff]  }
 0x258   : > { %8869 = vmatmul.mubr.bf16.vlgmr.msra.gmra.mrb[32].mxu1 %v1248_v48  ;;  %8878 = vmatprep.subr.bf16.mxu0 %v13362_v49  ;;  %v13413_v48 = vld [vmem:[%s15028_s27 + $0x1078] ss:$676 sps:$4 sm:$0xff]   ;;  %v13421_v49 = vld [vmem:[%s15028_s27 + $0x15c4] ss:$676 sps:$4 sm:$0xff]  }
 0x259   : > { %8917 = vmatpush1.bf16.xpose.msra.mxu1 %v13357_v50  ;;  %8948 = vmatprep.mubr.bf16.mxu1 %v1253_v51  ;;  %v13416_v50 = vld [vmem:[%s15028_s27 + $0x1080] ss:$676 sps:$4 sm:$0xff]   ;;  %v13424_v51 = vld [vmem:[%s15028_s27 + $0x15cc] ss:$676 sps:$4 sm:$0xff]  }
 0x25a   : > { %8918 = vmatprep.subr.bf16.mxu1 %v13365_v53  ;;  %v13419_v53 = vld [vmem:[%s15028_s27 + $0x15c0] ss:$676 sps:$4 sm:$0xff]  }
 0x25f   : > { %8879 = vmatpush1.bf16.xpose.msra.mxu0 %v13360_v45  ;;  %v13427_v45 = vld [vmem:[%s15028_s27 + $0x1b0c] ss:$676 sps:$4 sm:$0xff]  }
 0x260   : > { %8880 = vmatprep.subr.bf16.mxu0 %v13368_v52  ;;  %v13422_v52 = vld [vmem:[%s15028_s27 + $0x15c8] ss:$676 sps:$4 sm:$0xff]  }
 0x261   : > { %8919 = vmatpush1.bf16.xpose.msra.mxu1 %v13363_v54  ;;  %v13430_v54 = vld [vmem:[%s15028_s27 + $0x1b14] ss:$676 sps:$4 sm:$0xff]  }
 0x262   : > { %8920 = vmatprep.subr.bf16.mxu1 %v13371_v55  ;;  %v2423_v55 = vld [vmem:[%s15028_s27 + $0x2050] sm:$0x33] }
 0x263   : > { %v12738_v4 = vcombine.low %v2423_v55, %v2423_v55 }
 0x267   : > { %8881 = vmatpush1.bf16.xpose.msra.mxu0 %v13366_v56  ;;  %v13425_v56 = vld [vmem:[%s15028_s27 + $0x1b08] ss:$676 sps:$4 sm:$0xff]  }
 0x268   : > { %8882 = vmatprep.subr.bf16.mxu0 %v13374_v57  ;;  %v2424_v57 = vld [vmem:[%s15028_s27 + $0x2058] sm:$0x33] }
 0x269   : > { %8921 = vmatpush1.bf16.xpose.msra.mxu1 %v13369_v58  ;;  %v12739_v58 = vcombine.high %v2423_v55, %v2423_v55  ;;  %v12740_v11 = vcombine.low %v2424_v57, %v2424_v57 }
 0x26a   : > { %8922 = vmatprep.subr.bf16.mxu1 %v13377_v60  ;;  %v13428_v60 = vld [vmem:[%s15028_s27 + $0x1b10] ss:$676 sps:$4 sm:$0xff]  }
 0x26f   : > { %8883 = vmatpush1.bf16.xpose.msra.mxu0 %v13372_v61  ;;  %v12741_v61 = vcombine.high %v2424_v57, %v2424_v57 }
 0x270   : > { %8884 = vmatprep.subr.bf16.mxu0 %v13380_v62  ;;  %v249_v62 = vld [vmem:[%s15022_s6 + $0x58] sm:$0xff] }
 0x271   : > { %8923 = vmatpush1.bf16.xpose.msra.mxu1 %v13375_v63 }
 0x272   : > { %8924 = vmatprep.subr.bf16.mxu1 %v13383_v0  ;;  %v511_v0 = vcombine.high %v249_v62, %v249_v62 }
 0x274   : > { %v15505_v13 = vrot.slane %v511_v0, %v15052_v16 }
 0x277   : > { %8885 = vmatpush1.bf16.xpose.msra.mxu0 %v13378_v1 }
 0x278   : > { %8886 = vmatprep.subr.bf16.mxu0 %v13386_v59 }
 0x279   : > { %8925 = vmatpush1.bf16.xpose.msra.mxu1 %v13381_v2 }
 0x27a   : > { %8926 = vmatprep.subr.bf16.mxu1 %v13389_v3 }
 0x27f   : > { %8887 = vmatpush1.bf16.xpose.msra.mxu0 %v13384_v5  ;;  %v15499_v5 = vrot.slane %v249_v62, %v15052_v16 }
 0x280   : > { %8888 = vmatprep.subr.bf16.mxu0 %v12735_v7 }
 0x281   : > { %v8590_v12 = vpop.f32.mrb[20].mxu0  ;;  %8927 = vmatpush1.bf16.xpose.msra.mxu1 %v13387_v9  ;;  %v13437_v9 = vld [vmem:[%s15028_s27 + $0xb4] ss:$676 sps:$4 sm:$0xff]  }
 0x282   : > { %v8591_v14 = vadd.f32 %v8590_v12, %v15413_v33  ;;  %v8592_v8 = vpop.f32.mrb[21].mxu0  ;;  %8928 = vmatprep.subr.bf16.mxu1 %v12737_v10  ;;  %v13394_v33 = vld [vmem:[%s15028_s27 + $0xa0] ss:$676 sps:$4 sm:$0xff]  }
 0x283   : > { %v8593_v17 = vpop.f32.mrb[22].mxu0  ;;  %v8630_v18 = vpop.f32.mrb[20].mxu1 }
 0x284   : > { %v15457_v20 = vadd.f32 %v8630_v18, %v8591_v14  ;;  %v8594_v21 = vpop.f32.mrb[23].mxu0  ;;  %v8632_v24 = vpop.f32.mrb[21].mxu1  ;;  %v13441_v14 = vld [vmem:[%s15028_s27 + $0xbc] ss:$676 sps:$4 sm:$0xff]   ;;  %v526_v17 = vcombine.high %v15499_v5, %v15499_v5  ;;  %v527_v18 = vcombine.high %v15505_v13, %v15505_v13 }
 0x285   : > { %v8633_v26 = vpop.f32.mrb[22].mxu1  ;;  %v13444_v24 = vld [vmem:[%s15028_s27 + $0x5fc] ss:$676 sps:$4 sm:$0xff]  }
 0x286   : > { %v8634_v22 = vpop.f32.mrb[23].mxu1  ;;  %v1259_v21 = vpack.c.bf16 %v526_v17, %v526_v17  ;;  %v1261_v26 = vpack.c.bf16 %v527_v18, %v527_v18  ;;  %v13494_v17 = vld [vmem:[%s15028_s27 + $0xb5c] ss:$676 sps:$4 sm:$0xff]   ;;  %v13489_v18 = vld [vmem:[%s15028_s27 + $0xb50] ss:$676 sps:$4 sm:$0xff]  }
 0x287   : > { %8889 = vmatpush1.bf16.xpose.msra.mxu0 %v12734_v15  ;;  %v1254_v15 = vpack.c.bf16 %v15455_v19, %v15455_v19  ;;  %v13442_v19 = vld [vmem:[%s15028_s27 + $0x5f8] ss:$676 sps:$4 sm:$0xff]   ;;  %v13445_v22 = vld [vmem:[%s15028_s27 + $0x600] ss:$676 sps:$4 sm:$0xff]  }
 0x288   : > { %8956 = vmatprep.subr.bf16.mxu0 %v13396_v23  ;;  %v1256_v23 = vpack.c.bf16 %v15461_v27, %v15461_v27  ;;  %v13450_v27 = vld [vmem:[%s15028_s27 + $0xb44] ss:$676 sps:$4 sm:$0xff]  }
 0x289   : > { %8929 = vmatpush1.bf16.xpose.msra.mxu1 %v12736_v25  ;;  %v13439_v25 = vld [vmem:[%s15028_s27 + $0xb8] ss:$676 sps:$4 sm:$0xff]  }
 0x28a   : > { %8996 = vmatprep.subr.bf16.mxu1 %v13400_v28  ;;  %v13447_v28 = vld [vmem:[%s15028_s27 + $0x604] ss:$676 sps:$4 sm:$0xff]  }
 0x28e   : > { %8909 = vmatmul.mubr.bf16.vlgmr.msra.gmra.mrb[36].mxu0 %v1250_v29  ;;  %v13456_v29 = vld [vmem:[%s15028_s27 + $0x108c] ss:$676 sps:$4 sm:$0xff]  }
 0x28f   : > { %8957 = vmatpush1.bf16.xpose.msra.mxu0 %v13394_v33  ;;  %8988 = vmatprep.mubr.bf16.mxu0 %v1255_v34  ;;  %v13451_v33 = vld [vmem:[%s15028_s27 + $0xb48] ss:$676 sps:$4 sm:$0xff]   ;;  %v13459_v34 = vld [vmem:[%s15028_s27 + $0x1094] ss:$676 sps:$4 sm:$0xff]  }
 0x290   : > { %8949 = vmatmul.mubr.bf16.vlgmr.msra.gmra.mrb[36].mxu1 %v1252_v35  ;;  %8958 = vmatprep.subr.bf16.mxu0 %v13403_v36  ;;  %v13454_v35 = vld [vmem:[%s15028_s27 + $0x1088] ss:$676 sps:$4 sm:$0xff]   ;;  %v13462_v36 = vld [vmem:[%s15028_s27 + $0x15d4] ss:$676 sps:$4 sm:$0xff]  }
 0x291   : > { %8997 = vmatpush1.bf16.xpose.msra.mxu1 %v13398_v37  ;;  %9028 = vmatprep.mubr.bf16.mxu1 %v1257_v38  ;;  %v13457_v37 = vld [vmem:[%s15028_s27 + $0x1090] ss:$676 sps:$4 sm:$0xff]   ;;  %v13465_v38 = vld [vmem:[%s15028_s27 + $0x15dc] ss:$676 sps:$4 sm:$0xff]  }
 0x292   : > { %8998 = vmatprep.subr.bf16.mxu1 %v13406_v40  ;;  %v13460_v40 = vld [vmem:[%s15028_s27 + $0x15d0] ss:$676 sps:$4 sm:$0xff]  }
 0x297   : > { %8959 = vmatpush1.bf16.xpose.msra.mxu0 %v13401_v32  ;;  %v13468_v32 = vld [vmem:[%s15028_s27 + $0x1b1c] ss:$676 sps:$4 sm:$0xff]  }
 0x298   : > { %8960 = vmatprep.subr.bf16.mxu0 %v13409_v39  ;;  %v13463_v39 = vld [vmem:[%s15028_s27 + $0x15d8] ss:$676 sps:$4 sm:$0xff]  }
 0x299   : > { %8999 = vmatpush1.bf16.xpose.msra.mxu1 %v13404_v41  ;;  %v13471_v41 = vld [vmem:[%s15028_s27 + $0x1b24] ss:$676 sps:$4 sm:$0xff]  }
 0x29a   : > { %9000 = vmatprep.subr.bf16.mxu1 %v13412_v42  ;;  %v2425_v42 = vld [vmem:[%s15028_s27 + $0x2060] sm:$0x33] }
 0x29b   : > { %v12742_v55 = vcombine.low %v2425_v42, %v2425_v42 }
 0x29f   : > { %8961 = vmatpush1.bf16.xpose.msra.mxu0 %v13407_v43  ;;  %v13466_v43 = vld [vmem:[%s15028_s27 + $0x1b18] ss:$676 sps:$4 sm:$0xff]  }
 0x2a0   : > { %8962 = vmatprep.subr.bf16.mxu0 %v13415_v44  ;;  %v2426_v44 = vld [vmem:[%s15028_s27 + $0x2068] sm:$0x33] }
 0x2a1   : > { %9001 = vmatpush1.bf16.xpose.msra.mxu1 %v13410_v46  ;;  %v12743_v46 = vcombine.high %v2425_v42, %v2425_v42  ;;  %v12744_v62 = vcombine.low %v2426_v44, %v2426_v44 }
 0x2a2   : > { %9002 = vmatprep.subr.bf16.mxu1 %v13418_v47  ;;  %v13469_v47 = vld [vmem:[%s15028_s27 + $0x1b20] ss:$676 sps:$4 sm:$0xff]  }
 0x2a7   : > { %8963 = vmatpush1.bf16.xpose.msra.mxu0 %v13413_v48  ;;  %v12745_v48 = vcombine.high %v2426_v44, %v2426_v44 }
 0x2a8   : > { %8964 = vmatprep.subr.bf16.mxu0 %v13421_v49  ;;  %v250_v49 = vld [vmem:[%s15022_s6 + $0x60] sm:$0xff] }
 0x2a9   : > { %9003 = vmatpush1.bf16.xpose.msra.mxu1 %v13416_v50 }
 0x2aa   : > { %9004 = vmatprep.subr.bf16.mxu1 %v13424_v51  ;;  %v528_v51 = vcombine.high %v250_v49, %v250_v49 }
 0x2ac   : > { %v15549_v0 = vrot.slane %v528_v51, %v15052_v16 }
 0x2af   : > { %8965 = vmatpush1.bf16.xpose.msra.mxu0 %v13419_v53 }
 0x2b0   : > { %8966 = vmatprep.subr.bf16.mxu0 %v13427_v45 }
 0x2b1   : > { %9005 = vmatpush1.bf16.xpose.msra.mxu1 %v13422_v52 }
 0x2b2   : > { %9006 = vmatprep.subr.bf16.mxu1 %v13430_v54 }
 0x2b7   : > { %8967 = vmatpush1.bf16.xpose.msra.mxu0 %v13425_v56  ;;  %v15543_v56 = vrot.slane %v250_v49, %v15052_v16 }
 0x2b8   : > { %8968 = vmatprep.subr.bf16.mxu0 %v12739_v58 }
 0x2b9   : > { %v8670_v63 = vpop.f32.mrb[24].mxu0  ;;  %9007 = vmatpush1.bf16.xpose.msra.mxu1 %v13428_v60  ;;  %v13478_v60 = vld [vmem:[%s15028_s27 + $0xc4] ss:$676 sps:$4 sm:$0xff]  }
 0x2ba   : > { %v8671_v1 = vadd.f32 %v8670_v63, %v15457_v20  ;;  %v8672_v59 = vpop.f32.mrb[25].mxu0  ;;  %9008 = vmatprep.subr.bf16.mxu1 %v12741_v61  ;;  %v13435_v20 = vld [vmem:[%s15028_s27 + $0xb0] ss:$676 sps:$4 sm:$0xff]  }
 0x2bb   : > { %v8673_v2 = vpop.f32.mrb[26].mxu0  ;;  %v8710_v3 = vpop.f32.mrb[24].mxu1 }
 0x2bc   : > { %v15501_v6 = vadd.f32 %v8710_v3, %v8671_v1  ;;  %v8674_v7 = vpop.f32.mrb[27].mxu0  ;;  %v8712_v10 = vpop.f32.mrb[25].mxu1  ;;  %v13482_v1 = vld [vmem:[%s15028_s27 + $0xcc] ss:$676 sps:$4 sm:$0xff]   ;;  %v543_v2 = vcombine.high %v15543_v56, %v15543_v56  ;;  %v544_v3 = vcombine.high %v15549_v0, %v15549_v0 }
 0x2bd   : > { %v8713_v12 = vpop.f32.mrb[26].mxu1  ;;  %v13485_v10 = vld [vmem:[%s15028_s27 + $0x60c] ss:$676 sps:$4 sm:$0xff]  }
 0x2be   : > { %v8714_v8 = vpop.f32.mrb[27].mxu1  ;;  %v1263_v7 = vpack.c.bf16 %v543_v2, %v543_v2  ;;  %v1265_v12 = vpack.c.bf16 %v544_v3, %v544_v3  ;;  %v13535_v2 = vld [vmem:[%s15028_s27 + $0xb6c] ss:$676 sps:$4 sm:$0xff]   ;;  %v13530_v3 = vld [vmem:[%s15028_s27 + $0xb60] ss:$676 sps:$4 sm:$0xff]  }
 0x2bf   : > { %8969 = vmatpush1.bf16.xpose.msra.mxu0 %v12738_v4  ;;  %v1258_v4 = vpack.c.bf16 %v15499_v5, %v15499_v5  ;;  %v13483_v5 = vld [vmem:[%s15028_s27 + $0x608] ss:$676 sps:$4 sm:$0xff]   ;;  %v13486_v8 = vld [vmem:[%s15028_s27 + $0x610] ss:$676 sps:$4 sm:$0xff]  }
 0x2c0   : > { %9036 = vmatprep.subr.bf16.mxu0 %v13437_v9  ;;  %v1260_v9 = vpack.c.bf16 %v15505_v13, %v15505_v13  ;;  %v13491_v13 = vld [vmem:[%s15028_s27 + $0xb54] ss:$676 sps:$4 sm:$0xff]  }
 0x2c1   : > { %9009 = vmatpush1.bf16.xpose.msra.mxu1 %v12740_v11  ;;  %v13480_v11 = vld [vmem:[%s15028_s27 + $0xc8] ss:$676 sps:$4 sm:$0xff]  }
 0x2c2   : > { %9076 = vmatprep.subr.bf16.mxu1 %v13441_v14  ;;  %v13488_v14 = vld [vmem:[%s15028_s27 + $0x614] ss:$676 sps:$4 sm:$0xff]  }
 0x2c6   : > { %8989 = vmatmul.mubr.bf16.vlgmr.msra.gmra.mrb[40].mxu0 %v1254_v15  ;;  %v13497_v15 = vld [vmem:[%s15028_s27 + $0x109c] ss:$676 sps:$4 sm:$0xff]  }
 0x2c7   : > { %9037 = vmatpush1.bf16.xpose.msra.mxu0 %v13435_v20  ;;  %9068 = vmatprep.mubr.bf16.mxu0 %v1259_v21  ;;  %v13492_v20 = vld [vmem:[%s15028_s27 + $0xb58] ss:$676 sps:$4 sm:$0xff]   ;;  %v13500_v21 = vld [vmem:[%s15028_s27 + $0x10a4] ss:$676 sps:$4 sm:$0xff]  }
 0x2c8   : > { %9029 = vmatmul.mubr.bf16.vlgmr.msra.gmra.mrb[40].mxu1 %v1256_v23  ;;  %9038 = vmatprep.subr.bf16.mxu0 %v13444_v24  ;;  %v13495_v23 = vld [vmem:[%s15028_s27 + $0x1098] ss:$676 sps:$4 sm:$0xff]   ;;  %v13503_v24 = vld [vmem:[%s15028_s27 + $0x15e4] ss:$676 sps:$4 sm:$0xff]  }
 0x2c9   : > { %9077 = vmatpush1.bf16.xpose.msra.mxu1 %v13439_v25  ;;  %9108 = vmatprep.mubr.bf16.mxu1 %v1261_v26  ;;  %v13498_v25 = vld [vmem:[%s15028_s27 + $0x10a0] ss:$676 sps:$4 sm:$0xff]   ;;  %v13506_v26 = vld [vmem:[%s15028_s27 + $0x15ec] ss:$676 sps:$4 sm:$0xff]  }
 0x2ca   : > { %9078 = vmatprep.subr.bf16.mxu1 %v13447_v28  ;;  %v13501_v28 = vld [vmem:[%s15028_s27 + $0x15e0] ss:$676 sps:$4 sm:$0xff]  }
 0x2cf   : > { %9039 = vmatpush1.bf16.xpose.msra.mxu0 %v13442_v19  ;;  %v13509_v19 = vld [vmem:[%s15028_s27 + $0x1b2c] ss:$676 sps:$4 sm:$0xff]  }
 0x2d0   : > { %9040 = vmatprep.subr.bf16.mxu0 %v13450_v27  ;;  %v13504_v27 = vld [vmem:[%s15028_s27 + $0x15e8] ss:$676 sps:$4 sm:$0xff]  }
 0x2d1   : > { %9079 = vmatpush1.bf16.xpose.msra.mxu1 %v13445_v22  ;;  %v13512_v22 = vld [vmem:[%s15028_s27 + $0x1b34] ss:$676 sps:$4 sm:$0xff]  }
 0x2d2   : > { %9080 = vmatprep.subr.bf16.mxu1 %v13453_v30  ;;  %v2427_v30 = vld [vmem:[%s15028_s27 + $0x2070] sm:$0x33] }
 0x2d3   : > { %v12746_v42 = vcombine.low %v2427_v30, %v2427_v30 }
 0x2d7   : > { %9041 = vmatpush1.bf16.xpose.msra.mxu0 %v13448_v31  ;;  %v13507_v31 = vld [vmem:[%s15028_s27 + $0x1b28] ss:$676 sps:$4 sm:$0xff]  }
 0x2d8   : > { %9042 = vmatprep.subr.bf16.mxu0 %v13456_v29  ;;  %v2428_v29 = vld [vmem:[%s15028_s27 + $0x2078] sm:$0x33] }
 0x2d9   : > { %9081 = vmatpush1.bf16.xpose.msra.mxu1 %v13451_v33  ;;  %v12747_v33 = vcombine.high %v2427_v30, %v2427_v30  ;;  %v12748_v49 = vcombine.low %v2428_v29, %v2428_v29 }
 0x2da   : > { %9082 = vmatprep.subr.bf16.mxu1 %v13459_v34  ;;  %v13510_v34 = vld [vmem:[%s15028_s27 + $0x1b30] ss:$676 sps:$4 sm:$0xff]  }
 0x2df   : > { %9043 = vmatpush1.bf16.xpose.msra.mxu0 %v13454_v35  ;;  %v12749_v35 = vcombine.high %v2428_v29, %v2428_v29 }
 0x2e0   : > { %9044 = vmatprep.subr.bf16.mxu0 %v13462_v36  ;;  %v251_v36 = vld [vmem:[%s15022_s6 + $0x68] sm:$0xff] }
 0x2e1   : > { %9083 = vmatpush1.bf16.xpose.msra.mxu1 %v13457_v37 }
 0x2e2   : > { %9084 = vmatprep.subr.bf16.mxu1 %v13465_v38  ;;  %v545_v38 = vcombine.high %v251_v36, %v251_v36 }
 0x2e4   : > { %v15593_v51 = vrot.slane %v545_v38, %v15052_v16 }
 0x2e7   : > { %9045 = vmatpush1.bf16.xpose.msra.mxu0 %v13460_v40 }
 0x2e8   : > { %9046 = vmatprep.subr.bf16.mxu0 %v13468_v32 }
 0x2e9   : > { %9085 = vmatpush1.bf16.xpose.msra.mxu1 %v13463_v39 }
 0x2ea   : > { %9086 = vmatprep.subr.bf16.mxu1 %v13471_v41 }
 0x2ef   : > { %9047 = vmatpush1.bf16.xpose.msra.mxu0 %v13466_v43  ;;  %v15587_v43 = vrot.slane %v251_v36, %v15052_v16 }
 0x2f0   : > { %9048 = vmatprep.subr.bf16.mxu0 %v12743_v46 }
 0x2f1   : > { %v8750_v50 = vpop.f32.mrb[28].mxu0  ;;  %9087 = vmatpush1.bf16.xpose.msra.mxu1 %v13469_v47  ;;  %v13519_v47 = vld [vmem:[%s15028_s27 + $0xd4] ss:$676 sps:$4 sm:$0xff]  }
 0x2f2   : > { %v8751_v53 = vadd.f32 %v8750_v50, %v15501_v6  ;;  %v8752_v45 = vpop.f32.mrb[29].mxu0  ;;  %9088 = vmatprep.subr.bf16.mxu1 %v12745_v48  ;;  %v13476_v6 = vld [vmem:[%s15028_s27 + $0xc0] ss:$676 sps:$4 sm:$0xff]  }
 0x2f3   : > { %v8753_v52 = vpop.f32.mrb[30].mxu0  ;;  %v8790_v54 = vpop.f32.mrb[28].mxu1 }
 0x2f4   : > { %v15545_v57 = vadd.f32 %v8790_v54, %v8751_v53  ;;  %v8754_v58 = vpop.f32.mrb[31].mxu0  ;;  %v8792_v61 = vpop.f32.mrb[29].mxu1  ;;  %v13523_v53 = vld [vmem:[%s15028_s27 + $0xdc] ss:$676 sps:$4 sm:$0xff]   ;;  %v560_v52 = vcombine.high %v15587_v43, %v15587_v43  ;;  %v561_v54 = vcombine.high %v15593_v51, %v15593_v51 }
 0x2f5   : > { %v8793_v63 = vpop.f32.mrb[30].mxu1  ;;  %v13526_v61 = vld [vmem:[%s15028_s27 + $0x61c] ss:$676 sps:$4 sm:$0xff]  }
 0x2f6   : > { %v8794_v59 = vpop.f32.mrb[31].mxu1  ;;  %v1267_v58 = vpack.c.bf16 %v560_v52, %v560_v52  ;;  %v1269_v63 = vpack.c.bf16 %v561_v54, %v561_v54  ;;  %v13576_v52 = vld [vmem:[%s15028_s27 + $0xb7c] ss:$676 sps:$4 sm:$0xff]   ;;  %v13571_v54 = vld [vmem:[%s15028_s27 + $0xb70] ss:$676 sps:$4 sm:$0xff]  }
 0x2f7   : > { %9049 = vmatpush1.bf16.xpose.msra.mxu0 %v12742_v55  ;;  %v1262_v55 = vpack.c.bf16 %v15543_v56, %v15543_v56  ;;  %v13524_v56 = vld [vmem:[%s15028_s27 + $0x618] ss:$676 sps:$4 sm:$0xff]   ;;  %v13527_v59 = vld [vmem:[%s15028_s27 + $0x620] ss:$676 sps:$4 sm:$0xff]  }
 0x2f8   : > { %9116 = vmatprep.subr.bf16.mxu0 %v13478_v60  ;;  %v1264_v60 = vpack.c.bf16 %v15549_v0, %v15549_v0  ;;  %v13532_v0 = vld [vmem:[%s15028_s27 + $0xb64] ss:$676 sps:$4 sm:$0xff]  }
 0x2f9   : > { %9089 = vmatpush1.bf16.xpose.msra.mxu1 %v12744_v62  ;;  %v13521_v62 = vld [vmem:[%s15028_s27 + $0xd8] ss:$676 sps:$4 sm:$0xff]  }
 0x2fa   : > { %9156 = vmatprep.subr.bf16.mxu1 %v13482_v1  ;;  %v13529_v1 = vld [vmem:[%s15028_s27 + $0x624] ss:$676 sps:$4 sm:$0xff]  }
 0x2fe   : > { %9069 = vmatmul.mubr.bf16.vlgmr.msra.gmra.mrb[44].mxu0 %v1258_v4  ;;  %v13538_v4 = vld [vmem:[%s15028_s27 + $0x10ac] ss:$676 sps:$4 sm:$0xff]  }
 0x2ff   : > { %9117 = vmatpush1.bf16.xpose.msra.mxu0 %v13476_v6  ;;  %9148 = vmatprep.mubr.bf16.mxu0 %v1263_v7  ;;  %v13533_v6 = vld [vmem:[%s15028_s27 + $0xb68] ss:$676 sps:$4 sm:$0xff]   ;;  %v13541_v7 = vld [vmem:[%s15028_s27 + $0x10b4] ss:$676 sps:$4 sm:$0xff]  }
 0x300   : > { %9109 = vmatmul.mubr.bf16.vlgmr.msra.gmra.mrb[44].mxu1 %v1260_v9  ;;  %9118 = vmatprep.subr.bf16.mxu0 %v13485_v10  ;;  %v13536_v9 = vld [vmem:[%s15028_s27 + $0x10a8] ss:$676 sps:$4 sm:$0xff]   ;;  %v13544_v10 = vld [vmem:[%s15028_s27 + $0x15f4] ss:$676 sps:$4 sm:$0xff]  }
 0x301   : > { %9157 = vmatpush1.bf16.xpose.msra.mxu1 %v13480_v11  ;;  %9188 = vmatprep.mubr.bf16.mxu1 %v1265_v12  ;;  %v13539_v11 = vld [vmem:[%s15028_s27 + $0x10b0] ss:$676 sps:$4 sm:$0xff]   ;;  %v13547_v12 = vld [vmem:[%s15028_s27 + $0x15fc] ss:$676 sps:$4 sm:$0xff]  }
 0x302   : > { %9158 = vmatprep.subr.bf16.mxu1 %v13488_v14  ;;  %v13542_v14 = vld [vmem:[%s15028_s27 + $0x15f0] ss:$676 sps:$4 sm:$0xff]  }
 0x307   : > { %9119 = vmatpush1.bf16.xpose.msra.mxu0 %v13483_v5  ;;  %v13550_v5 = vld [vmem:[%s15028_s27 + $0x1b3c] ss:$676 sps:$4 sm:$0xff]  }
 0x308   : > { %9120 = vmatprep.subr.bf16.mxu0 %v13491_v13  ;;  %v13545_v13 = vld [vmem:[%s15028_s27 + $0x15f8] ss:$676 sps:$4 sm:$0xff]  }
 0x309   : > { %9159 = vmatpush1.bf16.xpose.msra.mxu1 %v13486_v8  ;;  %v13553_v8 = vld [vmem:[%s15028_s27 + $0x1b44] ss:$676 sps:$4 sm:$0xff]  }
 0x30a   : > { %9160 = vmatprep.subr.bf16.mxu1 %v13494_v17  ;;  %v2429_v17 = vld [vmem:[%s15028_s27 + $0x2080] sm:$0x33] }
 0x30b   : > { %v12750_v30 = vcombine.low %v2429_v17, %v2429_v17 }
 0x30f   : > { %9121 = vmatpush1.bf16.xpose.msra.mxu0 %v13489_v18  ;;  %v13548_v18 = vld [vmem:[%s15028_s27 + $0x1b38] ss:$676 sps:$4 sm:$0xff]  }
 0x310   : > { %9122 = vmatprep.subr.bf16.mxu0 %v13497_v15  ;;  %v2430_v15 = vld [vmem:[%s15028_s27 + $0x2088] sm:$0x33] }
 0x311   : > { %9161 = vmatpush1.bf16.xpose.msra.mxu1 %v13492_v20  ;;  %v12751_v20 = vcombine.high %v2429_v17, %v2429_v17  ;;  %v12752_v36 = vcombine.low %v2430_v15, %v2430_v15 }
 0x312   : > { %9162 = vmatprep.subr.bf16.mxu1 %v13500_v21  ;;  %v13551_v21 = vld [vmem:[%s15028_s27 + $0x1b40] ss:$676 sps:$4 sm:$0xff]  }
 0x317   : > { %9123 = vmatpush1.bf16.xpose.msra.mxu0 %v13495_v23  ;;  %v12753_v23 = vcombine.high %v2430_v15, %v2430_v15 }
 0x318   : > { %9124 = vmatprep.subr.bf16.mxu0 %v13503_v24  ;;  %v252_v24 = vld [vmem:[%s15022_s6 + $0x70] sm:$0xff] }
 0x319   : > { %9163 = vmatpush1.bf16.xpose.msra.mxu1 %v13498_v25 }
 0x31a   : > { %9164 = vmatprep.subr.bf16.mxu1 %v13506_v26  ;;  %v562_v26 = vcombine.high %v252_v24, %v252_v24 }
 0x31c   : > { %v15637_v38 = vrot.slane %v562_v26, %v15052_v16 }
 0x31f   : > { %9125 = vmatpush1.bf16.xpose.msra.mxu0 %v13501_v28 }
 0x320   : > { %9126 = vmatprep.subr.bf16.mxu0 %v13509_v19 }
 0x321   : > { %9165 = vmatpush1.bf16.xpose.msra.mxu1 %v13504_v27 }
 0x322   : > { %9166 = vmatprep.subr.bf16.mxu1 %v13512_v22 }
 0x327   : > { %9127 = vmatpush1.bf16.xpose.msra.mxu0 %v13507_v31  ;;  %v15631_v31 = vrot.slane %v252_v24, %v15052_v16 }
 0x328   : > { %9128 = vmatprep.subr.bf16.mxu0 %v12747_v33 }
 0x329   : > { %v8830_v37 = vpop.f32.mrb[32].mxu0  ;;  %9167 = vmatpush1.bf16.xpose.msra.mxu1 %v13510_v34  ;;  %v13560_v34 = vld [vmem:[%s15028_s27 + $0xe4] ss:$676 sps:$4 sm:$0xff]  }
 0x32a   : > { %v8831_v40 = vadd.f32 %v8830_v37, %v15545_v57  ;;  %v8832_v32 = vpop.f32.mrb[33].mxu0  ;;  %9168 = vmatprep.subr.bf16.mxu1 %v12749_v35  ;;  %v13517_v57 = vld [vmem:[%s15028_s27 + $0xd0] ss:$676 sps:$4 sm:$0xff]  }
 0x32b   : > { %v8833_v39 = vpop.f32.mrb[34].mxu0  ;;  %v8870_v41 = vpop.f32.mrb[32].mxu1 }
 0x32c   : > { %v15589_v44 = vadd.f32 %v8870_v41, %v8831_v40  ;;  %v8834_v46 = vpop.f32.mrb[35].mxu0  ;;  %v8872_v48 = vpop.f32.mrb[33].mxu1  ;;  %v13564_v40 = vld [vmem:[%s15028_s27 + $0xec] ss:$676 sps:$4 sm:$0xff]   ;;  %v577_v39 = vcombine.high %v15631_v31, %v15631_v31  ;;  %v578_v41 = vcombine.high %v15637_v38, %v15637_v38 }
 0x32d   : > { %v8873_v50 = vpop.f32.mrb[34].mxu1  ;;  %v13567_v48 = vld [vmem:[%s15028_s27 + $0x62c] ss:$676 sps:$4 sm:$0xff]  }
 0x32e   : > { %v8874_v45 = vpop.f32.mrb[35].mxu1  ;;  %v1271_v46 = vpack.c.bf16 %v577_v39, %v577_v39  ;;  %v1273_v50 = vpack.c.bf16 %v578_v41, %v578_v41  ;;  %v13617_v39 = vld [vmem:[%s15028_s27 + $0xb8c] ss:$676 sps:$4 sm:$0xff]   ;;  %v13612_v41 = vld [vmem:[%s15028_s27 + $0xb80] ss:$676 sps:$4 sm:$0xff]  }
 0x32f   : > { %9129 = vmatpush1.bf16.xpose.msra.mxu0 %v12746_v42  ;;  %v1266_v42 = vpack.c.bf16 %v15587_v43, %v15587_v43  ;;  %v13565_v43 = vld [vmem:[%s15028_s27 + $0x628] ss:$676 sps:$4 sm:$0xff]   ;;  %v13568_v45 = vld [vmem:[%s15028_s27 + $0x630] ss:$676 sps:$4 sm:$0xff]  }
 0x330   : > { %9196 = vmatprep.subr.bf16.mxu0 %v13519_v47  ;;  %v1268_v47 = vpack.c.bf16 %v15593_v51, %v15593_v51  ;;  %v13573_v51 = vld [vmem:[%s15028_s27 + $0xb74] ss:$676 sps:$4 sm:$0xff]  }
 0x331   : > { %9169 = vmatpush1.bf16.xpose.msra.mxu1 %v12748_v49  ;;  %v13562_v49 = vld [vmem:[%s15028_s27 + $0xe8] ss:$676 sps:$4 sm:$0xff]  }
 0x332   : > { %9236 = vmatprep.subr.bf16.mxu1 %v13523_v53  ;;  %v13570_v53 = vld [vmem:[%s15028_s27 + $0x634] ss:$676 sps:$4 sm:$0xff]  }
 0x336   : > { %9149 = vmatmul.mubr.bf16.vlgmr.msra.gmra.mrb[48].mxu0 %v1262_v55  ;;  %v13579_v55 = vld [vmem:[%s15028_s27 + $0x10bc] ss:$676 sps:$4 sm:$0xff]  }
 0x337   : > { %9197 = vmatpush1.bf16.xpose.msra.mxu0 %v13517_v57  ;;  %9228 = vmatprep.mubr.bf16.mxu0 %v1267_v58  ;;  %v13574_v57 = vld [vmem:[%s15028_s27 + $0xb78] ss:$676 sps:$4 sm:$0xff]   ;;  %v13582_v58 = vld [vmem:[%s15028_s27 + $0x10c4] ss:$676 sps:$4 sm:$0xff]  }
 0x338   : > { %9189 = vmatmul.mubr.bf16.vlgmr.msra.gmra.mrb[48].mxu1 %v1264_v60  ;;  %9198 = vmatprep.subr.bf16.mxu0 %v13526_v61  ;;  %v13577_v60 = vld [vmem:[%s15028_s27 + $0x10b8] ss:$676 sps:$4 sm:$0xff]   ;;  %v13585_v61 = vld [vmem:[%s15028_s27 + $0x1604] ss:$676 sps:$4 sm:$0xff]  }
 0x339   : > { %9237 = vmatpush1.bf16.xpose.msra.mxu1 %v13521_v62  ;;  %9268 = vmatprep.mubr.bf16.mxu1 %v1269_v63  ;;  %v13580_v62 = vld [vmem:[%s15028_s27 + $0x10c0] ss:$676 sps:$4 sm:$0xff]   ;;  %v13588_v63 = vld [vmem:[%s15028_s27 + $0x160c] ss:$676 sps:$4 sm:$0xff]  }
 0x33a   : > { %9238 = vmatprep.subr.bf16.mxu1 %v13529_v1  ;;  %v13583_v1 = vld [vmem:[%s15028_s27 + $0x1600] ss:$676 sps:$4 sm:$0xff]  }
 0x33f   : > { %9199 = vmatpush1.bf16.xpose.msra.mxu0 %v13524_v56  ;;  %v13591_v56 = vld [vmem:[%s15028_s27 + $0x1b4c] ss:$676 sps:$4 sm:$0xff]  }
 0x340   : > { %9200 = vmatprep.subr.bf16.mxu0 %v13532_v0  ;;  %v13586_v0 = vld [vmem:[%s15028_s27 + $0x1608] ss:$676 sps:$4 sm:$0xff]  }
 0x341   : > { %9239 = vmatpush1.bf16.xpose.msra.mxu1 %v13527_v59  ;;  %v13594_v59 = vld [vmem:[%s15028_s27 + $0x1b54] ss:$676 sps:$4 sm:$0xff]  }
 0x342   : > { %9240 = vmatprep.subr.bf16.mxu1 %v13535_v2  ;;  %v2431_v2 = vld [vmem:[%s15028_s27 + $0x2090] sm:$0x33] }
 0x343   : > { %v12754_v17 = vcombine.low %v2431_v2, %v2431_v2 }
 0x347   : > { %9201 = vmatpush1.bf16.xpose.msra.mxu0 %v13530_v3  ;;  %v13589_v3 = vld [vmem:[%s15028_s27 + $0x1b48] ss:$676 sps:$4 sm:$0xff]  }
 0x348   : > { %9202 = vmatprep.subr.bf16.mxu0 %v13538_v4  ;;  %v2432_v4 = vld [vmem:[%s15028_s27 + $0x2098] sm:$0x33] }
 0x349   : > { %9241 = vmatpush1.bf16.xpose.msra.mxu1 %v13533_v6  ;;  %v12755_v6 = vcombine.high %v2431_v2, %v2431_v2  ;;  %v12756_v24 = vcombine.low %v2432_v4, %v2432_v4 }
 0x34a   : > { %9242 = vmatprep.subr.bf16.mxu1 %v13541_v7  ;;  %v13592_v7 = vld [vmem:[%s15028_s27 + $0x1b50] ss:$676 sps:$4 sm:$0xff]  }
 0x34f   : > { %9203 = vmatpush1.bf16.xpose.msra.mxu0 %v13536_v9  ;;  %v12757_v9 = vcombine.high %v2432_v4, %v2432_v4 }
 0x350   : > { %9204 = vmatprep.subr.bf16.mxu0 %v13544_v10  ;;  %v253_v10 = vld [vmem:[%s15022_s6 + $0x78] sm:$0xff] }
 0x351   : > { %9243 = vmatpush1.bf16.xpose.msra.mxu1 %v13539_v11 }
 0x352   : > { %9244 = vmatprep.subr.bf16.mxu1 %v13547_v12  ;;  %v579_v12 = vcombine.high %v253_v10, %v253_v10 }
 0x354   : > { %v15681_v26 = vrot.slane %v579_v12, %v15052_v16 }
 0x357   : > { %9205 = vmatpush1.bf16.xpose.msra.mxu0 %v13542_v14 }
 0x358   : > { %9206 = vmatprep.subr.bf16.mxu0 %v13550_v5 }
 0x359   : > { %9245 = vmatpush1.bf16.xpose.msra.mxu1 %v13545_v13 }
 0x35a   : > { %9246 = vmatprep.subr.bf16.mxu1 %v13553_v8 }
 0x35f   : > { %9207 = vmatpush1.bf16.xpose.msra.mxu0 %v13548_v18  ;;  %v15675_v18 = vrot.slane %v253_v10, %v15052_v16 }
 0x360   : > { %9208 = vmatprep.subr.bf16.mxu0 %v12751_v20 }
 0x361   : > { %v8910_v25 = vpop.f32.mrb[36].mxu0  ;;  %9247 = vmatpush1.bf16.xpose.msra.mxu1 %v13551_v21  ;;  %v13601_v21 = vld [vmem:[%s15028_s27 + $0xf4] ss:$676 sps:$4 sm:$0xff]  }
 0x362   : > { %v8911_v28 = vadd.f32 %v8910_v25, %v15589_v44  ;;  %v8912_v19 = vpop.f32.mrb[37].mxu0  ;;  %9248 = vmatprep.subr.bf16.mxu1 %v12753_v23  ;;  %v13558_v44 = vld [vmem:[%s15028_s27 + $0xe0] ss:$676 sps:$4 sm:$0xff]  }
 0x363   : > { %v8913_v27 = vpop.f32.mrb[38].mxu0  ;;  %v8950_v22 = vpop.f32.mrb[36].mxu1 }
 0x364   : > { %v15633_v29 = vadd.f32 %v8950_v22, %v8911_v28  ;;  %v8914_v33 = vpop.f32.mrb[39].mxu0  ;;  %v8952_v35 = vpop.f32.mrb[37].mxu1  ;;  %v13605_v28 = vld [vmem:[%s15028_s27 + $0xfc] ss:$676 sps:$4 sm:$0xff]   ;;  %v594_v27 = vcombine.high %v15675_v18, %v15675_v18  ;;  %v595_v22 = vcombine.high %v15681_v26, %v15681_v26 }
 0x365   : > { %v8953_v37 = vpop.f32.mrb[38].mxu1  ;;  %v13608_v35 = vld [vmem:[%s15028_s27 + $0x63c] ss:$676 sps:$4 sm:$0xff]  }
 0x366   : > { %v8954_v32 = vpop.f32.mrb[39].mxu1  ;;  %v1275_v33 = vpack.c.bf16 %v594_v27, %v594_v27  ;;  %v1277_v37 = vpack.c.bf16 %v595_v22, %v595_v22  ;;  %v13658_v27 = vld [vmem:[%s15028_s27 + $0xb9c] ss:$676 sps:$4 sm:$0xff]   ;;  %v13653_v22 = vld [vmem:[%s15028_s27 + $0xb90] ss:$676 sps:$4 sm:$0xff]  }
 0x367   : > { %9209 = vmatpush1.bf16.xpose.msra.mxu0 %v12750_v30  ;;  %v1270_v30 = vpack.c.bf16 %v15631_v31, %v15631_v31  ;;  %v13606_v31 = vld [vmem:[%s15028_s27 + $0x638] ss:$676 sps:$4 sm:$0xff]   ;;  %v13609_v32 = vld [vmem:[%s15028_s27 + $0x640] ss:$676 sps:$4 sm:$0xff]  }
 0x368   : > { %9276 = vmatprep.subr.bf16.mxu0 %v13560_v34  ;;  %v1272_v34 = vpack.c.bf16 %v15637_v38, %v15637_v38  ;;  %v13614_v38 = vld [vmem:[%s15028_s27 + $0xb84] ss:$676 sps:$4 sm:$0xff]  }
 0x369   : > { %9249 = vmatpush1.bf16.xpose.msra.mxu1 %v12752_v36  ;;  %v13603_v36 = vld [vmem:[%s15028_s27 + $0xf8] ss:$676 sps:$4 sm:$0xff]  }
 0x36a   : > { %9316 = vmatprep.subr.bf16.mxu1 %v13564_v40  ;;  %v13611_v40 = vld [vmem:[%s15028_s27 + $0x644] ss:$676 sps:$4 sm:$0xff]  }
 0x36e   : > { %9229 = vmatmul.mubr.bf16.vlgmr.msra.gmra.mrb[52].mxu0 %v1266_v42  ;;  %v13620_v42 = vld [vmem:[%s15028_s27 + $0x10cc] ss:$676 sps:$4 sm:$0xff]  }
 0x36f   : > { %9277 = vmatpush1.bf16.xpose.msra.mxu0 %v13558_v44  ;;  %9308 = vmatprep.mubr.bf16.mxu0 %v1271_v46  ;;  %v13615_v44 = vld [vmem:[%s15028_s27 + $0xb88] ss:$676 sps:$4 sm:$0xff]   ;;  %v13623_v46 = vld [vmem:[%s15028_s27 + $0x10d4] ss:$676 sps:$4 sm:$0xff]  }
 0x370   : > { %9269 = vmatmul.mubr.bf16.vlgmr.msra.gmra.mrb[52].mxu1 %v1268_v47  ;;  %9278 = vmatprep.subr.bf16.mxu0 %v13567_v48  ;;  %v13618_v47 = vld [vmem:[%s15028_s27 + $0x10c8] ss:$676 sps:$4 sm:$0xff]   ;;  %v13626_v48 = vld [vmem:[%s15028_s27 + $0x1614] ss:$676 sps:$4 sm:$0xff]  }
 0x371   : > { %9317 = vmatpush1.bf16.xpose.msra.mxu1 %v13562_v49  ;;  %9348 = vmatprep.mubr.bf16.mxu1 %v1273_v50  ;;  %v13621_v49 = vld [vmem:[%s15028_s27 + $0x10d0] ss:$676 sps:$4 sm:$0xff]   ;;  %v13629_v50 = vld [vmem:[%s15028_s27 + $0x161c] ss:$676 sps:$4 sm:$0xff]  }
 0x372   : > { %9318 = vmatprep.subr.bf16.mxu1 %v13570_v53  ;;  %v13624_v53 = vld [vmem:[%s15028_s27 + $0x1610] ss:$676 sps:$4 sm:$0xff]  }
 0x377   : > { %9279 = vmatpush1.bf16.xpose.msra.mxu0 %v13565_v43  ;;  %v13632_v43 = vld [vmem:[%s15028_s27 + $0x1b5c] ss:$676 sps:$4 sm:$0xff]  }
 0x378   : > { %9280 = vmatprep.subr.bf16.mxu0 %v13573_v51  ;;  %v13627_v51 = vld [vmem:[%s15028_s27 + $0x1618] ss:$676 sps:$4 sm:$0xff]  }
 0x379   : > { %9319 = vmatpush1.bf16.xpose.msra.mxu1 %v13568_v45  ;;  %v13635_v45 = vld [vmem:[%s15028_s27 + $0x1b64] ss:$676 sps:$4 sm:$0xff]  }
 0x37a   : > { %9320 = vmatprep.subr.bf16.mxu1 %v13576_v52  ;;  %v2433_v52 = vld [vmem:[%s15028_s27 + $0x20a0] sm:$0x33] }
 0x37b   : > { %v12758_v2 = vcombine.low %v2433_v52, %v2433_v52 }
 0x37f   : > { %9281 = vmatpush1.bf16.xpose.msra.mxu0 %v13571_v54  ;;  %v13630_v54 = vld [vmem:[%s15028_s27 + $0x1b58] ss:$676 sps:$4 sm:$0xff]  }
 0x380   : > { %9282 = vmatprep.subr.bf16.mxu0 %v13579_v55  ;;  %v2434_v55 = vld [vmem:[%s15028_s27 + $0x20a8] sm:$0x33] }
 0x381   : > { %9321 = vmatpush1.bf16.xpose.msra.mxu1 %v13574_v57  ;;  %v12759_v57 = vcombine.high %v2433_v52, %v2433_v52  ;;  %v12760_v10 = vcombine.low %v2434_v55, %v2434_v55 }
 0x382   : > { %9322 = vmatprep.subr.bf16.mxu1 %v13582_v58  ;;  %v13633_v58 = vld [vmem:[%s15028_s27 + $0x1b60] ss:$676 sps:$4 sm:$0xff]  }
 0x387   : > { %9283 = vmatpush1.bf16.xpose.msra.mxu0 %v13577_v60  ;;  %v12761_v60 = vcombine.high %v2434_v55, %v2434_v55 }
 0x388   : > { %9284 = vmatprep.subr.bf16.mxu0 %v13585_v61  ;;  %v254_v61 = vld [vmem:[%s15022_s6 + $0x80] sm:$0xff] }
 0x389   : > { %9323 = vmatpush1.bf16.xpose.msra.mxu1 %v13580_v62 }
 0x38a   : > { %9324 = vmatprep.subr.bf16.mxu1 %v13588_v63  ;;  %v596_v63 = vcombine.high %v254_v61, %v254_v61 }
 0x38c   : > { %v15725_v12 = vrot.slane %v596_v63, %v15052_v16 }
 0x38f   : > { %9285 = vmatpush1.bf16.xpose.msra.mxu0 %v13583_v1 }
 0x390   : > { %9286 = vmatprep.subr.bf16.mxu0 %v13591_v56 }
 0x391   : > { %9325 = vmatpush1.bf16.xpose.msra.mxu1 %v13586_v0 }
 0x392   : > { %9326 = vmatprep.subr.bf16.mxu1 %v13594_v59 }
 0x397   : > { %9287 = vmatpush1.bf16.xpose.msra.mxu0 %v13589_v3  ;;  %v15719_v3 = vrot.slane %v254_v61, %v15052_v16 }
 0x398   : > { %9288 = vmatprep.subr.bf16.mxu0 %v12755_v6 }
 0x399   : > { %v8990_v11 = vpop.f32.mrb[40].mxu0  ;;  %9327 = vmatpush1.bf16.xpose.msra.mxu1 %v13592_v7  ;;  %v13642_v7 = vld [vmem:[%s15028_s27 + $0x104] ss:$676 sps:$4 sm:$0xff]  }
 0x39a   : > { %v8991_v14 = vadd.f32 %v8990_v11, %v15633_v29  ;;  %v8992_v5 = vpop.f32.mrb[41].mxu0  ;;  %9328 = vmatprep.subr.bf16.mxu1 %v12757_v9  ;;  %v13599_v29 = vld [vmem:[%s15028_s27 + $0xf0] ss:$676 sps:$4 sm:$0xff]  }
 0x39b   : > { %v8993_v13 = vpop.f32.mrb[42].mxu0  ;;  %v9030_v8 = vpop.f32.mrb[40].mxu1 }
 0x39c   : > { %v15677_v15 = vadd.f32 %v9030_v8, %v8991_v14  ;;  %v8994_v20 = vpop.f32.mrb[43].mxu0  ;;  %v9032_v23 = vpop.f32.mrb[41].mxu1  ;;  %v13646_v14 = vld [vmem:[%s15028_s27 + $0x10c] ss:$676 sps:$4 sm:$0xff]   ;;  %v611_v13 = vcombine.high %v15719_v3, %v15719_v3  ;;  %v612_v8 = vcombine.high %v15725_v12, %v15725_v12 }
 0x39d   : > { %v9033_v25 = vpop.f32.mrb[42].mxu1  ;;  %v13649_v23 = vld [vmem:[%s15028_s27 + $0x64c] ss:$676 sps:$4 sm:$0xff]  }
 0x39e   : > { %v9034_v19 = vpop.f32.mrb[43].mxu1  ;;  %v1279_v20 = vpack.c.bf16 %v611_v13, %v611_v13  ;;  %v1281_v25 = vpack.c.bf16 %v612_v8, %v612_v8  ;;  %v13699_v13 = vld [vmem:[%s15028_s27 + $0xbac] ss:$676 sps:$4 sm:$0xff]   ;;  %v13694_v8 = vld [vmem:[%s15028_s27 + $0xba0] ss:$676 sps:$4 sm:$0xff]  }
 0x39f   : > { %9289 = vmatpush1.bf16.xpose.msra.mxu0 %v12754_v17  ;;  %v1274_v17 = vpack.c.bf16 %v15675_v18, %v15675_v18  ;;  %v13647_v18 = vld [vmem:[%s15028_s27 + $0x648] ss:$676 sps:$4 sm:$0xff]   ;;  %v13650_v19 = vld [vmem:[%s15028_s27 + $0x650] ss:$676 sps:$4 sm:$0xff]  }
 0x3a0   : > { %9356 = vmatprep.subr.bf16.mxu0 %v13601_v21  ;;  %v1276_v21 = vpack.c.bf16 %v15681_v26, %v15681_v26  ;;  %v13655_v26 = vld [vmem:[%s15028_s27 + $0xb94] ss:$676 sps:$4 sm:$0xff]  }
 0x3a1   : > { %9329 = vmatpush1.bf16.xpose.msra.mxu1 %v12756_v24  ;;  %v13644_v24 = vld [vmem:[%s15028_s27 + $0x108] ss:$676 sps:$4 sm:$0xff]  }
 0x3a2   : > { %9396 = vmatprep.subr.bf16.mxu1 %v13605_v28  ;;  %v13652_v28 = vld [vmem:[%s15028_s27 + $0x654] ss:$676 sps:$4 sm:$0xff]  }
 0x3a6   : > { %9309 = vmatmul.mubr.bf16.vlgmr.msra.gmra.mrb[56].mxu0 %v1270_v30  ;;  %v13661_v30 = vld [vmem:[%s15028_s27 + $0x10dc] ss:$676 sps:$4 sm:$0xff]  }
 0x3a7   : > { %9357 = vmatpush1.bf16.xpose.msra.mxu0 %v13599_v29  ;;  %9388 = vmatprep.mubr.bf16.mxu0 %v1275_v33  ;;  %v13656_v29 = vld [vmem:[%s15028_s27 + $0xb98] ss:$676 sps:$4 sm:$0xff]   ;;  %v13664_v33 = vld [vmem:[%s15028_s27 + $0x10e4] ss:$676 sps:$4 sm:$0xff]  }
 0x3a8   : > { %9349 = vmatmul.mubr.bf16.vlgmr.msra.gmra.mrb[56].mxu1 %v1272_v34  ;;  %9358 = vmatprep.subr.bf16.mxu0 %v13608_v35  ;;  %v13659_v34 = vld [vmem:[%s15028_s27 + $0x10d8] ss:$676 sps:$4 sm:$0xff]   ;;  %v13667_v35 = vld [vmem:[%s15028_s27 + $0x1624] ss:$676 sps:$4 sm:$0xff]  }
 0x3a9   : > { %9397 = vmatpush1.bf16.xpose.msra.mxu1 %v13603_v36  ;;  %9428 = vmatprep.mubr.bf16.mxu1 %v1277_v37  ;;  %v13662_v36 = vld [vmem:[%s15028_s27 + $0x10e0] ss:$676 sps:$4 sm:$0xff]   ;;  %v13670_v37 = vld [vmem:[%s15028_s27 + $0x162c] ss:$676 sps:$4 sm:$0xff]  }
 0x3aa   : > { %9398 = vmatprep.subr.bf16.mxu1 %v13611_v40  ;;  %v13665_v40 = vld [vmem:[%s15028_s27 + $0x1620] ss:$676 sps:$4 sm:$0xff]  }
 0x3af   : > { %9359 = vmatpush1.bf16.xpose.msra.mxu0 %v13606_v31  ;;  %v13673_v31 = vld [vmem:[%s15028_s27 + $0x1b6c] ss:$676 sps:$4 sm:$0xff]  }
 0x3b0   : > { %9360 = vmatprep.subr.bf16.mxu0 %v13614_v38  ;;  %v13668_v38 = vld [vmem:[%s15028_s27 + $0x1628] ss:$676 sps:$4 sm:$0xff]  }
 0x3b1   : > { %9399 = vmatpush1.bf16.xpose.msra.mxu1 %v13609_v32  ;;  %v13676_v32 = vld [vmem:[%s15028_s27 + $0x1b74] ss:$676 sps:$4 sm:$0xff]  }
 0x3b2   : > { %9400 = vmatprep.subr.bf16.mxu1 %v13617_v39  ;;  %v2435_v39 = vld [vmem:[%s15028_s27 + $0x20b0] sm:$0x33] }
 0x3b3   : > { %v12762_v52 = vcombine.low %v2435_v39, %v2435_v39 }
 0x3b7   : > { %9361 = vmatpush1.bf16.xpose.msra.mxu0 %v13612_v41  ;;  %v13671_v41 = vld [vmem:[%s15028_s27 + $0x1b68] ss:$676 sps:$4 sm:$0xff]  }
 0x3b8   : > { %9362 = vmatprep.subr.bf16.mxu0 %v13620_v42  ;;  %v2436_v42 = vld [vmem:[%s15028_s27 + $0x20b8] sm:$0x33] }
 0x3b9   : > { %9401 = vmatpush1.bf16.xpose.msra.mxu1 %v13615_v44  ;;  %v12763_v44 = vcombine.high %v2435_v39, %v2435_v39  ;;  %v12764_v61 = vcombine.low %v2436_v42, %v2436_v42 }
 0x3ba   : > { %9402 = vmatprep.subr.bf16.mxu1 %v13623_v46  ;;  %v13674_v46 = vld [vmem:[%s15028_s27 + $0x1b70] ss:$676 sps:$4 sm:$0xff]  }
 0x3bf   : > { %9363 = vmatpush1.bf16.xpose.msra.mxu0 %v13618_v47  ;;  %v12765_v47 = vcombine.high %v2436_v42, %v2436_v42 }
 0x3c0   : > { %9364 = vmatprep.subr.bf16.mxu0 %v13626_v48  ;;  %v255_v48 = vld [vmem:[%s15022_s6 + $0x88] sm:$0xff] }
 0x3c1   : > { %9403 = vmatpush1.bf16.xpose.msra.mxu1 %v13621_v49 }
 0x3c2   : > { %9404 = vmatprep.subr.bf16.mxu1 %v13629_v50  ;;  %v613_v50 = vcombine.high %v255_v48, %v255_v48 }
 0x3c4   : > { %v15769_v63 = vrot.slane %v613_v50, %v15052_v16 }
 0x3c7   : > { %9365 = vmatpush1.bf16.xpose.msra.mxu0 %v13624_v53 }
 0x3c8   : > { %9366 = vmatprep.subr.bf16.mxu0 %v13632_v43 }
 0x3c9   : > { %9405 = vmatpush1.bf16.xpose.msra.mxu1 %v13627_v51 }
 0x3ca   : > { %9406 = vmatprep.subr.bf16.mxu1 %v13635_v45 }
 0x3cf   : > { %9367 = vmatpush1.bf16.xpose.msra.mxu0 %v13630_v54  ;;  %v15763_v54 = vrot.slane %v255_v48, %v15052_v16 }
 0x3d0   : > { %9368 = vmatprep.subr.bf16.mxu0 %v12759_v57 }
 0x3d1   : > { %v9070_v62 = vpop.f32.mrb[44].mxu0  ;;  %9407 = vmatpush1.bf16.xpose.msra.mxu1 %v13633_v58  ;;  %v13683_v58 = vld [vmem:[%s15028_s27 + $0x114] ss:$676 sps:$4 sm:$0xff]  }
 0x3d2   : > { %v9071_v1 = vadd.f32 %v9070_v62, %v15677_v15  ;;  %v9072_v56 = vpop.f32.mrb[45].mxu0  ;;  %9408 = vmatprep.subr.bf16.mxu1 %v12761_v60  ;;  %v13640_v15 = vld [vmem:[%s15028_s27 + $0x100] ss:$676 sps:$4 sm:$0xff]  }
 0x3d3   : > { %v9073_v0 = vpop.f32.mrb[46].mxu0  ;;  %v9110_v59 = vpop.f32.mrb[44].mxu1 }
 0x3d4   : > { %v15721_v4 = vadd.f32 %v9110_v59, %v9071_v1  ;;  %v9074_v6 = vpop.f32.mrb[47].mxu0  ;;  %v9112_v9 = vpop.f32.mrb[45].mxu1  ;;  %v13687_v1 = vld [vmem:[%s15028_s27 + $0x11c] ss:$676 sps:$4 sm:$0xff]   ;;  %v628_v0 = vcombine.high %v15763_v54, %v15763_v54  ;;  %v629_v59 = vcombine.high %v15769_v63, %v15769_v63 }
 0x3d5   : > { %v9113_v11 = vpop.f32.mrb[46].mxu1  ;;  %v13690_v9 = vld [vmem:[%s15028_s27 + $0x65c] ss:$676 sps:$4 sm:$0xff]  }
 0x3d6   : > { %v9114_v5 = vpop.f32.mrb[47].mxu1  ;;  %v1283_v6 = vpack.c.bf16 %v628_v0, %v628_v0  ;;  %v1285_v11 = vpack.c.bf16 %v629_v59, %v629_v59  ;;  %v13740_v0 = vld [vmem:[%s15028_s27 + $0xbbc] ss:$676 sps:$4 sm:$0xff]   ;;  %v13735_v59 = vld [vmem:[%s15028_s27 + $0xbb0] ss:$676 sps:$4 sm:$0xff]  }
 0x3d7   : > { %9369 = vmatpush1.bf16.xpose.msra.mxu0 %v12758_v2  ;;  %v1278_v2 = vpack.c.bf16 %v15719_v3, %v15719_v3  ;;  %v13688_v3 = vld [vmem:[%s15028_s27 + $0x658] ss:$676 sps:$4 sm:$0xff]   ;;  %v13691_v5 = vld [vmem:[%s15028_s27 + $0x660] ss:$676 sps:$4 sm:$0xff]  }
 0x3d8   : > { %9436 = vmatprep.subr.bf16.mxu0 %v13642_v7  ;;  %v1280_v7 = vpack.c.bf16 %v15725_v12, %v15725_v12  ;;  %v13696_v12 = vld [vmem:[%s15028_s27 + $0xba4] ss:$676 sps:$4 sm:$0xff]  }
 0x3d9   : > { %9409 = vmatpush1.bf16.xpose.msra.mxu1 %v12760_v10  ;;  %v13685_v10 = vld [vmem:[%s15028_s27 + $0x118] ss:$676 sps:$4 sm:$0xff]  }
 0x3da   : > { %9476 = vmatprep.subr.bf16.mxu1 %v13646_v14  ;;  %v13693_v14 = vld [vmem:[%s15028_s27 + $0x664] ss:$676 sps:$4 sm:$0xff]  }
 0x3de   : > { %9389 = vmatmul.mubr.bf16.vlgmr.msra.gmra.mrb[60].mxu0 %v1274_v17  ;;  %v13702_v17 = vld [vmem:[%s15028_s27 + $0x10ec] ss:$676 sps:$4 sm:$0xff]  }
 0x3df   : > { %9437 = vmatpush1.bf16.xpose.msra.mxu0 %v13640_v15  ;;  %9468 = vmatprep.mubr.bf16.mxu0 %v1279_v20  ;;  %v13697_v15 = vld [vmem:[%s15028_s27 + $0xba8] ss:$676 sps:$4 sm:$0xff]   ;;  %v13705_v20 = vld [vmem:[%s15028_s27 + $0x10f4] ss:$676 sps:$4 sm:$0xff]  }
 0x3e0   : > { %9429 = vmatmul.mubr.bf16.vlgmr.msra.gmra.mrb[60].mxu1 %v1276_v21  ;;  %9438 = vmatprep.subr.bf16.mxu0 %v13649_v23  ;;  %v13700_v21 = vld [vmem:[%s15028_s27 + $0x10e8] ss:$676 sps:$4 sm:$0xff]   ;;  %v13708_v23 = vld [vmem:[%s15028_s27 + $0x1634] ss:$676 sps:$4 sm:$0xff]  }
 0x3e1   : > { %9477 = vmatpush1.bf16.xpose.msra.mxu1 %v13644_v24  ;;  %9508 = vmatprep.mubr.bf16.mxu1 %v1281_v25  ;;  %v13703_v24 = vld [vmem:[%s15028_s27 + $0x10f0] ss:$676 sps:$4 sm:$0xff]   ;;  %v13711_v25 = vld [vmem:[%s15028_s27 + $0x163c] ss:$676 sps:$4 sm:$0xff]  }
 0x3e2   : > { %9478 = vmatprep.subr.bf16.mxu1 %v13652_v28  ;;  %v13706_v28 = vld [vmem:[%s15028_s27 + $0x1630] ss:$676 sps:$4 sm:$0xff]  }
 0x3e7   : > { %9439 = vmatpush1.bf16.xpose.msra.mxu0 %v13647_v18  ;;  %v13714_v18 = vld [vmem:[%s15028_s27 + $0x1b7c] ss:$676 sps:$4 sm:$0xff]  }
 0x3e8   : > { %9440 = vmatprep.subr.bf16.mxu0 %v13655_v26  ;;  %v13709_v26 = vld [vmem:[%s15028_s27 + $0x1638] ss:$676 sps:$4 sm:$0xff]  }
 0x3e9   : > { %9479 = vmatpush1.bf16.xpose.msra.mxu1 %v13650_v19  ;;  %v13717_v19 = vld [vmem:[%s15028_s27 + $0x1b84] ss:$676 sps:$4 sm:$0xff]  }
 0x3ea   : > { %9480 = vmatprep.subr.bf16.mxu1 %v13658_v27  ;;  %v2437_v27 = vld [vmem:[%s15028_s27 + $0x20c0] sm:$0x33] }
 0x3eb   : > { %v12766_v39 = vcombine.low %v2437_v27, %v2437_v27 }
 0x3ef   : > { %9441 = vmatpush1.bf16.xpose.msra.mxu0 %v13653_v22  ;;  %v13712_v22 = vld [vmem:[%s15028_s27 + $0x1b78] ss:$676 sps:$4 sm:$0xff]  }
 0x3f0   : > { %9442 = vmatprep.subr.bf16.mxu0 %v13661_v30  ;;  %v2438_v30 = vld [vmem:[%s15028_s27 + $0x20c8] sm:$0x33] }
 0x3f1   : > { %9481 = vmatpush1.bf16.xpose.msra.mxu1 %v13656_v29  ;;  %v12767_v29 = vcombine.high %v2437_v27, %v2437_v27  ;;  %v12768_v48 = vcombine.low %v2438_v30, %v2438_v30 }
 0x3f2   : > { %9482 = vmatprep.subr.bf16.mxu1 %v13664_v33  ;;  %v13715_v33 = vld [vmem:[%s15028_s27 + $0x1b80] ss:$676 sps:$4 sm:$0xff]  }
 0x3f7   : > { %9443 = vmatpush1.bf16.xpose.msra.mxu0 %v13659_v34  ;;  %v12769_v34 = vcombine.high %v2438_v30, %v2438_v30 }
 0x3f8   : > { %9444 = vmatprep.subr.bf16.mxu0 %v13667_v35  ;;  %v256_v35 = vld [vmem:[%s15022_s6 + $0x90] sm:$0xff] }
 0x3f9   : > { %9483 = vmatpush1.bf16.xpose.msra.mxu1 %v13662_v36 }
 0x3fa   : > { %9484 = vmatprep.subr.bf16.mxu1 %v13670_v37  ;;  %v630_v37 = vcombine.high %v256_v35, %v256_v35 }
 0x3fc   : > { %v15813_v50 = vrot.slane %v630_v37, %v15052_v16 }
 0x3ff   : > { %9445 = vmatpush1.bf16.xpose.msra.mxu0 %v13665_v40 }
 0x400   : > { %9446 = vmatprep.subr.bf16.mxu0 %v13673_v31 }
 0x401   : > { %9485 = vmatpush1.bf16.xpose.msra.mxu1 %v13668_v38 }
 0x402   : > { %9486 = vmatprep.subr.bf16.mxu1 %v13676_v32 }
 0x407   : > { %9447 = vmatpush1.bf16.xpose.msra.mxu0 %v13671_v41  ;;  %v15807_v41 = vrot.slane %v256_v35, %v15052_v16 }
 0x408   : > { %9448 = vmatprep.subr.bf16.mxu0 %v12763_v44 }
 0x409   : > { %v9150_v49 = vpop.f32.mrb[48].mxu0  ;;  %9487 = vmatpush1.bf16.xpose.msra.mxu1 %v13674_v46  ;;  %v13724_v46 = vld [vmem:[%s15028_s27 + $0x124] ss:$676 sps:$4 sm:$0xff]  }
 0x40a   : > { %v9151_v53 = vadd.f32 %v9150_v49, %v15721_v4  ;;  %v9152_v43 = vpop.f32.mrb[49].mxu0  ;;  %9488 = vmatprep.subr.bf16.mxu1 %v12765_v47  ;;  %v13681_v4 = vld [vmem:[%s15028_s27 + $0x110] ss:$676 sps:$4 sm:$0xff]  }
 0x40b   : > { %v9153_v51 = vpop.f32.mrb[50].mxu0  ;;  %v9190_v45 = vpop.f32.mrb[48].mxu1 }
 0x40c   : > { %v15765_v55 = vadd.f32 %v9190_v45, %v9151_v53  ;;  %v9154_v57 = vpop.f32.mrb[51].mxu0  ;;  %v9192_v60 = vpop.f32.mrb[49].mxu1  ;;  %v13728_v53 = vld [vmem:[%s15028_s27 + $0x12c] ss:$676 sps:$4 sm:$0xff]   ;;  %v645_v51 = vcombine.high %v15807_v41, %v15807_v41  ;;  %v646_v45 = vcombine.high %v15813_v50, %v15813_v50 }
 0x40d   : > { %v9193_v62 = vpop.f32.mrb[50].mxu1  ;;  %v13731_v60 = vld [vmem:[%s15028_s27 + $0x66c] ss:$676 sps:$4 sm:$0xff]  }
 0x40e   : > { %v9194_v56 = vpop.f32.mrb[51].mxu1  ;;  %v1287_v57 = vpack.c.bf16 %v645_v51, %v645_v51  ;;  %v1289_v62 = vpack.c.bf16 %v646_v45, %v646_v45  ;;  %v13781_v51 = vld [vmem:[%s15028_s27 + $0xbcc] ss:$676 sps:$4 sm:$0xff]   ;;  %v13776_v45 = vld [vmem:[%s15028_s27 + $0xbc0] ss:$676 sps:$4 sm:$0xff]  }
 0x40f   : > { %9449 = vmatpush1.bf16.xpose.msra.mxu0 %v12762_v52  ;;  %v1282_v52 = vpack.c.bf16 %v15763_v54, %v15763_v54  ;;  %v13729_v54 = vld [vmem:[%s15028_s27 + $0x668] ss:$676 sps:$4 sm:$0xff]   ;;  %v13732_v56 = vld [vmem:[%s15028_s27 + $0x670] ss:$676 sps:$4 sm:$0xff]  }
 0x410   : > { %9516 = vmatprep.subr.bf16.mxu0 %v13683_v58  ;;  %v1284_v58 = vpack.c.bf16 %v15769_v63, %v15769_v63  ;;  %v13737_v63 = vld [vmem:[%s15028_s27 + $0xbb4] ss:$676 sps:$4 sm:$0xff]  }
 0x411   : > { %9489 = vmatpush1.bf16.xpose.msra.mxu1 %v12764_v61  ;;  %v13726_v61 = vld [vmem:[%s15028_s27 + $0x128] ss:$676 sps:$4 sm:$0xff]  }
 0x412   : > { %9556 = vmatprep.subr.bf16.mxu1 %v13687_v1  ;;  %v13734_v1 = vld [vmem:[%s15028_s27 + $0x674] ss:$676 sps:$4 sm:$0xff]  }
 0x416   : > { %9469 = vmatmul.mubr.bf16.vlgmr.msra.gmra.mrb[64].mxu0 %v1278_v2  ;;  %v13743_v2 = vld [vmem:[%s15028_s27 + $0x10fc] ss:$676 sps:$4 sm:$0xff]  }
 0x417   : > { %9517 = vmatpush1.bf16.xpose.msra.mxu0 %v13681_v4  ;;  %9548 = vmatprep.mubr.bf16.mxu0 %v1283_v6  ;;  %v13738_v4 = vld [vmem:[%s15028_s27 + $0xbb8] ss:$676 sps:$4 sm:$0xff]   ;;  %v13746_v6 = vld [vmem:[%s15028_s27 + $0x1104] ss:$676 sps:$4 sm:$0xff]  }
 0x418   : > { %9509 = vmatmul.mubr.bf16.vlgmr.msra.gmra.mrb[64].mxu1 %v1280_v7  ;;  %9518 = vmatprep.subr.bf16.mxu0 %v13690_v9  ;;  %v13741_v7 = vld [vmem:[%s15028_s27 + $0x10f8] ss:$676 sps:$4 sm:$0xff]   ;;  %v13749_v9 = vld [vmem:[%s15028_s27 + $0x1644] ss:$676 sps:$4 sm:$0xff]  }
 0x419   : > { %9557 = vmatpush1.bf16.xpose.msra.mxu1 %v13685_v10  ;;  %9588 = vmatprep.mubr.bf16.mxu1 %v1285_v11  ;;  %v13744_v10 = vld [vmem:[%s15028_s27 + $0x1100] ss:$676 sps:$4 sm:$0xff]   ;;  %v13752_v11 = vld [vmem:[%s15028_s27 + $0x164c] ss:$676 sps:$4 sm:$0xff]  }
 0x41a   : > { %9558 = vmatprep.subr.bf16.mxu1 %v13693_v14  ;;  %v13747_v14 = vld [vmem:[%s15028_s27 + $0x1640] ss:$676 sps:$4 sm:$0xff]  }
 0x41f   : > { %9519 = vmatpush1.bf16.xpose.msra.mxu0 %v13688_v3  ;;  %v13755_v3 = vld [vmem:[%s15028_s27 + $0x1b8c] ss:$676 sps:$4 sm:$0xff]  }
 0x420   : > { %9520 = vmatprep.subr.bf16.mxu0 %v13696_v12  ;;  %v13750_v12 = vld [vmem:[%s15028_s27 + $0x1648] ss:$676 sps:$4 sm:$0xff]  }
 0x421   : > { %9559 = vmatpush1.bf16.xpose.msra.mxu1 %v13691_v5  ;;  %v13758_v5 = vld [vmem:[%s15028_s27 + $0x1b94] ss:$676 sps:$4 sm:$0xff]  }
 0x422   : > { %9560 = vmatprep.subr.bf16.mxu1 %v13699_v13  ;;  %v2439_v13 = vld [vmem:[%s15028_s27 + $0x20d0] sm:$0x33] }
 0x423   : > { %v12770_v27 = vcombine.low %v2439_v13, %v2439_v13 }
 0x427   : > { %9521 = vmatpush1.bf16.xpose.msra.mxu0 %v13694_v8  ;;  %v13753_v8 = vld [vmem:[%s15028_s27 + $0x1b88] ss:$676 sps:$4 sm:$0xff]  }
 0x428   : > { %9522 = vmatprep.subr.bf16.mxu0 %v13702_v17  ;;  %v2440_v17 = vld [vmem:[%s15028_s27 + $0x20d8] sm:$0x33] }
 0x429   : > { %9561 = vmatpush1.bf16.xpose.msra.mxu1 %v13697_v15  ;;  %v12771_v15 = vcombine.high %v2439_v13, %v2439_v13  ;;  %v12772_v35 = vcombine.low %v2440_v17, %v2440_v17 }
 0x42a   : > { %9562 = vmatprep.subr.bf16.mxu1 %v13705_v20  ;;  %v13756_v20 = vld [vmem:[%s15028_s27 + $0x1b90] ss:$676 sps:$4 sm:$0xff]  }
 0x42f   : > { %9523 = vmatpush1.bf16.xpose.msra.mxu0 %v13700_v21  ;;  %v12773_v21 = vcombine.high %v2440_v17, %v2440_v17 }
 0x430   : > { %9524 = vmatprep.subr.bf16.mxu0 %v13708_v23  ;;  %v257_v23 = vld [vmem:[%s15022_s6 + $0x98] sm:$0xff] }
 0x431   : > { %9563 = vmatpush1.bf16.xpose.msra.mxu1 %v13703_v24 }
 0x432   : > { %9564 = vmatprep.subr.bf16.mxu1 %v13711_v25  ;;  %v647_v25 = vcombine.high %v257_v23, %v257_v23 }
 0x434   : > { %v15857_v37 = vrot.slane %v647_v25, %v15052_v16 }
 0x437   : > { %9525 = vmatpush1.bf16.xpose.msra.mxu0 %v13706_v28 }
 0x438   : > { %9526 = vmatprep.subr.bf16.mxu0 %v13714_v18 }
 0x439   : > { %9565 = vmatpush1.bf16.xpose.msra.mxu1 %v13709_v26 }
 0x43a   : > { %9566 = vmatprep.subr.bf16.mxu1 %v13717_v19 }
 0x43f   : > { %9527 = vmatpush1.bf16.xpose.msra.mxu0 %v13712_v22  ;;  %v15851_v22 = vrot.slane %v257_v23, %v15052_v16 }
 0x440   : > { %9528 = vmatprep.subr.bf16.mxu0 %v12767_v29 }
 0x441   : > { %v9230_v36 = vpop.f32.mrb[52].mxu0  ;;  %9567 = vmatpush1.bf16.xpose.msra.mxu1 %v13715_v33  ;;  %v13765_v33 = vld [vmem:[%s15028_s27 + $0x134] ss:$676 sps:$4 sm:$0xff]  }
 0x442   : > { %v9231_v40 = vadd.f32 %v9230_v36, %v15765_v55  ;;  %v9232_v31 = vpop.f32.mrb[53].mxu0  ;;  %9568 = vmatprep.subr.bf16.mxu1 %v12769_v34  ;;  %v13722_v55 = vld [vmem:[%s15028_s27 + $0x120] ss:$676 sps:$4 sm:$0xff]  }
 0x443   : > { %v9233_v38 = vpop.f32.mrb[54].mxu0  ;;  %v9270_v32 = vpop.f32.mrb[52].mxu1 }
 0x444   : > { %v15809_v42 = vadd.f32 %v9270_v32, %v9231_v40  ;;  %v9234_v44 = vpop.f32.mrb[55].mxu0  ;;  %v9272_v47 = vpop.f32.mrb[53].mxu1  ;;  %v13769_v40 = vld [vmem:[%s15028_s27 + $0x13c] ss:$676 sps:$4 sm:$0xff]   ;;  %v662_v38 = vcombine.high %v15851_v22, %v15851_v22  ;;  %v663_v32 = vcombine.high %v15857_v37, %v15857_v37 }
 0x445   : > { %v9273_v49 = vpop.f32.mrb[54].mxu1  ;;  %v13772_v47 = vld [vmem:[%s15028_s27 + $0x67c] ss:$676 sps:$4 sm:$0xff]  }
 0x446   : > { %v9274_v43 = vpop.f32.mrb[55].mxu1  ;;  %v1291_v44 = vpack.c.bf16 %v662_v38, %v662_v38  ;;  %v1293_v49 = vpack.c.bf16 %v663_v32, %v663_v32  ;;  %v13822_v38 = vld [vmem:[%s15028_s27 + $0xbdc] ss:$676 sps:$4 sm:$0xff]   ;;  %v13817_v32 = vld [vmem:[%s15028_s27 + $0xbd0] ss:$676 sps:$4 sm:$0xff]  }
 0x447   : > { %9529 = vmatpush1.bf16.xpose.msra.mxu0 %v12766_v39  ;;  %v1286_v39 = vpack.c.bf16 %v15807_v41, %v15807_v41  ;;  %v13770_v41 = vld [vmem:[%s15028_s27 + $0x678] ss:$676 sps:$4 sm:$0xff]   ;;  %v13773_v43 = vld [vmem:[%s15028_s27 + $0x680] ss:$676 sps:$4 sm:$0xff]  }
 0x448   : > { %9596 = vmatprep.subr.bf16.mxu0 %v13724_v46  ;;  %v1288_v46 = vpack.c.bf16 %v15813_v50, %v15813_v50  ;;  %v13778_v50 = vld [vmem:[%s15028_s27 + $0xbc4] ss:$676 sps:$4 sm:$0xff]  }
 0x449   : > { %9569 = vmatpush1.bf16.xpose.msra.mxu1 %v12768_v48  ;;  %v13767_v48 = vld [vmem:[%s15028_s27 + $0x138] ss:$676 sps:$4 sm:$0xff]  }
 0x44a   : > { %9636 = vmatprep.subr.bf16.mxu1 %v13728_v53  ;;  %v13775_v53 = vld [vmem:[%s15028_s27 + $0x684] ss:$676 sps:$4 sm:$0xff]  }
 0x44e   : > { %9549 = vmatmul.mubr.bf16.vlgmr.msra.gmra.mrb[68].mxu0 %v1282_v52  ;;  %v13784_v52 = vld [vmem:[%s15028_s27 + $0x110c] ss:$676 sps:$4 sm:$0xff]  }
 0x44f   : > { %9597 = vmatpush1.bf16.xpose.msra.mxu0 %v13722_v55  ;;  %9628 = vmatprep.mubr.bf16.mxu0 %v1287_v57  ;;  %v13779_v55 = vld [vmem:[%s15028_s27 + $0xbc8] ss:$676 sps:$4 sm:$0xff]   ;;  %v13787_v57 = vld [vmem:[%s15028_s27 + $0x1114] ss:$676 sps:$4 sm:$0xff]  }
 0x450   : > { %9589 = vmatmul.mubr.bf16.vlgmr.msra.gmra.mrb[68].mxu1 %v1284_v58  ;;  %9598 = vmatprep.subr.bf16.mxu0 %v13731_v60  ;;  %v13782_v58 = vld [vmem:[%s15028_s27 + $0x1108] ss:$676 sps:$4 sm:$0xff]   ;;  %v13790_v60 = vld [vmem:[%s15028_s27 + $0x1654] ss:$676 sps:$4 sm:$0xff]  }
 0x451   : > { %9637 = vmatpush1.bf16.xpose.msra.mxu1 %v13726_v61  ;;  %9668 = vmatprep.mubr.bf16.mxu1 %v1289_v62  ;;  %v13785_v61 = vld [vmem:[%s15028_s27 + $0x1110] ss:$676 sps:$4 sm:$0xff]   ;;  %v13793_v62 = vld [vmem:[%s15028_s27 + $0x165c] ss:$676 sps:$4 sm:$0xff]  }
 0x452   : > { %9638 = vmatprep.subr.bf16.mxu1 %v13734_v1  ;;  %v13788_v1 = vld [vmem:[%s15028_s27 + $0x1650] ss:$676 sps:$4 sm:$0xff]  }
 0x457   : > { %9599 = vmatpush1.bf16.xpose.msra.mxu0 %v13729_v54  ;;  %v13796_v54 = vld [vmem:[%s15028_s27 + $0x1b9c] ss:$676 sps:$4 sm:$0xff]  }
 0x458   : > { %9600 = vmatprep.subr.bf16.mxu0 %v13737_v63  ;;  %v13791_v63 = vld [vmem:[%s15028_s27 + $0x1658] ss:$676 sps:$4 sm:$0xff]  }
 0x459   : > { %9639 = vmatpush1.bf16.xpose.msra.mxu1 %v13732_v56  ;;  %v13799_v56 = vld [vmem:[%s15028_s27 + $0x1ba4] ss:$676 sps:$4 sm:$0xff]  }
 0x45a   : > { %9640 = vmatprep.subr.bf16.mxu1 %v13740_v0  ;;  %v2441_v0 = vld [vmem:[%s15028_s27 + $0x20e0] sm:$0x33] }
 0x45b   : > { %v12774_v13 = vcombine.low %v2441_v0, %v2441_v0 }
 0x45f   : > { %9601 = vmatpush1.bf16.xpose.msra.mxu0 %v13735_v59  ;;  %v13794_v59 = vld [vmem:[%s15028_s27 + $0x1b98] ss:$676 sps:$4 sm:$0xff]  }
 0x460   : > { %9602 = vmatprep.subr.bf16.mxu0 %v13743_v2  ;;  %v2442_v2 = vld [vmem:[%s15028_s27 + $0x20e8] sm:$0x33] }
 0x461   : > { %9641 = vmatpush1.bf16.xpose.msra.mxu1 %v13738_v4  ;;  %v12775_v4 = vcombine.high %v2441_v0, %v2441_v0  ;;  %v12776_v23 = vcombine.low %v2442_v2, %v2442_v2 }
 0x462   : > { %9642 = vmatprep.subr.bf16.mxu1 %v13746_v6  ;;  %v13797_v6 = vld [vmem:[%s15028_s27 + $0x1ba0] ss:$676 sps:$4 sm:$0xff]  }
 0x467   : > { %9603 = vmatpush1.bf16.xpose.msra.mxu0 %v13741_v7  ;;  %v12777_v7 = vcombine.high %v2442_v2, %v2442_v2 }
 0x468   : > { %9604 = vmatprep.subr.bf16.mxu0 %v13749_v9  ;;  %v258_v9 = vld [vmem:[%s15022_s6 + $0xa0] sm:$0xff] }
 0x469   : > { %9643 = vmatpush1.bf16.xpose.msra.mxu1 %v13744_v10 }
 0x46a   : > { %9644 = vmatprep.subr.bf16.mxu1 %v13752_v11  ;;  %v664_v11 = vcombine.high %v258_v9, %v258_v9 }
 0x46c   : > { %v15901_v25 = vrot.slane %v664_v11, %v15052_v16 }
 0x46f   : > { %9605 = vmatpush1.bf16.xpose.msra.mxu0 %v13747_v14 }
 0x470   : > { %9606 = vmatprep.subr.bf16.mxu0 %v13755_v3 }
 0x471   : > { %9645 = vmatpush1.bf16.xpose.msra.mxu1 %v13750_v12 }
 0x472   : > { %9646 = vmatprep.subr.bf16.mxu1 %v13758_v5 }
 0x477   : > { %9607 = vmatpush1.bf16.xpose.msra.mxu0 %v13753_v8  ;;  %v15895_v8 = vrot.slane %v258_v9, %v15052_v16 }
 0x478   : > { %9608 = vmatprep.subr.bf16.mxu0 %v12771_v15 }
 0x479   : > { %v9310_v24 = vpop.f32.mrb[56].mxu0  ;;  %9647 = vmatpush1.bf16.xpose.msra.mxu1 %v13756_v20  ;;  %v13806_v20 = vld [vmem:[%s15028_s27 + $0x144] ss:$676 sps:$4 sm:$0xff]  }
 0x47a   : > { %v9311_v28 = vadd.f32 %v9310_v24, %v15809_v42  ;;  %v9312_v18 = vpop.f32.mrb[57].mxu0  ;;  %9648 = vmatprep.subr.bf16.mxu1 %v12773_v21  ;;  %v13763_v42 = vld [vmem:[%s15028_s27 + $0x130] ss:$676 sps:$4 sm:$0xff]  }
 0x47b   : > { %v9313_v26 = vpop.f32.mrb[58].mxu0  ;;  %v9350_v19 = vpop.f32.mrb[56].mxu1 }
 0x47c   : > { %v15853_v30 = vadd.f32 %v9350_v19, %v9311_v28  ;;  %v9314_v29 = vpop.f32.mrb[59].mxu0  ;;  %v9352_v34 = vpop.f32.mrb[57].mxu1  ;;  %v13810_v28 = vld [vmem:[%s15028_s27 + $0x14c] ss:$676 sps:$4 sm:$0xff]   ;;  %v679_v26 = vcombine.high %v15895_v8, %v15895_v8  ;;  %v680_v19 = vcombine.high %v15901_v25, %v15901_v25 }
 0x47d   : > { %v9353_v36 = vpop.f32.mrb[58].mxu1  ;;  %v13813_v34 = vld [vmem:[%s15028_s27 + $0x68c] ss:$676 sps:$4 sm:$0xff]  }
 0x47e   : > { %v9354_v31 = vpop.f32.mrb[59].mxu1  ;;  %v1295_v29 = vpack.c.bf16 %v679_v26, %v679_v26  ;;  %v1297_v36 = vpack.c.bf16 %v680_v19, %v680_v19  ;;  %v13863_v26 = vld [vmem:[%s15028_s27 + $0xbec] ss:$676 sps:$4 sm:$0xff]   ;;  %v13858_v19 = vld [vmem:[%s15028_s27 + $0xbe0] ss:$676 sps:$4 sm:$0xff]  }
 0x47f   : > { %9609 = vmatpush1.bf16.xpose.msra.mxu0 %v12770_v27  ;;  %v1290_v27 = vpack.c.bf16 %v15851_v22, %v15851_v22  ;;  %v13811_v22 = vld [vmem:[%s15028_s27 + $0x688] ss:$676 sps:$4 sm:$0xff]   ;;  %v13814_v31 = vld [vmem:[%s15028_s27 + $0x690] ss:$676 sps:$4 sm:$0xff]  }
 0x480   : > { %9676 = vmatprep.subr.bf16.mxu0 %v13765_v33  ;;  %v1292_v33 = vpack.c.bf16 %v15857_v37, %v15857_v37  ;;  %v13819_v37 = vld [vmem:[%s15028_s27 + $0xbd4] ss:$676 sps:$4 sm:$0xff]  }
 0x481   : > { %9649 = vmatpush1.bf16.xpose.msra.mxu1 %v12772_v35  ;;  %v13808_v35 = vld [vmem:[%s15028_s27 + $0x148] ss:$676 sps:$4 sm:$0xff]  }
 0x482   : > { %9716 = vmatprep.subr.bf16.mxu1 %v13769_v40  ;;  %v13816_v40 = vld [vmem:[%s15028_s27 + $0x694] ss:$676 sps:$4 sm:$0xff]  }
 0x486   : > { %9629 = vmatmul.mubr.bf16.vlgmr.msra.gmra.mrb[72].mxu0 %v1286_v39  ;;  %v13825_v39 = vld [vmem:[%s15028_s27 + $0x111c] ss:$676 sps:$4 sm:$0xff]  }
 0x487   : > { %9677 = vmatpush1.bf16.xpose.msra.mxu0 %v13763_v42  ;;  %9708 = vmatprep.mubr.bf16.mxu0 %v1291_v44  ;;  %v13820_v42 = vld [vmem:[%s15028_s27 + $0xbd8] ss:$676 sps:$4 sm:$0xff]   ;;  %v13828_v44 = vld [vmem:[%s15028_s27 + $0x1124] ss:$676 sps:$4 sm:$0xff]  }
 0x488   : > { %9669 = vmatmul.mubr.bf16.vlgmr.msra.gmra.mrb[72].mxu1 %v1288_v46  ;;  %9678 = vmatprep.subr.bf16.mxu0 %v13772_v47  ;;  %v13823_v46 = vld [vmem:[%s15028_s27 + $0x1118] ss:$676 sps:$4 sm:$0xff]   ;;  %v13831_v47 = vld [vmem:[%s15028_s27 + $0x1664] ss:$676 sps:$4 sm:$0xff]  }
 0x489   : > { %9717 = vmatpush1.bf16.xpose.msra.mxu1 %v13767_v48  ;;  %9748 = vmatprep.mubr.bf16.mxu1 %v1293_v49  ;;  %v13826_v48 = vld [vmem:[%s15028_s27 + $0x1120] ss:$676 sps:$4 sm:$0xff]   ;;  %v13834_v49 = vld [vmem:[%s15028_s27 + $0x166c] ss:$676 sps:$4 sm:$0xff]  }
 0x48a   : > { %9718 = vmatprep.subr.bf16.mxu1 %v13775_v53  ;;  %v13829_v53 = vld [vmem:[%s15028_s27 + $0x1660] ss:$676 sps:$4 sm:$0xff]  }
 0x48f   : > { %9679 = vmatpush1.bf16.xpose.msra.mxu0 %v13770_v41  ;;  %v13837_v41 = vld [vmem:[%s15028_s27 + $0x1bac] ss:$676 sps:$4 sm:$0xff]  }
 0x490   : > { %9680 = vmatprep.subr.bf16.mxu0 %v13778_v50  ;;  %v13832_v50 = vld [vmem:[%s15028_s27 + $0x1668] ss:$676 sps:$4 sm:$0xff]  }
 0x491   : > { %9719 = vmatpush1.bf16.xpose.msra.mxu1 %v13773_v43  ;;  %v13840_v43 = vld [vmem:[%s15028_s27 + $0x1bb4] ss:$676 sps:$4 sm:$0xff]  }
 0x492   : > { %9720 = vmatprep.subr.bf16.mxu1 %v13781_v51  ;;  %v2443_v51 = vld [vmem:[%s15028_s27 + $0x20f0] sm:$0x33] }
 0x493   : > { %v12778_v0 = vcombine.low %v2443_v51, %v2443_v51 }
 0x497   : > { %9681 = vmatpush1.bf16.xpose.msra.mxu0 %v13776_v45  ;;  %v13835_v45 = vld [vmem:[%s15028_s27 + $0x1ba8] ss:$676 sps:$4 sm:$0xff]  }
 0x498   : > { %9682 = vmatprep.subr.bf16.mxu0 %v13784_v52  ;;  %v2444_v52 = vld [vmem:[%s15028_s27 + $0x20f8] sm:$0x33] }
 0x499   : > { %9721 = vmatpush1.bf16.xpose.msra.mxu1 %v13779_v55  ;;  %v12779_v55 = vcombine.high %v2443_v51, %v2443_v51  ;;  %v12780_v9 = vcombine.low %v2444_v52, %v2444_v52 }
 0x49a   : > { %9722 = vmatprep.subr.bf16.mxu1 %v13787_v57  ;;  %v13838_v57 = vld [vmem:[%s15028_s27 + $0x1bb0] ss:$676 sps:$4 sm:$0xff]  }
 0x49f   : > { %9683 = vmatpush1.bf16.xpose.msra.mxu0 %v13782_v58  ;;  %v12781_v58 = vcombine.high %v2444_v52, %v2444_v52 }
 0x4a0   : > { %9684 = vmatprep.subr.bf16.mxu0 %v13790_v60  ;;  %v259_v60 = vld [vmem:[%s15022_s6 + $0xa8] sm:$0xff] }
 0x4a1   : > { %9723 = vmatpush1.bf16.xpose.msra.mxu1 %v13785_v61 }
 0x4a2   : > { %9724 = vmatprep.subr.bf16.mxu1 %v13793_v62  ;;  %v681_v62 = vcombine.high %v259_v60, %v259_v60 }
 0x4a4   : > { %v15945_v11 = vrot.slane %v681_v62, %v15052_v16 }
 0x4a7   : > { %9685 = vmatpush1.bf16.xpose.msra.mxu0 %v13788_v1 }
 0x4a8   : > { %9686 = vmatprep.subr.bf16.mxu0 %v13796_v54 }
 0x4a9   : > { %9725 = vmatpush1.bf16.xpose.msra.mxu1 %v13791_v63 }
 0x4aa   : > { %9726 = vmatprep.subr.bf16.mxu1 %v13799_v56 }
 0x4af   : > { %9687 = vmatpush1.bf16.xpose.msra.mxu0 %v13794_v59  ;;  %v15939_v59 = vrot.slane %v259_v60, %v15052_v16 }
 0x4b0   : > { %9688 = vmatprep.subr.bf16.mxu0 %v12775_v4 }
 0x4b1   : > { %v9390_v10 = vpop.f32.mrb[60].mxu0  ;;  %9727 = vmatpush1.bf16.xpose.msra.mxu1 %v13797_v6  ;;  %v13847_v6 = vld [vmem:[%s15028_s27 + $0x154] ss:$676 sps:$4 sm:$0xff]  }
 0x4b2   : > { %v9391_v14 = vadd.f32 %v9390_v10, %v15853_v30  ;;  %v9392_v3 = vpop.f32.mrb[61].mxu0  ;;  %9728 = vmatprep.subr.bf16.mxu1 %v12777_v7  ;;  %v13804_v30 = vld [vmem:[%s15028_s27 + $0x140] ss:$676 sps:$4 sm:$0xff]  }
 0x4b3   : > { %v9393_v12 = vpop.f32.mrb[62].mxu0  ;;  %v9430_v5 = vpop.f32.mrb[60].mxu1 }
 0x4b4   : > { %v15897_v17 = vadd.f32 %v9430_v5, %v9391_v14  ;;  %v9394_v15 = vpop.f32.mrb[63].mxu0  ;;  %v9432_v21 = vpop.f32.mrb[61].mxu1  ;;  %v13851_v14 = vld [vmem:[%s15028_s27 + $0x15c] ss:$676 sps:$4 sm:$0xff]   ;;  %v696_v12 = vcombine.high %v15939_v59, %v15939_v59  ;;  %v697_v5 = vcombine.high %v15945_v11, %v15945_v11 }
 0x4b5   : > { %v9433_v24 = vpop.f32.mrb[62].mxu1  ;;  %v13854_v21 = vld [vmem:[%s15028_s27 + $0x69c] ss:$676 sps:$4 sm:$0xff]  }
 0x4b6   : > { %v9434_v18 = vpop.f32.mrb[63].mxu1  ;;  %v1299_v15 = vpack.c.bf16 %v696_v12, %v696_v12  ;;  %v1301_v24 = vpack.c.bf16 %v697_v5, %v697_v5  ;;  %v13904_v12 = vld [vmem:[%s15028_s27 + $0xbfc] ss:$676 sps:$4 sm:$0xff]   ;;  %v13899_v5 = vld [vmem:[%s15028_s27 + $0xbf0] ss:$676 sps:$4 sm:$0xff]  }
 0x4b7   : > { %9689 = vmatpush1.bf16.xpose.msra.mxu0 %v12774_v13  ;;  %v1294_v13 = vpack.c.bf16 %v15895_v8, %v15895_v8  ;;  %v13852_v8 = vld [vmem:[%s15028_s27 + $0x698] ss:$676 sps:$4 sm:$0xff]   ;;  %v13855_v18 = vld [vmem:[%s15028_s27 + $0x6a0] ss:$676 sps:$4 sm:$0xff]  }
 0x4b8   : > { %9756 = vmatprep.subr.bf16.mxu0 %v13806_v20  ;;  %v1296_v20 = vpack.c.bf16 %v15901_v25, %v15901_v25  ;;  %v13860_v25 = vld [vmem:[%s15028_s27 + $0xbe4] ss:$676 sps:$4 sm:$0xff]  }
 0x4b9   : > { %9729 = vmatpush1.bf16.xpose.msra.mxu1 %v12776_v23  ;;  %v13849_v23 = vld [vmem:[%s15028_s27 + $0x158] ss:$676 sps:$4 sm:$0xff]  }
 0x4ba   : > { %9796 = vmatprep.subr.bf16.mxu1 %v13810_v28  ;;  %v13857_v28 = vld [vmem:[%s15028_s27 + $0x6a4] ss:$676 sps:$4 sm:$0xff]  }
 0x4be   : > { %9709 = vmatmul.mubr.bf16.vlgmr.msra.gmra.mrb[76].mxu0 %v1290_v27  ;;  %v13866_v27 = vld [vmem:[%s15028_s27 + $0x112c] ss:$676 sps:$4 sm:$0xff]  }
 0x4bf   : > { %9757 = vmatpush1.bf16.xpose.msra.mxu0 %v13804_v30  ;;  %9788 = vmatprep.mubr.bf16.mxu0 %v1295_v29  ;;  %v13861_v30 = vld [vmem:[%s15028_s27 + $0xbe8] ss:$676 sps:$4 sm:$0xff]   ;;  %v13869_v29 = vld [vmem:[%s15028_s27 + $0x1134] ss:$676 sps:$4 sm:$0xff]  }
 0x4c0   : > { %9749 = vmatmul.mubr.bf16.vlgmr.msra.gmra.mrb[76].mxu1 %v1292_v33  ;;  %9758 = vmatprep.subr.bf16.mxu0 %v13813_v34  ;;  %v13864_v33 = vld [vmem:[%s15028_s27 + $0x1128] ss:$676 sps:$4 sm:$0xff]   ;;  %v13872_v34 = vld [vmem:[%s15028_s27 + $0x1674] ss:$676 sps:$4 sm:$0xff]  }
 0x4c1   : > { %9797 = vmatpush1.bf16.xpose.msra.mxu1 %v13808_v35  ;;  %9828 = vmatprep.mubr.bf16.mxu1 %v1297_v36  ;;  %v13867_v35 = vld [vmem:[%s15028_s27 + $0x1130] ss:$676 sps:$4 sm:$0xff]   ;;  %v13875_v36 = vld [vmem:[%s15028_s27 + $0x167c] ss:$676 sps:$4 sm:$0xff]  }
 0x4c2   : > { %9798 = vmatprep.subr.bf16.mxu1 %v13816_v40  ;;  %v13870_v40 = vld [vmem:[%s15028_s27 + $0x1670] ss:$676 sps:$4 sm:$0xff]  }
 0x4c7   : > { %9759 = vmatpush1.bf16.xpose.msra.mxu0 %v13811_v22  ;;  %v13878_v22 = vld [vmem:[%s15028_s27 + $0x1bbc] ss:$676 sps:$4 sm:$0xff]  }
 0x4c8   : > { %9760 = vmatprep.subr.bf16.mxu0 %v13819_v37  ;;  %v13873_v37 = vld [vmem:[%s15028_s27 + $0x1678] ss:$676 sps:$4 sm:$0xff]  }
 0x4c9   : > { %9799 = vmatpush1.bf16.xpose.msra.mxu1 %v13814_v31  ;;  %v13881_v31 = vld [vmem:[%s15028_s27 + $0x1bc4] ss:$676 sps:$4 sm:$0xff]  }
 0x4ca   : > { %9800 = vmatprep.subr.bf16.mxu1 %v13822_v38  ;;  %v2445_v38 = vld [vmem:[%s15028_s27 + $0x2100] sm:$0x33] }
 0x4cb   : > { %v12782_v51 = vcombine.low %v2445_v38, %v2445_v38 }
 0x4cf   : > { %9761 = vmatpush1.bf16.xpose.msra.mxu0 %v13817_v32  ;;  %v13876_v32 = vld [vmem:[%s15028_s27 + $0x1bb8] ss:$676 sps:$4 sm:$0xff]  }
 0x4d0   : > { %9762 = vmatprep.subr.bf16.mxu0 %v13825_v39  ;;  %v2446_v39 = vld [vmem:[%s15028_s27 + $0x2108] sm:$0x33] }
 0x4d1   : > { %9801 = vmatpush1.bf16.xpose.msra.mxu1 %v13820_v42  ;;  %v12783_v42 = vcombine.high %v2445_v38, %v2445_v38  ;;  %v12784_v60 = vcombine.low %v2446_v39, %v2446_v39 }
 0x4d2   : > { %9802 = vmatprep.subr.bf16.mxu1 %v13828_v44  ;;  %v13879_v44 = vld [vmem:[%s15028_s27 + $0x1bc0] ss:$676 sps:$4 sm:$0xff]  }
 0x4d7   : > { %9763 = vmatpush1.bf16.xpose.msra.mxu0 %v13823_v46  ;;  %v12785_v46 = vcombine.high %v2446_v39, %v2446_v39 }
 0x4d8   : > { %9764 = vmatprep.subr.bf16.mxu0 %v13831_v47  ;;  %v260_v47 = vld [vmem:[%s15022_s6 + $0xb0] sm:$0xff] }
 0x4d9   : > { %9803 = vmatpush1.bf16.xpose.msra.mxu1 %v13826_v48 }
 0x4da   : > { %9804 = vmatprep.subr.bf16.mxu1 %v13834_v49  ;;  %v698_v49 = vcombine.high %v260_v47, %v260_v47 }
 0x4dc   : > { %v15989_v62 = vrot.slane %v698_v49, %v15052_v16 }
 0x4df   : > { %9765 = vmatpush1.bf16.xpose.msra.mxu0 %v13829_v53 }
 0x4e0   : > { %9766 = vmatprep.subr.bf16.mxu0 %v13837_v41 }
 0x4e1   : > { %9805 = vmatpush1.bf16.xpose.msra.mxu1 %v13832_v50 }
 0x4e2   : > { %9806 = vmatprep.subr.bf16.mxu1 %v13840_v43 }
 0x4e7   : > { %9767 = vmatpush1.bf16.xpose.msra.mxu0 %v13835_v45  ;;  %v15983_v45 = vrot.slane %v260_v47, %v15052_v16 }
 0x4e8   : > { %9768 = vmatprep.subr.bf16.mxu0 %v12779_v55 }
 0x4e9   : > { %v9470_v61 = vpop.f32.mrb[64].mxu0  ;;  %9807 = vmatpush1.bf16.xpose.msra.mxu1 %v13838_v57  ;;  %v13888_v57 = vld [vmem:[%s15028_s27 + $0x164] ss:$676 sps:$4 sm:$0xff]  }
 0x4ea   : > { %v9471_v1 = vadd.f32 %v9470_v61, %v15897_v17  ;;  %v9472_v54 = vpop.f32.mrb[65].mxu0  ;;  %9808 = vmatprep.subr.bf16.mxu1 %v12781_v58  ;;  %v13845_v17 = vld [vmem:[%s15028_s27 + $0x150] ss:$676 sps:$4 sm:$0xff]  }
 0x4eb   : > { %v9473_v63 = vpop.f32.mrb[66].mxu0  ;;  %v9510_v56 = vpop.f32.mrb[64].mxu1 }
 0x4ec   : > { %v15941_v2 = vadd.f32 %v9510_v56, %v9471_v1  ;;  %v9474_v4 = vpop.f32.mrb[67].mxu0  ;;  %v9512_v7 = vpop.f32.mrb[65].mxu1  ;;  %v13892_v1 = vld [vmem:[%s15028_s27 + $0x16c] ss:$676 sps:$4 sm:$0xff]   ;;  %v713_v63 = vcombine.high %v15983_v45, %v15983_v45  ;;  %v714_v56 = vcombine.high %v15989_v62, %v15989_v62 }
 0x4ed   : > { %v9513_v10 = vpop.f32.mrb[66].mxu1  ;;  %v13895_v7 = vld [vmem:[%s15028_s27 + $0x6ac] ss:$676 sps:$4 sm:$0xff]  }
 0x4ee   : > { %v9514_v3 = vpop.f32.mrb[67].mxu1  ;;  %v1303_v4 = vpack.c.bf16 %v713_v63, %v713_v63  ;;  %v1305_v10 = vpack.c.bf16 %v714_v56, %v714_v56  ;;  %v13945_v63 = vld [vmem:[%s15028_s27 + $0xc0c] ss:$676 sps:$4 sm:$0xff]   ;;  %v13940_v56 = vld [vmem:[%s15028_s27 + $0xc00] ss:$676 sps:$4 sm:$0xff]  }
 0x4ef   : > { %9769 = vmatpush1.bf16.xpose.msra.mxu0 %v12778_v0  ;;  %v1298_v0 = vpack.c.bf16 %v15939_v59, %v15939_v59  ;;  %v13893_v59 = vld [vmem:[%s15028_s27 + $0x6a8] ss:$676 sps:$4 sm:$0xff]   ;;  %v13896_v3 = vld [vmem:[%s15028_s27 + $0x6b0] ss:$676 sps:$4 sm:$0xff]  }
 0x4f0   : > { %9836 = vmatprep.subr.bf16.mxu0 %v13847_v6  ;;  %v1300_v6 = vpack.c.bf16 %v15945_v11, %v15945_v11  ;;  %v13901_v11 = vld [vmem:[%s15028_s27 + $0xbf4] ss:$676 sps:$4 sm:$0xff]  }
 0x4f1   : > { %9809 = vmatpush1.bf16.xpose.msra.mxu1 %v12780_v9  ;;  %v13890_v9 = vld [vmem:[%s15028_s27 + $0x168] ss:$676 sps:$4 sm:$0xff]  }
 0x4f2   : > { %9876 = vmatprep.subr.bf16.mxu1 %v13851_v14  ;;  %v13898_v14 = vld [vmem:[%s15028_s27 + $0x6b4] ss:$676 sps:$4 sm:$0xff]  }
 0x4f6   : > { %9789 = vmatmul.mubr.bf16.vlgmr.msra.gmra.mrb[80].mxu0 %v1294_v13  ;;  %v13907_v13 = vld [vmem:[%s15028_s27 + $0x113c] ss:$676 sps:$4 sm:$0xff]  }
 0x4f7   : > { %9837 = vmatpush1.bf16.xpose.msra.mxu0 %v13845_v17  ;;  %9868 = vmatprep.mubr.bf16.mxu0 %v1299_v15  ;;  %v13902_v17 = vld [vmem:[%s15028_s27 + $0xbf8] ss:$676 sps:$4 sm:$0xff]   ;;  %v13910_v15 = vld [vmem:[%s15028_s27 + $0x1144] ss:$676 sps:$4 sm:$0xff]  }
 0x4f8   : > { %9829 = vmatmul.mubr.bf16.vlgmr.msra.gmra.mrb[80].mxu1 %v1296_v20  ;;  %9838 = vmatprep.subr.bf16.mxu0 %v13854_v21  ;;  %v13905_v20 = vld [vmem:[%s15028_s27 + $0x1138] ss:$676 sps:$4 sm:$0xff]   ;;  %v13913_v21 = vld [vmem:[%s15028_s27 + $0x1684] ss:$676 sps:$4 sm:$0xff]  }
 0x4f9   : > { %9877 = vmatpush1.bf16.xpose.msra.mxu1 %v13849_v23  ;;  %9908 = vmatprep.mubr.bf16.mxu1 %v1301_v24  ;;  %v13908_v23 = vld [vmem:[%s15028_s27 + $0x1140] ss:$676 sps:$4 sm:$0xff]   ;;  %v13916_v24 = vld [vmem:[%s15028_s27 + $0x168c] ss:$676 sps:$4 sm:$0xff]  }
 0x4fa   : > { %9878 = vmatprep.subr.bf16.mxu1 %v13857_v28  ;;  %v13911_v28 = vld [vmem:[%s15028_s27 + $0x1680] ss:$676 sps:$4 sm:$0xff]  }
 0x4ff   : > { %9839 = vmatpush1.bf16.xpose.msra.mxu0 %v13852_v8  ;;  %v13919_v8 = vld [vmem:[%s15028_s27 + $0x1bcc] ss:$676 sps:$4 sm:$0xff]  }
 0x500   : > { %9840 = vmatprep.subr.bf16.mxu0 %v13860_v25  ;;  %v13914_v25 = vld [vmem:[%s15028_s27 + $0x1688] ss:$676 sps:$4 sm:$0xff]  }
 0x501   : > { %9879 = vmatpush1.bf16.xpose.msra.mxu1 %v13855_v18  ;;  %v13922_v18 = vld [vmem:[%s15028_s27 + $0x1bd4] ss:$676 sps:$4 sm:$0xff]  }
 0x502   : > { %9880 = vmatprep.subr.bf16.mxu1 %v13863_v26  ;;  %v2447_v26 = vld [vmem:[%s15028_s27 + $0x2110] sm:$0x33] }
 0x503   : > { %v12786_v38 = vcombine.low %v2447_v26, %v2447_v26 }
 0x507   : > { %9841 = vmatpush1.bf16.xpose.msra.mxu0 %v13858_v19  ;;  %v13917_v19 = vld [vmem:[%s15028_s27 + $0x1bc8] ss:$676 sps:$4 sm:$0xff]  }
 0x508   : > { %9842 = vmatprep.subr.bf16.mxu0 %v13866_v27  ;;  %v2448_v27 = vld [vmem:[%s15028_s27 + $0x2118] sm:$0x33] }
 0x509   : > { %9881 = vmatpush1.bf16.xpose.msra.mxu1 %v13861_v30  ;;  %v12787_v30 = vcombine.high %v2447_v26, %v2447_v26  ;;  %v12788_v47 = vcombine.low %v2448_v27, %v2448_v27 }
 0x50a   : > { %9882 = vmatprep.subr.bf16.mxu1 %v13869_v29  ;;  %v13920_v29 = vld [vmem:[%s15028_s27 + $0x1bd0] ss:$676 sps:$4 sm:$0xff]  }
 0x50f   : > { %9843 = vmatpush1.bf16.xpose.msra.mxu0 %v13864_v33  ;;  %v12789_v33 = vcombine.high %v2448_v27, %v2448_v27 }
 0x510   : > { %9844 = vmatprep.subr.bf16.mxu0 %v13872_v34  ;;  %v261_v34 = vld [vmem:[%s15022_s6 + $0xb8] sm:$0xff] }
 0x511   : > { %9883 = vmatpush1.bf16.xpose.msra.mxu1 %v13867_v35 }
 0x512   : > { %9884 = vmatprep.subr.bf16.mxu1 %v13875_v36  ;;  %v715_v36 = vcombine.high %v261_v34, %v261_v34 }
 0x514   : > { %v16033_v49 = vrot.slane %v715_v36, %v15052_v16 }
 0x517   : > { %9845 = vmatpush1.bf16.xpose.msra.mxu0 %v13870_v40 }
 0x518   : > { %9846 = vmatprep.subr.bf16.mxu0 %v13878_v22 }
 0x519   : > { %9885 = vmatpush1.bf16.xpose.msra.mxu1 %v13873_v37 }
 0x51a   : > { %9886 = vmatprep.subr.bf16.mxu1 %v13881_v31 }
 0x51f   : > { %9847 = vmatpush1.bf16.xpose.msra.mxu0 %v13876_v32  ;;  %v16027_v32 = vrot.slane %v261_v34, %v15052_v16 }
 0x520   : > { %9848 = vmatprep.subr.bf16.mxu0 %v12783_v42 }
 0x521   : > { %v9550_v48 = vpop.f32.mrb[68].mxu0  ;;  %9887 = vmatpush1.bf16.xpose.msra.mxu1 %v13879_v44  ;;  %v13929_v44 = vld [vmem:[%s15028_s27 + $0x174] ss:$676 sps:$4 sm:$0xff]  }
 0x522   : > { %v9551_v53 = vadd.f32 %v9550_v48, %v15941_v2  ;;  %v9552_v41 = vpop.f32.mrb[69].mxu0  ;;  %9888 = vmatprep.subr.bf16.mxu1 %v12785_v46  ;;  %v13886_v2 = vld [vmem:[%s15028_s27 + $0x160] ss:$676 sps:$4 sm:$0xff]  }
 0x523   : > { %v9553_v50 = vpop.f32.mrb[70].mxu0  ;;  %v9590_v43 = vpop.f32.mrb[68].mxu1 }
 0x524   : > { %v15985_v52 = vadd.f32 %v9590_v43, %v9551_v53  ;;  %v9554_v55 = vpop.f32.mrb[71].mxu0  ;;  %v9592_v58 = vpop.f32.mrb[69].mxu1  ;;  %v13933_v53 = vld [vmem:[%s15028_s27 + $0x17c] ss:$676 sps:$4 sm:$0xff]   ;;  %v730_v50 = vcombine.high %v16027_v32, %v16027_v32  ;;  %v731_v43 = vcombine.high %v16033_v49, %v16033_v49 }
 0x525   : > { %v9593_v61 = vpop.f32.mrb[70].mxu1  ;;  %v13936_v58 = vld [vmem:[%s15028_s27 + $0x6bc] ss:$676 sps:$4 sm:$0xff]  }
 0x526   : > { %v9594_v54 = vpop.f32.mrb[71].mxu1  ;;  %v1307_v55 = vpack.c.bf16 %v730_v50, %v730_v50  ;;  %v1309_v61 = vpack.c.bf16 %v731_v43, %v731_v43  ;;  %v13986_v50 = vld [vmem:[%s15028_s27 + $0xc1c] ss:$676 sps:$4 sm:$0xff]   ;;  %v13981_v43 = vld [vmem:[%s15028_s27 + $0xc10] ss:$676 sps:$4 sm:$0xff]  }
 0x527   : > { %9849 = vmatpush1.bf16.xpose.msra.mxu0 %v12782_v51  ;;  %v1302_v51 = vpack.c.bf16 %v15983_v45, %v15983_v45  ;;  %v13934_v45 = vld [vmem:[%s15028_s27 + $0x6b8] ss:$676 sps:$4 sm:$0xff]   ;;  %v13937_v54 = vld [vmem:[%s15028_s27 + $0x6c0] ss:$676 sps:$4 sm:$0xff]  }
 0x528   : > { %9916 = vmatprep.subr.bf16.mxu0 %v13888_v57  ;;  %v1304_v57 = vpack.c.bf16 %v15989_v62, %v15989_v62  ;;  %v13942_v62 = vld [vmem:[%s15028_s27 + $0xc04] ss:$676 sps:$4 sm:$0xff]  }
 0x529   : > { %9889 = vmatpush1.bf16.xpose.msra.mxu1 %v12784_v60  ;;  %v13931_v60 = vld [vmem:[%s15028_s27 + $0x178] ss:$676 sps:$4 sm:$0xff]  }
 0x52a   : > { %9956 = vmatprep.subr.bf16.mxu1 %v13892_v1  ;;  %v13939_v1 = vld [vmem:[%s15028_s27 + $0x6c4] ss:$676 sps:$4 sm:$0xff]  }
 0x52e   : > { %9869 = vmatmul.mubr.bf16.vlgmr.msra.gmra.mrb[84].mxu0 %v1298_v0  ;;  %v13948_v0 = vld [vmem:[%s15028_s27 + $0x114c] ss:$676 sps:$4 sm:$0xff]  }
 0x52f   : > { %9917 = vmatpush1.bf16.xpose.msra.mxu0 %v13886_v2  ;;  %9948 = vmatprep.mubr.bf16.mxu0 %v1303_v4  ;;  %v13943_v2 = vld [vmem:[%s15028_s27 + $0xc08] ss:$676 sps:$4 sm:$0xff]   ;;  %v13951_v4 = vld [vmem:[%s15028_s27 + $0x1154] ss:$676 sps:$4 sm:$0xff]  }
 0x530   : > { %9909 = vmatmul.mubr.bf16.vlgmr.msra.gmra.mrb[84].mxu1 %v1300_v6  ;;  %9918 = vmatprep.subr.bf16.mxu0 %v13895_v7  ;;  %v13946_v6 = vld [vmem:[%s15028_s27 + $0x1148] ss:$676 sps:$4 sm:$0xff]   ;;  %v13954_v7 = vld [vmem:[%s15028_s27 + $0x1694] ss:$676 sps:$4 sm:$0xff]  }
 0x531   : > { %9957 = vmatpush1.bf16.xpose.msra.mxu1 %v13890_v9  ;;  %9988 = vmatprep.mubr.bf16.mxu1 %v1305_v10  ;;  %v13949_v9 = vld [vmem:[%s15028_s27 + $0x1150] ss:$676 sps:$4 sm:$0xff]   ;;  %v13957_v10 = vld [vmem:[%s15028_s27 + $0x169c] ss:$676 sps:$4 sm:$0xff]  }
 0x532   : > { %9958 = vmatprep.subr.bf16.mxu1 %v13898_v14  ;;  %v13952_v14 = vld [vmem:[%s15028_s27 + $0x1690] ss:$676 sps:$4 sm:$0xff]  }
 0x537   : > { %9919 = vmatpush1.bf16.xpose.msra.mxu0 %v13893_v59  ;;  %v13960_v59 = vld [vmem:[%s15028_s27 + $0x1bdc] ss:$676 sps:$4 sm:$0xff]  }
 0x538   : > { %9920 = vmatprep.subr.bf16.mxu0 %v13901_v11  ;;  %v13955_v11 = vld [vmem:[%s15028_s27 + $0x1698] ss:$676 sps:$4 sm:$0xff]  }
 0x539   : > { %9959 = vmatpush1.bf16.xpose.msra.mxu1 %v13896_v3  ;;  %v13963_v3 = vld [vmem:[%s15028_s27 + $0x1be4] ss:$676 sps:$4 sm:$0xff]  }
 0x53a   : > { %9960 = vmatprep.subr.bf16.mxu1 %v13904_v12  ;;  %v2449_v12 = vld [vmem:[%s15028_s27 + $0x2120] sm:$0x33] }
 0x53b   : > { %v12790_v26 = vcombine.low %v2449_v12, %v2449_v12 }
 0x53f   : > { %9921 = vmatpush1.bf16.xpose.msra.mxu0 %v13899_v5  ;;  %v13958_v5 = vld [vmem:[%s15028_s27 + $0x1bd8] ss:$676 sps:$4 sm:$0xff]  }
 0x540   : > { %9922 = vmatprep.subr.bf16.mxu0 %v13907_v13  ;;  %v2450_v13 = vld [vmem:[%s15028_s27 + $0x2128] sm:$0x33] }
 0x541   : > { %9961 = vmatpush1.bf16.xpose.msra.mxu1 %v13902_v17  ;;  %v12791_v17 = vcombine.high %v2449_v12, %v2449_v12  ;;  %v12792_v34 = vcombine.low %v2450_v13, %v2450_v13 }
 0x542   : > { %9962 = vmatprep.subr.bf16.mxu1 %v13910_v15  ;;  %v13961_v15 = vld [vmem:[%s15028_s27 + $0x1be0] ss:$676 sps:$4 sm:$0xff]  }
 0x547   : > { %9923 = vmatpush1.bf16.xpose.msra.mxu0 %v13905_v20  ;;  %v12793_v20 = vcombine.high %v2450_v13, %v2450_v13 }
 0x548   : > { %9924 = vmatprep.subr.bf16.mxu0 %v13913_v21  ;;  %v262_v21 = vld [vmem:[%s15022_s6 + $0xc0] sm:$0xff] }
 0x549   : > { %9963 = vmatpush1.bf16.xpose.msra.mxu1 %v13908_v23 }
 0x54a   : > { %9964 = vmatprep.subr.bf16.mxu1 %v13916_v24  ;;  %v732_v24 = vcombine.high %v262_v21, %v262_v21 }
 0x54c   : > { %v16077_v36 = vrot.slane %v732_v24, %v15052_v16 }
 0x54f   : > { %9925 = vmatpush1.bf16.xpose.msra.mxu0 %v13911_v28 }
 0x550   : > { %9926 = vmatprep.subr.bf16.mxu0 %v13919_v8 }
 0x551   : > { %9965 = vmatpush1.bf16.xpose.msra.mxu1 %v13914_v25 }
 0x552   : > { %9966 = vmatprep.subr.bf16.mxu1 %v13922_v18 }
 0x557   : > { %9927 = vmatpush1.bf16.xpose.msra.mxu0 %v13917_v19  ;;  %v16071_v19 = vrot.slane %v262_v21, %v15052_v16 }
 0x558   : > { %9928 = vmatprep.subr.bf16.mxu0 %v12787_v30 }
 0x559   : > { %v9630_v35 = vpop.f32.mrb[72].mxu0  ;;  %9967 = vmatpush1.bf16.xpose.msra.mxu1 %v13920_v29  ;;  %v13970_v29 = vld [vmem:[%s15028_s27 + $0x184] ss:$676 sps:$4 sm:$0xff]  }
 0x55a   : > { %v9631_v40 = vadd.f32 %v9630_v35, %v15985_v52  ;;  %v9632_v22 = vpop.f32.mrb[73].mxu0  ;;  %9968 = vmatprep.subr.bf16.mxu1 %v12789_v33  ;;  %v13927_v52 = vld [vmem:[%s15028_s27 + $0x170] ss:$676 sps:$4 sm:$0xff]  }
 0x55b   : > { %v9633_v37 = vpop.f32.mrb[74].mxu0  ;;  %v9670_v31 = vpop.f32.mrb[72].mxu1 }
 0x55c   : > { %v16029_v39 = vadd.f32 %v9670_v31, %v9631_v40  ;;  %v9634_v42 = vpop.f32.mrb[75].mxu0  ;;  %v9672_v46 = vpop.f32.mrb[73].mxu1  ;;  %v13974_v40 = vld [vmem:[%s15028_s27 + $0x18c] ss:$676 sps:$4 sm:$0xff]   ;;  %v747_v37 = vcombine.high %v16071_v19, %v16071_v19  ;;  %v748_v31 = vcombine.high %v16077_v36, %v16077_v36 }
 0x55d   : > { %v9673_v48 = vpop.f32.mrb[74].mxu1  ;;  %v13977_v46 = vld [vmem:[%s15028_s27 + $0x6cc] ss:$676 sps:$4 sm:$0xff]  }
 0x55e   : > { %v9674_v41 = vpop.f32.mrb[75].mxu1  ;;  %v1311_v42 = vpack.c.bf16 %v747_v37, %v747_v37  ;;  %v1313_v48 = vpack.c.bf16 %v748_v31, %v748_v31  ;;  %v14027_v37 = vld [vmem:[%s15028_s27 + $0xc2c] ss:$676 sps:$4 sm:$0xff]   ;;  %v14022_v31 = vld [vmem:[%s15028_s27 + $0xc20] ss:$676 sps:$4 sm:$0xff]  }
 0x55f   : > { %9929 = vmatpush1.bf16.xpose.msra.mxu0 %v12786_v38  ;;  %v1306_v38 = vpack.c.bf16 %v16027_v32, %v16027_v32  ;;  %v13975_v32 = vld [vmem:[%s15028_s27 + $0x6c8] ss:$676 sps:$4 sm:$0xff]   ;;  %v13978_v41 = vld [vmem:[%s15028_s27 + $0x6d0] ss:$676 sps:$4 sm:$0xff]  }
 0x560   : > { %9996 = vmatprep.subr.bf16.mxu0 %v13929_v44  ;;  %v1308_v44 = vpack.c.bf16 %v16033_v49, %v16033_v49  ;;  %v13983_v49 = vld [vmem:[%s15028_s27 + $0xc14] ss:$676 sps:$4 sm:$0xff]  }
 0x561   : > { %9969 = vmatpush1.bf16.xpose.msra.mxu1 %v12788_v47  ;;  %v13972_v47 = vld [vmem:[%s15028_s27 + $0x188] ss:$676 sps:$4 sm:$0xff]  }
 0x562   : > { %10036 = vmatprep.subr.bf16.mxu1 %v13933_v53  ;;  %v13980_v53 = vld [vmem:[%s15028_s27 + $0x6d4] ss:$676 sps:$4 sm:$0xff]  }
 0x566   : > { %9949 = vmatmul.mubr.bf16.vlgmr.msra.gmra.mrb[88].mxu0 %v1302_v51  ;;  %v13989_v51 = vld [vmem:[%s15028_s27 + $0x115c] ss:$676 sps:$4 sm:$0xff]  }
 0x567   : > { %9997 = vmatpush1.bf16.xpose.msra.mxu0 %v13927_v52  ;;  %10028 = vmatprep.mubr.bf16.mxu0 %v1307_v55  ;;  %v13984_v52 = vld [vmem:[%s15028_s27 + $0xc18] ss:$676 sps:$4 sm:$0xff]   ;;  %v13992_v55 = vld [vmem:[%s15028_s27 + $0x1164] ss:$676 sps:$4 sm:$0xff]  }
 0x568   : > { %9989 = vmatmul.mubr.bf16.vlgmr.msra.gmra.mrb[88].mxu1 %v1304_v57  ;;  %9998 = vmatprep.subr.bf16.mxu0 %v13936_v58  ;;  %v13987_v57 = vld [vmem:[%s15028_s27 + $0x1158] ss:$676 sps:$4 sm:$0xff]   ;;  %v13995_v58 = vld [vmem:[%s15028_s27 + $0x16a4] ss:$676 sps:$4 sm:$0xff]  }
 0x569   : > { %10037 = vmatpush1.bf16.xpose.msra.mxu1 %v13931_v60  ;;  %10068 = vmatprep.mubr.bf16.mxu1 %v1309_v61  ;;  %v13990_v60 = vld [vmem:[%s15028_s27 + $0x1160] ss:$676 sps:$4 sm:$0xff]   ;;  %v13998_v61 = vld [vmem:[%s15028_s27 + $0x16ac] ss:$676 sps:$4 sm:$0xff]  }
 0x56a   : > { %10038 = vmatprep.subr.bf16.mxu1 %v13939_v1  ;;  %v13993_v1 = vld [vmem:[%s15028_s27 + $0x16a0] ss:$676 sps:$4 sm:$0xff]  }
 0x56f   : > { %9999 = vmatpush1.bf16.xpose.msra.mxu0 %v13934_v45  ;;  %v14001_v45 = vld [vmem:[%s15028_s27 + $0x1bec] ss:$676 sps:$4 sm:$0xff]  }
 0x570   : > { %10000 = vmatprep.subr.bf16.mxu0 %v13942_v62  ;;  %v13996_v62 = vld [vmem:[%s15028_s27 + $0x16a8] ss:$676 sps:$4 sm:$0xff]  }
 0x571   : > { %10039 = vmatpush1.bf16.xpose.msra.mxu1 %v13937_v54  ;;  %v14004_v54 = vld [vmem:[%s15028_s27 + $0x1bf4] ss:$676 sps:$4 sm:$0xff]  }
 0x572   : > { %10040 = vmatprep.subr.bf16.mxu1 %v13945_v63  ;;  %v2451_v63 = vld [vmem:[%s15028_s27 + $0x2130] sm:$0x33] }
 0x573   : > { %v12794_v12 = vcombine.low %v2451_v63, %v2451_v63 }
 0x577   : > { %10001 = vmatpush1.bf16.xpose.msra.mxu0 %v13940_v56  ;;  %v13999_v56 = vld [vmem:[%s15028_s27 + $0x1be8] ss:$676 sps:$4 sm:$0xff]  }
 0x578   : > { %10002 = vmatprep.subr.bf16.mxu0 %v13948_v0  ;;  %v2452_v0 = vld [vmem:[%s15028_s27 + $0x2138] sm:$0x33] }
 0x579   : > { %10041 = vmatpush1.bf16.xpose.msra.mxu1 %v13943_v2  ;;  %v12795_v2 = vcombine.high %v2451_v63, %v2451_v63  ;;  %v12796_v21 = vcombine.low %v2452_v0, %v2452_v0 }
 0x57a   : > { %10042 = vmatprep.subr.bf16.mxu1 %v13951_v4  ;;  %v14002_v4 = vld [vmem:[%s15028_s27 + $0x1bf0] ss:$676 sps:$4 sm:$0xff]  }
 0x57f   : > { %10003 = vmatpush1.bf16.xpose.msra.mxu0 %v13946_v6  ;;  %v12797_v6 = vcombine.high %v2452_v0, %v2452_v0 }
 0x580   : > { %10004 = vmatprep.subr.bf16.mxu0 %v13954_v7  ;;  %v263_v7 = vld [vmem:[%s15022_s6 + $0xc8] sm:$0xff] }
 0x581   : > { %10043 = vmatpush1.bf16.xpose.msra.mxu1 %v13949_v9 }
 0x582   : > { %10044 = vmatprep.subr.bf16.mxu1 %v13957_v10  ;;  %v749_v10 = vcombine.high %v263_v7, %v263_v7 }
 0x584   : > { %v16121_v24 = vrot.slane %v749_v10, %v15052_v16 }
 0x587   : > { %10005 = vmatpush1.bf16.xpose.msra.mxu0 %v13952_v14 }
 0x588   : > { %10006 = vmatprep.subr.bf16.mxu0 %v13960_v59 }
 0x589   : > { %10045 = vmatpush1.bf16.xpose.msra.mxu1 %v13955_v11 }
 0x58a   : > { %10046 = vmatprep.subr.bf16.mxu1 %v13963_v3 }
 0x58f   : > { %10007 = vmatpush1.bf16.xpose.msra.mxu0 %v13958_v5  ;;  %v16115_v5 = vrot.slane %v263_v7, %v15052_v16 }
 0x590   : > { %10008 = vmatprep.subr.bf16.mxu0 %v12791_v17 }
 0x591   : > { %v9710_v23 = vpop.f32.mrb[76].mxu0  ;;  %10047 = vmatpush1.bf16.xpose.msra.mxu1 %v13961_v15  ;;  %v14011_v15 = vld [vmem:[%s15028_s27 + $0x194] ss:$676 sps:$4 sm:$0xff]  }
 0x592   : > { %v9711_v28 = vadd.f32 %v9710_v23, %v16029_v39  ;;  %v9712_v8 = vpop.f32.mrb[77].mxu0  ;;  %10048 = vmatprep.subr.bf16.mxu1 %v12793_v20  ;;  %v13968_v39 = vld [vmem:[%s15028_s27 + $0x180] ss:$676 sps:$4 sm:$0xff]  }
 0x593   : > { %v9713_v25 = vpop.f32.mrb[78].mxu0  ;;  %v9750_v18 = vpop.f32.mrb[76].mxu1 }
 0x594   : > { %v16073_v27 = vadd.f32 %v9750_v18, %v9711_v28  ;;  %v9714_v30 = vpop.f32.mrb[79].mxu0  ;;  %v9752_v33 = vpop.f32.mrb[77].mxu1  ;;  %v14015_v28 = vld [vmem:[%s15028_s27 + $0x19c] ss:$676 sps:$4 sm:$0xff]   ;;  %v764_v25 = vcombine.high %v16115_v5, %v16115_v5  ;;  %v765_v18 = vcombine.high %v16121_v24, %v16121_v24 }
 0x595   : > { %v9753_v35 = vpop.f32.mrb[78].mxu1  ;;  %v14018_v33 = vld [vmem:[%s15028_s27 + $0x6dc] ss:$676 sps:$4 sm:$0xff]  }
 0x596   : > { %v9754_v22 = vpop.f32.mrb[79].mxu1  ;;  %v1315_v30 = vpack.c.bf16 %v764_v25, %v764_v25  ;;  %v1317_v35 = vpack.c.bf16 %v765_v18, %v765_v18  ;;  %v14068_v25 = vld [vmem:[%s15028_s27 + $0xc3c] ss:$676 sps:$4 sm:$0xff]   ;;  %v14063_v18 = vld [vmem:[%s15028_s27 + $0xc30] ss:$676 sps:$4 sm:$0xff]  }
 0x597   : > { %10009 = vmatpush1.bf16.xpose.msra.mxu0 %v12790_v26  ;;  %v1310_v26 = vpack.c.bf16 %v16071_v19, %v16071_v19  ;;  %v14016_v19 = vld [vmem:[%s15028_s27 + $0x6d8] ss:$676 sps:$4 sm:$0xff]   ;;  %v14019_v22 = vld [vmem:[%s15028_s27 + $0x6e0] ss:$676 sps:$4 sm:$0xff]  }
 0x598   : > { %10076 = vmatprep.subr.bf16.mxu0 %v13970_v29  ;;  %v1312_v29 = vpack.c.bf16 %v16077_v36, %v16077_v36  ;;  %v14024_v36 = vld [vmem:[%s15028_s27 + $0xc24] ss:$676 sps:$4 sm:$0xff]  }
 0x599   : > { %10049 = vmatpush1.bf16.xpose.msra.mxu1 %v12792_v34  ;;  %v14013_v34 = vld [vmem:[%s15028_s27 + $0x198] ss:$676 sps:$4 sm:$0xff]  }
 0x59a   : > { %10116 = vmatprep.subr.bf16.mxu1 %v13974_v40  ;;  %v14021_v40 = vld [vmem:[%s15028_s27 + $0x6e4] ss:$676 sps:$4 sm:$0xff]  }
 0x59e   : > { %10029 = vmatmul.mubr.bf16.vlgmr.msra.gmra.mrb[92].mxu0 %v1306_v38  ;;  %v14030_v38 = vld [vmem:[%s15028_s27 + $0x116c] ss:$676 sps:$4 sm:$0xff]  }
 0x59f   : > { %10077 = vmatpush1.bf16.xpose.msra.mxu0 %v13968_v39  ;;  %10108 = vmatprep.mubr.bf16.mxu0 %v1311_v42  ;;  %v14025_v39 = vld [vmem:[%s15028_s27 + $0xc28] ss:$676 sps:$4 sm:$0xff]   ;;  %v14033_v42 = vld [vmem:[%s15028_s27 + $0x1174] ss:$676 sps:$4 sm:$0xff]  }
 0x5a0   : > { %10069 = vmatmul.mubr.bf16.vlgmr.msra.gmra.mrb[92].mxu1 %v1308_v44  ;;  %10078 = vmatprep.subr.bf16.mxu0 %v13977_v46  ;;  %v14028_v44 = vld [vmem:[%s15028_s27 + $0x1168] ss:$676 sps:$4 sm:$0xff]   ;;  %v14036_v46 = vld [vmem:[%s15028_s27 + $0x16b4] ss:$676 sps:$4 sm:$0xff]  }
 0x5a1   : > { %10117 = vmatpush1.bf16.xpose.msra.mxu1 %v13972_v47  ;;  %10148 = vmatprep.mubr.bf16.mxu1 %v1313_v48  ;;  %v14031_v47 = vld [vmem:[%s15028_s27 + $0x1170] ss:$676 sps:$4 sm:$0xff]   ;;  %v14039_v48 = vld [vmem:[%s15028_s27 + $0x16bc] ss:$676 sps:$4 sm:$0xff]  }
 0x5a2   : > { %10118 = vmatprep.subr.bf16.mxu1 %v13980_v53  ;;  %v14034_v53 = vld [vmem:[%s15028_s27 + $0x16b0] ss:$676 sps:$4 sm:$0xff]  }
 0x5a7   : > { %10079 = vmatpush1.bf16.xpose.msra.mxu0 %v13975_v32  ;;  %v14042_v32 = vld [vmem:[%s15028_s27 + $0x1bfc] ss:$676 sps:$4 sm:$0xff]  }
 0x5a8   : > { %10080 = vmatprep.subr.bf16.mxu0 %v13983_v49  ;;  %v14037_v49 = vld [vmem:[%s15028_s27 + $0x16b8] ss:$676 sps:$4 sm:$0xff]  }
 0x5a9   : > { %10119 = vmatpush1.bf16.xpose.msra.mxu1 %v13978_v41  ;;  %v14045_v41 = vld [vmem:[%s15028_s27 + $0x1c04] ss:$676 sps:$4 sm:$0xff]  }
 0x5aa   : > { %10120 = vmatprep.subr.bf16.mxu1 %v13986_v50  ;;  %v2453_v50 = vld [vmem:[%s15028_s27 + $0x2140] sm:$0x33] }
 0x5ab   : > { %v12798_v63 = vcombine.low %v2453_v50, %v2453_v50 }
 0x5af   : > { %10081 = vmatpush1.bf16.xpose.msra.mxu0 %v13981_v43  ;;  %v14040_v43 = vld [vmem:[%s15028_s27 + $0x1bf8] ss:$676 sps:$4 sm:$0xff]  }
 0x5b0   : > { %10082 = vmatprep.subr.bf16.mxu0 %v13989_v51  ;;  %v2454_v51 = vld [vmem:[%s15028_s27 + $0x2148] sm:$0x33] }
 0x5b1   : > { %10121 = vmatpush1.bf16.xpose.msra.mxu1 %v13984_v52  ;;  %v12799_v52 = vcombine.high %v2453_v50, %v2453_v50  ;;  %v12800_v7 = vcombine.low %v2454_v51, %v2454_v51 }
 0x5b2   : > { %10122 = vmatprep.subr.bf16.mxu1 %v13992_v55  ;;  %v14043_v55 = vld [vmem:[%s15028_s27 + $0x1c00] ss:$676 sps:$4 sm:$0xff]  }
 0x5b7   : > { %10083 = vmatpush1.bf16.xpose.msra.mxu0 %v13987_v57  ;;  %v12801_v57 = vcombine.high %v2454_v51, %v2454_v51 }
 0x5b8   : > { %10084 = vmatprep.subr.bf16.mxu0 %v13995_v58  ;;  %v264_v58 = vld [vmem:[%s15022_s6 + $0xd0] sm:$0xff] }
 0x5b9   : > { %10123 = vmatpush1.bf16.xpose.msra.mxu1 %v13990_v60 }
 0x5ba   : > { %10124 = vmatprep.subr.bf16.mxu1 %v13998_v61  ;;  %v766_v61 = vcombine.high %v264_v58, %v264_v58 }
 0x5bc   : > { %v16165_v10 = vrot.slane %v766_v61, %v15052_v16 }
 0x5bf   : > { %10085 = vmatpush1.bf16.xpose.msra.mxu0 %v13993_v1 }
 0x5c0   : > { %10086 = vmatprep.subr.bf16.mxu0 %v14001_v45 }
 0x5c1   : > { %10125 = vmatpush1.bf16.xpose.msra.mxu1 %v13996_v62 }
 0x5c2   : > { %10126 = vmatprep.subr.bf16.mxu1 %v14004_v54 }
 0x5c7   : > { %10087 = vmatpush1.bf16.xpose.msra.mxu0 %v13999_v56  ;;  %v16159_v56 = vrot.slane %v264_v58, %v15052_v16 }
 0x5c8   : > { %10088 = vmatprep.subr.bf16.mxu0 %v12795_v2 }
 0x5c9   : > { %v9790_v9 = vpop.f32.mrb[80].mxu0  ;;  %10127 = vmatpush1.bf16.xpose.msra.mxu1 %v14002_v4  ;;  %v14052_v4 = vld [vmem:[%s15028_s27 + $0x1a4] ss:$676 sps:$4 sm:$0xff]  }
 0x5ca   : > { %v9791_v14 = vadd.f32 %v9790_v9, %v16073_v27  ;;  %v9792_v59 = vpop.f32.mrb[81].mxu0  ;;  %10128 = vmatprep.subr.bf16.mxu1 %v12797_v6  ;;  %v14009_v27 = vld [vmem:[%s15028_s27 + $0x190] ss:$676 sps:$4 sm:$0xff]  }
 0x5cb   : > { %v9793_v11 = vpop.f32.mrb[82].mxu0  ;;  %v9830_v3 = vpop.f32.mrb[80].mxu1 }
 0x5cc   : > { %v16117_v13 = vadd.f32 %v9830_v3, %v9791_v14  ;;  %v9794_v17 = vpop.f32.mrb[83].mxu0  ;;  %v9832_v20 = vpop.f32.mrb[81].mxu1  ;;  %v14056_v14 = vld [vmem:[%s15028_s27 + $0x1ac] ss:$676 sps:$4 sm:$0xff]   ;;  %v781_v11 = vcombine.high %v16159_v56, %v16159_v56  ;;  %v782_v3 = vcombine.high %v16165_v10, %v16165_v10 }
 0x5cd   : > { %v9833_v23 = vpop.f32.mrb[82].mxu1  ;;  %v14059_v20 = vld [vmem:[%s15028_s27 + $0x6ec] ss:$676 sps:$4 sm:$0xff]  }
 0x5ce   : > { %v9834_v8 = vpop.f32.mrb[83].mxu1  ;;  %v1319_v17 = vpack.c.bf16 %v781_v11, %v781_v11  ;;  %v1321_v23 = vpack.c.bf16 %v782_v3, %v782_v3  ;;  %v14109_v11 = vld [vmem:[%s15028_s27 + $0xc4c] ss:$676 sps:$4 sm:$0xff]   ;;  %v14104_v3 = vld [vmem:[%s15028_s27 + $0xc40] ss:$676 sps:$4 sm:$0xff]  }
 0x5cf   : > { %10089 = vmatpush1.bf16.xpose.msra.mxu0 %v12794_v12  ;;  %v1314_v12 = vpack.c.bf16 %v16115_v5, %v16115_v5  ;;  %v14057_v5 = vld [vmem:[%s15028_s27 + $0x6e8] ss:$676 sps:$4 sm:$0xff]   ;;  %v14060_v8 = vld [vmem:[%s15028_s27 + $0x6f0] ss:$676 sps:$4 sm:$0xff]  }
 0x5d0   : > { %10156 = vmatprep.subr.bf16.mxu0 %v14011_v15  ;;  %v1316_v15 = vpack.c.bf16 %v16121_v24, %v16121_v24  ;;  %v14065_v24 = vld [vmem:[%s15028_s27 + $0xc34] ss:$676 sps:$4 sm:$0xff]  }
 0x5d1   : > { %10129 = vmatpush1.bf16.xpose.msra.mxu1 %v12796_v21  ;;  %v14054_v21 = vld [vmem:[%s15028_s27 + $0x1a8] ss:$676 sps:$4 sm:$0xff]  }
 0x5d2   : > { %10196 = vmatprep.subr.bf16.mxu1 %v14015_v28  ;;  %v14062_v28 = vld [vmem:[%s15028_s27 + $0x6f4] ss:$676 sps:$4 sm:$0xff]  }
 0x5d6   : > { %10109 = vmatmul.mubr.bf16.vlgmr.msra.gmra.mrb[96].mxu0 %v1310_v26  ;;  %v14071_v26 = vld [vmem:[%s15028_s27 + $0x117c] ss:$676 sps:$4 sm:$0xff]  }
 0x5d7   : > { %10157 = vmatpush1.bf16.xpose.msra.mxu0 %v14009_v27  ;;  %10188 = vmatprep.mubr.bf16.mxu0 %v1315_v30  ;;  %v14066_v27 = vld [vmem:[%s15028_s27 + $0xc38] ss:$676 sps:$4 sm:$0xff]   ;;  %v14074_v30 = vld [vmem:[%s15028_s27 + $0x1184] ss:$676 sps:$4 sm:$0xff]  }
 0x5d8   : > { %10149 = vmatmul.mubr.bf16.vlgmr.msra.gmra.mrb[96].mxu1 %v1312_v29  ;;  %10158 = vmatprep.subr.bf16.mxu0 %v14018_v33  ;;  %v14069_v29 = vld [vmem:[%s15028_s27 + $0x1178] ss:$676 sps:$4 sm:$0xff]   ;;  %v14077_v33 = vld [vmem:[%s15028_s27 + $0x16c4] ss:$676 sps:$4 sm:$0xff]  }
 0x5d9   : > { %10197 = vmatpush1.bf16.xpose.msra.mxu1 %v14013_v34  ;;  %10228 = vmatprep.mubr.bf16.mxu1 %v1317_v35  ;;  %v14072_v34 = vld [vmem:[%s15028_s27 + $0x1180] ss:$676 sps:$4 sm:$0xff]   ;;  %v14080_v35 = vld [vmem:[%s15028_s27 + $0x16cc] ss:$676 sps:$4 sm:$0xff]  }
 0x5da   : > { %10198 = vmatprep.subr.bf16.mxu1 %v14021_v40  ;;  %v14075_v40 = vld [vmem:[%s15028_s27 + $0x16c0] ss:$676 sps:$4 sm:$0xff]  }
 0x5df   : > { %10159 = vmatpush1.bf16.xpose.msra.mxu0 %v14016_v19  ;;  %v14083_v19 = vld [vmem:[%s15028_s27 + $0x1c0c] ss:$676 sps:$4 sm:$0xff]  }
 0x5e0   : > { %10160 = vmatprep.subr.bf16.mxu0 %v14024_v36  ;;  %v14078_v36 = vld [vmem:[%s15028_s27 + $0x16c8] ss:$676 sps:$4 sm:$0xff]  }
 0x5e1   : > { %10199 = vmatpush1.bf16.xpose.msra.mxu1 %v14019_v22  ;;  %v14086_v22 = vld [vmem:[%s15028_s27 + $0x1c14] ss:$676 sps:$4 sm:$0xff]  }
 0x5e2   : > { %10200 = vmatprep.subr.bf16.mxu1 %v14027_v37  ;;  %v2455_v37 = vld [vmem:[%s15028_s27 + $0x2150] sm:$0x33] }
 0x5e3   : > { %v12802_v50 = vcombine.low %v2455_v37, %v2455_v37 }
 0x5e7   : > { %10161 = vmatpush1.bf16.xpose.msra.mxu0 %v14022_v31  ;;  %v14081_v31 = vld [vmem:[%s15028_s27 + $0x1c08] ss:$676 sps:$4 sm:$0xff]  }
 0x5e8   : > { %10162 = vmatprep.subr.bf16.mxu0 %v14030_v38  ;;  %v2456_v38 = vld [vmem:[%s15028_s27 + $0x2158] sm:$0x33] }
 0x5e9   : > { %10201 = vmatpush1.bf16.xpose.msra.mxu1 %v14025_v39  ;;  %v12803_v39 = vcombine.high %v2455_v37, %v2455_v37  ;;  %v12804_v58 = vcombine.low %v2456_v38, %v2456_v38 }
 0x5ea   : > { %10202 = vmatprep.subr.bf16.mxu1 %v14033_v42  ;;  %v14084_v42 = vld [vmem:[%s15028_s27 + $0x1c10] ss:$676 sps:$4 sm:$0xff]  }
 0x5ef   : > { %10163 = vmatpush1.bf16.xpose.msra.mxu0 %v14028_v44  ;;  %v12805_v44 = vcombine.high %v2456_v38, %v2456_v38 }
 0x5f0   : > { %10164 = vmatprep.subr.bf16.mxu0 %v14036_v46  ;;  %v265_v46 = vld [vmem:[%s15022_s6 + $0xd8] sm:$0xff] }
 0x5f1   : > { %10203 = vmatpush1.bf16.xpose.msra.mxu1 %v14031_v47 }
 0x5f2   : > { %10204 = vmatprep.subr.bf16.mxu1 %v14039_v48  ;;  %v783_v48 = vcombine.high %v265_v46, %v265_v46 }
 0x5f4   : > { %v16209_v61 = vrot.slane %v783_v48, %v15052_v16 }
 0x5f7   : > { %10165 = vmatpush1.bf16.xpose.msra.mxu0 %v14034_v53 }
 0x5f8   : > { %10166 = vmatprep.subr.bf16.mxu0 %v14042_v32 }
 0x5f9   : > { %10205 = vmatpush1.bf16.xpose.msra.mxu1 %v14037_v49 }
 0x5fa   : > { %10206 = vmatprep.subr.bf16.mxu1 %v14045_v41 }
 0x5ff   : > { %10167 = vmatpush1.bf16.xpose.msra.mxu0 %v14040_v43  ;;  %v16203_v43 = vrot.slane %v265_v46, %v15052_v16 }
 0x600   : > { %10168 = vmatprep.subr.bf16.mxu0 %v12799_v52 }
 0x601   : > { %v9870_v60 = vpop.f32.mrb[84].mxu0  ;;  %10207 = vmatpush1.bf16.xpose.msra.mxu1 %v14043_v55  ;;  %v14093_v55 = vld [vmem:[%s15028_s27 + $0x1b4] ss:$676 sps:$4 sm:$0xff]  }
 0x602   : > { %v9871_v1 = vadd.f32 %v9870_v60, %v16117_v13  ;;  %v9872_v45 = vpop.f32.mrb[85].mxu0  ;;  %10208 = vmatprep.subr.bf16.mxu1 %v12801_v57  ;;  %v14050_v13 = vld [vmem:[%s15028_s27 + $0x1a0] ss:$676 sps:$4 sm:$0xff]  }
 0x603   : > { %v9873_v62 = vpop.f32.mrb[86].mxu0  ;;  %v9910_v54 = vpop.f32.mrb[84].mxu1 }
 0x604   : > { %v16161_v0 = vadd.f32 %v9910_v54, %v9871_v1  ;;  %v9874_v2 = vpop.f32.mrb[87].mxu0  ;;  %v9912_v6 = vpop.f32.mrb[85].mxu1  ;;  %v14097_v1 = vld [vmem:[%s15028_s27 + $0x1bc] ss:$676 sps:$4 sm:$0xff]   ;;  %v798_v62 = vcombine.high %v16203_v43, %v16203_v43  ;;  %v799_v54 = vcombine.high %v16209_v61, %v16209_v61 }
 0x605   : > { %v9913_v9 = vpop.f32.mrb[86].mxu1  ;;  %v14100_v6 = vld [vmem:[%s15028_s27 + $0x6fc] ss:$676 sps:$4 sm:$0xff]  }
 0x606   : > { %v9914_v59 = vpop.f32.mrb[87].mxu1  ;;  %v1323_v2 = vpack.c.bf16 %v798_v62, %v798_v62  ;;  %v1325_v9 = vpack.c.bf16 %v799_v54, %v799_v54  ;;  %v14150_v62 = vld [vmem:[%s15028_s27 + $0xc5c] ss:$676 sps:$4 sm:$0xff]   ;;  %v14145_v54 = vld [vmem:[%s15028_s27 + $0xc50] ss:$676 sps:$4 sm:$0xff]  }
 0x607   : > { %10169 = vmatpush1.bf16.xpose.msra.mxu0 %v12798_v63  ;;  %v1318_v63 = vpack.c.bf16 %v16159_v56, %v16159_v56  ;;  %v14098_v56 = vld [vmem:[%s15028_s27 + $0x6f8] ss:$676 sps:$4 sm:$0xff]   ;;  %v14101_v59 = vld [vmem:[%s15028_s27 + $0x700] ss:$676 sps:$4 sm:$0xff]  }
 0x608   : > { %10236 = vmatprep.subr.bf16.mxu0 %v14052_v4  ;;  %v1320_v4 = vpack.c.bf16 %v16165_v10, %v16165_v10  ;;  %v14106_v10 = vld [vmem:[%s15028_s27 + $0xc44] ss:$676 sps:$4 sm:$0xff]  }
 0x609   : > { %10209 = vmatpush1.bf16.xpose.msra.mxu1 %v12800_v7  ;;  %v14095_v7 = vld [vmem:[%s15028_s27 + $0x1b8] ss:$676 sps:$4 sm:$0xff]  }
 0x60a   : > { %10276 = vmatprep.subr.bf16.mxu1 %v14056_v14  ;;  %v14103_v14 = vld [vmem:[%s15028_s27 + $0x704] ss:$676 sps:$4 sm:$0xff]  }
 0x60e   : > { %10189 = vmatmul.mubr.bf16.vlgmr.msra.gmra.mrb[100].mxu0 %v1314_v12  ;;  %v14112_v12 = vld [vmem:[%s15028_s27 + $0x118c] ss:$676 sps:$4 sm:$0xff]  }
 0x60f   : > { %10237 = vmatpush1.bf16.xpose.msra.mxu0 %v14050_v13  ;;  %10268 = vmatprep.mubr.bf16.mxu0 %v1319_v17  ;;  %v14107_v13 = vld [vmem:[%s15028_s27 + $0xc48] ss:$676 sps:$4 sm:$0xff]   ;;  %v14115_v17 = vld [vmem:[%s15028_s27 + $0x1194] ss:$676 sps:$4 sm:$0xff]  }
 0x610   : > { %10229 = vmatmul.mubr.bf16.vlgmr.msra.gmra.mrb[100].mxu1 %v1316_v15  ;;  %10238 = vmatprep.subr.bf16.mxu0 %v14059_v20  ;;  %v14110_v15 = vld [vmem:[%s15028_s27 + $0x1188] ss:$676 sps:$4 sm:$0xff]   ;;  %v14118_v20 = vld [vmem:[%s15028_s27 + $0x16d4] ss:$676 sps:$4 sm:$0xff]  }
 0x611   : > { %10277 = vmatpush1.bf16.xpose.msra.mxu1 %v14054_v21  ;;  %10308 = vmatprep.mubr.bf16.mxu1 %v1321_v23  ;;  %v14113_v21 = vld [vmem:[%s15028_s27 + $0x1190] ss:$676 sps:$4 sm:$0xff]   ;;  %v14121_v23 = vld [vmem:[%s15028_s27 + $0x16dc] ss:$676 sps:$4 sm:$0xff]  }
 0x612   : > { %10278 = vmatprep.subr.bf16.mxu1 %v14062_v28  ;;  %v14116_v28 = vld [vmem:[%s15028_s27 + $0x16d0] ss:$676 sps:$4 sm:$0xff]  }
 0x617   : > { %10239 = vmatpush1.bf16.xpose.msra.mxu0 %v14057_v5  ;;  %v14124_v5 = vld [vmem:[%s15028_s27 + $0x1c1c] ss:$676 sps:$4 sm:$0xff]  }
 0x618   : > { %10240 = vmatprep.subr.bf16.mxu0 %v14065_v24  ;;  %v14119_v24 = vld [vmem:[%s15028_s27 + $0x16d8] ss:$676 sps:$4 sm:$0xff]  }
 0x619   : > { %10279 = vmatpush1.bf16.xpose.msra.mxu1 %v14060_v8  ;;  %v14127_v8 = vld [vmem:[%s15028_s27 + $0x1c24] ss:$676 sps:$4 sm:$0xff]  }
 0x61a   : > { %10280 = vmatprep.subr.bf16.mxu1 %v14068_v25  ;;  %v2457_v25 = vld [vmem:[%s15028_s27 + $0x2160] sm:$0x33] }
 0x61b   : > { %v12806_v37 = vcombine.low %v2457_v25, %v2457_v25 }
 0x61f   : > { %10241 = vmatpush1.bf16.xpose.msra.mxu0 %v14063_v18  ;;  %v14122_v18 = vld [vmem:[%s15028_s27 + $0x1c18] ss:$676 sps:$4 sm:$0xff]  }
 0x620   : > { %10242 = vmatprep.subr.bf16.mxu0 %v14071_v26  ;;  %v2458_v26 = vld [vmem:[%s15028_s27 + $0x2168] sm:$0x33] }
 0x621   : > { %10281 = vmatpush1.bf16.xpose.msra.mxu1 %v14066_v27  ;;  %v12807_v27 = vcombine.high %v2457_v25, %v2457_v25  ;;  %v12808_v46 = vcombine.low %v2458_v26, %v2458_v26 }
 0x622   : > { %10282 = vmatprep.subr.bf16.mxu1 %v14074_v30  ;;  %v14125_v30 = vld [vmem:[%s15028_s27 + $0x1c20] ss:$676 sps:$4 sm:$0xff]  }
 0x627   : > { %10243 = vmatpush1.bf16.xpose.msra.mxu0 %v14069_v29  ;;  %v12809_v29 = vcombine.high %v2458_v26, %v2458_v26 }
 0x628   : > { %10244 = vmatprep.subr.bf16.mxu0 %v14077_v33  ;;  %v266_v33 = vld [vmem:[%s15022_s6 + $0xe0] sm:$0xff] }
 0x629   : > { %10283 = vmatpush1.bf16.xpose.msra.mxu1 %v14072_v34 }
 0x62a   : > { %10284 = vmatprep.subr.bf16.mxu1 %v14080_v35  ;;  %v800_v35 = vcombine.high %v266_v33, %v266_v33 }
 0x62c   : > { %v16253_v48 = vrot.slane %v800_v35, %v15052_v16 }
 0x62f   : > { %10245 = vmatpush1.bf16.xpose.msra.mxu0 %v14075_v40 }
 0x630   : > { %10246 = vmatprep.subr.bf16.mxu0 %v14083_v19 }
 0x631   : > { %10285 = vmatpush1.bf16.xpose.msra.mxu1 %v14078_v36 }
 0x632   : > { %10286 = vmatprep.subr.bf16.mxu1 %v14086_v22 }
 0x637   : > { %10247 = vmatpush1.bf16.xpose.msra.mxu0 %v14081_v31  ;;  %v16247_v31 = vrot.slane %v266_v33, %v15052_v16 }
 0x638   : > { %10248 = vmatprep.subr.bf16.mxu0 %v12803_v39 }
 0x639   : > { %v9950_v47 = vpop.f32.mrb[88].mxu0  ;;  %10287 = vmatpush1.bf16.xpose.msra.mxu1 %v14084_v42  ;;  %v14134_v42 = vld [vmem:[%s15028_s27 + $0x1c4] ss:$676 sps:$4 sm:$0xff]  }
 0x63a   : > { %v9951_v53 = vadd.f32 %v9950_v47, %v16161_v0  ;;  %v9952_v32 = vpop.f32.mrb[89].mxu0  ;;  %10288 = vmatprep.subr.bf16.mxu1 %v12805_v44  ;;  %v14091_v0 = vld [vmem:[%s15028_s27 + $0x1b0] ss:$676 sps:$4 sm:$0xff]  }
 0x63b   : > { %v9953_v49 = vpop.f32.mrb[90].mxu0  ;;  %v9990_v41 = vpop.f32.mrb[88].mxu1 }
 0x63c   : > { %v16205_v51 = vadd.f32 %v9990_v41, %v9951_v53  ;;  %v9954_v52 = vpop.f32.mrb[91].mxu0  ;;  %v9992_v57 = vpop.f32.mrb[89].mxu1  ;;  %v14138_v53 = vld [vmem:[%s15028_s27 + $0x1cc] ss:$676 sps:$4 sm:$0xff]   ;;  %v815_v49 = vcombine.high %v16247_v31, %v16247_v31  ;;  %v816_v41 = vcombine.high %v16253_v48, %v16253_v48 }
 0x63d   : > { %v9993_v60 = vpop.f32.mrb[90].mxu1  ;;  %v14141_v57 = vld [vmem:[%s15028_s27 + $0x70c] ss:$676 sps:$4 sm:$0xff]  }
 0x63e   : > { %v9994_v45 = vpop.f32.mrb[91].mxu1  ;;  %v1327_v52 = vpack.c.bf16 %v815_v49, %v815_v49  ;;  %v1329_v60 = vpack.c.bf16 %v816_v41, %v816_v41  ;;  %v14191_v49 = vld [vmem:[%s15028_s27 + $0xc6c] ss:$676 sps:$4 sm:$0xff]   ;;  %v14186_v41 = vld [vmem:[%s15028_s27 + $0xc60] ss:$676 sps:$4 sm:$0xff]  }
 0x63f   : > { %10249 = vmatpush1.bf16.xpose.msra.mxu0 %v12802_v50  ;;  %v1322_v50 = vpack.c.bf16 %v16203_v43, %v16203_v43  ;;  %v14139_v43 = vld [vmem:[%s15028_s27 + $0x708] ss:$676 sps:$4 sm:$0xff]   ;;  %v14142_v45 = vld [vmem:[%s15028_s27 + $0x710] ss:$676 sps:$4 sm:$0xff]  }
 0x640   : > { %10316 = vmatprep.subr.bf16.mxu0 %v14093_v55  ;;  %v1324_v55 = vpack.c.bf16 %v16209_v61, %v16209_v61  ;;  %v14147_v61 = vld [vmem:[%s15028_s27 + $0xc54] ss:$676 sps:$4 sm:$0xff]  }
 0x641   : > { %10289 = vmatpush1.bf16.xpose.msra.mxu1 %v12804_v58  ;;  %v14136_v58 = vld [vmem:[%s15028_s27 + $0x1c8] ss:$676 sps:$4 sm:$0xff]  }
 0x642   : > { %10356 = vmatprep.subr.bf16.mxu1 %v14097_v1  ;;  %v14144_v1 = vld [vmem:[%s15028_s27 + $0x714] ss:$676 sps:$4 sm:$0xff]  }
 0x646   : > { %10269 = vmatmul.mubr.bf16.vlgmr.msra.gmra.mrb[104].mxu0 %v1318_v63  ;;  %v14153_v63 = vld [vmem:[%s15028_s27 + $0x119c] ss:$676 sps:$4 sm:$0xff]  }
 0x647   : > { %10317 = vmatpush1.bf16.xpose.msra.mxu0 %v14091_v0  ;;  %10348 = vmatprep.mubr.bf16.mxu0 %v1323_v2  ;;  %v14148_v0 = vld [vmem:[%s15028_s27 + $0xc58] ss:$676 sps:$4 sm:$0xff]   ;;  %v14156_v2 = vld [vmem:[%s15028_s27 + $0x11a4] ss:$676 sps:$4 sm:$0xff]  }
 0x648   : > { %10309 = vmatmul.mubr.bf16.vlgmr.msra.gmra.mrb[104].mxu1 %v1320_v4  ;;  %10318 = vmatprep.subr.bf16.mxu0 %v14100_v6  ;;  %v14151_v4 = vld [vmem:[%s15028_s27 + $0x1198] ss:$676 sps:$4 sm:$0xff]   ;;  %v14159_v6 = vld [vmem:[%s15028_s27 + $0x16e4] ss:$676 sps:$4 sm:$0xff]  }
 0x649   : > { %10357 = vmatpush1.bf16.xpose.msra.mxu1 %v14095_v7  ;;  %10388 = vmatprep.mubr.bf16.mxu1 %v1325_v9  ;;  %v14154_v7 = vld [vmem:[%s15028_s27 + $0x11a0] ss:$676 sps:$4 sm:$0xff]   ;;  %v14162_v9 = vld [vmem:[%s15028_s27 + $0x16ec] ss:$676 sps:$4 sm:$0xff]  }
 0x64a   : > { %10358 = vmatprep.subr.bf16.mxu1 %v14103_v14  ;;  %v14157_v14 = vld [vmem:[%s15028_s27 + $0x16e0] ss:$676 sps:$4 sm:$0xff]  }
 0x64f   : > { %10319 = vmatpush1.bf16.xpose.msra.mxu0 %v14098_v56  ;;  %v14165_v56 = vld [vmem:[%s15028_s27 + $0x1c2c] ss:$676 sps:$4 sm:$0xff]  }
 0x650   : > { %10320 = vmatprep.subr.bf16.mxu0 %v14106_v10  ;;  %v14160_v10 = vld [vmem:[%s15028_s27 + $0x16e8] ss:$676 sps:$4 sm:$0xff]  }
 0x651   : > { %10359 = vmatpush1.bf16.xpose.msra.mxu1 %v14101_v59  ;;  %v14168_v59 = vld [vmem:[%s15028_s27 + $0x1c34] ss:$676 sps:$4 sm:$0xff]  }
 0x652   : > { %10360 = vmatprep.subr.bf16.mxu1 %v14109_v11  ;;  %v2459_v11 = vld [vmem:[%s15028_s27 + $0x2170] sm:$0x33] }
 0x653   : > { %v12810_v25 = vcombine.low %v2459_v11, %v2459_v11 }
 0x657   : > { %10321 = vmatpush1.bf16.xpose.msra.mxu0 %v14104_v3  ;;  %v14163_v3 = vld [vmem:[%s15028_s27 + $0x1c28] ss:$676 sps:$4 sm:$0xff]  }
 0x658   : > { %10322 = vmatprep.subr.bf16.mxu0 %v14112_v12  ;;  %v2460_v12 = vld [vmem:[%s15028_s27 + $0x2178] sm:$0x33] }
 0x659   : > { %10361 = vmatpush1.bf16.xpose.msra.mxu1 %v14107_v13  ;;  %v12811_v13 = vcombine.high %v2459_v11, %v2459_v11  ;;  %v12812_v33 = vcombine.low %v2460_v12, %v2460_v12 }
 0x65a   : > { %10362 = vmatprep.subr.bf16.mxu1 %v14115_v17  ;;  %v14166_v17 = vld [vmem:[%s15028_s27 + $0x1c30] ss:$676 sps:$4 sm:$0xff]  }
 0x65f   : > { %10323 = vmatpush1.bf16.xpose.msra.mxu0 %v14110_v15  ;;  %v12813_v15 = vcombine.high %v2460_v12, %v2460_v12 }
 0x660   : > { %10324 = vmatprep.subr.bf16.mxu0 %v14118_v20  ;;  %v267_v20 = vld [vmem:[%s15022_s6 + $0xe8] sm:$0xff] }
 0x661   : > { %10363 = vmatpush1.bf16.xpose.msra.mxu1 %v14113_v21 }
 0x662   : > { %10364 = vmatprep.subr.bf16.mxu1 %v14121_v23  ;;  %v817_v23 = vcombine.high %v267_v20, %v267_v20 }
 0x664   : > { %v16297_v35 = vrot.slane %v817_v23, %v15052_v16 }
 0x667   : > { %10325 = vmatpush1.bf16.xpose.msra.mxu0 %v14116_v28 }
 0x668   : > { %10326 = vmatprep.subr.bf16.mxu0 %v14124_v5 }
 0x669   : > { %10365 = vmatpush1.bf16.xpose.msra.mxu1 %v14119_v24 }
 0x66a   : > { %10366 = vmatprep.subr.bf16.mxu1 %v14127_v8 }
 0x66f   : > { %10327 = vmatpush1.bf16.xpose.msra.mxu0 %v14122_v18  ;;  %v16291_v18 = vrot.slane %v267_v20, %v15052_v16 }
 0x670   : > { %10328 = vmatprep.subr.bf16.mxu0 %v12807_v27 }
 0x671   : > { %v10030_v34 = vpop.f32.mrb[92].mxu0  ;;  %10367 = vmatpush1.bf16.xpose.msra.mxu1 %v14125_v30  ;;  %v14175_v30 = vld [vmem:[%s15028_s27 + $0x1d4] ss:$676 sps:$4 sm:$0xff]  }
 0x672   : > { %v10031_v40 = vadd.f32 %v10030_v34, %v16205_v51  ;;  %v10032_v19 = vpop.f32.mrb[93].mxu0  ;;  %10368 = vmatprep.subr.bf16.mxu1 %v12809_v29  ;;  %v14132_v51 = vld [vmem:[%s15028_s27 + $0x1c0] ss:$676 sps:$4 sm:$0xff]  }
 0x673   : > { %v10033_v36 = vpop.f32.mrb[94].mxu0  ;;  %v10070_v22 = vpop.f32.mrb[92].mxu1 }
 0x674   : > { %v16249_v38 = vadd.f32 %v10070_v22, %v10031_v40  ;;  %v10034_v39 = vpop.f32.mrb[95].mxu0  ;;  %v10072_v44 = vpop.f32.mrb[93].mxu1  ;;  %v14179_v40 = vld [vmem:[%s15028_s27 + $0x1dc] ss:$676 sps:$4 sm:$0xff]   ;;  %v832_v36 = vcombine.high %v16291_v18, %v16291_v18  ;;  %v833_v22 = vcombine.high %v16297_v35, %v16297_v35 }
 0x675   : > { %v10073_v47 = vpop.f32.mrb[94].mxu1  ;;  %v14182_v44 = vld [vmem:[%s15028_s27 + $0x71c] ss:$676 sps:$4 sm:$0xff]  }
 0x676   : > { %v10074_v32 = vpop.f32.mrb[95].mxu1  ;;  %v1331_v39 = vpack.c.bf16 %v832_v36, %v832_v36  ;;  %v1333_v47 = vpack.c.bf16 %v833_v22, %v833_v22  ;;  %v14232_v36 = vld [vmem:[%s15028_s27 + $0xc7c] ss:$676 sps:$4 sm:$0xff]   ;;  %v14227_v22 = vld [vmem:[%s15028_s27 + $0xc70] ss:$676 sps:$4 sm:$0xff]  }
 0x677   : > { %10329 = vmatpush1.bf16.xpose.msra.mxu0 %v12806_v37  ;;  %v1326_v37 = vpack.c.bf16 %v16247_v31, %v16247_v31  ;;  %v14180_v31 = vld [vmem:[%s15028_s27 + $0x718] ss:$676 sps:$4 sm:$0xff]   ;;  %v14183_v32 = vld [vmem:[%s15028_s27 + $0x720] ss:$676 sps:$4 sm:$0xff]  }
 0x678   : > { %10396 = vmatprep.subr.bf16.mxu0 %v14134_v42  ;;  %v1328_v42 = vpack.c.bf16 %v16253_v48, %v16253_v48  ;;  %v14188_v48 = vld [vmem:[%s15028_s27 + $0xc64] ss:$676 sps:$4 sm:$0xff]  }
 0x679   : > { %10369 = vmatpush1.bf16.xpose.msra.mxu1 %v12808_v46  ;;  %v14177_v46 = vld [vmem:[%s15028_s27 + $0x1d8] ss:$676 sps:$4 sm:$0xff]  }
 0x67a   : > { %10436 = vmatprep.subr.bf16.mxu1 %v14138_v53  ;;  %v14185_v53 = vld [vmem:[%s15028_s27 + $0x724] ss:$676 sps:$4 sm:$0xff]  }
 0x67e   : > { %10349 = vmatmul.mubr.bf16.vlgmr.msra.gmra.mrb[108].mxu0 %v1322_v50  ;;  %v14194_v50 = vld [vmem:[%s15028_s27 + $0x11ac] ss:$676 sps:$4 sm:$0xff]  }
 0x67f   : > { %10397 = vmatpush1.bf16.xpose.msra.mxu0 %v14132_v51  ;;  %10428 = vmatprep.mubr.bf16.mxu0 %v1327_v52  ;;  %v14189_v51 = vld [vmem:[%s15028_s27 + $0xc68] ss:$676 sps:$4 sm:$0xff]   ;;  %v14197_v52 = vld [vmem:[%s15028_s27 + $0x11b4] ss:$676 sps:$4 sm:$0xff]  }
 0x680   : > { %10389 = vmatmul.mubr.bf16.vlgmr.msra.gmra.mrb[108].mxu1 %v1324_v55  ;;  %10398 = vmatprep.subr.bf16.mxu0 %v14141_v57  ;;  %v14192_v55 = vld [vmem:[%s15028_s27 + $0x11a8] ss:$676 sps:$4 sm:$0xff]   ;;  %v14200_v57 = vld [vmem:[%s15028_s27 + $0x16f4] ss:$676 sps:$4 sm:$0xff]  }
 0x681   : > { %10437 = vmatpush1.bf16.xpose.msra.mxu1 %v14136_v58  ;;  %10468 = vmatprep.mubr.bf16.mxu1 %v1329_v60  ;;  %v14195_v58 = vld [vmem:[%s15028_s27 + $0x11b0] ss:$676 sps:$4 sm:$0xff]   ;;  %v14203_v60 = vld [vmem:[%s15028_s27 + $0x16fc] ss:$676 sps:$4 sm:$0xff]  }
 0x682   : > { %10438 = vmatprep.subr.bf16.mxu1 %v14144_v1  ;;  %v14198_v1 = vld [vmem:[%s15028_s27 + $0x16f0] ss:$676 sps:$4 sm:$0xff]  }
 0x687   : > { %10399 = vmatpush1.bf16.xpose.msra.mxu0 %v14139_v43  ;;  %v14206_v43 = vld [vmem:[%s15028_s27 + $0x1c3c] ss:$676 sps:$4 sm:$0xff]  }
 0x688   : > { %10400 = vmatprep.subr.bf16.mxu0 %v14147_v61  ;;  %v14201_v61 = vld [vmem:[%s15028_s27 + $0x16f8] ss:$676 sps:$4 sm:$0xff]  }
 0x689   : > { %10439 = vmatpush1.bf16.xpose.msra.mxu1 %v14142_v45  ;;  %v14209_v45 = vld [vmem:[%s15028_s27 + $0x1c44] ss:$676 sps:$4 sm:$0xff]  }
 0x68a   : > { %10440 = vmatprep.subr.bf16.mxu1 %v14150_v62  ;;  %v2461_v62 = vld [vmem:[%s15028_s27 + $0x2180] sm:$0x33] }
 0x68b   : > { %v12814_v11 = vcombine.low %v2461_v62, %v2461_v62 }
 0x68f   : > { %10401 = vmatpush1.bf16.xpose.msra.mxu0 %v14145_v54  ;;  %v14204_v54 = vld [vmem:[%s15028_s27 + $0x1c38] ss:$676 sps:$4 sm:$0xff]  }
 0x690   : > { %10402 = vmatprep.subr.bf16.mxu0 %v14153_v63  ;;  %v2462_v63 = vld [vmem:[%s15028_s27 + $0x2188] sm:$0x33] }
 0x691   : > { %10441 = vmatpush1.bf16.xpose.msra.mxu1 %v14148_v0  ;;  %v12815_v0 = vcombine.high %v2461_v62, %v2461_v62  ;;  %v12816_v20 = vcombine.low %v2462_v63, %v2462_v63 }
 0x692   : > { %10442 = vmatprep.subr.bf16.mxu1 %v14156_v2  ;;  %v14207_v2 = vld [vmem:[%s15028_s27 + $0x1c40] ss:$676 sps:$4 sm:$0xff]  }
 0x697   : > { %10403 = vmatpush1.bf16.xpose.msra.mxu0 %v14151_v4  ;;  %v12817_v4 = vcombine.high %v2462_v63, %v2462_v63 }
 0x698   : > { %10404 = vmatprep.subr.bf16.mxu0 %v14159_v6  ;;  %v268_v6 = vld [vmem:[%s15022_s6 + $0xf0] sm:$0xff] }
 0x699   : > { %10443 = vmatpush1.bf16.xpose.msra.mxu1 %v14154_v7 }
 0x69a   : > { %10444 = vmatprep.subr.bf16.mxu1 %v14162_v9  ;;  %v834_v9 = vcombine.high %v268_v6, %v268_v6 }
 0x69c   : > { %v16341_v23 = vrot.slane %v834_v9, %v15052_v16 }
 0x69f   : > { %10405 = vmatpush1.bf16.xpose.msra.mxu0 %v14157_v14 }
 0x6a0   : > { %10406 = vmatprep.subr.bf16.mxu0 %v14165_v56 }
 0x6a1   : > { %10445 = vmatpush1.bf16.xpose.msra.mxu1 %v14160_v10 }
 0x6a2   : > { %10446 = vmatprep.subr.bf16.mxu1 %v14168_v59 }
 0x6a7   : > { %10407 = vmatpush1.bf16.xpose.msra.mxu0 %v14163_v3  ;;  %v16335_v3 = vrot.slane %v268_v6, %v15052_v16 }
 0x6a8   : > { %10408 = vmatprep.subr.bf16.mxu0 %v12811_v13 }
 0x6a9   : > { %v10110_v21 = vpop.f32.mrb[96].mxu0  ;;  %10447 = vmatpush1.bf16.xpose.msra.mxu1 %v14166_v17  ;;  %v14216_v17 = vld [vmem:[%s15028_s27 + $0x1e4] ss:$676 sps:$4 sm:$0xff]  }
 0x6aa   : > { %v10111_v28 = vadd.f32 %v10110_v21, %v16249_v38  ;;  %v10112_v5 = vpop.f32.mrb[97].mxu0  ;;  %10448 = vmatprep.subr.bf16.mxu1 %v12813_v15  ;;  %v14173_v38 = vld [vmem:[%s15028_s27 + $0x1d0] ss:$676 sps:$4 sm:$0xff]  }
 0x6ab   : > { %v10113_v24 = vpop.f32.mrb[98].mxu0  ;;  %v10150_v8 = vpop.f32.mrb[96].mxu1 }
 0x6ac   : > { %v16293_v26 = vadd.f32 %v10150_v8, %v10111_v28  ;;  %v10114_v27 = vpop.f32.mrb[99].mxu0  ;;  %v10152_v29 = vpop.f32.mrb[97].mxu1  ;;  %v14220_v28 = vld [vmem:[%s15028_s27 + $0x1ec] ss:$676 sps:$4 sm:$0xff]   ;;  %v849_v24 = vcombine.high %v16335_v3, %v16335_v3  ;;  %v850_v8 = vcombine.high %v16341_v23, %v16341_v23 }
 0x6ad   : > { %v10153_v34 = vpop.f32.mrb[98].mxu1  ;;  %v14223_v29 = vld [vmem:[%s15028_s27 + $0x72c] ss:$676 sps:$4 sm:$0xff]  }
 0x6ae   : > { %v10154_v19 = vpop.f32.mrb[99].mxu1  ;;  %v1335_v27 = vpack.c.bf16 %v849_v24, %v849_v24  ;;  %v1337_v34 = vpack.c.bf16 %v850_v8, %v850_v8  ;;  %v14273_v24 = vld [vmem:[%s15028_s27 + $0xc8c] ss:$676 sps:$4 sm:$0xff]   ;;  %v14268_v8 = vld [vmem:[%s15028_s27 + $0xc80] ss:$676 sps:$4 sm:$0xff]  }
 0x6af   : > { %10409 = vmatpush1.bf16.xpose.msra.mxu0 %v12810_v25  ;;  %v1330_v25 = vpack.c.bf16 %v16291_v18, %v16291_v18  ;;  %v14221_v18 = vld [vmem:[%s15028_s27 + $0x728] ss:$676 sps:$4 sm:$0xff]   ;;  %v14224_v19 = vld [vmem:[%s15028_s27 + $0x730] ss:$676 sps:$4 sm:$0xff]  }
 0x6b0   : > { %10476 = vmatprep.subr.bf16.mxu0 %v14175_v30  ;;  %v1332_v30 = vpack.c.bf16 %v16297_v35, %v16297_v35  ;;  %v14229_v35 = vld [vmem:[%s15028_s27 + $0xc74] ss:$676 sps:$4 sm:$0xff]  }
 0x6b1   : > { %10449 = vmatpush1.bf16.xpose.msra.mxu1 %v12812_v33  ;;  %v14218_v33 = vld [vmem:[%s15028_s27 + $0x1e8] ss:$676 sps:$4 sm:$0xff]  }
 0x6b2   : > { %10516 = vmatprep.subr.bf16.mxu1 %v14179_v40  ;;  %v14226_v40 = vld [vmem:[%s15028_s27 + $0x734] ss:$676 sps:$4 sm:$0xff]  }
 0x6b6   : > { %10429 = vmatmul.mubr.bf16.vlgmr.msra.gmra.mrb[112].mxu0 %v1326_v37  ;;  %v14235_v37 = vld [vmem:[%s15028_s27 + $0x11bc] ss:$676 sps:$4 sm:$0xff]  }
 0x6b7   : > { %10477 = vmatpush1.bf16.xpose.msra.mxu0 %v14173_v38  ;;  %10508 = vmatprep.mubr.bf16.mxu0 %v1331_v39  ;;  %v14230_v38 = vld [vmem:[%s15028_s27 + $0xc78] ss:$676 sps:$4 sm:$0xff]   ;;  %v14238_v39 = vld [vmem:[%s15028_s27 + $0x11c4] ss:$676 sps:$4 sm:$0xff]  }
 0x6b8   : > { %10469 = vmatmul.mubr.bf16.vlgmr.msra.gmra.mrb[112].mxu1 %v1328_v42  ;;  %10478 = vmatprep.subr.bf16.mxu0 %v14182_v44  ;;  %v14233_v42 = vld [vmem:[%s15028_s27 + $0x11b8] ss:$676 sps:$4 sm:$0xff]   ;;  %v14241_v44 = vld [vmem:[%s15028_s27 + $0x1704] ss:$676 sps:$4 sm:$0xff]  }
 0x6b9   : > { %10517 = vmatpush1.bf16.xpose.msra.mxu1 %v14177_v46  ;;  %10548 = vmatprep.mubr.bf16.mxu1 %v1333_v47  ;;  %v14236_v46 = vld [vmem:[%s15028_s27 + $0x11c0] ss:$676 sps:$4 sm:$0xff]   ;;  %v14244_v47 = vld [vmem:[%s15028_s27 + $0x170c] ss:$676 sps:$4 sm:$0xff]  }
 0x6ba   : > { %10518 = vmatprep.subr.bf16.mxu1 %v14185_v53  ;;  %v14239_v53 = vld [vmem:[%s15028_s27 + $0x1700] ss:$676 sps:$4 sm:$0xff]  }
 0x6bf   : > { %10479 = vmatpush1.bf16.xpose.msra.mxu0 %v14180_v31  ;;  %v14247_v31 = vld [vmem:[%s15028_s27 + $0x1c4c] ss:$676 sps:$4 sm:$0xff]  }
 0x6c0   : > { %10480 = vmatprep.subr.bf16.mxu0 %v14188_v48  ;;  %v14242_v48 = vld [vmem:[%s15028_s27 + $0x1708] ss:$676 sps:$4 sm:$0xff]  }
 0x6c1   : > { %10519 = vmatpush1.bf16.xpose.msra.mxu1 %v14183_v32  ;;  %v14250_v32 = vld [vmem:[%s15028_s27 + $0x1c54] ss:$676 sps:$4 sm:$0xff]  }
 0x6c2   : > { %10520 = vmatprep.subr.bf16.mxu1 %v14191_v49  ;;  %v2463_v49 = vld [vmem:[%s15028_s27 + $0x2190] sm:$0x33] }
 0x6c3   : > { %v12818_v62 = vcombine.low %v2463_v49, %v2463_v49 }
 0x6c7   : > { %10481 = vmatpush1.bf16.xpose.msra.mxu0 %v14186_v41  ;;  %v14245_v41 = vld [vmem:[%s15028_s27 + $0x1c48] ss:$676 sps:$4 sm:$0xff]  }
 0x6c8   : > { %10482 = vmatprep.subr.bf16.mxu0 %v14194_v50  ;;  %v2464_v50 = vld [vmem:[%s15028_s27 + $0x2198] sm:$0x33] }
 0x6c9   : > { %10521 = vmatpush1.bf16.xpose.msra.mxu1 %v14189_v51  ;;  %v12819_v51 = vcombine.high %v2463_v49, %v2463_v49  ;;  %v12820_v6 = vcombine.low %v2464_v50, %v2464_v50 }
 0x6ca   : > { %10522 = vmatprep.subr.bf16.mxu1 %v14197_v52  ;;  %v14248_v52 = vld [vmem:[%s15028_s27 + $0x1c50] ss:$676 sps:$4 sm:$0xff]  }
 0x6cf   : > { %10483 = vmatpush1.bf16.xpose.msra.mxu0 %v14192_v55  ;;  %v12821_v55 = vcombine.high %v2464_v50, %v2464_v50 }
 0x6d0   : > { %10484 = vmatprep.subr.bf16.mxu0 %v14200_v57  ;;  %v269_v57 = vld [vmem:[%s15022_s6 + $0xf8] sm:$0xff] }
 0x6d1   : > { %10523 = vmatpush1.bf16.xpose.msra.mxu1 %v14195_v58 }
 0x6d2   : > { %10524 = vmatprep.subr.bf16.mxu1 %v14203_v60  ;;  %v851_v60 = vcombine.high %v269_v57, %v269_v57 }
 0x6d4   : > { %v16385_v9 = vrot.slane %v851_v60, %v15052_v16 }
 0x6d7   : > { %10485 = vmatpush1.bf16.xpose.msra.mxu0 %v14198_v1 }
 0x6d8   : > { %10486 = vmatprep.subr.bf16.mxu0 %v14206_v43 }
 0x6d9   : > { %10525 = vmatpush1.bf16.xpose.msra.mxu1 %v14201_v61 }
 0x6da   : > { %10526 = vmatprep.subr.bf16.mxu1 %v14209_v45 }
 0x6df   : > { %10487 = vmatpush1.bf16.xpose.msra.mxu0 %v14204_v54  ;;  %v16379_v54 = vrot.slane %v269_v57, %v15052_v16 }
 0x6e0   : > { %10488 = vmatprep.subr.bf16.mxu0 %v12815_v0 }
 0x6e1   : > { %v10190_v7 = vpop.f32.mrb[100].mxu0  ;;  %10527 = vmatpush1.bf16.xpose.msra.mxu1 %v14207_v2  ;;  %v14257_v2 = vld [vmem:[%s15028_s27 + $0x1f4] ss:$676 sps:$4 sm:$0xff]  }
 0x6e2   : > { %v10191_v14 = vadd.f32 %v10190_v7, %v16293_v26  ;;  %v10192_v56 = vpop.f32.mrb[101].mxu0  ;;  %10528 = vmatprep.subr.bf16.mxu1 %v12817_v4  ;;  %v14214_v26 = vld [vmem:[%s15028_s27 + $0x1e0] ss:$676 sps:$4 sm:$0xff]  }
 0x6e3   : > { %v10193_v10 = vpop.f32.mrb[102].mxu0  ;;  %v10230_v59 = vpop.f32.mrb[100].mxu1 }
 0x6e4   : > { %v16337_v12 = vadd.f32 %v10230_v59, %v10191_v14  ;;  %v10194_v13 = vpop.f32.mrb[103].mxu0  ;;  %v10232_v15 = vpop.f32.mrb[101].mxu1  ;;  %v14261_v14 = vld [vmem:[%s15028_s27 + $0x1fc] ss:$676 sps:$4 sm:$0xff]   ;;  %v866_v10 = vcombine.high %v16379_v54, %v16379_v54  ;;  %v867_v59 = vcombine.high %v16385_v9, %v16385_v9 }
 0x6e5   : > { %v10233_v21 = vpop.f32.mrb[102].mxu1  ;;  %v14264_v15 = vld [vmem:[%s15028_s27 + $0x73c] ss:$676 sps:$4 sm:$0xff]  }
 0x6e6   : > { %v10234_v5 = vpop.f32.mrb[103].mxu1  ;;  %v1339_v13 = vpack.c.bf16 %v866_v10, %v866_v10  ;;  %v1341_v21 = vpack.c.bf16 %v867_v59, %v867_v59  ;;  %v14314_v10 = vld [vmem:[%s15028_s27 + $0xc9c] ss:$676 sps:$4 sm:$0xff]   ;;  %v14309_v59 = vld [vmem:[%s15028_s27 + $0xc90] ss:$676 sps:$4 sm:$0xff]  }
 0x6e7   : > { %10489 = vmatpush1.bf16.xpose.msra.mxu0 %v12814_v11  ;;  %v1334_v11 = vpack.c.bf16 %v16335_v3, %v16335_v3  ;;  %v14262_v3 = vld [vmem:[%s15028_s27 + $0x738] ss:$676 sps:$4 sm:$0xff]   ;;  %v14265_v5 = vld [vmem:[%s15028_s27 + $0x740] ss:$676 sps:$4 sm:$0xff]  }
 0x6e8   : > { %10556 = vmatprep.subr.bf16.mxu0 %v14216_v17  ;;  %v1336_v17 = vpack.c.bf16 %v16341_v23, %v16341_v23  ;;  %v14270_v23 = vld [vmem:[%s15028_s27 + $0xc84] ss:$676 sps:$4 sm:$0xff]  }
 0x6e9   : > { %10529 = vmatpush1.bf16.xpose.msra.mxu1 %v12816_v20  ;;  %v14259_v20 = vld [vmem:[%s15028_s27 + $0x1f8] ss:$676 sps:$4 sm:$0xff]  }
 0x6ea   : > { %10596 = vmatprep.subr.bf16.mxu1 %v14220_v28  ;;  %v14267_v28 = vld [vmem:[%s15028_s27 + $0x744] ss:$676 sps:$4 sm:$0xff]  }
 0x6ee   : > { %10509 = vmatmul.mubr.bf16.vlgmr.msra.gmra.mrb[116].mxu0 %v1330_v25  ;;  %v14276_v25 = vld [vmem:[%s15028_s27 + $0x11cc] ss:$676 sps:$4 sm:$0xff]  }
 0x6ef   : > { %10557 = vmatpush1.bf16.xpose.msra.mxu0 %v14214_v26  ;;  %10588 = vmatprep.mubr.bf16.mxu0 %v1335_v27  ;;  %v14271_v26 = vld [vmem:[%s15028_s27 + $0xc88] ss:$676 sps:$4 sm:$0xff]   ;;  %v14279_v27 = vld [vmem:[%s15028_s27 + $0x11d4] ss:$676 sps:$4 sm:$0xff]  }
 0x6f0   : > { %10549 = vmatmul.mubr.bf16.vlgmr.msra.gmra.mrb[116].mxu1 %v1332_v30  ;;  %10558 = vmatprep.subr.bf16.mxu0 %v14223_v29  ;;  %v14274_v30 = vld [vmem:[%s15028_s27 + $0x11c8] ss:$676 sps:$4 sm:$0xff]   ;;  %v14282_v29 = vld [vmem:[%s15028_s27 + $0x1714] ss:$676 sps:$4 sm:$0xff]  }
 0x6f1   : > { %10597 = vmatpush1.bf16.xpose.msra.mxu1 %v14218_v33  ;;  %10628 = vmatprep.mubr.bf16.mxu1 %v1337_v34  ;;  %v14277_v33 = vld [vmem:[%s15028_s27 + $0x11d0] ss:$676 sps:$4 sm:$0xff]   ;;  %v14285_v34 = vld [vmem:[%s15028_s27 + $0x171c] ss:$676 sps:$4 sm:$0xff]  }
 0x6f2   : > { %10598 = vmatprep.subr.bf16.mxu1 %v14226_v40  ;;  %v14280_v40 = vld [vmem:[%s15028_s27 + $0x1710] ss:$676 sps:$4 sm:$0xff]  }
 0x6f7   : > { %10559 = vmatpush1.bf16.xpose.msra.mxu0 %v14221_v18  ;;  %v14288_v18 = vld [vmem:[%s15028_s27 + $0x1c5c] ss:$676 sps:$4 sm:$0xff]  }
 0x6f8   : > { %10560 = vmatprep.subr.bf16.mxu0 %v14229_v35  ;;  %v14283_v35 = vld [vmem:[%s15028_s27 + $0x1718] ss:$676 sps:$4 sm:$0xff]  }
 0x6f9   : > { %10599 = vmatpush1.bf16.xpose.msra.mxu1 %v14224_v19  ;;  %v14291_v19 = vld [vmem:[%s15028_s27 + $0x1c64] ss:$676 sps:$4 sm:$0xff]  }
 0x6fa   : > { %10600 = vmatprep.subr.bf16.mxu1 %v14232_v36  ;;  %v2465_v36 = vld [vmem:[%s15028_s27 + $0x21a0] sm:$0x33] }
 0x6fb   : > { %v12822_v49 = vcombine.low %v2465_v36, %v2465_v36 }
 0x6ff   : > { %10561 = vmatpush1.bf16.xpose.msra.mxu0 %v14227_v22  ;;  %v14286_v22 = vld [vmem:[%s15028_s27 + $0x1c58] ss:$676 sps:$4 sm:$0xff]  }
 0x700   : > { %10562 = vmatprep.subr.bf16.mxu0 %v14235_v37  ;;  %v2466_v37 = vld [vmem:[%s15028_s27 + $0x21a8] sm:$0x33] }
 0x701   : > { %10601 = vmatpush1.bf16.xpose.msra.mxu1 %v14230_v38  ;;  %v12823_v38 = vcombine.high %v2465_v36, %v2465_v36  ;;  %v12824_v57 = vcombine.low %v2466_v37, %v2466_v37 }
 0x702   : > { %10602 = vmatprep.subr.bf16.mxu1 %v14238_v39  ;;  %v14289_v39 = vld [vmem:[%s15028_s27 + $0x1c60] ss:$676 sps:$4 sm:$0xff]  }
 0x707   : > { %10563 = vmatpush1.bf16.xpose.msra.mxu0 %v14233_v42  ;;  %v12825_v42 = vcombine.high %v2466_v37, %v2466_v37 }
 0x708   : > { %10564 = vmatprep.subr.bf16.mxu0 %v14241_v44  ;;  %v270_v44 = vld [vmem:[%s15022_s6 + $0x100] sm:$0xff] }
 0x709   : > { %10603 = vmatpush1.bf16.xpose.msra.mxu1 %v14236_v46 }
 0x70a   : > { %10604 = vmatprep.subr.bf16.mxu1 %v14244_v47  ;;  %v868_v47 = vcombine.high %v270_v44, %v270_v44 }
 0x70c   : > { %v16429_v60 = vrot.slane %v868_v47, %v15052_v16 }
 0x70f   : > { %10565 = vmatpush1.bf16.xpose.msra.mxu0 %v14239_v53 }
 0x710   : > { %10566 = vmatprep.subr.bf16.mxu0 %v14247_v31 }
 0x711   : > { %10605 = vmatpush1.bf16.xpose.msra.mxu1 %v14242_v48 }
 0x712   : > { %10606 = vmatprep.subr.bf16.mxu1 %v14250_v32 }
 0x717   : > { %10567 = vmatpush1.bf16.xpose.msra.mxu0 %v14245_v41  ;;  %v16423_v41 = vrot.slane %v270_v44, %v15052_v16 }
 0x718   : > { %10568 = vmatprep.subr.bf16.mxu0 %v12819_v51 }
 0x719   : > { %v10270_v58 = vpop.f32.mrb[104].mxu0  ;;  %10607 = vmatpush1.bf16.xpose.msra.mxu1 %v14248_v52  ;;  %v14298_v52 = vld [vmem:[%s15028_s27 + $0x204] ss:$676 sps:$4 sm:$0xff]  }
 0x71a   : > { %v10271_v1 = vadd.f32 %v10270_v58, %v16337_v12  ;;  %v10272_v43 = vpop.f32.mrb[105].mxu0  ;;  %10608 = vmatprep.subr.bf16.mxu1 %v12821_v55  ;;  %v14255_v12 = vld [vmem:[%s15028_s27 + $0x1f0] ss:$676 sps:$4 sm:$0xff]  }
 0x71b   : > { %v10273_v61 = vpop.f32.mrb[106].mxu0  ;;  %v10310_v45 = vpop.f32.mrb[104].mxu1 }
 0x71c   : > { %v16381_v63 = vadd.f32 %v10310_v45, %v10271_v1  ;;  %v10274_v0 = vpop.f32.mrb[107].mxu0  ;;  %v10312_v4 = vpop.f32.mrb[105].mxu1  ;;  %v14302_v1 = vld [vmem:[%s15028_s27 + $0x20c] ss:$676 sps:$4 sm:$0xff]   ;;  %v883_v61 = vcombine.high %v16423_v41, %v16423_v41  ;;  %v884_v45 = vcombine.high %v16429_v60, %v16429_v60 }
 0x71d   : > { %v10313_v7 = vpop.f32.mrb[106].mxu1  ;;  %v14305_v4 = vld [vmem:[%s15028_s27 + $0x74c] ss:$676 sps:$4 sm:$0xff]  }
 0x71e   : > { %v10314_v56 = vpop.f32.mrb[107].mxu1  ;;  %v1343_v0 = vpack.c.bf16 %v883_v61, %v883_v61  ;;  %v1345_v7 = vpack.c.bf16 %v884_v45, %v884_v45  ;;  %v14355_v61 = vld [vmem:[%s15028_s27 + $0xcac] ss:$676 sps:$4 sm:$0xff]   ;;  %v14350_v45 = vld [vmem:[%s15028_s27 + $0xca0] ss:$676 sps:$4 sm:$0xff]  }
 0x71f   : > { %10569 = vmatpush1.bf16.xpose.msra.mxu0 %v12818_v62  ;;  %v1338_v62 = vpack.c.bf16 %v16379_v54, %v16379_v54  ;;  %v14303_v54 = vld [vmem:[%s15028_s27 + $0x748] ss:$676 sps:$4 sm:$0xff]   ;;  %v14306_v56 = vld [vmem:[%s15028_s27 + $0x750] ss:$676 sps:$4 sm:$0xff]  }
 0x720   : > { %10636 = vmatprep.subr.bf16.mxu0 %v14257_v2  ;;  %v1340_v2 = vpack.c.bf16 %v16385_v9, %v16385_v9  ;;  %v14311_v9 = vld [vmem:[%s15028_s27 + $0xc94] ss:$676 sps:$4 sm:$0xff]  }
 0x721   : > { %10609 = vmatpush1.bf16.xpose.msra.mxu1 %v12820_v6  ;;  %v14300_v6 = vld [vmem:[%s15028_s27 + $0x208] ss:$676 sps:$4 sm:$0xff]  }
 0x722   : > { %10676 = vmatprep.subr.bf16.mxu1 %v14261_v14  ;;  %v14308_v14 = vld [vmem:[%s15028_s27 + $0x754] ss:$676 sps:$4 sm:$0xff]  }
 0x726   : > { %10589 = vmatmul.mubr.bf16.vlgmr.msra.gmra.mrb[120].mxu0 %v1334_v11  ;;  %v14317_v11 = vld [vmem:[%s15028_s27 + $0x11dc] ss:$676 sps:$4 sm:$0xff]  }
 0x727   : > { %10637 = vmatpush1.bf16.xpose.msra.mxu0 %v14255_v12  ;;  %10668 = vmatprep.mubr.bf16.mxu0 %v1339_v13  ;;  %v14312_v12 = vld [vmem:[%s15028_s27 + $0xc98] ss:$676 sps:$4 sm:$0xff]   ;;  %v14320_v13 = vld [vmem:[%s15028_s27 + $0x11e4] ss:$676 sps:$4 sm:$0xff]  }
 0x728   : > { %10629 = vmatmul.mubr.bf16.vlgmr.msra.gmra.mrb[120].mxu1 %v1336_v17  ;;  %10638 = vmatprep.subr.bf16.mxu0 %v14264_v15  ;;  %v14315_v17 = vld [vmem:[%s15028_s27 + $0x11d8] ss:$676 sps:$4 sm:$0xff]   ;;  %v14323_v15 = vld [vmem:[%s15028_s27 + $0x1724] ss:$676 sps:$4 sm:$0xff]  }
 0x729   : > { %10677 = vmatpush1.bf16.xpose.msra.mxu1 %v14259_v20  ;;  %10708 = vmatprep.mubr.bf16.mxu1 %v1341_v21  ;;  %v14318_v20 = vld [vmem:[%s15028_s27 + $0x11e0] ss:$676 sps:$4 sm:$0xff]   ;;  %v14326_v21 = vld [vmem:[%s15028_s27 + $0x172c] ss:$676 sps:$4 sm:$0xff]  }
 0x72a   : > { %10678 = vmatprep.subr.bf16.mxu1 %v14267_v28  ;;  %v14321_v28 = vld [vmem:[%s15028_s27 + $0x1720] ss:$676 sps:$4 sm:$0xff]  }
 0x72f   : > { %10639 = vmatpush1.bf16.xpose.msra.mxu0 %v14262_v3  ;;  %v14329_v3 = vld [vmem:[%s15028_s27 + $0x1c6c] ss:$676 sps:$4 sm:$0xff]  }
 0x730   : > { %10640 = vmatprep.subr.bf16.mxu0 %v14270_v23  ;;  %v14324_v23 = vld [vmem:[%s15028_s27 + $0x1728] ss:$676 sps:$4 sm:$0xff]  }
 0x731   : > { %10679 = vmatpush1.bf16.xpose.msra.mxu1 %v14265_v5  ;;  %v14332_v5 = vld [vmem:[%s15028_s27 + $0x1c74] ss:$676 sps:$4 sm:$0xff]  }
 0x732   : > { %10680 = vmatprep.subr.bf16.mxu1 %v14273_v24  ;;  %v2467_v24 = vld [vmem:[%s15028_s27 + $0x21b0] sm:$0x33] }
 0x733   : > { %v12826_v36 = vcombine.low %v2467_v24, %v2467_v24 }
 0x737   : > { %10641 = vmatpush1.bf16.xpose.msra.mxu0 %v14268_v8  ;;  %v14327_v8 = vld [vmem:[%s15028_s27 + $0x1c68] ss:$676 sps:$4 sm:$0xff]  }
 0x738   : > { %10642 = vmatprep.subr.bf16.mxu0 %v14276_v25  ;;  %v2468_v25 = vld [vmem:[%s15028_s27 + $0x21b8] sm:$0x33] }
 0x739   : > { %10681 = vmatpush1.bf16.xpose.msra.mxu1 %v14271_v26  ;;  %v12827_v26 = vcombine.high %v2467_v24, %v2467_v24  ;;  %v12828_v44 = vcombine.low %v2468_v25, %v2468_v25 }
 0x73a   : > { %10682 = vmatprep.subr.bf16.mxu1 %v14279_v27  ;;  %v14330_v27 = vld [vmem:[%s15028_s27 + $0x1c70] ss:$676 sps:$4 sm:$0xff]  }
 0x73f   : > { %10643 = vmatpush1.bf16.xpose.msra.mxu0 %v14274_v30  ;;  %v12829_v30 = vcombine.high %v2468_v25, %v2468_v25 }
 0x740   : > { %10644 = vmatprep.subr.bf16.mxu0 %v14282_v29  ;;  %v271_v29 = vld [vmem:[%s15022_s6 + $0x108] sm:$0xff] }
 0x741   : > { %10683 = vmatpush1.bf16.xpose.msra.mxu1 %v14277_v33 }
 0x742   : > { %10684 = vmatprep.subr.bf16.mxu1 %v14285_v34  ;;  %v885_v34 = vcombine.high %v271_v29, %v271_v29 }
 0x744   : > { %v16473_v47 = vrot.slane %v885_v34, %v15052_v16 }
 0x747   : > { %10645 = vmatpush1.bf16.xpose.msra.mxu0 %v14280_v40 }
 0x748   : > { %10646 = vmatprep.subr.bf16.mxu0 %v14288_v18 }
 0x749   : > { %10685 = vmatpush1.bf16.xpose.msra.mxu1 %v14283_v35 }
 0x74a   : > { %10686 = vmatprep.subr.bf16.mxu1 %v14291_v19 }
 0x74f   : > { %10647 = vmatpush1.bf16.xpose.msra.mxu0 %v14286_v22  ;;  %v16467_v22 = vrot.slane %v271_v29, %v15052_v16 }
 0x750   : > { %10648 = vmatprep.subr.bf16.mxu0 %v12823_v38 }
 0x751   : > { %v10350_v46 = vpop.f32.mrb[108].mxu0  ;;  %10687 = vmatpush1.bf16.xpose.msra.mxu1 %v14289_v39  ;;  %v14339_v39 = vld [vmem:[%s15028_s27 + $0x214] ss:$676 sps:$4 sm:$0xff]  }
 0x752   : > { %v10351_v53 = vadd.f32 %v10350_v46, %v16381_v63  ;;  %v10352_v31 = vpop.f32.mrb[109].mxu0  ;;  %10688 = vmatprep.subr.bf16.mxu1 %v12825_v42  ;;  %v14296_v63 = vld [vmem:[%s15028_s27 + $0x200] ss:$676 sps:$4 sm:$0xff]  }
 0x753   : > { %v10353_v48 = vpop.f32.mrb[110].mxu0  ;;  %v10390_v32 = vpop.f32.mrb[108].mxu1 }
 0x754   : > { %v16425_v50 = vadd.f32 %v10390_v32, %v10351_v53  ;;  %v10354_v51 = vpop.f32.mrb[111].mxu0  ;;  %v10392_v55 = vpop.f32.mrb[109].mxu1  ;;  %v14343_v53 = vld [vmem:[%s15028_s27 + $0x21c] ss:$676 sps:$4 sm:$0xff]   ;;  %v900_v48 = vcombine.high %v16467_v22, %v16467_v22  ;;  %v901_v32 = vcombine.high %v16473_v47, %v16473_v47 }
 0x755   : > { %v10393_v58 = vpop.f32.mrb[110].mxu1  ;;  %v14346_v55 = vld [vmem:[%s15028_s27 + $0x75c] ss:$676 sps:$4 sm:$0xff]  }
 0x756   : > { %v10394_v43 = vpop.f32.mrb[111].mxu1  ;;  %v1347_v51 = vpack.c.bf16 %v900_v48, %v900_v48  ;;  %v1349_v58 = vpack.c.bf16 %v901_v32, %v901_v32  ;;  %v14396_v48 = vld [vmem:[%s15028_s27 + $0xcbc] ss:$676 sps:$4 sm:$0xff]   ;;  %v14391_v32 = vld [vmem:[%s15028_s27 + $0xcb0] ss:$676 sps:$4 sm:$0xff]  }
 0x757   : > { %10649 = vmatpush1.bf16.xpose.msra.mxu0 %v12822_v49  ;;  %v1342_v49 = vpack.c.bf16 %v16423_v41, %v16423_v41  ;;  %v14344_v41 = vld [vmem:[%s15028_s27 + $0x758] ss:$676 sps:$4 sm:$0xff]   ;;  %v14347_v43 = vld [vmem:[%s15028_s27 + $0x760] ss:$676 sps:$4 sm:$0xff]  }
 0x758   : > { %10716 = vmatprep.subr.bf16.mxu0 %v14298_v52  ;;  %v1344_v52 = vpack.c.bf16 %v16429_v60, %v16429_v60  ;;  %v14352_v60 = vld [vmem:[%s15028_s27 + $0xca4] ss:$676 sps:$4 sm:$0xff]  }
 0x759   : > { %10689 = vmatpush1.bf16.xpose.msra.mxu1 %v12824_v57  ;;  %v14341_v57 = vld [vmem:[%s15028_s27 + $0x218] ss:$676 sps:$4 sm:$0xff]  }
 0x75a   : > { %10756 = vmatprep.subr.bf16.mxu1 %v14302_v1  ;;  %v14349_v1 = vld [vmem:[%s15028_s27 + $0x764] ss:$676 sps:$4 sm:$0xff]  }
 0x75e   : > { %10669 = vmatmul.mubr.bf16.vlgmr.msra.gmra.mrb[124].mxu0 %v1338_v62  ;;  %v14358_v62 = vld [vmem:[%s15028_s27 + $0x11ec] ss:$676 sps:$4 sm:$0xff]  }
 0x75f   : > { %10717 = vmatpush1.bf16.xpose.msra.mxu0 %v14296_v63  ;;  %10748 = vmatprep.mubr.bf16.mxu0 %v1343_v0  ;;  %v14353_v63 = vld [vmem:[%s15028_s27 + $0xca8] ss:$676 sps:$4 sm:$0xff]   ;;  %v14361_v0 = vld [vmem:[%s15028_s27 + $0x11f4] ss:$676 sps:$4 sm:$0xff]  }
 0x760   : > { %10709 = vmatmul.mubr.bf16.vlgmr.msra.gmra.mrb[124].mxu1 %v1340_v2  ;;  %10718 = vmatprep.subr.bf16.mxu0 %v14305_v4  ;;  %v14356_v2 = vld [vmem:[%s15028_s27 + $0x11e8] ss:$676 sps:$4 sm:$0xff]   ;;  %v14364_v4 = vld [vmem:[%s15028_s27 + $0x1734] ss:$676 sps:$4 sm:$0xff]  }
 0x761   : > { %10757 = vmatpush1.bf16.xpose.msra.mxu1 %v14300_v6  ;;  %10788 = vmatprep.mubr.bf16.mxu1 %v1345_v7  ;;  %v14359_v6 = vld [vmem:[%s15028_s27 + $0x11f0] ss:$676 sps:$4 sm:$0xff]   ;;  %v14367_v7 = vld [vmem:[%s15028_s27 + $0x173c] ss:$676 sps:$4 sm:$0xff]  }
 0x762   : > { %10758 = vmatprep.subr.bf16.mxu1 %v14308_v14  ;;  %v14362_v14 = vld [vmem:[%s15028_s27 + $0x1730] ss:$676 sps:$4 sm:$0xff]  }
 0x767   : > { %10719 = vmatpush1.bf16.xpose.msra.mxu0 %v14303_v54  ;;  %v14370_v54 = vld [vmem:[%s15028_s27 + $0x1c7c] ss:$676 sps:$4 sm:$0xff]  }
 0x768   : > { %10720 = vmatprep.subr.bf16.mxu0 %v14311_v9  ;;  %v14365_v9 = vld [vmem:[%s15028_s27 + $0x1738] ss:$676 sps:$4 sm:$0xff]  }
 0x769   : > { %10759 = vmatpush1.bf16.xpose.msra.mxu1 %v14306_v56  ;;  %v14373_v56 = vld [vmem:[%s15028_s27 + $0x1c84] ss:$676 sps:$4 sm:$0xff]  }
 0x76a   : > { %10760 = vmatprep.subr.bf16.mxu1 %v14314_v10  ;;  %v2469_v10 = vld [vmem:[%s15028_s27 + $0x21c0] sm:$0x33] }
 0x76b   : > { %v12830_v24 = vcombine.low %v2469_v10, %v2469_v10 }
 0x76f   : > { %10721 = vmatpush1.bf16.xpose.msra.mxu0 %v14309_v59  ;;  %v14368_v59 = vld [vmem:[%s15028_s27 + $0x1c78] ss:$676 sps:$4 sm:$0xff]  }
 0x770   : > { %10722 = vmatprep.subr.bf16.mxu0 %v14317_v11  ;;  %v2470_v11 = vld [vmem:[%s15028_s27 + $0x21c8] sm:$0x33] }
 0x771   : > { %10761 = vmatpush1.bf16.xpose.msra.mxu1 %v14312_v12  ;;  %v12831_v12 = vcombine.high %v2469_v10, %v2469_v10  ;;  %v12832_v29 = vcombine.low %v2470_v11, %v2470_v11 }
 0x772   : > { %10762 = vmatprep.subr.bf16.mxu1 %v14320_v13  ;;  %v14371_v13 = vld [vmem:[%s15028_s27 + $0x1c80] ss:$676 sps:$4 sm:$0xff]  }
 0x777   : > { %10723 = vmatpush1.bf16.xpose.msra.mxu0 %v14315_v17  ;;  %v12833_v17 = vcombine.high %v2470_v11, %v2470_v11 }
 0x778   : > { %10724 = vmatprep.subr.bf16.mxu0 %v14323_v15  ;;  %v272_v15 = vld [vmem:[%s15022_s6 + $0x110] sm:$0xff] }
 0x779   : > { %10763 = vmatpush1.bf16.xpose.msra.mxu1 %v14318_v20 }
 0x77a   : > { %10764 = vmatprep.subr.bf16.mxu1 %v14326_v21  ;;  %v902_v21 = vcombine.high %v272_v15, %v272_v15 }
 0x77c   : > { %v16517_v34 = vrot.slane %v902_v21, %v15052_v16 }
 0x77f   : > { %10725 = vmatpush1.bf16.xpose.msra.mxu0 %v14321_v28 }
 0x780   : > { %10726 = vmatprep.subr.bf16.mxu0 %v14329_v3 }
 0x781   : > { %10765 = vmatpush1.bf16.xpose.msra.mxu1 %v14324_v23 }
 0x782   : > { %10766 = vmatprep.subr.bf16.mxu1 %v14332_v5 }
 0x787   : > { %10727 = vmatpush1.bf16.xpose.msra.mxu0 %v14327_v8  ;;  %v16511_v8 = vrot.slane %v272_v15, %v15052_v16 }
 0x788   : > { %10728 = vmatprep.subr.bf16.mxu0 %v12827_v26 }
 0x789   : > { %v10430_v33 = vpop.f32.mrb[112].mxu0  ;;  %10767 = vmatpush1.bf16.xpose.msra.mxu1 %v14330_v27  ;;  %v14380_v27 = vld [vmem:[%s15028_s27 + $0x224] ss:$676 sps:$4 sm:$0xff]  }
 0x78a   : > { %v10431_v40 = vadd.f32 %v10430_v33, %v16425_v50  ;;  %v10432_v18 = vpop.f32.mrb[113].mxu0  ;;  %10768 = vmatprep.subr.bf16.mxu1 %v12829_v30  ;;  %v14337_v50 = vld [vmem:[%s15028_s27 + $0x210] ss:$676 sps:$4 sm:$0xff]  }
 0x78b   : > { %v10433_v35 = vpop.f32.mrb[114].mxu0  ;;  %v10470_v19 = vpop.f32.mrb[112].mxu1 }
 0x78c   : > { %v16469_v37 = vadd.f32 %v10470_v19, %v10431_v40  ;;  %v10434_v38 = vpop.f32.mrb[115].mxu0  ;;  %v10472_v42 = vpop.f32.mrb[113].mxu1  ;;  %v14384_v40 = vld [vmem:[%s15028_s27 + $0x22c] ss:$676 sps:$4 sm:$0xff]   ;;  %v917_v35 = vcombine.high %v16511_v8, %v16511_v8  ;;  %v918_v19 = vcombine.high %v16517_v34, %v16517_v34 }
 0x78d   : > { %v10473_v46 = vpop.f32.mrb[114].mxu1  ;;  %v14387_v42 = vld [vmem:[%s15028_s27 + $0x76c] ss:$676 sps:$4 sm:$0xff]  }
 0x78e   : > { %v10474_v31 = vpop.f32.mrb[115].mxu1  ;;  %v1351_v38 = vpack.c.bf16 %v917_v35, %v917_v35  ;;  %v1353_v46 = vpack.c.bf16 %v918_v19, %v918_v19  ;;  %v14437_v35 = vld [vmem:[%s15028_s27 + $0xccc] ss:$676 sps:$4 sm:$0xff]   ;;  %v14432_v19 = vld [vmem:[%s15028_s27 + $0xcc0] ss:$676 sps:$4 sm:$0xff]  }
 0x78f   : > { %10729 = vmatpush1.bf16.xpose.msra.mxu0 %v12826_v36  ;;  %v1346_v36 = vpack.c.bf16 %v16467_v22, %v16467_v22  ;;  %v14385_v22 = vld [vmem:[%s15028_s27 + $0x768] ss:$676 sps:$4 sm:$0xff]   ;;  %v14388_v31 = vld [vmem:[%s15028_s27 + $0x770] ss:$676 sps:$4 sm:$0xff]  }
 0x790   : > { %10796 = vmatprep.subr.bf16.mxu0 %v14339_v39  ;;  %v1348_v39 = vpack.c.bf16 %v16473_v47, %v16473_v47  ;;  %v14393_v47 = vld [vmem:[%s15028_s27 + $0xcb4] ss:$676 sps:$4 sm:$0xff]  }
 0x791   : > { %10769 = vmatpush1.bf16.xpose.msra.mxu1 %v12828_v44  ;;  %v14382_v44 = vld [vmem:[%s15028_s27 + $0x228] ss:$676 sps:$4 sm:$0xff]  }
 0x792   : > { %10836 = vmatprep.subr.bf16.mxu1 %v14343_v53  ;;  %v14390_v53 = vld [vmem:[%s15028_s27 + $0x774] ss:$676 sps:$4 sm:$0xff]  }
 0x796   : > { %10749 = vmatmul.mubr.bf16.vlgmr.msra.gmra.mrb[128].mxu0 %v1342_v49  ;;  %v14399_v49 = vld [vmem:[%s15028_s27 + $0x11fc] ss:$676 sps:$4 sm:$0xff]  }
 0x797   : > { %10797 = vmatpush1.bf16.xpose.msra.mxu0 %v14337_v50  ;;  %10828 = vmatprep.mubr.bf16.mxu0 %v1347_v51  ;;  %v14394_v50 = vld [vmem:[%s15028_s27 + $0xcb8] ss:$676 sps:$4 sm:$0xff]   ;;  %v14402_v51 = vld [vmem:[%s15028_s27 + $0x1204] ss:$676 sps:$4 sm:$0xff]  }
 0x798   : > { %10789 = vmatmul.mubr.bf16.vlgmr.msra.gmra.mrb[128].mxu1 %v1344_v52  ;;  %10798 = vmatprep.subr.bf16.mxu0 %v14346_v55  ;;  %v14397_v52 = vld [vmem:[%s15028_s27 + $0x11f8] ss:$676 sps:$4 sm:$0xff]   ;;  %v14405_v55 = vld [vmem:[%s15028_s27 + $0x1744] ss:$676 sps:$4 sm:$0xff]  }
 0x799   : > { %10837 = vmatpush1.bf16.xpose.msra.mxu1 %v14341_v57  ;;  %10868 = vmatprep.mubr.bf16.mxu1 %v1349_v58  ;;  %v14400_v57 = vld [vmem:[%s15028_s27 + $0x1200] ss:$676 sps:$4 sm:$0xff]   ;;  %v14408_v58 = vld [vmem:[%s15028_s27 + $0x174c] ss:$676 sps:$4 sm:$0xff]  }
 0x79a   : > { %10838 = vmatprep.subr.bf16.mxu1 %v14349_v1  ;;  %v14403_v1 = vld [vmem:[%s15028_s27 + $0x1740] ss:$676 sps:$4 sm:$0xff]  }
 0x79f   : > { %10799 = vmatpush1.bf16.xpose.msra.mxu0 %v14344_v41  ;;  %v14411_v41 = vld [vmem:[%s15028_s27 + $0x1c8c] ss:$676 sps:$4 sm:$0xff]  }
 0x7a0   : > { %10800 = vmatprep.subr.bf16.mxu0 %v14352_v60  ;;  %v14406_v60 = vld [vmem:[%s15028_s27 + $0x1748] ss:$676 sps:$4 sm:$0xff]  }
 0x7a1   : > { %10839 = vmatpush1.bf16.xpose.msra.mxu1 %v14347_v43  ;;  %v14414_v43 = vld [vmem:[%s15028_s27 + $0x1c94] ss:$676 sps:$4 sm:$0xff]  }
 0x7a2   : > { %10840 = vmatprep.subr.bf16.mxu1 %v14355_v61  ;;  %v2471_v61 = vld [vmem:[%s15028_s27 + $0x21d0] sm:$0x33] }
 0x7a3   : > { %v12834_v10 = vcombine.low %v2471_v61, %v2471_v61 }
 0x7a7   : > { %10801 = vmatpush1.bf16.xpose.msra.mxu0 %v14350_v45  ;;  %v14409_v45 = vld [vmem:[%s15028_s27 + $0x1c88] ss:$676 sps:$4 sm:$0xff]  }
 0x7a8   : > { %10802 = vmatprep.subr.bf16.mxu0 %v14358_v62  ;;  %v2472_v62 = vld [vmem:[%s15028_s27 + $0x21d8] sm:$0x33] }
 0x7a9   : > { %10841 = vmatpush1.bf16.xpose.msra.mxu1 %v14353_v63  ;;  %v12835_v63 = vcombine.high %v2471_v61, %v2471_v61  ;;  %v12836_v15 = vcombine.low %v2472_v62, %v2472_v62 }
 0x7aa   : > { %10842 = vmatprep.subr.bf16.mxu1 %v14361_v0  ;;  %v14412_v0 = vld [vmem:[%s15028_s27 + $0x1c90] ss:$676 sps:$4 sm:$0xff]  }
 0x7af   : > { %10803 = vmatpush1.bf16.xpose.msra.mxu0 %v14356_v2  ;;  %v12837_v2 = vcombine.high %v2472_v62, %v2472_v62 }
 0x7b0   : > { %10804 = vmatprep.subr.bf16.mxu0 %v14364_v4  ;;  %v273_v4 = vld [vmem:[%s15022_s6 + $0x118] sm:$0xff] }
 0x7b1   : > { %10843 = vmatpush1.bf16.xpose.msra.mxu1 %v14359_v6 }
 0x7b2   : > { %10844 = vmatprep.subr.bf16.mxu1 %v14367_v7  ;;  %v919_v7 = vcombine.high %v273_v4, %v273_v4 }
 0x7b4   : > { %v16561_v21 = vrot.slane %v919_v7, %v15052_v16 }
 0x7b7   : > { %10805 = vmatpush1.bf16.xpose.msra.mxu0 %v14362_v14 }
 0x7b8   : > { %10806 = vmatprep.subr.bf16.mxu0 %v14370_v54 }
 0x7b9   : > { %10845 = vmatpush1.bf16.xpose.msra.mxu1 %v14365_v9 }
 0x7ba   : > { %10846 = vmatprep.subr.bf16.mxu1 %v14373_v56 }
 0x7bf   : > { %10807 = vmatpush1.bf16.xpose.msra.mxu0 %v14368_v59  ;;  %v16555_v59 = vrot.slane %v273_v4, %v15052_v16 }
 0x7c0   : > { %10808 = vmatprep.subr.bf16.mxu0 %v12831_v12 }
 0x7c1   : > { %v10510_v20 = vpop.f32.mrb[116].mxu0  ;;  %10847 = vmatpush1.bf16.xpose.msra.mxu1 %v14371_v13  ;;  %v14421_v13 = vld [vmem:[%s15028_s27 + $0x234] ss:$676 sps:$4 sm:$0xff]  }
 0x7c2   : > { %v10511_v28 = vadd.f32 %v10510_v20, %v16469_v37  ;;  %v10512_v3 = vpop.f32.mrb[117].mxu0  ;;  %10848 = vmatprep.subr.bf16.mxu1 %v12833_v17  ;;  %v14378_v37 = vld [vmem:[%s15028_s27 + $0x220] ss:$676 sps:$4 sm:$0xff]  }
 0x7c3   : > { %v10513_v23 = vpop.f32.mrb[118].mxu0  ;;  %v10550_v5 = vpop.f32.mrb[116].mxu1 }
 0x7c4   : > { %v16513_v25 = vadd.f32 %v10550_v5, %v10511_v28  ;;  %v10514_v26 = vpop.f32.mrb[119].mxu0  ;;  %v10552_v30 = vpop.f32.mrb[117].mxu1  ;;  %v14425_v28 = vld [vmem:[%s15028_s27 + $0x23c] ss:$676 sps:$4 sm:$0xff]   ;;  %v934_v23 = vcombine.high %v16555_v59, %v16555_v59  ;;  %v935_v5 = vcombine.high %v16561_v21, %v16561_v21 }
 0x7c5   : > { %v10553_v33 = vpop.f32.mrb[118].mxu1  ;;  %v14428_v30 = vld [vmem:[%s15028_s27 + $0x77c] ss:$676 sps:$4 sm:$0xff]  }
 0x7c6   : > { %v10554_v18 = vpop.f32.mrb[119].mxu1  ;;  %v1355_v26 = vpack.c.bf16 %v934_v23, %v934_v23  ;;  %v1357_v33 = vpack.c.bf16 %v935_v5, %v935_v5  ;;  %v14478_v23 = vld [vmem:[%s15028_s27 + $0xcdc] ss:$676 sps:$4 sm:$0xff]   ;;  %v14473_v5 = vld [vmem:[%s15028_s27 + $0xcd0] ss:$676 sps:$4 sm:$0xff]  }
 0x7c7   : > { %10809 = vmatpush1.bf16.xpose.msra.mxu0 %v12830_v24  ;;  %v1350_v24 = vpack.c.bf16 %v16511_v8, %v16511_v8  ;;  %v14426_v8 = vld [vmem:[%s15028_s27 + $0x778] ss:$676 sps:$4 sm:$0xff]   ;;  %v14429_v18 = vld [vmem:[%s15028_s27 + $0x780] ss:$676 sps:$4 sm:$0xff]  }
 0x7c8   : > { %10876 = vmatprep.subr.bf16.mxu0 %v14380_v27  ;;  %v1352_v27 = vpack.c.bf16 %v16517_v34, %v16517_v34  ;;  %v14434_v34 = vld [vmem:[%s15028_s27 + $0xcc4] ss:$676 sps:$4 sm:$0xff]  }
 0x7c9   : > { %10849 = vmatpush1.bf16.xpose.msra.mxu1 %v12832_v29  ;;  %v14423_v29 = vld [vmem:[%s15028_s27 + $0x238] ss:$676 sps:$4 sm:$0xff]  }
 0x7ca   : > { %10916 = vmatprep.subr.bf16.mxu1 %v14384_v40  ;;  %v14431_v40 = vld [vmem:[%s15028_s27 + $0x784] ss:$676 sps:$4 sm:$0xff]  }
 0x7ce   : > { %10829 = vmatmul.mubr.bf16.vlgmr.msra.gmra.mrb[132].mxu0 %v1346_v36  ;;  %v14440_v36 = vld [vmem:[%s15028_s27 + $0x120c] ss:$676 sps:$4 sm:$0xff]  }
 0x7cf   : > { %10877 = vmatpush1.bf16.xpose.msra.mxu0 %v14378_v37  ;;  %10908 = vmatprep.mubr.bf16.mxu0 %v1351_v38  ;;  %v14435_v37 = vld [vmem:[%s15028_s27 + $0xcc8] ss:$676 sps:$4 sm:$0xff]   ;;  %v14443_v38 = vld [vmem:[%s15028_s27 + $0x1214] ss:$676 sps:$4 sm:$0xff]  }
 0x7d0   : > { %10869 = vmatmul.mubr.bf16.vlgmr.msra.gmra.mrb[132].mxu1 %v1348_v39  ;;  %10878 = vmatprep.subr.bf16.mxu0 %v14387_v42  ;;  %v14438_v39 = vld [vmem:[%s15028_s27 + $0x1208] ss:$676 sps:$4 sm:$0xff]   ;;  %v14446_v42 = vld [vmem:[%s15028_s27 + $0x1754] ss:$676 sps:$4 sm:$0xff]  }
 0x7d1   : > { %10917 = vmatpush1.bf16.xpose.msra.mxu1 %v14382_v44  ;;  %10948 = vmatprep.mubr.bf16.mxu1 %v1353_v46  ;;  %v14441_v44 = vld [vmem:[%s15028_s27 + $0x1210] ss:$676 sps:$4 sm:$0xff]   ;;  %v14449_v46 = vld [vmem:[%s15028_s27 + $0x175c] ss:$676 sps:$4 sm:$0xff]  }
 0x7d2   : > { %10918 = vmatprep.subr.bf16.mxu1 %v14390_v53  ;;  %v14444_v53 = vld [vmem:[%s15028_s27 + $0x1750] ss:$676 sps:$4 sm:$0xff]  }
 0x7d7   : > { %10879 = vmatpush1.bf16.xpose.msra.mxu0 %v14385_v22  ;;  %v14452_v22 = vld [vmem:[%s15028_s27 + $0x1c9c] ss:$676 sps:$4 sm:$0xff]  }
 0x7d8   : > { %10880 = vmatprep.subr.bf16.mxu0 %v14393_v47  ;;  %v14447_v47 = vld [vmem:[%s15028_s27 + $0x1758] ss:$676 sps:$4 sm:$0xff]  }
 0x7d9   : > { %10919 = vmatpush1.bf16.xpose.msra.mxu1 %v14388_v31  ;;  %v14455_v31 = vld [vmem:[%s15028_s27 + $0x1ca4] ss:$676 sps:$4 sm:$0xff]  }
 0x7da   : > { %10920 = vmatprep.subr.bf16.mxu1 %v14396_v48  ;;  %v2473_v48 = vld [vmem:[%s15028_s27 + $0x21e0] sm:$0x33] }
 0x7db   : > { %v12838_v61 = vcombine.low %v2473_v48, %v2473_v48 }
 0x7df   : > { %10881 = vmatpush1.bf16.xpose.msra.mxu0 %v14391_v32  ;;  %v14450_v32 = vld [vmem:[%s15028_s27 + $0x1c98] ss:$676 sps:$4 sm:$0xff]  }
 0x7e0   : > { %10882 = vmatprep.subr.bf16.mxu0 %v14399_v49  ;;  %v2474_v49 = vld [vmem:[%s15028_s27 + $0x21e8] sm:$0x33] }
 0x7e1   : > { %10921 = vmatpush1.bf16.xpose.msra.mxu1 %v14394_v50  ;;  %v12839_v50 = vcombine.high %v2473_v48, %v2473_v48  ;;  %v12840_v4 = vcombine.low %v2474_v49, %v2474_v49 }
 0x7e2   : > { %10922 = vmatprep.subr.bf16.mxu1 %v14402_v51  ;;  %v14453_v51 = vld [vmem:[%s15028_s27 + $0x1ca0] ss:$676 sps:$4 sm:$0xff]  }
 0x7e7   : > { %10883 = vmatpush1.bf16.xpose.msra.mxu0 %v14397_v52  ;;  %v12841_v52 = vcombine.high %v2474_v49, %v2474_v49 }
 0x7e8   : > { %10884 = vmatprep.subr.bf16.mxu0 %v14405_v55  ;;  %v274_v55 = vld [vmem:[%s15022_s6 + $0x120] sm:$0xff] }
 0x7e9   : > { %10923 = vmatpush1.bf16.xpose.msra.mxu1 %v14400_v57 }
 0x7ea   : > { %10924 = vmatprep.subr.bf16.mxu1 %v14408_v58  ;;  %v936_v58 = vcombine.high %v274_v55, %v274_v55 }
 0x7ec   : > { %v16605_v7 = vrot.slane %v936_v58, %v15052_v16 }
 0x7ef   : > { %10885 = vmatpush1.bf16.xpose.msra.mxu0 %v14403_v1 }
 0x7f0   : > { %10886 = vmatprep.subr.bf16.mxu0 %v14411_v41 }
 0x7f1   : > { %10925 = vmatpush1.bf16.xpose.msra.mxu1 %v14406_v60 }
 0x7f2   : > { %10926 = vmatprep.subr.bf16.mxu1 %v14414_v43 }
 0x7f7   : > { %10887 = vmatpush1.bf16.xpose.msra.mxu0 %v14409_v45  ;;  %v16599_v45 = vrot.slane %v274_v55, %v15052_v16 }
 0x7f8   : > { %10888 = vmatprep.subr.bf16.mxu0 %v12835_v63 }
 0x7f9   : > { %v10590_v6 = vpop.f32.mrb[120].mxu0  ;;  %10927 = vmatpush1.bf16.xpose.msra.mxu1 %v14412_v0  ;;  %v14462_v0 = vld [vmem:[%s15028_s27 + $0x244] ss:$676 sps:$4 sm:$0xff]  }
 0x7fa   : > { %v10591_v14 = vadd.f32 %v10590_v6, %v16513_v25  ;;  %v10592_v54 = vpop.f32.mrb[121].mxu0  ;;  %10928 = vmatprep.subr.bf16.mxu1 %v12837_v2  ;;  %v14419_v25 = vld [vmem:[%s15028_s27 + $0x230] ss:$676 sps:$4 sm:$0xff]  }
 0x7fb   : > { %v10593_v9 = vpop.f32.mrb[122].mxu0  ;;  %v10630_v56 = vpop.f32.mrb[120].mxu1 }
 0x7fc   : > { %v16557_v11 = vadd.f32 %v10630_v56, %v10591_v14  ;;  %v10594_v12 = vpop.f32.mrb[123].mxu0  ;;  %v10632_v17 = vpop.f32.mrb[121].mxu1  ;;  %v14466_v14 = vld [vmem:[%s15028_s27 + $0x24c] ss:$676 sps:$4 sm:$0xff]   ;;  %v951_v9 = vcombine.high %v16599_v45, %v16599_v45  ;;  %v952_v56 = vcombine.high %v16605_v7, %v16605_v7 }
 0x7fd   : > { %v10633_v20 = vpop.f32.mrb[122].mxu1  ;;  %v14469_v17 = vld [vmem:[%s15028_s27 + $0x78c] ss:$676 sps:$4 sm:$0xff]  }
 0x7fe   : > { %v10634_v3 = vpop.f32.mrb[123].mxu1  ;;  %v1359_v12 = vpack.c.bf16 %v951_v9, %v951_v9  ;;  %v1361_v20 = vpack.c.bf16 %v952_v56, %v952_v56  ;;  %v14519_v9 = vld [vmem:[%s15028_s27 + $0xcec] ss:$676 sps:$4 sm:$0xff]   ;;  %v14514_v56 = vld [vmem:[%s15028_s27 + $0xce0] ss:$676 sps:$4 sm:$0xff]  }
 0x7ff   : > { %10889 = vmatpush1.bf16.xpose.msra.mxu0 %v12834_v10  ;;  %v1354_v10 = vpack.c.bf16 %v16555_v59, %v16555_v59  ;;  %v14467_v59 = vld [vmem:[%s15028_s27 + $0x788] ss:$676 sps:$4 sm:$0xff]   ;;  %v14470_v3 = vld [vmem:[%s15028_s27 + $0x790] ss:$676 sps:$4 sm:$0xff]  }
 0x800   : > { %10956 = vmatprep.subr.bf16.mxu0 %v14421_v13  ;;  %v1356_v13 = vpack.c.bf16 %v16561_v21, %v16561_v21  ;;  %v14475_v21 = vld [vmem:[%s15028_s27 + $0xcd4] ss:$676 sps:$4 sm:$0xff]  }
 0x801   : > { %10929 = vmatpush1.bf16.xpose.msra.mxu1 %v12836_v15  ;;  %v14464_v15 = vld [vmem:[%s15028_s27 + $0x248] ss:$676 sps:$4 sm:$0xff]  }
 0x802   : > { %10996 = vmatprep.subr.bf16.mxu1 %v14425_v28  ;;  %v14472_v28 = vld [vmem:[%s15028_s27 + $0x794] ss:$676 sps:$4 sm:$0xff]  }
 0x806   : > { %10909 = vmatmul.mubr.bf16.vlgmr.msra.gmra.mrb[136].mxu0 %v1350_v24  ;;  %v14481_v24 = vld [vmem:[%s15028_s27 + $0x121c] ss:$676 sps:$4 sm:$0xff]  }
 0x807   : > { %10957 = vmatpush1.bf16.xpose.msra.mxu0 %v14419_v25  ;;  %10988 = vmatprep.mubr.bf16.mxu0 %v1355_v26  ;;  %v14476_v25 = vld [vmem:[%s15028_s27 + $0xcd8] ss:$676 sps:$4 sm:$0xff]   ;;  %v14484_v26 = vld [vmem:[%s15028_s27 + $0x1224] ss:$676 sps:$4 sm:$0xff]  }
 0x808   : > { %10949 = vmatmul.mubr.bf16.vlgmr.msra.gmra.mrb[136].mxu1 %v1352_v27  ;;  %10958 = vmatprep.subr.bf16.mxu0 %v14428_v30  ;;  %v14479_v27 = vld [vmem:[%s15028_s27 + $0x1218] ss:$676 sps:$4 sm:$0xff]   ;;  %v14487_v30 = vld [vmem:[%s15028_s27 + $0x1764] ss:$676 sps:$4 sm:$0xff]  }
 0x809   : > { %10997 = vmatpush1.bf16.xpose.msra.mxu1 %v14423_v29  ;;  %11028 = vmatprep.mubr.bf16.mxu1 %v1357_v33  ;;  %v14482_v29 = vld [vmem:[%s15028_s27 + $0x1220] ss:$676 sps:$4 sm:$0xff]   ;;  %v14490_v33 = vld [vmem:[%s15028_s27 + $0x176c] ss:$676 sps:$4 sm:$0xff]  }
 0x80a   : > { %10998 = vmatprep.subr.bf16.mxu1 %v14431_v40  ;;  %v14485_v40 = vld [vmem:[%s15028_s27 + $0x1760] ss:$676 sps:$4 sm:$0xff]  }
 0x80f   : > { %10959 = vmatpush1.bf16.xpose.msra.mxu0 %v14426_v8  ;;  %v14493_v8 = vld [vmem:[%s15028_s27 + $0x1cac] ss:$676 sps:$4 sm:$0xff]  }
 0x810   : > { %10960 = vmatprep.subr.bf16.mxu0 %v14434_v34  ;;  %v14488_v34 = vld [vmem:[%s15028_s27 + $0x1768] ss:$676 sps:$4 sm:$0xff]  }
 0x811   : > { %10999 = vmatpush1.bf16.xpose.msra.mxu1 %v14429_v18  ;;  %v14496_v18 = vld [vmem:[%s15028_s27 + $0x1cb4] ss:$676 sps:$4 sm:$0xff]  }
 0x812   : > { %11000 = vmatprep.subr.bf16.mxu1 %v14437_v35  ;;  %v2475_v35 = vld [vmem:[%s15028_s27 + $0x21f0] sm:$0x33] }
 0x813   : > { %v12842_v48 = vcombine.low %v2475_v35, %v2475_v35 }
 0x817   : > { %10961 = vmatpush1.bf16.xpose.msra.mxu0 %v14432_v19  ;;  %v14491_v19 = vld [vmem:[%s15028_s27 + $0x1ca8] ss:$676 sps:$4 sm:$0xff]  }
 0x818   : > { %10962 = vmatprep.subr.bf16.mxu0 %v14440_v36  ;;  %v2476_v36 = vld [vmem:[%s15028_s27 + $0x21f8] sm:$0x33] }
 0x819   : > { %11001 = vmatpush1.bf16.xpose.msra.mxu1 %v14435_v37  ;;  %v12843_v37 = vcombine.high %v2475_v35, %v2475_v35  ;;  %v12844_v55 = vcombine.low %v2476_v36, %v2476_v36 }
 0x81a   : > { %11002 = vmatprep.subr.bf16.mxu1 %v14443_v38  ;;  %v14494_v38 = vld [vmem:[%s15028_s27 + $0x1cb0] ss:$676 sps:$4 sm:$0xff]  }
 0x81f   : > { %10963 = vmatpush1.bf16.xpose.msra.mxu0 %v14438_v39  ;;  %v12845_v39 = vcombine.high %v2476_v36, %v2476_v36 }
 0x820   : > { %10964 = vmatprep.subr.bf16.mxu0 %v14446_v42  ;;  %v275_v42 = vld [vmem:[%s15022_s6 + $0x128] sm:$0xff] }
 0x821   : > { %11003 = vmatpush1.bf16.xpose.msra.mxu1 %v14441_v44 }
 0x822   : > { %11004 = vmatprep.subr.bf16.mxu1 %v14449_v46  ;;  %v953_v46 = vcombine.high %v275_v42, %v275_v42 }
 0x824   : > { %v16649_v58 = vrot.slane %v953_v46, %v15052_v16 }
 0x827   : > { %10965 = vmatpush1.bf16.xpose.msra.mxu0 %v14444_v53 }
 0x828   : > { %10966 = vmatprep.subr.bf16.mxu0 %v14452_v22 }
 0x829   : > { %11005 = vmatpush1.bf16.xpose.msra.mxu1 %v14447_v47 }
 0x82a   : > { %11006 = vmatprep.subr.bf16.mxu1 %v14455_v31 }
 0x82f   : > { %10967 = vmatpush1.bf16.xpose.msra.mxu0 %v14450_v32  ;;  %v16643_v32 = vrot.slane %v275_v42, %v15052_v16 }
 0x830   : > { %10968 = vmatprep.subr.bf16.mxu0 %v12839_v50 }
 0x831   : > { %v10670_v57 = vpop.f32.mrb[124].mxu0  ;;  %11007 = vmatpush1.bf16.xpose.msra.mxu1 %v14453_v51  ;;  %v14503_v51 = vld [vmem:[%s15028_s27 + $0x254] ss:$676 sps:$4 sm:$0xff]  }
 0x832   : > { %v10671_v1 = vadd.f32 %v10670_v57, %v16557_v11  ;;  %v10672_v41 = vpop.f32.mrb[125].mxu0  ;;  %11008 = vmatprep.subr.bf16.mxu1 %v12841_v52  ;;  %v14460_v11 = vld [vmem:[%s15028_s27 + $0x240] ss:$676 sps:$4 sm:$0xff]  }
 0x833   : > { %v10673_v60 = vpop.f32.mrb[126].mxu0  ;;  %v10710_v43 = vpop.f32.mrb[124].mxu1 }
 0x834   : > { %v16601_v62 = vadd.f32 %v10710_v43, %v10671_v1  ;;  %v10674_v63 = vpop.f32.mrb[127].mxu0  ;;  %v10712_v2 = vpop.f32.mrb[125].mxu1  ;;  %v14507_v1 = vld [vmem:[%s15028_s27 + $0x25c] ss:$676 sps:$4 sm:$0xff]   ;;  %v968_v60 = vcombine.high %v16643_v32, %v16643_v32  ;;  %v969_v43 = vcombine.high %v16649_v58, %v16649_v58 }
 0x835   : > { %v10713_v6 = vpop.f32.mrb[126].mxu1  ;;  %v14510_v2 = vld [vmem:[%s15028_s27 + $0x79c] ss:$676 sps:$4 sm:$0xff]  }
 0x836   : > { %v10714_v54 = vpop.f32.mrb[127].mxu1  ;;  %v1363_v63 = vpack.c.bf16 %v968_v60, %v968_v60  ;;  %v1365_v6 = vpack.c.bf16 %v969_v43, %v969_v43  ;;  %v14560_v60 = vld [vmem:[%s15028_s27 + $0xcfc] ss:$676 sps:$4 sm:$0xff]   ;;  %v14555_v43 = vld [vmem:[%s15028_s27 + $0xcf0] ss:$676 sps:$4 sm:$0xff]  }
 0x837   : > { %10969 = vmatpush1.bf16.xpose.msra.mxu0 %v12838_v61  ;;  %v1358_v61 = vpack.c.bf16 %v16599_v45, %v16599_v45  ;;  %v14508_v45 = vld [vmem:[%s15028_s27 + $0x798] ss:$676 sps:$4 sm:$0xff]   ;;  %v14511_v54 = vld [vmem:[%s15028_s27 + $0x7a0] ss:$676 sps:$4 sm:$0xff]  }
 0x838   : > { %11036 = vmatprep.subr.bf16.mxu0 %v14462_v0  ;;  %v1360_v0 = vpack.c.bf16 %v16605_v7, %v16605_v7  ;;  %v14516_v7 = vld [vmem:[%s15028_s27 + $0xce4] ss:$676 sps:$4 sm:$0xff]  }
 0x839   : > { %11009 = vmatpush1.bf16.xpose.msra.mxu1 %v12840_v4  ;;  %v14505_v4 = vld [vmem:[%s15028_s27 + $0x258] ss:$676 sps:$4 sm:$0xff]  }
 0x83a   : > { %11076 = vmatprep.subr.bf16.mxu1 %v14466_v14  ;;  %v14513_v14 = vld [vmem:[%s15028_s27 + $0x7a4] ss:$676 sps:$4 sm:$0xff]  }
 0x83e   : > { %10989 = vmatmul.mubr.bf16.vlgmr.msra.gmra.mrb[140].mxu0 %v1354_v10  ;;  %v14522_v10 = vld [vmem:[%s15028_s27 + $0x122c] ss:$676 sps:$4 sm:$0xff]  }
 0x83f   : > { %11037 = vmatpush1.bf16.xpose.msra.mxu0 %v14460_v11  ;;  %11068 = vmatprep.mubr.bf16.mxu0 %v1359_v12  ;;  %v14517_v11 = vld [vmem:[%s15028_s27 + $0xce8] ss:$676 sps:$4 sm:$0xff]   ;;  %v14525_v12 = vld [vmem:[%s15028_s27 + $0x1234] ss:$676 sps:$4 sm:$0xff]  }
 0x840   : > { %11029 = vmatmul.mubr.bf16.vlgmr.msra.gmra.mrb[140].mxu1 %v1356_v13  ;;  %11038 = vmatprep.subr.bf16.mxu0 %v14469_v17  ;;  %v14520_v13 = vld [vmem:[%s15028_s27 + $0x1228] ss:$676 sps:$4 sm:$0xff]   ;;  %v14528_v17 = vld [vmem:[%s15028_s27 + $0x1774] ss:$676 sps:$4 sm:$0xff]  }
 0x841   : > { %11077 = vmatpush1.bf16.xpose.msra.mxu1 %v14464_v15  ;;  %11108 = vmatprep.mubr.bf16.mxu1 %v1361_v20  ;;  %v14523_v15 = vld [vmem:[%s15028_s27 + $0x1230] ss:$676 sps:$4 sm:$0xff]   ;;  %v14531_v20 = vld [vmem:[%s15028_s27 + $0x177c] ss:$676 sps:$4 sm:$0xff]  }
 0x842   : > { %11078 = vmatprep.subr.bf16.mxu1 %v14472_v28  ;;  %v14526_v28 = vld [vmem:[%s15028_s27 + $0x1770] ss:$676 sps:$4 sm:$0xff]  }
 0x847   : > { %11039 = vmatpush1.bf16.xpose.msra.mxu0 %v14467_v59  ;;  %v14534_v59 = vld [vmem:[%s15028_s27 + $0x1cbc] ss:$676 sps:$4 sm:$0xff]  }
 0x848   : > { %11040 = vmatprep.subr.bf16.mxu0 %v14475_v21  ;;  %v14529_v21 = vld [vmem:[%s15028_s27 + $0x1778] ss:$676 sps:$4 sm:$0xff]  }
 0x849   : > { %11079 = vmatpush1.bf16.xpose.msra.mxu1 %v14470_v3  ;;  %v14537_v3 = vld [vmem:[%s15028_s27 + $0x1cc4] ss:$676 sps:$4 sm:$0xff]  }
 0x84a   : > { %11080 = vmatprep.subr.bf16.mxu1 %v14478_v23  ;;  %v2477_v23 = vld [vmem:[%s15028_s27 + $0x2200] sm:$0x33] }
 0x84b   : > { %v12846_v35 = vcombine.low %v2477_v23, %v2477_v23 }
 0x84f   : > { %11041 = vmatpush1.bf16.xpose.msra.mxu0 %v14473_v5  ;;  %v14532_v5 = vld [vmem:[%s15028_s27 + $0x1cb8] ss:$676 sps:$4 sm:$0xff]  }
 0x850   : > { %11042 = vmatprep.subr.bf16.mxu0 %v14481_v24  ;;  %v2478_v24 = vld [vmem:[%s15028_s27 + $0x2208] sm:$0x33] }
 0x851   : > { %11081 = vmatpush1.bf16.xpose.msra.mxu1 %v14476_v25  ;;  %v12847_v25 = vcombine.high %v2477_v23, %v2477_v23  ;;  %v12848_v42 = vcombine.low %v2478_v24, %v2478_v24 }
 0x852   : > { %11082 = vmatprep.subr.bf16.mxu1 %v14484_v26  ;;  %v14535_v26 = vld [vmem:[%s15028_s27 + $0x1cc0] ss:$676 sps:$4 sm:$0xff]  }
 0x857   : > { %11043 = vmatpush1.bf16.xpose.msra.mxu0 %v14479_v27  ;;  %v12849_v27 = vcombine.high %v2478_v24, %v2478_v24 }
 0x858   : > { %11044 = vmatprep.subr.bf16.mxu0 %v14487_v30  ;;  %v276_v30 = vld [vmem:[%s15022_s6 + $0x130] sm:$0xff] }
 0x859   : > { %11083 = vmatpush1.bf16.xpose.msra.mxu1 %v14482_v29 }
 0x85a   : > { %11084 = vmatprep.subr.bf16.mxu1 %v14490_v33  ;;  %v970_v33 = vcombine.high %v276_v30, %v276_v30 }
 0x85c   : > { %v16693_v46 = vrot.slane %v970_v33, %v15052_v16 }
 0x85f   : > { %11045 = vmatpush1.bf16.xpose.msra.mxu0 %v14485_v40 }
 0x860   : > { %11046 = vmatprep.subr.bf16.mxu0 %v14493_v8 }
 0x861   : > { %11085 = vmatpush1.bf16.xpose.msra.mxu1 %v14488_v34 }
 0x862   : > { %11086 = vmatprep.subr.bf16.mxu1 %v14496_v18 }
 0x867   : > { %11047 = vmatpush1.bf16.xpose.msra.mxu0 %v14491_v19  ;;  %v16687_v19 = vrot.slane %v276_v30, %v15052_v16 }
 0x868   : > { %11048 = vmatprep.subr.bf16.mxu0 %v12843_v37 }
 0x869   : > { %v10750_v44 = vpop.f32.mrb[128].mxu0  ;;  %11087 = vmatpush1.bf16.xpose.msra.mxu1 %v14494_v38  ;;  %v14544_v38 = vld [vmem:[%s15028_s27 + $0x264] ss:$676 sps:$4 sm:$0xff]  }
 0x86a   : > { %v10751_v53 = vadd.f32 %v10750_v44, %v16601_v62  ;;  %v10752_v22 = vpop.f32.mrb[129].mxu0  ;;  %11088 = vmatprep.subr.bf16.mxu1 %v12845_v39  ;;  %v14501_v62 = vld [vmem:[%s15028_s27 + $0x250] ss:$676 sps:$4 sm:$0xff]  }
 0x86b   : > { %v10753_v47 = vpop.f32.mrb[130].mxu0  ;;  %v10790_v31 = vpop.f32.mrb[128].mxu1 }
 0x86c   : > { %v16645_v49 = vadd.f32 %v10790_v31, %v10751_v53  ;;  %v10754_v50 = vpop.f32.mrb[131].mxu0  ;;  %v10792_v52 = vpop.f32.mrb[129].mxu1  ;;  %v14548_v53 = vld [vmem:[%s15028_s27 + $0x26c] ss:$676 sps:$4 sm:$0xff]   ;;  %v985_v47 = vcombine.high %v16687_v19, %v16687_v19  ;;  %v986_v31 = vcombine.high %v16693_v46, %v16693_v46 }
 0x86d   : > { %v10793_v57 = vpop.f32.mrb[130].mxu1  ;;  %v14551_v52 = vld [vmem:[%s15028_s27 + $0x7ac] ss:$676 sps:$4 sm:$0xff]  }
 0x86e   : > { %v10794_v41 = vpop.f32.mrb[131].mxu1  ;;  %v1367_v50 = vpack.c.bf16 %v985_v47, %v985_v47  ;;  %v1369_v57 = vpack.c.bf16 %v986_v31, %v986_v31  ;;  %v14601_v47 = vld [vmem:[%s15028_s27 + $0xd0c] ss:$676 sps:$4 sm:$0xff]   ;;  %v14596_v31 = vld [vmem:[%s15028_s27 + $0xd00] ss:$676 sps:$4 sm:$0xff]  }
 0x86f   : > { %11049 = vmatpush1.bf16.xpose.msra.mxu0 %v12842_v48  ;;  %v1362_v48 = vpack.c.bf16 %v16643_v32, %v16643_v32  ;;  %v14549_v32 = vld [vmem:[%s15028_s27 + $0x7a8] ss:$676 sps:$4 sm:$0xff]   ;;  %v14552_v41 = vld [vmem:[%s15028_s27 + $0x7b0] ss:$676 sps:$4 sm:$0xff]  }
 0x870   : > { %11116 = vmatprep.subr.bf16.mxu0 %v14503_v51  ;;  %v1364_v51 = vpack.c.bf16 %v16649_v58, %v16649_v58  ;;  %v14557_v58 = vld [vmem:[%s15028_s27 + $0xcf4] ss:$676 sps:$4 sm:$0xff]  }
 0x871   : > { %11089 = vmatpush1.bf16.xpose.msra.mxu1 %v12844_v55  ;;  %v14546_v55 = vld [vmem:[%s15028_s27 + $0x268] ss:$676 sps:$4 sm:$0xff]  }
 0x872   : > { %11156 = vmatprep.subr.bf16.mxu1 %v14507_v1  ;;  %v14554_v1 = vld [vmem:[%s15028_s27 + $0x7b4] ss:$676 sps:$4 sm:$0xff]  }
 0x876   : > { %11069 = vmatmul.mubr.bf16.vlgmr.msra.gmra.mrb[144].mxu0 %v1358_v61  ;;  %v14563_v61 = vld [vmem:[%s15028_s27 + $0x123c] ss:$676 sps:$4 sm:$0xff]  }
 0x877   : > { %11117 = vmatpush1.bf16.xpose.msra.mxu0 %v14501_v62  ;;  %11148 = vmatprep.mubr.bf16.mxu0 %v1363_v63  ;;  %v14558_v62 = vld [vmem:[%s15028_s27 + $0xcf8] ss:$676 sps:$4 sm:$0xff]   ;;  %v14566_v63 = vld [vmem:[%s15028_s27 + $0x1244] ss:$676 sps:$4 sm:$0xff]  }
 0x878   : > { %11109 = vmatmul.mubr.bf16.vlgmr.msra.gmra.mrb[144].mxu1 %v1360_v0  ;;  %11118 = vmatprep.subr.bf16.mxu0 %v14510_v2  ;;  %v14561_v0 = vld [vmem:[%s15028_s27 + $0x1238] ss:$676 sps:$4 sm:$0xff]   ;;  %v14569_v2 = vld [vmem:[%s15028_s27 + $0x1784] ss:$676 sps:$4 sm:$0xff]  }
 0x879   : > { %11157 = vmatpush1.bf16.xpose.msra.mxu1 %v14505_v4  ;;  %11188 = vmatprep.mubr.bf16.mxu1 %v1365_v6  ;;  %v14564_v4 = vld [vmem:[%s15028_s27 + $0x1240] ss:$676 sps:$4 sm:$0xff]   ;;  %v14572_v6 = vld [vmem:[%s15028_s27 + $0x178c] ss:$676 sps:$4 sm:$0xff]  }
 0x87a   : > { %11158 = vmatprep.subr.bf16.mxu1 %v14513_v14  ;;  %v14567_v14 = vld [vmem:[%s15028_s27 + $0x1780] ss:$676 sps:$4 sm:$0xff]  }
 0x87f   : > { %11119 = vmatpush1.bf16.xpose.msra.mxu0 %v14508_v45  ;;  %v14575_v45 = vld [vmem:[%s15028_s27 + $0x1ccc] ss:$676 sps:$4 sm:$0xff]  }
 0x880   : > { %11120 = vmatprep.subr.bf16.mxu0 %v14516_v7  ;;  %v14570_v7 = vld [vmem:[%s15028_s27 + $0x1788] ss:$676 sps:$4 sm:$0xff]  }
 0x881   : > { %11159 = vmatpush1.bf16.xpose.msra.mxu1 %v14511_v54  ;;  %v14578_v54 = vld [vmem:[%s15028_s27 + $0x1cd4] ss:$676 sps:$4 sm:$0xff]  }
 0x882   : > { %11160 = vmatprep.subr.bf16.mxu1 %v14519_v9  ;;  %v2479_v9 = vld [vmem:[%s15028_s27 + $0x2210] sm:$0x33] }
 0x883   : > { %v12850_v23 = vcombine.low %v2479_v9, %v2479_v9 }
 0x887   : > { %11121 = vmatpush1.bf16.xpose.msra.mxu0 %v14514_v56  ;;  %v14573_v56 = vld [vmem:[%s15028_s27 + $0x1cc8] ss:$676 sps:$4 sm:$0xff]  }
 0x888   : > { %11122 = vmatprep.subr.bf16.mxu0 %v14522_v10  ;;  %v2480_v10 = vld [vmem:[%s15028_s27 + $0x2218] sm:$0x33] }
 0x889   : > { %11161 = vmatpush1.bf16.xpose.msra.mxu1 %v14517_v11  ;;  %v12851_v11 = vcombine.high %v2479_v9, %v2479_v9  ;;  %v12852_v30 = vcombine.low %v2480_v10, %v2480_v10 }
 0x88a   : > { %11162 = vmatprep.subr.bf16.mxu1 %v14525_v12  ;;  %v14576_v12 = vld [vmem:[%s15028_s27 + $0x1cd0] ss:$676 sps:$4 sm:$0xff]  }
 0x88f   : > { %11123 = vmatpush1.bf16.xpose.msra.mxu0 %v14520_v13  ;;  %v12853_v13 = vcombine.high %v2480_v10, %v2480_v10 }
 0x890   : > { %11124 = vmatprep.subr.bf16.mxu0 %v14528_v17  ;;  %v277_v17 = vld [vmem:[%s15022_s6 + $0x138] sm:$0xff] }
 0x891   : > { %11163 = vmatpush1.bf16.xpose.msra.mxu1 %v14523_v15 }
 0x892   : > { %11164 = vmatprep.subr.bf16.mxu1 %v14531_v20  ;;  %v987_v20 = vcombine.high %v277_v17, %v277_v17 }
 0x894   : > { %v16737_v33 = vrot.slane %v987_v20, %v15052_v16 }
 0x897   : > { %11125 = vmatpush1.bf16.xpose.msra.mxu0 %v14526_v28 }
 0x898   : > { %11126 = vmatprep.subr.bf16.mxu0 %v14534_v59 }
 0x899   : > { %11165 = vmatpush1.bf16.xpose.msra.mxu1 %v14529_v21 }
 0x89a   : > { %11166 = vmatprep.subr.bf16.mxu1 %v14537_v3 }
 0x89f   : > { %11127 = vmatpush1.bf16.xpose.msra.mxu0 %v14532_v5  ;;  %v16731_v5 = vrot.slane %v277_v17, %v15052_v16 }
 0x8a0   : > { %11128 = vmatprep.subr.bf16.mxu0 %v12847_v25 }
 0x8a1   : > { %v10830_v29 = vpop.f32.mrb[132].mxu0  ;;  %11167 = vmatpush1.bf16.xpose.msra.mxu1 %v14535_v26  ;;  %v14585_v26 = vld [vmem:[%s15028_s27 + $0x274] ss:$676 sps:$4 sm:$0xff]  }
 0x8a2   : > { %v10831_v40 = vadd.f32 %v10830_v29, %v16645_v49  ;;  %v10832_v8 = vpop.f32.mrb[133].mxu0  ;;  %11168 = vmatprep.subr.bf16.mxu1 %v12849_v27  ;;  %v14542_v49 = vld [vmem:[%s15028_s27 + $0x260] ss:$676 sps:$4 sm:$0xff]  }
 0x8a3   : > { %v10833_v34 = vpop.f32.mrb[134].mxu0  ;;  %v10870_v18 = vpop.f32.mrb[132].mxu1 }
 0x8a4   : > { %v16689_v36 = vadd.f32 %v10870_v18, %v10831_v40  ;;  %v10834_v37 = vpop.f32.mrb[135].mxu0  ;;  %v10872_v39 = vpop.f32.mrb[133].mxu1  ;;  %v14589_v40 = vld [vmem:[%s15028_s27 + $0x27c] ss:$676 sps:$4 sm:$0xff]   ;;  %v1002_v34 = vcombine.high %v16731_v5, %v16731_v5  ;;  %v1003_v18 = vcombine.high %v16737_v33, %v16737_v33 }
 0x8a5   : > { %v10873_v44 = vpop.f32.mrb[134].mxu1  ;;  %v14592_v39 = vld [vmem:[%s15028_s27 + $0x7bc] ss:$676 sps:$4 sm:$0xff]  }
 0x8a6   : > { %v10874_v22 = vpop.f32.mrb[135].mxu1  ;;  %v1371_v37 = vpack.c.bf16 %v1002_v34, %v1002_v34  ;;  %v1373_v44 = vpack.c.bf16 %v1003_v18, %v1003_v18  ;;  %v14642_v34 = vld [vmem:[%s15028_s27 + $0xd1c] ss:$676 sps:$4 sm:$0xff]   ;;  %v14637_v18 = vld [vmem:[%s15028_s27 + $0xd10] ss:$676 sps:$4 sm:$0xff]  }
 0x8a7   : > { %11129 = vmatpush1.bf16.xpose.msra.mxu0 %v12846_v35  ;;  %v1366_v35 = vpack.c.bf16 %v16687_v19, %v16687_v19  ;;  %v14590_v19 = vld [vmem:[%s15028_s27 + $0x7b8] ss:$676 sps:$4 sm:$0xff]   ;;  %v14593_v22 = vld [vmem:[%s15028_s27 + $0x7c0] ss:$676 sps:$4 sm:$0xff]  }
 0x8a8   : > { %11196 = vmatprep.subr.bf16.mxu0 %v14544_v38  ;;  %v1368_v38 = vpack.c.bf16 %v16693_v46, %v16693_v46  ;;  %v14598_v46 = vld [vmem:[%s15028_s27 + $0xd04] ss:$676 sps:$4 sm:$0xff]  }
 0x8a9   : > { %11169 = vmatpush1.bf16.xpose.msra.mxu1 %v12848_v42  ;;  %v14587_v42 = vld [vmem:[%s15028_s27 + $0x278] ss:$676 sps:$4 sm:$0xff]  }
 0x8aa   : > { %11236 = vmatprep.subr.bf16.mxu1 %v14548_v53  ;;  %v14595_v53 = vld [vmem:[%s15028_s27 + $0x7c4] ss:$676 sps:$4 sm:$0xff]  }
 0x8ae   : > { %11149 = vmatmul.mubr.bf16.vlgmr.msra.gmra.mrb[148].mxu0 %v1362_v48  ;;  %v14604_v48 = vld [vmem:[%s15028_s27 + $0x124c] ss:$676 sps:$4 sm:$0xff]  }
 0x8af   : > { %11197 = vmatpush1.bf16.xpose.msra.mxu0 %v14542_v49  ;;  %11228 = vmatprep.mubr.bf16.mxu0 %v1367_v50  ;;  %v14599_v49 = vld [vmem:[%s15028_s27 + $0xd08] ss:$676 sps:$4 sm:$0xff]   ;;  %v14607_v50 = vld [vmem:[%s15028_s27 + $0x1254] ss:$676 sps:$4 sm:$0xff]  }
 0x8b0   : > { %11189 = vmatmul.mubr.bf16.vlgmr.msra.gmra.mrb[148].mxu1 %v1364_v51  ;;  %11198 = vmatprep.subr.bf16.mxu0 %v14551_v52  ;;  %v14602_v51 = vld [vmem:[%s15028_s27 + $0x1248] ss:$676 sps:$4 sm:$0xff]   ;;  %v14610_v52 = vld [vmem:[%s15028_s27 + $0x1794] ss:$676 sps:$4 sm:$0xff]  }
 0x8b1   : > { %11237 = vmatpush1.bf16.xpose.msra.mxu1 %v14546_v55  ;;  %11268 = vmatprep.mubr.bf16.mxu1 %v1369_v57  ;;  %v14605_v55 = vld [vmem:[%s15028_s27 + $0x1250] ss:$676 sps:$4 sm:$0xff]   ;;  %v14613_v57 = vld [vmem:[%s15028_s27 + $0x179c] ss:$676 sps:$4 sm:$0xff]  }
 0x8b2   : > { %11238 = vmatprep.subr.bf16.mxu1 %v14554_v1  ;;  %v14608_v1 = vld [vmem:[%s15028_s27 + $0x1790] ss:$676 sps:$4 sm:$0xff]  }
 0x8b7   : > { %11199 = vmatpush1.bf16.xpose.msra.mxu0 %v14549_v32  ;;  %v14616_v32 = vld [vmem:[%s15028_s27 + $0x1cdc] ss:$676 sps:$4 sm:$0xff]  }
 0x8b8   : > { %11200 = vmatprep.subr.bf16.mxu0 %v14557_v58  ;;  %v14611_v58 = vld [vmem:[%s15028_s27 + $0x1798] ss:$676 sps:$4 sm:$0xff]  }
 0x8b9   : > { %11239 = vmatpush1.bf16.xpose.msra.mxu1 %v14552_v41  ;;  %v14619_v41 = vld [vmem:[%s15028_s27 + $0x1ce4] ss:$676 sps:$4 sm:$0xff]  }
 0x8ba   : > { %11240 = vmatprep.subr.bf16.mxu1 %v14560_v60  ;;  %v2481_v60 = vld [vmem:[%s15028_s27 + $0x2220] sm:$0x33] }
 0x8bb   : > { %v12854_v9 = vcombine.low %v2481_v60, %v2481_v60 }
 0x8bf   : > { %11201 = vmatpush1.bf16.xpose.msra.mxu0 %v14555_v43  ;;  %v14614_v43 = vld [vmem:[%s15028_s27 + $0x1cd8] ss:$676 sps:$4 sm:$0xff]  }
 0x8c0   : > { %11202 = vmatprep.subr.bf16.mxu0 %v14563_v61  ;;  %v2482_v61 = vld [vmem:[%s15028_s27 + $0x2228] sm:$0x33] }
 0x8c1   : > { %11241 = vmatpush1.bf16.xpose.msra.mxu1 %v14558_v62  ;;  %v12855_v62 = vcombine.high %v2481_v60, %v2481_v60  ;;  %v12856_v17 = vcombine.low %v2482_v61, %v2482_v61 }
 0x8c2   : > { %11242 = vmatprep.subr.bf16.mxu1 %v14566_v63  ;;  %v14617_v63 = vld [vmem:[%s15028_s27 + $0x1ce0] ss:$676 sps:$4 sm:$0xff]  }
 0x8c7   : > { %11203 = vmatpush1.bf16.xpose.msra.mxu0 %v14561_v0  ;;  %v12857_v0 = vcombine.high %v2482_v61, %v2482_v61 }
 0x8c8   : > { %11204 = vmatprep.subr.bf16.mxu0 %v14569_v2  ;;  %v278_v2 = vld [vmem:[%s15022_s6 + $0x140] sm:$0xff] }
 0x8c9   : > { %11243 = vmatpush1.bf16.xpose.msra.mxu1 %v14564_v4 }
 0x8ca   : > { %11244 = vmatprep.subr.bf16.mxu1 %v14572_v6  ;;  %v1004_v6 = vcombine.high %v278_v2, %v278_v2 }
 0x8cc   : > { %v16781_v20 = vrot.slane %v1004_v6, %v15052_v16 }
 0x8cf   : > { %11205 = vmatpush1.bf16.xpose.msra.mxu0 %v14567_v14 }
 0x8d0   : > { %11206 = vmatprep.subr.bf16.mxu0 %v14575_v45 }
 0x8d1   : > { %11245 = vmatpush1.bf16.xpose.msra.mxu1 %v14570_v7 }
 0x8d2   : > { %11246 = vmatprep.subr.bf16.mxu1 %v14578_v54 }
 0x8d7   : > { %11207 = vmatpush1.bf16.xpose.msra.mxu0 %v14573_v56  ;;  %v16775_v56 = vrot.slane %v278_v2, %v15052_v16 }
 0x8d8   : > { %11208 = vmatprep.subr.bf16.mxu0 %v12851_v11 }
 0x8d9   : > { %v10910_v15 = vpop.f32.mrb[136].mxu0  ;;  %11247 = vmatpush1.bf16.xpose.msra.mxu1 %v14576_v12  ;;  %v14626_v12 = vld [vmem:[%s15028_s27 + $0x284] ss:$676 sps:$4 sm:$0xff]  }
 0x8da   : > { %v10911_v28 = vadd.f32 %v10910_v15, %v16689_v36  ;;  %v10912_v59 = vpop.f32.mrb[137].mxu0  ;;  %11248 = vmatprep.subr.bf16.mxu1 %v12853_v13  ;;  %v14583_v36 = vld [vmem:[%s15028_s27 + $0x270] ss:$676 sps:$4 sm:$0xff]  }
 0x8db   : > { %v10913_v21 = vpop.f32.mrb[138].mxu0  ;;  %v10950_v3 = vpop.f32.mrb[136].mxu1 }
 0x8dc   : > { %v16733_v24 = vadd.f32 %v10950_v3, %v10911_v28  ;;  %v10914_v25 = vpop.f32.mrb[139].mxu0  ;;  %v10952_v27 = vpop.f32.mrb[137].mxu1  ;;  %v14630_v28 = vld [vmem:[%s15028_s27 + $0x28c] ss:$676 sps:$4 sm:$0xff]   ;;  %v1019_v21 = vcombine.high %v16775_v56, %v16775_v56  ;;  %v1020_v3 = vcombine.high %v16781_v20, %v16781_v20 }
 0x8dd   : > { %v10953_v29 = vpop.f32.mrb[138].mxu1  ;;  %v14633_v27 = vld [vmem:[%s15028_s27 + $0x7cc] ss:$676 sps:$4 sm:$0xff]  }
 0x8de   : > { %v10954_v8 = vpop.f32.mrb[139].mxu1  ;;  %v1375_v25 = vpack.c.bf16 %v1019_v21, %v1019_v21  ;;  %v1377_v29 = vpack.c.bf16 %v1020_v3, %v1020_v3  ;;  %v14678_v21 = vld [vmem:[%s15028_s27 + $0xd20] ss:$676 sps:$4 sm:$0xff]   ;;  %v14686_v3 = vld [vmem:[%s15028_s27 + $0x126c] ss:$676 sps:$4 sm:$0xff]  }
 0x8df   : > { %11209 = vmatpush1.bf16.xpose.msra.mxu0 %v12850_v23  ;;  %v1370_v23 = vpack.c.bf16 %v16731_v5, %v16731_v5  ;;  %v14631_v5 = vld [vmem:[%s15028_s27 + $0x7c8] ss:$676 sps:$4 sm:$0xff]   ;;  %v14634_v8 = vld [vmem:[%s15028_s27 + $0x7d0] ss:$676 sps:$4 sm:$0xff]  }
 0x8e0   : > { %11276 = vmatprep.subr.bf16.mxu0 %v14585_v26  ;;  %v1372_v26 = vpack.c.bf16 %v16737_v33, %v16737_v33  ;;  %v14639_v33 = vld [vmem:[%s15028_s27 + $0xd14] ss:$676 sps:$4 sm:$0xff]  }
 0x8e1   : > { %11249 = vmatpush1.bf16.xpose.msra.mxu1 %v12852_v30  ;;  %v14628_v30 = vld [vmem:[%s15028_s27 + $0x288] ss:$676 sps:$4 sm:$0xff]  }
 0x8e2   : > { %11316 = vmatprep.subr.bf16.mxu1 %v14589_v40  ;;  %v14636_v40 = vld [vmem:[%s15028_s27 + $0x7d4] ss:$676 sps:$4 sm:$0xff]  }
 0x8e6   : > { %11229 = vmatmul.mubr.bf16.vlgmr.msra.gmra.mrb[152].mxu0 %v1366_v35  ;;  %v14645_v35 = vld [vmem:[%s15028_s27 + $0x125c] ss:$676 sps:$4 sm:$0xff]  }
 0x8e7   : > { %11277 = vmatpush1.bf16.xpose.msra.mxu0 %v14583_v36  ;;  %11308 = vmatprep.mubr.bf16.mxu0 %v1371_v37  ;;  %v14640_v36 = vld [vmem:[%s15028_s27 + $0xd18] ss:$676 sps:$4 sm:$0xff]   ;;  %v14648_v37 = vld [vmem:[%s15028_s27 + $0x1264] ss:$676 sps:$4 sm:$0xff]  }
 0x8e8   : > { %11269 = vmatmul.mubr.bf16.vlgmr.msra.gmra.mrb[152].mxu1 %v1368_v38  ;;  %11278 = vmatprep.subr.bf16.mxu0 %v14592_v39  ;;  %v14643_v38 = vld [vmem:[%s15028_s27 + $0x1258] ss:$676 sps:$4 sm:$0xff]   ;;  %v14651_v39 = vld [vmem:[%s15028_s27 + $0x17a4] ss:$676 sps:$4 sm:$0xff]  }
 0x8e9   : > { %11317 = vmatpush1.bf16.xpose.msra.mxu1 %v14587_v42  ;;  %11348 = vmatprep.mubr.bf16.mxu1 %v1373_v44  ;;  %v14646_v42 = vld [vmem:[%s15028_s27 + $0x1260] ss:$676 sps:$4 sm:$0xff]   ;;  %v14654_v44 = vld [vmem:[%s15028_s27 + $0x17ac] ss:$676 sps:$4 sm:$0xff]  }
 0x8ea   : > { %11318 = vmatprep.subr.bf16.mxu1 %v14595_v53  ;;  %v14649_v53 = vld [vmem:[%s15028_s27 + $0x17a0] ss:$676 sps:$4 sm:$0xff]  }
 0x8ef   : > { %11279 = vmatpush1.bf16.xpose.msra.mxu0 %v14590_v19  ;;  %v14657_v19 = vld [vmem:[%s15028_s27 + $0x1cec] ss:$676 sps:$4 sm:$0xff]  }
 0x8f0   : > { %11280 = vmatprep.subr.bf16.mxu0 %v14598_v46  ;;  %v14652_v46 = vld [vmem:[%s15028_s27 + $0x17a8] ss:$676 sps:$4 sm:$0xff]  }
 0x8f1   : > { %11319 = vmatpush1.bf16.xpose.msra.mxu1 %v14593_v22  ;;  %v14660_v22 = vld [vmem:[%s15028_s27 + $0x1cf4] ss:$676 sps:$4 sm:$0xff]  }
 0x8f2   : > { %11320 = vmatprep.subr.bf16.mxu1 %v14601_v47  ;;  %v2483_v47 = vld [vmem:[%s15028_s27 + $0x2230] sm:$0x33] }
 0x8f3   : > { %v12858_v60 = vcombine.low %v2483_v47, %v2483_v47 }
 0x8f7   : > { %11281 = vmatpush1.bf16.xpose.msra.mxu0 %v14596_v31  ;;  %v14655_v31 = vld [vmem:[%s15028_s27 + $0x1ce8] ss:$676 sps:$4 sm:$0xff]  }
 0x8f8   : > { %11282 = vmatprep.subr.bf16.mxu0 %v14604_v48  ;;  %v2484_v48 = vld [vmem:[%s15028_s27 + $0x2238] sm:$0x33] }
 0x8f9   : > { %11321 = vmatpush1.bf16.xpose.msra.mxu1 %v14599_v49  ;;  %v12859_v49 = vcombine.high %v2483_v47, %v2483_v47  ;;  %v12860_v2 = vcombine.low %v2484_v48, %v2484_v48 }
 0x8fa   : > { %11322 = vmatprep.subr.bf16.mxu1 %v14607_v50  ;;  %v14658_v50 = vld [vmem:[%s15028_s27 + $0x1cf0] ss:$676 sps:$4 sm:$0xff]  }
 0x8ff   : > { %11283 = vmatpush1.bf16.xpose.msra.mxu0 %v14602_v51  ;;  %v12861_v51 = vcombine.high %v2484_v48, %v2484_v48 }
 0x900   : > { %11284 = vmatprep.subr.bf16.mxu0 %v14610_v52  ;;  %v279_v52 = vld [vmem:[%s15022_s6 + $0x148] sm:$0xff] }
 0x901   : > { %11323 = vmatpush1.bf16.xpose.msra.mxu1 %v14605_v55 }
 0x902   : > { %11324 = vmatprep.subr.bf16.mxu1 %v14613_v57  ;;  %v1021_v57 = vcombine.high %v279_v52, %v279_v52 }
 0x904   : > { %v16825_v6 = vrot.slane %v1021_v57, %v15052_v16  ;;  %v14708_v57 = vld [vmem:[%s15028_s27 + $0x7e8] ss:$676 sps:$4 sm:$0xff]  }
 0x907   : > { %11285 = vmatpush1.bf16.xpose.msra.mxu0 %v14608_v1 }
 0x908   : > { %11286 = vmatprep.subr.bf16.mxu0 %v14616_v32 }
 0x909   : > { %11325 = vmatpush1.bf16.xpose.msra.mxu1 %v14611_v58 }
 0x90a   : > { %11326 = vmatprep.subr.bf16.mxu1 %v14619_v41 }
 0x90f   : > { %11287 = vmatpush1.bf16.xpose.msra.mxu0 %v14614_v43  ;;  %v16819_v43 = vrot.slane %v279_v52, %v15052_v16  ;;  %v14707_v52 = vld [vmem:[%s15028_s27 + $0x2a0] ss:$676 sps:$4 sm:$0xff]  }
 0x910   : > { %11288 = vmatprep.subr.bf16.mxu0 %v12855_v62 }
 0x911   : > { %v10990_v4 = vpop.f32.mrb[140].mxu0  ;;  %11327 = vmatpush1.bf16.xpose.msra.mxu1 %v14617_v63  ;;  %v14667_v63 = vld [vmem:[%s15028_s27 + $0x294] ss:$676 sps:$4 sm:$0xff]  }
 0x912   : > { %v10991_v14 = vadd.f32 %v10990_v4, %v16733_v24  ;;  %v10992_v45 = vpop.f32.mrb[141].mxu0  ;;  %11328 = vmatprep.subr.bf16.mxu1 %v12857_v0  ;;  %v14624_v24 = vld [vmem:[%s15028_s27 + $0x280] ss:$676 sps:$4 sm:$0xff]  }
 0x913   : > { %v10993_v7 = vpop.f32.mrb[142].mxu0  ;;  %v11030_v54 = vpop.f32.mrb[140].mxu1 }
 0x914   : > { %v16777_v10 = vadd.f32 %v11030_v54, %v10991_v14  ;;  %v10994_v11 = vpop.f32.mrb[143].mxu0  ;;  %v11032_v13 = vpop.f32.mrb[141].mxu1  ;;  %v14671_v14 = vld [vmem:[%s15028_s27 + $0x29c] ss:$676 sps:$4 sm:$0xff]   ;;  %v1036_v7 = vcombine.high %v16819_v43, %v16819_v43  ;;  %v1037_v54 = vcombine.high %v16825_v6, %v16825_v6 }
 0x915   : > { %v11033_v15 = vpop.f32.mrb[142].mxu1  ;;  %v1376_v11 = vpack.c.bf16 %v16781_v20, %v16781_v20  ;;  %v14669_v13 = vld [vmem:[%s15028_s27 + $0x298] ss:$676 sps:$4 sm:$0xff]   ;;  %v14680_v20 = vld [vmem:[%s15028_s27 + $0xd24] ss:$676 sps:$4 sm:$0xff]  }
 0x916   : > { %v11034_v59 = vpop.f32.mrb[143].mxu1  ;;  %v1379_v16 = vpack.c.bf16 %v1036_v7, %v1036_v7  ;;  %v14677_v15 = vld [vmem:[%s15028_s27 + $0x7e4] ss:$676 sps:$4 sm:$0xff]  }
 0x917   : > { %11289 = vmatpush1.bf16.xpose.msra.mxu0 %v12854_v9  ;;  %v1374_v9 = vpack.c.bf16 %v16775_v56, %v16775_v56  ;;  %v14672_v56 = vld [vmem:[%s15028_s27 + $0x7d8] ss:$676 sps:$4 sm:$0xff]   ;;  %v14683_v59 = vld [vmem:[%s15028_s27 + $0xd2c] ss:$676 sps:$4 sm:$0xff]  }
 0x918   : > { %11356 = vmatprep.subr.bf16.mxu0 %v14626_v12  ;;  %v14674_v12 = vld [vmem:[%s15028_s27 + $0x7dc] ss:$676 sps:$4 sm:$0xff]   ;;  %v11683_v7 = vld.sshfl [vmem:[%s15022_s6 + $0x150] sm:$0x3 pattern:$0x76325410] }
 0x919   : > { %11329 = vmatpush1.bf16.xpose.msra.mxu1 %v12856_v17  ;;  %v1381_v17 = vpack.c.bf16 %v1037_v54, %v1037_v54  ;;  %v1382_v54 = vpack.c.bf16 %v11683_v7, %v11683_v7 }
 0x91a   : > { %11396 = vmatprep.subr.bf16.mxu1 %v14630_v28  ;;  %v14675_v28 = vld [vmem:[%s15028_s27 + $0x7e0] ss:$676 sps:$4 sm:$0xff]  }
 0x91e   : > { %11309 = vmatmul.mubr.bf16.vlgmr.msra.gmra.mrb[156].mxu0 %v1370_v23  ;;  %v14681_v23 = vld [vmem:[%s15028_s27 + $0xd28] ss:$676 sps:$4 sm:$0xff]  }
 0x91f   : > { %11357 = vmatpush1.bf16.xpose.msra.mxu0 %v14624_v24  ;;  %11388 = vmatprep.mubr.bf16.mxu0 %v1375_v25  ;;  %v14689_v24 = vld [vmem:[%s15028_s27 + $0x1274] ss:$676 sps:$4 sm:$0xff]   ;;  %v14684_v25 = vld [vmem:[%s15028_s27 + $0x1268] ss:$676 sps:$4 sm:$0xff]  }
 0x920   : > { %11349 = vmatmul.mubr.bf16.vlgmr.msra.gmra.mrb[156].mxu1 %v1372_v26  ;;  %11358 = vmatprep.subr.bf16.mxu0 %v14633_v27  ;;  %v14692_v26 = vld [vmem:[%s15028_s27 + $0x17b4] ss:$676 sps:$4 sm:$0xff]  }
 0x921   : > { %11397 = vmatpush1.bf16.xpose.msra.mxu1 %v14628_v30  ;;  %11428 = vmatprep.mubr.bf16.mxu1 %v1377_v29  ;;  %v14687_v27 = vld [vmem:[%s15028_s27 + $0x1270] ss:$676 sps:$4 sm:$0xff]   ;;  %v14695_v30 = vld [vmem:[%s15028_s27 + $0x17bc] ss:$676 sps:$4 sm:$0xff]  }
 0x922   : > { %11398 = vmatprep.subr.bf16.mxu1 %v14636_v40  ;;  %v14690_v29 = vld [vmem:[%s15028_s27 + $0x17b0] ss:$676 sps:$4 sm:$0xff]   ;;  %v14698_v40 = vld [vmem:[%s15028_s27 + $0x1cfc] ss:$676 sps:$4 sm:$0xff]  }
 0x927   : > { %11359 = vmatpush1.bf16.xpose.msra.mxu0 %v14631_v5  ;;  %v14693_v5 = vld [vmem:[%s15028_s27 + $0x17b8] ss:$676 sps:$4 sm:$0xff]  }
 0x928   : > { %11360 = vmatprep.subr.bf16.mxu0 %v14639_v33  ;;  %v14701_v33 = vld [vmem:[%s15028_s27 + $0x1d04] ss:$676 sps:$4 sm:$0xff]  }
 0x929   : > { %11399 = vmatpush1.bf16.xpose.msra.mxu1 %v14634_v8  ;;  %v2485_v8 = vld [vmem:[%s15028_s27 + $0x2240] sm:$0x33] }
 0x92a   : > { %11400 = vmatprep.subr.bf16.mxu1 %v14642_v34  ;;  %v14696_v34 = vld [vmem:[%s15028_s27 + $0x1cf8] ss:$676 sps:$4 sm:$0xff]  }
 0x92f   : > { %11361 = vmatpush1.bf16.xpose.msra.mxu0 %v14637_v18  ;;  %v2486_v18 = vld [vmem:[%s15028_s27 + $0x2248] sm:$0x33] }
 0x930   : > { %11362 = vmatprep.subr.bf16.mxu0 %v14645_v35  ;;  %v12863_v35 = vcombine.high %v2485_v8, %v2485_v8 }
 0x931   : > { %11401 = vmatpush1.bf16.xpose.msra.mxu1 %v14640_v36  ;;  %v14699_v36 = vld [vmem:[%s15028_s27 + $0x1d00] ss:$676 sps:$4 sm:$0xff]  }
 0x932   : > { %11402 = vmatprep.subr.bf16.mxu1 %v14648_v37  ;;  %v12865_v37 = vcombine.high %v2486_v18, %v2486_v18 }
 0x937   : > { %11363 = vmatpush1.bf16.xpose.msra.mxu0 %v14643_v38 }
 0x938   : > { %11364 = vmatprep.subr.bf16.mxu0 %v14651_v39 }
 0x939   : > { %11403 = vmatpush1.bf16.xpose.msra.mxu1 %v14646_v42 }
 0x93a   : > { %11404 = vmatprep.subr.bf16.mxu1 %v14654_v44 }
 0x93f   : > { %11365 = vmatpush1.bf16.xpose.msra.mxu0 %v14649_v53 }
 0x940   : > { %11366 = vmatprep.subr.bf16.mxu0 %v14657_v19  ;;  %v12862_v19 = vcombine.low %v2485_v8, %v2485_v8 }
 0x941   : > { %11405 = vmatpush1.bf16.xpose.msra.mxu1 %v14652_v46 }
 0x942   : > { %11406 = vmatprep.subr.bf16.mxu1 %v14660_v22 }
 0x947   : > { %11367 = vmatpush1.bf16.xpose.msra.mxu0 %v14655_v31  ;;  %v12864_v31 = vcombine.low %v2486_v18, %v2486_v18 }
 0x948   : > { %11368 = vmatprep.subr.bf16.mxu0 %v12859_v49 }
 0x949   : > { %v11070_v55 = vpop.f32.mrb[144].mxu0  ;;  %11407 = vmatpush1.bf16.xpose.msra.mxu1 %v14658_v50  ;;  %v14853_v50 = vmov 0.0  }
 0x94a   : > { %v11071_v1 = vadd.f32 %v11070_v55, %v16777_v10  ;;  %v11072_v32 = vpop.f32.mrb[145].mxu0  ;;  %11408 = vmatprep.subr.bf16.mxu1 %v12861_v51  ;;  %v14665_v10 = vld [vmem:[%s15028_s27 + $0x290] ss:$676 sps:$4 sm:$0xff]   ;;  %v1378_v51 = vpack.c.bf16 %v16819_v43, %v16819_v43  ;;  %v1380_v55 = vpack.c.bf16 %v16825_v6, %v16825_v6 }
 0x94b   : > { %v11073_v58 = vpop.f32.mrb[146].mxu0  ;;  %v11110_v41 = vpop.f32.mrb[144].mxu1  ;;  %v14710_v32 = vld [vmem:[%s15028_s27 + $0x1278] ss:$676 sps:$4 sm:$0xff]  }
 0x94c   : > { %v16821_v61 = vadd.f32 %v11110_v41, %v11071_v1  ;;  %v11074_v62 = vpop.f32.mrb[147].mxu0  ;;  %v11112_v0 = vpop.f32.mrb[145].mxu1  ;;  %v14709_v1 = vld [vmem:[%s15028_s27 + $0xd30] ss:$676 sps:$4 sm:$0xff]   ;;  %v14711_v58 = vld [vmem:[%s15028_s27 + $0x17c0] ss:$676 sps:$4 sm:$0xff]  }
 0x94d   : > { %v11113_v4 = vpop.f32.mrb[146].mxu1  ;;  %v14712_v41 = vld [vmem:[%s15028_s27 + $0x1d08] ss:$676 sps:$4 sm:$0xff]   ;;  %v14713_v0 = vld [vmem:[%s15028_s27 + $0x2250] ss:$0 sps:$4 sm:$0x33]  }
 0x94e   : > { %v11114_v45 = vpop.f32.mrb[147].mxu1 }
 0x94f   : > { %11369 = vmatpush1.bf16.xpose.msra.mxu0 %v12858_v60 }
 0x950   : > { %11436 = vmatprep.subr.bf16.mxu0 %v14667_v63 }
 0x951   : > { %11409 = vmatpush1.bf16.xpose.msra.mxu1 %v12860_v2 }
 0x952   : > { %11476 = vmatprep.subr.bf16.mxu1 %v14671_v14 }
 0x956   : > { %11389 = vmatmul.mubr.bf16.vlgmr.msra.gmra.mrb[160].mxu0 %v1374_v9 }
 0x957   : > { %11437 = vmatpush1.bf16.xpose.msra.mxu0 %v14665_v10  ;;  %11468 = vmatprep.mubr.bf16.mxu0 %v1379_v16 }
 0x958   : > { %11429 = vmatmul.mubr.bf16.vlgmr.msra.gmra.mrb[160].mxu1 %v1376_v11  ;;  %11438 = vmatprep.subr.bf16.mxu0 %v14674_v12 }
 0x959   : > { %11477 = vmatpush1.bf16.xpose.msra.mxu1 %v14669_v13  ;;  %11508 = vmatprep.mubr.bf16.mxu1 %v1381_v17 }
 0x95a   : > { %11478 = vmatprep.subr.bf16.mxu1 %v14677_v15 }
 0x95f   : > { %11439 = vmatpush1.bf16.xpose.msra.mxu0 %v14672_v56 }
 0x960   : > { %11440 = vmatprep.subr.bf16.mxu0 %v14680_v20 }
 0x961   : > { %11479 = vmatpush1.bf16.xpose.msra.mxu1 %v14675_v28 }
 0x962   : > { %11480 = vmatprep.subr.bf16.mxu1 %v14683_v59 }
 0x967   : > { %11441 = vmatpush1.bf16.xpose.msra.mxu0 %v14678_v21 }
 0x968   : > { %11442 = vmatprep.subr.bf16.mxu0 %v14686_v3 }
 0x969   : > { %11481 = vmatpush1.bf16.xpose.msra.mxu1 %v14681_v23 }
 0x96a   : > { %11482 = vmatprep.subr.bf16.mxu1 %v14689_v24 }
 0x96f   : > { %11443 = vmatpush1.bf16.xpose.msra.mxu0 %v14684_v25 }
 0x970   : > { %11444 = vmatprep.subr.bf16.mxu0 %v14692_v26 }
 0x971   : > { %11483 = vmatpush1.bf16.xpose.msra.mxu1 %v14687_v27 }
 0x972   : > { %11484 = vmatprep.subr.bf16.mxu1 %v14695_v30 }
 0x977   : > { %11445 = vmatpush1.bf16.xpose.msra.mxu0 %v14690_v29 }
 0x978   : > { %11446 = vmatprep.subr.bf16.mxu0 %v14698_v40 }
 0x979   : > { %11485 = vmatpush1.bf16.xpose.msra.mxu1 %v14693_v5 }
 0x97a   : > { %11486 = vmatprep.subr.bf16.mxu1 %v14701_v33 }
 0x97f   : > { %11447 = vmatpush1.bf16.xpose.msra.mxu0 %v14696_v34 }
 0x980   : > { %11448 = vmatprep.subr.bf16.mxu0 %v12863_v35 }
 0x981   : > { %v11150_v38 = vpop.f32.mrb[148].mxu0  ;;  %11487 = vmatpush1.bf16.xpose.msra.mxu1 %v14699_v36 }
 0x982   : > { %v11151_v39 = vadd.f32 %v11150_v38, %v16821_v61  ;;  %v11152_v42 = vpop.f32.mrb[149].mxu0  ;;  %11488 = vmatprep.subr.bf16.mxu1 %v12865_v37  ;;  %v237_v38 = vld [vmem:[#allocation2] sm:$0x3] }
 0x983   : > { %v11153_v44 = vpop.f32.mrb[150].mxu0  ;;  %v11190_v53 = vpop.f32.mrb[148].mxu1 }
 0x984   : > { %v11191_v46 = vadd.f32 %v11190_v53, %v11151_v39  ;;  %v11154_v22 = vpop.f32.mrb[151].mxu0  ;;  %v11192_v47 = vpop.f32.mrb[149].mxu1 }
 0x985   : > { %v11193_v48 = vpop.f32.mrb[150].mxu1 }
 0x986   : > { %v11194_v49 = vpop.f32.mrb[151].mxu1 }
 0x987   : > { %11449 = vmatpush1.bf16.xpose.msra.mxu0 %v12862_v19 }
 0x988   : > { %12880 = vmatprep.subr.bf16.mxu0 %v14853_v50 }
 0x989   : > { %11489 = vmatpush1.bf16.xpose.msra.mxu1 %v12864_v31 }
 0x98e   : > { %11469 = vmatmul.mubr.bf16.vlgmr.msra.gmra.mrb[164].mxu0 %v1378_v51 }
 0x98f   : > { %12881 = vmatpush3.bf16.xpose.msra.mxu0 %v14707_v52  ;;  %12894 = vmatprep.mubr.msk.bf16.mxu0 %vm14854_vm1, %v14853_v50 }
 0x990   : > { %11509 = vmatmul.mubr.bf16.vlgmr.msra.gmra.mrb[164].mxu1 %v1380_v55  ;;  %12882 = vmatprep.subr.bf16.mxu0 %v14853_v50 }
 0x997   : > { %12883 = vmatpush3.bf16.xpose.msra.mxu0 %v14708_v57 }
 0x998   : > { %12884 = vmatprep.subr.bf16.mxu0 %v14853_v50 }
 0x99f   : > { %12885 = vmatpush3.bf16.xpose.msra.mxu0 %v14709_v1 }
 0x9a0   : > { %12886 = vmatprep.subr.bf16.mxu0 %v14853_v50 }
 0x9a7   : > { %12887 = vmatpush3.bf16.xpose.msra.mxu0 %v14710_v32 }
 0x9a8   : > { %12888 = vmatprep.subr.bf16.mxu0 %v14853_v50 }
 0x9af   : > { %12889 = vmatpush3.bf16.xpose.msra.mxu0 %v14711_v58 }
 0x9b0   : > { %12890 = vmatprep.subr.bf16.mxu0 %v14853_v50 }
 0x9b7   : > { %12891 = vmatpush3.bf16.xpose.msra.mxu0 %v14712_v41 }
 0x9b8   : > { %12892 = vmatprep.subr.bf16.mxu0 %v14853_v50 }
 0x9b9   : > { %v11230_v60 = vpop.f32.mrb[152].mxu0 }
 0x9ba   : > { %v11231_v43 = vadd.f32 %v11230_v60, %v11191_v46  ;;  %v11232_v61 = vpop.f32.mrb[153].mxu0 }
 0x9bb   : > { %v11233_v62 = vpop.f32.mrb[154].mxu0  ;;  %v11270_v63 = vpop.f32.mrb[152].mxu1 }
 0x9bc   : > { %v11271_v2 = vadd.f32 %v11270_v63, %v11231_v43  ;;  %v11234_v4 = vpop.f32.mrb[155].mxu0  ;;  %v11272_v6 = vpop.f32.mrb[153].mxu1 }
 0x9bd   : > { %v11273_v14 = vpop.f32.mrb[154].mxu1 }
 0x9be   : > { %v11274_v45 = vpop.f32.mrb[155].mxu1 }
 0x9bf   : > { %12893 = vmatpush3.bf16.xpose.msra.mxu0 %v14713_v0 }
 0x9c6   : > { %12895 = vmatmul.mubr.bf16.vlgmr.msra.gmra.mrb[168].mxu0 %v1382_v54 }
 0x9f1   : > { %v11310_v9 = vpop.f32.mrb[156].mxu0 }
 0x9f2   : > { %v11311_v10 = vadd.f32 %v11310_v9, %v11271_v2  ;;  %v11312_v16 = vpop.f32.mrb[157].mxu0 }
 0x9f3   : > { %v11313_v11 = vpop.f32.mrb[158].mxu0  ;;  %v11350_v12 = vpop.f32.mrb[156].mxu1 }
 0x9f4   : > { %v11351_v13 = vadd.f32 %v11350_v12, %v11311_v10  ;;  %v11314_v17 = vpop.f32.mrb[159].mxu0  ;;  %v11352_v15 = vpop.f32.mrb[157].mxu1 }
 0x9f5   : > { %v11353_v56 = vpop.f32.mrb[158].mxu1 }
 0x9f6   : > { %v11354_v20 = vpop.f32.mrb[159].mxu1 }
 0xa29   : > { %v11390_v28 = vpop.f32.mrb[160].mxu0 }
 0xa2a   : > { %v11391_v59 = vadd.f32 %v11390_v28, %v11351_v13  ;;  %v11392_v21 = vpop.f32.mrb[161].mxu0 }
 0xa2b   : > { %v11393_v3 = vpop.f32.mrb[162].mxu0  ;;  %v11430_v23 = vpop.f32.mrb[160].mxu1 }
 0xa2c   : > { %v11431_v24 = vadd.f32 %v11430_v23, %v11391_v59  ;;  %v11394_v25 = vpop.f32.mrb[163].mxu0  ;;  %v11432_v26 = vpop.f32.mrb[161].mxu1 }
 0xa2d   : > { %v11433_v27 = vpop.f32.mrb[162].mxu1 }
 0xa2e   : > { %v11434_v30 = vpop.f32.mrb[163].mxu1 }
 0xa61   : > { %v11470_v29 = vpop.f32.mrb[164].mxu0 }
 0xa62   : > { %v11471_v40 = vadd.f32 %v11470_v29, %v11431_v24  ;;  %v11472_v5 = vpop.f32.mrb[165].mxu0 }
 0xa63   : > { %v11473_v33 = vpop.f32.mrb[166].mxu0  ;;  %v11510_v8 = vpop.f32.mrb[164].mxu1 }
 0xa64   : > { %v11511_v34 = vadd.f32 %v11510_v8, %v11471_v40  ;;  %v11474_v18 = vpop.f32.mrb[167].mxu0  ;;  %v11512_v35 = vpop.f32.mrb[165].mxu1 }
 0xa65   : > { %v11513_v36 = vpop.f32.mrb[166].mxu1 }
 0xa66   : > { %v11514_v37 = vpop.f32.mrb[167].mxu1 }
 0xa98   : > { %11562 = sbr.rel (%p12867_p5) target bundleno = 2727 (0xaa7), region = 44 }
 0xa99   : > { %v11550_v39 = vpop.f32.mrb[168].mxu0 }
 0xa9a   : > { %v11551_v42 = vadd.f32 %v11550_v39, %v11511_v34  ;;  %v12896_v44 = vpop.f32.mrb[169].mxu0 }
 0xa9b   : > { %v11553_v53 = vpop.f32.mrb[170].mxu0 }
 0xa9c   : > { %v11556_v19 = vadd.f32 %v11551_v42, %v237_v38  ;;  %v12897_v46 = vpop.f32.mrb[171].mxu0 }
 0xa9e   : > { %11558 = vst.msk [vmem:[#allocation2] sm:$0x3] %vm11557_vm2, %v11556_v19 }
 0xaa5   : > { %v11563_v22 = vld [vmem:[#allocation2] sm:$0x3] }
 0xaa6   : > { %11564 = vst.msk [vmem:[%s15039_s22] sm:$0x3] %vm11557_vm2, %v11563_v22 }
 0xaa7 PF: > { %s18_s16 = sadd.s32 1, %s14844_s16   ;;  %s16907_s9 = smov %s14820_s10 }
 0xaa8   : > { %p15_p9 = scmp.ge.s32.totalorder %s18_s16, 6   ;;  %s16908_s10 = smov %s14824_s11 }
 0xaa9   : > { %s16909_s11 = smov %s14942_s30  ;;  %s16910_s12 = smov %s14836_s14 }
 0xaaa   : > { %s16911_s13 = smov %s14840_s15  ;;  %s16912_s14 = smov %s16915_s18 }
 0xaab   : > { %s16913_s15 = smov %s16919_s19  ;;  %17 = sbr.rel (!%p15_p9) target bundleno = 7 (0x7), region = 89 }
 0xab2   :  { %11584 = vsyncpa [#allocation4], 1 }
 0xab3   :  { %11586 = vsyncpa [#allocation4 + $0x1], 1 }
 0xab4   :  { %11587 = vsyncpa [#allocation6], 1 }
 0xab5   :  { %11589 = vsyncpa [#allocation6 + $0x1], 1 }

</bundles_post_ra>
